<compile_context>
chip_gen: v5e
topology: v5e:2x2
jax: 0.10.0
libtpu: 0.0.40
codegen_flags: <defaults>
</compile_context>

<pallas_src>
import jax
import jax.numpy as jnp
from jax import lax
from jax.experimental import pallas as pl
from jax.experimental.pallas import tpu as pltpu


# ----------------------------------------------------------------------------- kernel

def _fused_forward_kernel(alpha_ref,               # SMEM (4,) PReLU alphas
                          x_ref,                   # (tb, 28, 28) f32
                          wb1_ref, b1l_ref,        # (168, 1536) bf16, (1, 1536) f32
                          wb2_ref, b2l_ref,        # (1920, 512) bf16, (1, 512) f32
                          w1p_ref, bf1_ref,        # (1024, 256) bf16, (1, 256) f32
                          wf2_ref, bf2_ref,        # (256, 256) bf16, (1, 256) f32
                          wf3_ref, bf3_ref,        # (256, 2) bf16, (1, 2) f32
                          o_ref,                   # (1, tb, 2) f32
                          a1_sc,                   # VMEM (tb, 12, 384) bf16 : pooled conv1
                          c2_sc):                  # VMEM (tb, 8, 512)  bf16 : conv2 pre-pool
    tb = x_ref.shape[0]
    f32 = jnp.float32
    bf16 = jnp.bfloat16

    # ---- conv1 (1->32, 5x5) + PReLU + 2x2 maxpool, fully fused ---------------------------
    # One banded MXU matmul per pooled output row: LHS row (b, ph) is the concatenation of the
    # 6 input rows 2*ph .. 2*ph+5; RHS columns are ordered (q, p, cout, pw) where q/p are the
    # row/col parities of the 2x2 pool window, so the pool is two lane-half maxes and the
    # full-resolution conv1 tensor never exists (no scratch round trip).
    lhs1 = jnp.concatenate([x_ref[:, pl.ds(r, 12, 2), :] for r in range(6)], axis=2)
    lhs1 = lhs1.reshape(tb * 12, 6 * 28).astype(bf16)
    c1 = jnp.dot(lhs1, wb1_ref[...], preferred_element_type=f32)          # (tb*12, 1536)
    c1 = c1 + b1l_ref[...]
    c1 = jnp.where(c1 >= 0.0, c1, alpha_ref[0] * c1)                      # PReLU pre-pool (exact)
    m1 = jnp.maximum(c1[:, 0:768], c1[:, 768:1536])                       # pool over row parity
    m1 = jnp.maximum(m1[:, 0:384], m1[:, 384:768])                        # pool over col parity
    a1_sc[...] = m1.reshape(tb, 12, 384).astype(bf16)                     # lanes = ci*12 + w'

    # ---- conv2 (32->64, 5x5) + PReLU as one banded MXU matmul over (kh, ci, w') -----------
    lhs2 = jnp.concatenate([a1_sc[:, kh:kh + 8, :] for kh in range(5)], axis=2)   # (tb,8,1920)
    lhs2 = lhs2.reshape(tb * 8, 5 * 384)
    c2 = jnp.dot(lhs2, wb2_ref[...], preferred_element_type=f32)          # (tb*8, 512)
    c2 = c2 + b2l_ref[...]
    c2 = jnp.where(c2 >= 0.0, c2, alpha_ref[1] * c2)
    c2_sc[...] = c2.reshape(tb, 8, 512).astype(bf16)                      # lanes = p*256+co*4+pw

    # ---- 2x2 maxpool of conv2 + fc1 + PReLU (single K=1024 matmul) ------------------------
    pooled = []
    for ph in range(4):
        rowmax = jnp.maximum(c2_sc[:, 2 * ph, :], c2_sc[:, 2 * ph + 1, :])   # H-pool (tb, 512)
        pooled.append(jnp.maximum(rowmax[:, 0:256], rowmax[:, 256:512]))      # W-pool (tb, 256)
    hin = jnp.concatenate(pooled, axis=1)                                    # (tb, 1024) lane-aligned
    h = jnp.dot(hin, w1p_ref[...], preferred_element_type=f32) + bf1_ref[...]
    h = jnp.where(h >= 0.0, h, alpha_ref[2] * h)

    # ---- fc2 + PReLU -----------------------------------------------------------------------
    h = jnp.dot(h.astype(bf16), wf2_ref[...], preferred_element_type=f32) + bf2_ref[...]
    h = jnp.where(h >= 0.0, h, alpha_ref[3] * h)

    # ---- fc3 + L2 normalisation (rsqrt on the EUP; eps guards the all-zero embedding) ------
    e = jnp.dot(h.astype(bf16), wf3_ref[...], preferred_element_type=f32) + bf3_ref[...]
    o_ref[...] = (e * lax.rsqrt(jnp.sum(e * e, axis=1, keepdims=True) + 1e-12))[None]


# ----------------------------------------------------------------------------- weight packing

def _conv1_pool_fused_weight(w):
    """Conv1 weight (32,1,5,5) -> pool-fused banded RHS of shape (6*28, 2*2*32*12) bf16.

    Row = r*28 + w'                    (r: row offset inside the 6-row slab, w': input column)
    Col = q*768 + p*384 + co*12 + pw   (q/p: row/col parity of the 2x2 pool, pw: pooled column)
    Val = w[co, 0, r-q, w'-(2*pw+p)] when both kernel offsets are in [0,5), else 0.
    """
    cout, _, nkh, nkw = w.shape
    w2 = w[:, 0]                                             # (co, kh, kw)
    r = jnp.arange(6)
    q = jnp.arange(2)
    kh = r[:, None] - q[None, :]                             # (6, 2)
    kh_ok = (kh >= 0) & (kh < nkh)
    kh_c = jnp.clip(kh, 0, nkh - 1)
    wp = jnp.arange(28)
    p = jnp.arange(2)
    pw = jnp.arange(12)
    ow = 2 * pw[None, :] + p[:, None]                        # (2, 12)
    kw = wp[:, None, None] - ow[None, :, :]                  # (28, 2, 12)
    kw_ok = (kw >= 0) & (kw < nkw)
    kw_c = jnp.clip(kw, 0, nkw - 1)
    val = w2[:, kh_c[:, :, None, None, None], kw_c[None, None, :, :, :]]   # (co,6,2,28,2,12)
    mask = (kh_ok[:, :, None, None, None] & kw_ok[None, None, :, :, :]).astype(w.dtype)
    band = val * mask[None]
    band = jnp.transpose(band, (1, 3, 2, 4, 0, 5))           # (r, w', q, p, co, pw)
    return band.reshape(6 * 28, 2 * 2 * cout * 12).astype(jnp.bfloat16)


def _conv1_lane_bias(b):
    """Conv1 bias (32,) -> (1, 2*2*32*12) f32 in the same (q, p, co, pw) lane order."""
    cout = b.shape[0]
    return jnp.broadcast_to(b[None, None, :, None],
                            (2, 2, cout, 12)).reshape(1, 2 * 2 * cout * 12).astype(jnp.float32)


def _banded_conv_weight(w, in_w, out_w):
    """Conv weight (Cout,Cin,5,5) -> banded matmul RHS (5*Cin*in_w, 2*Cout*(out_w//2)) bf16.

    row = kh*(Cin*in_w) + ci*in_w + w'
    col = p*(Cout*out_w//2) + co*(out_w//2) + pw   with ow = 2*pw + p
    val = w[co, ci, kh, w'-ow]  if 0 <= w'-ow < 5 else 0.
    The (p, co, pw) column order makes the 2x2 W-pool a max of two contiguous lane halves.
    """
    cout, cin, nkh, nkw = w.shape
    wp = jnp.arange(in_w)
    ow = jnp.arange(out_w)
    kw = wp[:, None] - ow[None, :]                           # (in_w, out_w)
    valid = ((kw >= 0) & (kw < nkw)).astype(w.dtype)
    kwc = jnp.clip(kw, 0, nkw - 1)
    wt = jnp.transpose(w, (2, 1, 3, 0))                      # (kh, ci, kw, co)
    band = wt[:, :, kwc, :] * valid[None, None, :, :, None]  # (kh, ci, w', ow, co)
    pwn = out_w // 2
    band = band.reshape(nkh, cin, in_w, pwn, 2, cout)        # ow -> (pw, p)
    band = jnp.transpose(band, (0, 1, 2, 4, 5, 3))           # (kh, ci, w', p, co, pw)
    return band.reshape(nkh * cin * in_w, 2 * cout * pwn).astype(jnp.bfloat16)


def _lane_bias(b, pwn):
    """Per-channel bias -> (1, 2*Cout*pwn) f32 in the same (p, co, pw) lane order."""
    cout = b.shape[0]
    return jnp.broadcast_to(b[None, :, None], (2, cout, pwn)).reshape(1, 2 * cout * pwn)


def init_params(key):
    """PyTorch-layout parameters (same init / layout conventions as the reference module)."""
    ks = jax.random.split(key, 10)

    def u(k, shape, fan_in):
        bound = 1.0 / jnp.sqrt(jnp.float32(fan_in))
        return jax.random.uniform(k, shape, jnp.float32, -bound, bound)

    return {
        'conv1_w': u(ks[0], (32, 1, 5, 5), 1 * 5 * 5),
        'conv1_b': u(ks[1], (32,), 1 * 5 * 5),
        'prelu1': jnp.array([0.25], jnp.float32),
        'conv2_w': u(ks[2], (64, 32, 5, 5), 32 * 5 * 5),
        'conv2_b': u(ks[3], (64,), 32 * 5 * 5),
        'prelu2': jnp.array([0.25], jnp.float32),
        'fc1_w': u(ks[4], (64 * 4 * 4, 256), 64 * 4 * 4),   # rows in PyTorch c*16+h*4+w order
        'fc1_b': u(ks[5], (256,), 64 * 4 * 4),
        'prelu3': jnp.array([0.25], jnp.float32),
        'fc2_w': u(ks[6], (256, 256), 256),
        'fc2_b': u(ks[7], (256,), 256),
        'prelu4': jnp.array([0.25], jnp.float32),
        'fc3_w': u(ks[8], (256, 2), 256),
        'fc3_b': u(ks[9], (2,), 256),
    }


def prepare_params(params):
    """One-time conversion of PyTorch-layout params into the fused-kernel packed format."""
    bf16 = jnp.bfloat16
    # fc1 rows are PyTorch-flatten ordered (c, h, w); regroup as (h, c, w) so they line up with
    # the kernel's fc1 LHS lanes (pooled conv2 rows concatenated: lane = h*256 + c*4 + w).
    w1p = (params['fc1_w'].reshape(64, 4, 4, 256)   # (c, h, w, out)
           .transpose(1, 0, 2, 3)                   # (h, c, w, out)
           .reshape(1024, 256).astype(bf16))
    return {
        'alphas': jnp.concatenate([params['prelu1'], params['prelu2'],
                                   params['prelu3'], params['prelu4']]).astype(jnp.float32),
        'wb1': _conv1_pool_fused_weight(params['conv1_w']),      # (168, 1536) bf16
        'b1l': _conv1_lane_bias(params['conv1_b']),              # (1, 1536) f32
        'wb2': _banded_conv_weight(params['conv2_w'], 12, 8),    # (1920, 512) bf16
        'b2l': _lane_bias(params['conv2_b'], 4),                 # (1, 512) f32
        'w1p': w1p,                                              # (1024, 256) bf16
        'bf1': params['fc1_b'].reshape(1, 256),
        'wf2': params['fc2_w'].astype(bf16),
        'bf2': params['fc2_b'].reshape(1, 256),
        'wf3': params['fc3_w'].astype(bf16),
        'bf3': params['fc3_b'].reshape(1, 2),
    }


# ----------------------------------------------------------------------------- forward

@jax.jit
def simple_embedding_net_l2(prepared, x):
    """x: (N, 1, 28, 28) f32 NCHW (matches PyTorch). Returns (N, 2) L2-normalised embeddings."""
    n = x.shape[0]
    xs = x.reshape(n, 28, 28)
    # Batch tile: keep >=2 grid steps whenever n >= 2 so the "parallel" batch axis shards
    # across both v7x TensorCores and the input DMA has a step to prefetch against; cap at 32
    # so the working set stays comfortably inside the 32 MiB scoped-VMEM budget everywhere.
    tb = max(1, min(32, (n + 1) // 2))
    npad = ((n + tb - 1) // tb) * tb
    if npad != n:
        xs = jnp.pad(xs, ((0, npad - n), (0, 0), (0, 0)))
    g = npad // tb

    out = pl.pallas_call(
        _fused_forward_kernel,
        out_shape=jax.ShapeDtypeStruct((g, tb, 2), jnp.float32),
        grid_spec=pltpu.PrefetchScalarGridSpec(
            num_scalar_prefetch=0,
            grid=(g,),
            in_specs=[
                pl.BlockSpec(memory_space=pltpu.MemorySpace.SMEM),    # PReLU alphas (4,)
                pl.BlockSpec((tb, 28, 28), lambda i: (i, 0, 0)),      # images
                pl.BlockSpec((168, 1536), lambda i: (0, 0)),          # conv1 pool-fused weight
                pl.BlockSpec((1, 1536), lambda i: (0, 0)),            # conv1 lane bias
                pl.BlockSpec((1920, 512), lambda i: (0, 0)),          # conv2 banded weight
                pl.BlockSpec((1, 512), lambda i: (0, 0)),             # conv2 lane bias
                pl.BlockSpec((1024, 256), lambda i: (0, 0)),          # fc1 (pool-folded) weight
                pl.BlockSpec((1, 256), lambda i: (0, 0)),             # fc1 bias
                pl.BlockSpec((256, 256), lambda i: (0, 0)),           # fc2 weight
                pl.BlockSpec((1, 256), lambda i: (0, 0)),             # fc2 bias
                pl.BlockSpec((256, 2), lambda i: (0, 0)),             # fc3 weight
                pl.BlockSpec((1, 2), lambda i: (0, 0)),               # fc3 bias
            ],
            out_specs=pl.BlockSpec((1, tb, 2), lambda i: (i, 0, 0)),
            scratch_shapes=[
                pltpu.VMEM((tb, 12, 384), jnp.bfloat16),   # pooled conv1 activations
                pltpu.VMEM((tb, 8, 512), jnp.bfloat16),    # conv2 pre-pool activations
            ]),
        compiler_params=pltpu.CompilerParams(
            dimension_semantics=("parallel",),
            vmem_limit_bytes=32 * 1024 * 1024),
    )(prepared['alphas'], xs,
      prepared['wb1'], prepared['b1l'], prepared['wb2'], prepared['b2l'],
      prepared['w1p'], prepared['bf1'], prepared['wf2'], prepared['bf2'],
      prepared['wf3'], prepared['bf3'])
    return out.reshape(npad, 2)[:n]


# ----------------------------------------------------------------------------- reference

def _reference_forward(params, x):
    """Pure-JAX/XLA forward mirroring the kernel's bf16-operand / f32-accumulate matmuls."""
    bf16, f32 = jnp.bfloat16, jnp.float32

    def prelu(v, a):
        return jnp.where(v >= 0.0, v, a * v)

    def conv(v, w):
        return lax.conv_general_dilated(
            v.astype(bf16), w.astype(bf16), window_strides=(1, 1), padding='VALID',
            dimension_numbers=('NCHW', 'OIHW', 'NCHW'), preferred_element_type=f32)

    def pool2x2(v):
        return lax.reduce_window(v, jnp.array(-jnp.inf, v.dtype), lax.max,
                                 (1, 1, 2, 2), (1, 1, 2, 2), 'VALID')

    h = conv(x, params['conv1_w']) + params['conv1_b'][None, :, None, None]
    h = pool2x2(prelu(h, params['prelu1'][0])).astype(bf16)
    h = conv(h, params['conv2_w']) + params['conv2_b'][None, :, None, None]
    h = pool2x2(prelu(h, params['prelu2'][0])).astype(bf16)          # (N, 64, 4, 4)
    h = h.reshape(h.shape[0], -1)                                    # PyTorch (c, h, w) flatten
    h = jnp.dot(h, params['fc1_w'].astype(bf16), preferred_element_type=f32) + params['fc1_b']
    h = prelu(h, params['prelu3'][0])
    h = jnp.dot(h.astype(bf16), params['fc2_w'].astype(bf16),
                preferred_element_type=f32) + params['fc2_b']
    h = prelu(h, params['prelu4'][0])
    e = jnp.dot(h.astype(bf16), params['fc3_w'].astype(bf16),
                preferred_element_type=f32) + params['fc3_b']
    return e * lax.rsqrt(jnp.sum(e * e, axis=1, keepdims=True) + 1e-12)


if __name__ == "__main__":
    key = jax.random.PRNGKey(0)
    pkey, xkey = jax.random.split(key)
    params = init_params(pkey)
    prepared = prepare_params(params)

    # 28x28 single-channel input is implied by the 64*4*4 fc input size (MNIST-style).
    x = jax.random.normal(xkey, (2, 1, 28, 28), jnp.float32)

    out = jax.block_until_ready(simple_embedding_net_l2(prepared, x))
    assert out.shape == (2, 2), out.shape

    # Structural correctness check against a pure-JAX/XLA reference that applies the same
    # bf16-operand / f32-accumulate quantisation as the kernel.
    ref = jax.block_until_ready(_reference_forward(params, x))
    max_err = float(jnp.max(jnp.abs(out - ref)))
    assert max_err < 2e-2, (max_err, out, ref)

    norms = jnp.sqrt(jnp.sum(out * out, axis=1))
    assert bool(jnp.all(jnp.abs(norms - 1.0) < 1e-3)), norms
    print("KERNEL_OK")
</pallas_src>

<mosaic_0001>
module attributes {stable_mosaic.version = 11 : i64} {
  func.func @_fused_forward_kernel(%arg0: i32, %arg1: memref<4xf32, #tpu.memory_space<smem>>, %arg2: memref<1x28x28xf32, #tpu.memory_space<vmem>>, %arg3: memref<168x1536xbf16, #tpu.memory_space<vmem>>, %arg4: memref<1x1536xf32, #tpu.memory_space<vmem>>, %arg5: memref<1920x512xbf16, #tpu.memory_space<vmem>>, %arg6: memref<1x512xf32, #tpu.memory_space<vmem>>, %arg7: memref<1024x256xbf16, #tpu.memory_space<vmem>>, %arg8: memref<1x256xf32, #tpu.memory_space<vmem>>, %arg9: memref<256x256xbf16, #tpu.memory_space<vmem>>, %arg10: memref<1x256xf32, #tpu.memory_space<vmem>>, %arg11: memref<256x2xbf16, #tpu.memory_space<vmem>>, %arg12: memref<1x2xf32, #tpu.memory_space<vmem>>, %arg13: memref<1x1x2xf32, #tpu.memory_space<vmem>>, %arg14: memref<1x12x384xbf16, #tpu.memory_space<vmem>>, %arg15: memref<1x8x512xbf16, #tpu.memory_space<vmem>>) attributes {dimension_semantics = [#tpu.dimension_semantics<parallel>], iteration_bounds = array<i64: 2>, scalar_prefetch = 0 : i64, scratch_operands = 2 : i64, tpu.core_type = #tpu.core_type<tc>, window_params = [{transform_indices = @transform_0, window_bounds = array<i64: 4>}, {transform_indices = @transform_1, window_bounds = array<i64: 1, 28, 28>}, {pipeline_mode = #tpu.pipeline_mode<synchronous>, transform_indices = @transform_2, window_bounds = array<i64: 168, 1536>}, {pipeline_mode = #tpu.pipeline_mode<synchronous>, transform_indices = @transform_3, window_bounds = array<i64: 1, 1536>}, {pipeline_mode = #tpu.pipeline_mode<synchronous>, transform_indices = @transform_4, window_bounds = array<i64: 1920, 512>}, {pipeline_mode = #tpu.pipeline_mode<synchronous>, transform_indices = @transform_5, window_bounds = array<i64: 1, 512>}, {pipeline_mode = #tpu.pipeline_mode<synchronous>, transform_indices = @transform_6, window_bounds = array<i64: 1024, 256>}, {pipeline_mode = #tpu.pipeline_mode<synchronous>, transform_indices = @transform_7, window_bounds = array<i64: 1, 256>}, {pipeline_mode = #tpu.pipeline_mode<synchronous>, transform_indices = @transform_8, window_bounds = array<i64: 256, 256>}, {pipeline_mode = #tpu.pipeline_mode<synchronous>, transform_indices = @transform_9, window_bounds = array<i64: 1, 256>}, {pipeline_mode = #tpu.pipeline_mode<synchronous>, transform_indices = @transform_10, window_bounds = array<i64: 256, 2>}, {pipeline_mode = #tpu.pipeline_mode<synchronous>, transform_indices = @transform_11, window_bounds = array<i64: 1, 2>}, {transform_indices = @transform_12, window_bounds = array<i64: 1, 1, 2>}]} {
    %c0 = arith.constant 0 : index
    %c0_0 = arith.constant 0 : index
    %c0_1 = arith.constant 0 : index
    %0 = tpu.strided_load %arg2[%c0, %c0_0, %c0_1] {strides = array<i32: 1, 2, 1>} : memref<1x28x28xf32, #tpu.memory_space<vmem>>, vector<1x12x28xf32>
    %c0_2 = arith.constant 0 : index
    %c1 = arith.constant 1 : index
    %c0_3 = arith.constant 0 : index
    %1 = tpu.strided_load %arg2[%c0_2, %c1, %c0_3] {strides = array<i32: 1, 2, 1>} : memref<1x28x28xf32, #tpu.memory_space<vmem>>, vector<1x12x28xf32>
    %c0_4 = arith.constant 0 : index
    %c2 = arith.constant 2 : index
    %c0_5 = arith.constant 0 : index
    %2 = tpu.strided_load %arg2[%c0_4, %c2, %c0_5] {strides = array<i32: 1, 2, 1>} : memref<1x28x28xf32, #tpu.memory_space<vmem>>, vector<1x12x28xf32>
    %c0_6 = arith.constant 0 : index
    %c3 = arith.constant 3 : index
    %c0_7 = arith.constant 0 : index
    %3 = tpu.strided_load %arg2[%c0_6, %c3, %c0_7] {strides = array<i32: 1, 2, 1>} : memref<1x28x28xf32, #tpu.memory_space<vmem>>, vector<1x12x28xf32>
    %c0_8 = arith.constant 0 : index
    %c4 = arith.constant 4 : index
    %c0_9 = arith.constant 0 : index
    %4 = tpu.strided_load %arg2[%c0_8, %c4, %c0_9] {strides = array<i32: 1, 2, 1>} : memref<1x28x28xf32, #tpu.memory_space<vmem>>, vector<1x12x28xf32>
    %c0_10 = arith.constant 0 : index
    %c5 = arith.constant 5 : index
    %c0_11 = arith.constant 0 : index
    %5 = tpu.strided_load %arg2[%c0_10, %c5, %c0_11] {strides = array<i32: 1, 2, 1>} : memref<1x28x28xf32, #tpu.memory_space<vmem>>, vector<1x12x28xf32>
    %6 = tpu.concatenate %0, %1, %2, %3, %4, %5 in 2 : vector<1x12x28xf32>, vector<1x12x28xf32>, vector<1x12x28xf32>, vector<1x12x28xf32>, vector<1x12x28xf32>, vector<1x12x28xf32> -> vector<1x12x168xf32>
    %7 = vector.shape_cast %6 : vector<1x12x168xf32> to vector<12x168xf32>
    %8 = arith.truncf %7 : vector<12x168xf32> to vector<12x168xbf16>
    %c0_12 = arith.constant 0 : index
    %c0_13 = arith.constant 0 : index
    %9 = vector.load %arg3[%c0_12, %c0_13] : memref<168x1536xbf16, #tpu.memory_space<vmem>>, vector<168x1536xbf16>
    %cst = arith.constant dense<0.000000e+00> : vector<12x1536xf32>
    %10 = tpu.matmul %8, %9, %cst {dimension_numbers = #tpu.dot_dimension_numbers<[1], [0], [0], [1], [0, 0, 1, 1], [], []>} : vector<12x168xbf16>, vector<168x1536xbf16>, vector<12x1536xf32> -> vector<12x1536xf32>
    %c0_14 = arith.constant 0 : index
    %c0_15 = arith.constant 0 : index
    %11 = vector.load %arg4[%c0_14, %c0_15] : memref<1x1536xf32, #tpu.memory_space<vmem>>, vector<1x1536xf32>
    %12 = vector.broadcast %11 : vector<1x1536xf32> to vector<12x1536xf32>
    %13 = arith.addf %10, %12 : vector<12x1536xf32>
    %cst_16 = arith.constant 0.000000e+00 : f32
    %14 = vector.broadcast %cst_16 : f32 to vector<12x1536xf32>
    %15 = arith.cmpf oge, %13, %14 : vector<12x1536xf32>
    %c0_17 = arith.constant 0 : index
    %16 = memref.load %arg1[%c0_17] : memref<4xf32, #tpu.memory_space<smem>>
    %17 = vector.broadcast %16 : f32 to vector<12x1536xf32>
    %18 = arith.mulf %17, %13 : vector<12x1536xf32>
    %19 = arith.select %15, %13, %18 : vector<12x1536xi1>, vector<12x1536xf32>
    %20 = vector.extract_strided_slice %19 {offsets = [0, 0], sizes = [12, 768], strides = [1, 1]} : vector<12x1536xf32> to vector<12x768xf32>
    %21 = vector.extract_strided_slice %19 {offsets = [0, 768], sizes = [12, 768], strides = [1, 1]} : vector<12x1536xf32> to vector<12x768xf32>
    %22 = arith.maximumf %20, %21 : vector<12x768xf32>
    %23 = vector.extract_strided_slice %22 {offsets = [0, 0], sizes = [12, 384], strides = [1, 1]} : vector<12x768xf32> to vector<12x384xf32>
    %24 = vector.extract_strided_slice %22 {offsets = [0, 384], sizes = [12, 384], strides = [1, 1]} : vector<12x768xf32> to vector<12x384xf32>
    %25 = arith.maximumf %23, %24 : vector<12x384xf32>
    %26 = vector.shape_cast %25 : vector<12x384xf32> to vector<1x12x384xf32>
    %27 = arith.truncf %26 : vector<1x12x384xf32> to vector<1x12x384xbf16>
    %c0_18 = arith.constant 0 : index
    %c0_19 = arith.constant 0 : index
    %c0_20 = arith.constant 0 : index
    %28 = vector.load %arg14[%c0_18, %c0_19, %c0_20] : memref<1x12x384xbf16, #tpu.memory_space<vmem>>, vector<1x12x384xbf16>
    tpu.vector_store %arg14[%c0_18, %c0_19, %c0_20], %27 {strides = array<i32>} : memref<1x12x384xbf16, #tpu.memory_space<vmem>>, vector<1x12x384xbf16>,
    %c0_21 = arith.constant 0 : index
    %c0_22 = arith.constant 0 : index
    %c0_23 = arith.constant 0 : index
    %29 = vector.load %arg14[%c0_21, %c0_22, %c0_23] : memref<1x12x384xbf16, #tpu.memory_space<vmem>>, vector<1x8x384xbf16>
    %c0_24 = arith.constant 0 : index
    %c1_25 = arith.constant 1 : index
    %c0_26 = arith.constant 0 : index
    %30 = vector.load %arg14[%c0_24, %c1_25, %c0_26] : memref<1x12x384xbf16, #tpu.memory_space<vmem>>, vector<1x8x384xbf16>
    %c0_27 = arith.constant 0 : index
    %c2_28 = arith.constant 2 : index
    %c0_29 = arith.constant 0 : index
    %31 = vector.load %arg14[%c0_27, %c2_28, %c0_29] : memref<1x12x384xbf16, #tpu.memory_space<vmem>>, vector<1x8x384xbf16>
    %c0_30 = arith.constant 0 : index
    %c3_31 = arith.constant 3 : index
    %c0_32 = arith.constant 0 : index
    %32 = vector.load %arg14[%c0_30, %c3_31, %c0_32] : memref<1x12x384xbf16, #tpu.memory_space<vmem>>, vector<1x8x384xbf16>
    %c0_33 = arith.constant 0 : index
    %c4_34 = arith.constant 4 : index
    %c0_35 = arith.constant 0 : index
    %33 = vector.load %arg14[%c0_33, %c4_34, %c0_35] : memref<1x12x384xbf16, #tpu.memory_space<vmem>>, vector<1x8x384xbf16>
    %34 = tpu.concatenate %29, %30, %31, %32, %33 in 2 : vector<1x8x384xbf16>, vector<1x8x384xbf16>, vector<1x8x384xbf16>, vector<1x8x384xbf16>, vector<1x8x384xbf16> -> vector<1x8x1920xbf16>
    %35 = vector.shape_cast %34 : vector<1x8x1920xbf16> to vector<8x1920xbf16>
    %c0_36 = arith.constant 0 : index
    %c0_37 = arith.constant 0 : index
    %36 = vector.load %arg5[%c0_36, %c0_37] : memref<1920x512xbf16, #tpu.memory_space<vmem>>, vector<1920x512xbf16>
    %cst_38 = arith.constant dense<0.000000e+00> : vector<8x512xf32>
    %37 = tpu.matmul %35, %36, %cst_38 {dimension_numbers = #tpu.dot_dimension_numbers<[1], [0], [0], [1], [0, 0, 1, 1], [], []>} : vector<8x1920xbf16>, vector<1920x512xbf16>, vector<8x512xf32> -> vector<8x512xf32>
    %c0_39 = arith.constant 0 : index
    %c0_40 = arith.constant 0 : index
    %38 = vector.load %arg6[%c0_39, %c0_40] : memref<1x512xf32, #tpu.memory_space<vmem>>, vector<1x512xf32>
    %39 = vector.broadcast %38 : vector<1x512xf32> to vector<8x512xf32>
    %40 = arith.addf %37, %39 : vector<8x512xf32>
    %cst_41 = arith.constant 0.000000e+00 : f32
    %41 = vector.broadcast %cst_41 : f32 to vector<8x512xf32>
    %42 = arith.cmpf oge, %40, %41 : vector<8x512xf32>
    %c1_42 = arith.constant 1 : index
    %43 = memref.load %arg1[%c1_42] : memref<4xf32, #tpu.memory_space<smem>>
    %44 = vector.broadcast %43 : f32 to vector<8x512xf32>
    %45 = arith.mulf %44, %40 : vector<8x512xf32>
    %46 = arith.select %42, %40, %45 : vector<8x512xi1>, vector<8x512xf32>
    %47 = vector.shape_cast %46 : vector<8x512xf32> to vector<1x8x512xf32>
    %48 = arith.truncf %47 : vector<1x8x512xf32> to vector<1x8x512xbf16>
    %c0_43 = arith.constant 0 : index
    %c0_44 = arith.constant 0 : index
    %c0_45 = arith.constant 0 : index
    %49 = vector.load %arg15[%c0_43, %c0_44, %c0_45] : memref<1x8x512xbf16, #tpu.memory_space<vmem>>, vector<1x8x512xbf16>
    tpu.vector_store %arg15[%c0_43, %c0_44, %c0_45], %48 {strides = array<i32>} : memref<1x8x512xbf16, #tpu.memory_space<vmem>>, vector<1x8x512xbf16>,
    %c0_46 = arith.constant 0 : index
    %c0_47 = arith.constant 0 : index
    %c0_48 = arith.constant 0 : index
    %50 = vector.load %arg15[%c0_46, %c0_47, %c0_48] : memref<1x8x512xbf16, #tpu.memory_space<vmem>>, vector<1x1x512xbf16>
    %51 = vector.shape_cast %50 : vector<1x1x512xbf16> to vector<1x512xbf16>
    %c0_49 = arith.constant 0 : index
    %c1_50 = arith.constant 1 : index
    %c0_51 = arith.constant 0 : index
    %52 = vector.load %arg15[%c0_49, %c1_50, %c0_51] : memref<1x8x512xbf16, #tpu.memory_space<vmem>>, vector<1x1x512xbf16>
    %53 = vector.shape_cast %52 : vector<1x1x512xbf16> to vector<1x512xbf16>
    %54 = arith.maximumf %51, %53 : vector<1x512xbf16>
    %55 = vector.extract_strided_slice %54 {offsets = [0, 0], sizes = [1, 256], strides = [1, 1]} : vector<1x512xbf16> to vector<1x256xbf16>
    %56 = vector.extract_strided_slice %54 {offsets = [0, 256], sizes = [1, 256], strides = [1, 1]} : vector<1x512xbf16> to vector<1x256xbf16>
    %57 = arith.maximumf %55, %56 : vector<1x256xbf16>
    %c0_52 = arith.constant 0 : index
    %c2_53 = arith.constant 2 : index
    %c0_54 = arith.constant 0 : index
    %58 = vector.load %arg15[%c0_52, %c2_53, %c0_54] : memref<1x8x512xbf16, #tpu.memory_space<vmem>>, vector<1x1x512xbf16>
    %59 = vector.shape_cast %58 : vector<1x1x512xbf16> to vector<1x512xbf16>
    %c0_55 = arith.constant 0 : index
    %c3_56 = arith.constant 3 : index
    %c0_57 = arith.constant 0 : index
    %60 = vector.load %arg15[%c0_55, %c3_56, %c0_57] : memref<1x8x512xbf16, #tpu.memory_space<vmem>>, vector<1x1x512xbf16>
    %61 = vector.shape_cast %60 : vector<1x1x512xbf16> to vector<1x512xbf16>
    %62 = arith.maximumf %59, %61 : vector<1x512xbf16>
    %63 = vector.extract_strided_slice %62 {offsets = [0, 0], sizes = [1, 256], strides = [1, 1]} : vector<1x512xbf16> to vector<1x256xbf16>
    %64 = vector.extract_strided_slice %62 {offsets = [0, 256], sizes = [1, 256], strides = [1, 1]} : vector<1x512xbf16> to vector<1x256xbf16>
    %65 = arith.maximumf %63, %64 : vector<1x256xbf16>
    %c0_58 = arith.constant 0 : index
    %c4_59 = arith.constant 4 : index
    %c0_60 = arith.constant 0 : index
    %66 = vector.load %arg15[%c0_58, %c4_59, %c0_60] : memref<1x8x512xbf16, #tpu.memory_space<vmem>>, vector<1x1x512xbf16>
    %67 = vector.shape_cast %66 : vector<1x1x512xbf16> to vector<1x512xbf16>
    %c0_61 = arith.constant 0 : index
    %c5_62 = arith.constant 5 : index
    %c0_63 = arith.constant 0 : index
    %68 = vector.load %arg15[%c0_61, %c5_62, %c0_63] : memref<1x8x512xbf16, #tpu.memory_space<vmem>>, vector<1x1x512xbf16>
    %69 = vector.shape_cast %68 : vector<1x1x512xbf16> to vector<1x512xbf16>
    %70 = arith.maximumf %67, %69 : vector<1x512xbf16>
    %71 = vector.extract_strided_slice %70 {offsets = [0, 0], sizes = [1, 256], strides = [1, 1]} : vector<1x512xbf16> to vector<1x256xbf16>
    %72 = vector.extract_strided_slice %70 {offsets = [0, 256], sizes = [1, 256], strides = [1, 1]} : vector<1x512xbf16> to vector<1x256xbf16>
    %73 = arith.maximumf %71, %72 : vector<1x256xbf16>
    %c0_64 = arith.constant 0 : index
    %c6 = arith.constant 6 : index
    %c0_65 = arith.constant 0 : index
    %74 = vector.load %arg15[%c0_64, %c6, %c0_65] : memref<1x8x512xbf16, #tpu.memory_space<vmem>>, vector<1x1x512xbf16>
    %75 = vector.shape_cast %74 : vector<1x1x512xbf16> to vector<1x512xbf16>
    %c0_66 = arith.constant 0 : index
    %c7 = arith.constant 7 : index
    %c0_67 = arith.constant 0 : index
    %76 = vector.load %arg15[%c0_66, %c7, %c0_67] : memref<1x8x512xbf16, #tpu.memory_space<vmem>>, vector<1x1x512xbf16>
    %77 = vector.shape_cast %76 : vector<1x1x512xbf16> to vector<1x512xbf16>
    %78 = arith.maximumf %75, %77 : vector<1x512xbf16>
    %79 = vector.extract_strided_slice %78 {offsets = [0, 0], sizes = [1, 256], strides = [1, 1]} : vector<1x512xbf16> to vector<1x256xbf16>
    %80 = vector.extract_strided_slice %78 {offsets = [0, 256], sizes = [1, 256], strides = [1, 1]} : vector<1x512xbf16> to vector<1x256xbf16>
    %81 = arith.maximumf %79, %80 : vector<1x256xbf16>
    %82 = tpu.concatenate %57, %65, %73, %81 in 1 : vector<1x256xbf16>, vector<1x256xbf16>, vector<1x256xbf16>, vector<1x256xbf16> -> vector<1x1024xbf16>
    %c0_68 = arith.constant 0 : index
    %c0_69 = arith.constant 0 : index
    %83 = vector.load %arg7[%c0_68, %c0_69] : memref<1024x256xbf16, #tpu.memory_space<vmem>>, vector<1024x256xbf16>
    %cst_70 = arith.constant dense<0.000000e+00> : vector<1x256xf32>
    %84 = tpu.matmul %82, %83, %cst_70 {dimension_numbers = #tpu.dot_dimension_numbers<[1], [0], [0], [1], [0, 0, 1, 1], [], []>} : vector<1x1024xbf16>, vector<1024x256xbf16>, vector<1x256xf32> -> vector<1x256xf32>
    %c0_71 = arith.constant 0 : index
    %c0_72 = arith.constant 0 : index
    %85 = vector.load %arg8[%c0_71, %c0_72] : memref<1x256xf32, #tpu.memory_space<vmem>>, vector<1x256xf32>
    %86 = arith.addf %84, %85 : vector<1x256xf32>
    %cst_73 = arith.constant 0.000000e+00 : f32
    %87 = vector.broadcast %cst_73 : f32 to vector<1x256xf32>
    %88 = arith.cmpf oge, %86, %87 : vector<1x256xf32>
    %c2_74 = arith.constant 2 : index
    %89 = memref.load %arg1[%c2_74] : memref<4xf32, #tpu.memory_space<smem>>
    %90 = vector.broadcast %89 : f32 to vector<1x256xf32>
    %91 = arith.mulf %90, %86 : vector<1x256xf32>
    %92 = arith.select %88, %86, %91 : vector<1x256xi1>, vector<1x256xf32>
    %93 = arith.truncf %92 : vector<1x256xf32> to vector<1x256xbf16>
    %c0_75 = arith.constant 0 : index
    %c0_76 = arith.constant 0 : index
    %94 = vector.load %arg9[%c0_75, %c0_76] : memref<256x256xbf16, #tpu.memory_space<vmem>>, vector<256x256xbf16>
    %cst_77 = arith.constant dense<0.000000e+00> : vector<1x256xf32>
    %95 = tpu.matmul %93, %94, %cst_77 {dimension_numbers = #tpu.dot_dimension_numbers<[1], [0], [0], [1], [0, 0, 1, 1], [], []>} : vector<1x256xbf16>, vector<256x256xbf16>, vector<1x256xf32> -> vector<1x256xf32>
    %c0_78 = arith.constant 0 : index
    %c0_79 = arith.constant 0 : index
    %96 = vector.load %arg10[%c0_78, %c0_79] : memref<1x256xf32, #tpu.memory_space<vmem>>, vector<1x256xf32>
    %97 = arith.addf %95, %96 : vector<1x256xf32>
    %cst_80 = arith.constant 0.000000e+00 : f32
    %98 = vector.broadcast %cst_80 : f32 to vector<1x256xf32>
    %99 = arith.cmpf oge, %97, %98 : vector<1x256xf32>
    %c3_81 = arith.constant 3 : index
    %100 = memref.load %arg1[%c3_81] : memref<4xf32, #tpu.memory_space<smem>>
    %101 = vector.broadcast %100 : f32 to vector<1x256xf32>
    %102 = arith.mulf %101, %97 : vector<1x256xf32>
    %103 = arith.select %99, %97, %102 : vector<1x256xi1>, vector<1x256xf32>
    %104 = arith.truncf %103 : vector<1x256xf32> to vector<1x256xbf16>
    %c0_82 = arith.constant 0 : index
    %c0_83 = arith.constant 0 : index
    %105 = vector.load %arg11[%c0_82, %c0_83] : memref<256x2xbf16, #tpu.memory_space<vmem>>, vector<256x2xbf16>
    %cst_84 = arith.constant dense<0.000000e+00> : vector<1x2xf32>
    %106 = tpu.matmul %104, %105, %cst_84 {dimension_numbers = #tpu.dot_dimension_numbers<[1], [0], [0], [1], [0, 0, 1, 1], [], []>} : vector<1x256xbf16>, vector<256x2xbf16>, vector<1x2xf32> -> vector<1x2xf32>
    %c0_85 = arith.constant 0 : index
    %c0_86 = arith.constant 0 : index
    %107 = vector.load %arg12[%c0_85, %c0_86] : memref<1x2xf32, #tpu.memory_space<vmem>>, vector<1x2xf32>
    %108 = arith.addf %106, %107 : vector<1x2xf32>
    %109 = arith.mulf %108, %108 : vector<1x2xf32>
    %cst_87 = arith.constant dense<0.000000e+00> : vector<1xf32>
    %110 = vector.multi_reduction <add>, %109, %cst_87 [1] : vector<1x2xf32> to vector<1xf32>
    %111 = vector.shape_cast %110 : vector<1xf32> to vector<1x1xf32>
    %cst_88 = arith.constant 9.99999996E-13 : f32
    %112 = vector.broadcast %cst_88 : f32 to vector<1x1xf32>
    %113 = arith.addf %111, %112 : vector<1x1xf32>
    %114 = math.rsqrt %113 : vector<1x1xf32>
    %115 = vector.broadcast %114 : vector<1x1xf32> to vector<1x2xf32>
    %116 = arith.mulf %108, %115 : vector<1x2xf32>
    %117 = vector.shape_cast %116 : vector<1x2xf32> to vector<1x1x2xf32>
    %c0_89 = arith.constant 0 : index
    %c0_90 = arith.constant 0 : index
    %c0_91 = arith.constant 0 : index
    %118 = vector.load %arg13[%c0_89, %c0_90, %c0_91] : memref<1x1x2xf32, #tpu.memory_space<vmem>>, vector<1x1x2xf32>
    tpu.vector_store %arg13[%c0_89, %c0_90, %c0_91], %117 {strides = array<i32>} : memref<1x1x2xf32, #tpu.memory_space<vmem>>, vector<1x1x2xf32>,
    return
  }
  func.func @transform_0(%arg0: i32) -> i32 {
    %c0_i32 = arith.constant 0 : i32
    %c0_i32_0 = arith.constant 0 : i32
    return %c0_i32 : i32
  }
  func.func @transform_1(%arg0: i32) -> (i32, i32, i32) {
    %c0_i32 = arith.constant 0 : i32
    %c0_i32_0 = arith.constant 0 : i32
    %c0_i32_1 = arith.constant 0 : i32
    return %arg0, %c0_i32, %c0_i32_0 : i32, i32, i32
  }
  func.func @transform_2(%arg0: i32) -> (i32, i32) {
    %c0_i32 = arith.constant 0 : i32
    %c0_i32_0 = arith.constant 0 : i32
    %c0_i32_1 = arith.constant 0 : i32
    return %c0_i32, %c0_i32_0 : i32, i32
  }
  func.func @transform_3(%arg0: i32) -> (i32, i32) {
    %c0_i32 = arith.constant 0 : i32
    %c0_i32_0 = arith.constant 0 : i32
    %c0_i32_1 = arith.constant 0 : i32
    return %c0_i32, %c0_i32_0 : i32, i32
  }
  func.func @transform_4(%arg0: i32) -> (i32, i32) {
    %c0_i32 = arith.constant 0 : i32
    %c0_i32_0 = arith.constant 0 : i32
    %c0_i32_1 = arith.constant 0 : i32
    return %c0_i32, %c0_i32_0 : i32, i32
  }
  func.func @transform_5(%arg0: i32) -> (i32, i32) {
    %c0_i32 = arith.constant 0 : i32
    %c0_i32_0 = arith.constant 0 : i32
    %c0_i32_1 = arith.constant 0 : i32
    return %c0_i32, %c0_i32_0 : i32, i32
  }
  func.func @transform_6(%arg0: i32) -> (i32, i32) {
    %c0_i32 = arith.constant 0 : i32
    %c0_i32_0 = arith.constant 0 : i32
    %c0_i32_1 = arith.constant 0 : i32
    return %c0_i32, %c0_i32_0 : i32, i32
  }
  func.func @transform_7(%arg0: i32) -> (i32, i32) {
    %c0_i32 = arith.constant 0 : i32
    %c0_i32_0 = arith.constant 0 : i32
    %c0_i32_1 = arith.constant 0 : i32
    return %c0_i32, %c0_i32_0 : i32, i32
  }
  func.func @transform_8(%arg0: i32) -> (i32, i32) {
    %c0_i32 = arith.constant 0 : i32
    %c0_i32_0 = arith.constant 0 : i32
    %c0_i32_1 = arith.constant 0 : i32
    return %c0_i32, %c0_i32_0 : i32, i32
  }
  func.func @transform_9(%arg0: i32) -> (i32, i32) {
    %c0_i32 = arith.constant 0 : i32
    %c0_i32_0 = arith.constant 0 : i32
    %c0_i32_1 = arith.constant 0 : i32
    return %c0_i32, %c0_i32_0 : i32, i32
  }
  func.func @transform_10(%arg0: i32) -> (i32, i32) {
    %c0_i32 = arith.constant 0 : i32
    %c0_i32_0 = arith.constant 0 : i32
    %c0_i32_1 = arith.constant 0 : i32
    return %c0_i32, %c0_i32_0 : i32, i32
  }
  func.func @transform_11(%arg0: i32) -> (i32, i32) {
    %c0_i32 = arith.constant 0 : i32
    %c0_i32_0 = arith.constant 0 : i32
    %c0_i32_1 = arith.constant 0 : i32
    return %c0_i32, %c0_i32_0 : i32, i32
  }
  func.func @transform_12(%arg0: i32) -> (i32, i32, i32) {
    %c0_i32 = arith.constant 0 : i32
    %c0_i32_0 = arith.constant 0 : i32
    %c0_i32_1 = arith.constant 0 : i32
    return %arg0, %c0_i32, %c0_i32_0 : i32, i32, i32
  }
}

</mosaic_0001>

<bundles_post_ra>
// kernel: simple_embedding_net_l2.1
= control target key start
LH: loop header
LB: loop body
LE: loop exit
PB: predicated region body
PF: predicated region fallthrough
CT: control target
= control target key end

     0   :  { %s12899_s0 = inlined_call_operand.hbm [shape: f32[4], index: 0, kind: input, shape index: {}]   ;;  %s12900_s1 = inlined_call_operand.vmem [shape: f32[2,28,28], index: 1, kind: input, shape index: {}]   ;;  %s12901_s2 = inlined_call_operand.hbm [shape: bf16[168,1536], index: 2, kind: input, shape index: {}]   ;;  %s12902_s3 = inlined_call_operand.hbm [shape: f32[1,1536], index: 3, kind: input, shape index: {}]   ;;  %s12903_s4 = inlined_call_operand.hbm [shape: bf16[1920,512], index: 4, kind: input, shape index: {}]   ;;  %s12904_s5 = inlined_call_operand.hbm [shape: f32[1,512], index: 5, kind: input, shape index: {}]   ;;  %s12905_s6 = inlined_call_operand.hbm [shape: bf16[1024,256], index: 6, kind: input, shape index: {}]   ;;  %s12906_s7 = inlined_call_operand.hbm [shape: f32[1,256], index: 7, kind: input, shape index: {}]   ;;  %s12907_s8 = inlined_call_operand.hbm [shape: bf16[256,256], index: 8, kind: input, shape index: {}]   ;;  %s12908_s9 = inlined_call_operand.hbm [shape: f32[1,256], index: 9, kind: input, shape index: {}]   ;;  %s12909_s10 = inlined_call_operand.vmem [shape: bf16[256,2], index: 10, kind: input, shape index: {}]   ;;  %s12910_s11 = inlined_call_operand.hbm [shape: f32[1,2], index: 11, kind: input, shape index: {}]   ;;  %s12911_s12 = inlined_call_operand.hbm [shape: f32[2,1,2], index: 12, kind: output, shape index: {}]  }
   0x1   :  { %12916 = sst [smem:[#allocation33_spill]] %s12899_s0 }
   0x2   :  { %12917 = sst [smem:[#allocation34_spill]] %s12901_s2 }
   0x3   :  { %12918 = sst [smem:[#allocation35_spill]] %s12902_s3 }
   0x4   :  { %12919 = sst [smem:[#allocation36_spill]] %s12903_s4 }
   0x5   :  { %12920 = sst [smem:[#allocation37_spill]] %s12904_s5 }
   0x6   :  { %17 = vsyncpa [#allocation7], 0 }
   0x7   :  { %18 = vsyncpa [#allocation5], 0 }
   0x8   :  { %19 = vsyncpa [#allocation10], 0 }
   0x9   :  { %20 = vsyncpa [#allocation13], 0 }
   0xa   :  { %21 = vsyncpa [#allocation16], 0 }
   0xb   :  { %22 = vsyncpa [#allocation19], 0 }
   0xc   :  { %23 = vsyncpa [#allocation6], 0 }
   0xd   :  { %25 = vsyncpa [#allocation6 + $0x1], 0  ;;  %s12034_s21 = smov 0   ;;  %s12036_s22 = smov 0  }
   0xe   :  { %s12038_s23 = smov 0   ;;  %s12040_s24 = smov 0  }
   0xf LB: > { %12921 = sst [smem:[#allocation29_spill]] %s11942_s23  ;;  %s12055_s25 = sadd.s32 4294967295, %s11946_s24   ;;  %s11946_s24 = sphi %s12040_s24, %s12935_s24   ;;  %s11942_s23 = sphi %s12038_s23, %s12940_s23   ;;  %s11938_s22 = sphi %s12036_s22, %s12939_s22   ;;  %s11934_s21 = sphi %s12034_s21, %s12938_s21  }
  0x10   : > { %s7461_s26 = sadd.s32 4294967294, %s11946_s24   ;;  %s12059_s27 = sadd.s32 1, %s11946_s24  }
  0x11   : > { %12922 = sst [smem:[#allocation30_spill]] %s12059_s27  ;;  %s295_s28 = sadd.s32 1, %s11942_s23 }
  0x12   : > { %s292_s29 = ssub.s32 %s11946_s24, %s12059_s27  ;;  %p305_p0 = scmp.ne.s32.totalorder %s11942_s23, %s11938_s22 }
  0x13   : > { %p293_p1 = scmp.eq.s32.totalorder %s292_s29, 0  ;;  %p306_p2 = scmp.eq.s32.totalorder %s12055_s25, 1 }
  0x14   : > { %p311_p3 = scmp.ne.s32.totalorder %s11938_s22, %s11934_s21  ;;  %p312_p4 = scmp.eq.s32.totalorder %s7461_s26, 1 }
  0x15   : > { %s12070_s30 = scalar_select %p293_p1, %s11942_s23, %s295_s28  }
  0x16   : > { %p12072_p5 = por %p306_p2, %p305_p0  ;;  %p12076_p6 = por %p312_p4, %p311_p3 }
  0x17   : > { %12923 = sst [smem:[#allocation31_spill]] %s12070_s30  ;;  %p7462_p7 = scmp.ge.s32.totalorder %s11946_s24, 1 }
  0x18   : > { %s12925_s14 = scalar_select %p12076_p6, 1, 0 }
  0x19   : > { %p319_p8 = scmp.lt.s32.totalorder %s11946_s24, 3  ;;  %p11473_p9 = scmp.eq.s32.totalorder %s12055_s25, 0 }
  0x1a   : > { %12926 = sst [smem:[#allocation32_spill]] %s12925_s14  ;;  %s11948_s19 = smov [#allocation9]  }
  0x1b   : > { %p12083_p10 = pnand %p7462_p7, %p319_p8  ;;  %s12928_s3 = sld [smem:[#allocation35_spill]] }
  0x1c   : > { %s357_s20 = sshll.u32 %s11948_s19, 4  ;;  %s12929_s5 = sld [smem:[#allocation37_spill]]  ;;  %s358_s20 = int_to_ptr.vmem [resolvable:$true] %s357_s20 }
  0x1d   : > { %p11438_p11 = pneg %p12083_p10  ;;  %s11949_s23 = smov [#allocation12]  }
  0x1e   : > { %s383_s19 = sshll.u32 %s11949_s23, 4  ;;  %s11950_s27 = smov [#allocation15]   ;;  %s384_s19 = int_to_ptr.vmem [resolvable:$true] %s383_s19 }
  0x1f   : > { %p12097_p12 = pnand %p11473_p9, %p11438_p11  ;;  %s409_s14 = sshll.u32 %s11950_s27, 4  ;;  %s410_s14 = int_to_ptr.vmem [resolvable:$true] %s409_s14 }
  0x20   : > { %s11951_s23 = smov [#allocation18]   ;;  %s12931_s0 = sld [smem:[#allocation33_spill]] }
  0x21   : > { %s355_s18 = sshll.u32 %s12928_s3, 4  ;;  %s407_s3 = sshll.u32 %s12906_s7, 4  ;;  %s356_s18 = int_to_ptr.hbm [resolvable:$true] %s355_s18  ;;  %s408_s3 = int_to_ptr.hbm [resolvable:$true] %s407_s3 }
  0x22   : > { %s381_s29 = sshll.u32 %s12929_s5, 4  ;;  %s433_s5 = sshll.u32 %s12908_s9, 4  ;;  %s382_s29 = int_to_ptr.hbm [resolvable:$true] %s381_s29  ;;  %s434_s5 = int_to_ptr.hbm [resolvable:$true] %s433_s5 }
  0x23   : > { %11447 = dma.hbm_to_vmem [thread:$0]  (!%p12097_p12), %s356_s18, 192, %s358_s20, [#allocation10]  }
  0x24   : > { %11453 = dma.hbm_to_vmem [thread:$0]  (!%p12097_p12), %s382_s29, 64, %s384_s19, [#allocation13]  }
  0x25   : > { %11459 = dma.hbm_to_vmem [thread:$0]  (!%p12097_p12), %s408_s3, 32, %s410_s14, [#allocation16]  }
  0x26   : > { %s435_s16 = sshll.u32 %s11951_s23, 4  ;;  %s331_s20 = sshll.u32 %s12931_s0, 4  ;;  %s436_s16 = int_to_ptr.vmem [resolvable:$true] %s435_s16  ;;  %s332_s20 = int_to_ptr.hbm [resolvable:$true] %s331_s20 }
  0x27   : > { %11465 = dma.hbm_to_vmem [thread:$0]  (!%p12097_p12), %s434_s5, 32, %s436_s16, [#allocation19]  }
  0x28   : > { %s12932_s2 = sld [smem:[#allocation34_spill]]  ;;  %s11952_s27 = smov [#allocation4]  }
  0x29   : > { %11441 = dma.hbm_to_smem (!%p12097_p12), %s332_s20, 16, %s11952_s27, [#allocation7]  }
  0x2a   : > { %s11953_s3 = smov [#allocation8]   ;;  %s11954_s28 = smov 768  }
  0x2b   : > { %s342_s14 = sshll.u32 %s11953_s3, 4  ;;  %s11955_s23 = smov 48   ;;  %s343_s14 = int_to_ptr.vmem [resolvable:$true] %s342_s14 }
  0x2c   : > { %s12933_s4 = sld [smem:[#allocation36_spill]]  ;;  %s11956_s16 = smov [#allocation11]  }
  0x2d   : > { %s368_s29 = sshll.u32 %s11956_s16, 4  ;;  %s392_s27 = sshll.u32 %s12905_s6, 4  ;;  %s369_s29 = int_to_ptr.vmem [resolvable:$true] %s368_s29  ;;  %s393_s27 = int_to_ptr.hbm [resolvable:$true] %s392_s27 }
  0x2e   : > { %s340_s26 = sshll.u32 %s12932_s2, 4  ;;  %s11957_s0 = smov 256   ;;  %s341_s26 = int_to_ptr.hbm [resolvable:$true] %s340_s26 }
  0x2f   : > { %11444 = dma.hbm_to_vmem [thread:$0]  (!%p12097_p12), %s341_s26, 16128, %s343_s14, [#allocation5], %s11954_s28, %s11954_s28, %s11955_s23  }
  0x30   : > { %s11958_s3 = smov 16   ;;  %s11959_s26 = smov [#allocation14]  }
  0x31   : > { %s394_s14 = sshll.u32 %s11959_s26, 4  ;;  %s11960_s28 = smov 128   ;;  %s395_s14 = int_to_ptr.vmem [resolvable:$true] %s394_s14 }
  0x32   : > { %s366_s5 = sshll.u32 %s12933_s4, 4  ;;  %s11961_s23 = smov 8   ;;  %s367_s5 = int_to_ptr.hbm [resolvable:$true] %s366_s5 }
  0x33   : > { %11450 = dma.hbm_to_vmem [thread:$0]  (!%p12097_p12), %s367_s5, 61440, %s369_s29, [#allocation10], %s11957_s0, %s11957_s0, %s11958_s3  }
  0x34   : > { %11456 = dma.hbm_to_vmem [thread:$0]  (!%p12097_p12), %s393_s27, 16384, %s395_s14, [#allocation13], %s11960_s28, %s11960_s28, %s11961_s23  }
  0x35   : > { %s418_s16 = sshll.u32 %s12907_s8, 4  ;;  %s11962_s19 = smov [#allocation17]   ;;  %s419_s16 = int_to_ptr.hbm [resolvable:$true] %s418_s16 }
  0x36   : > { %s420_s20 = sshll.u32 %s11962_s19, 4  ;;  %s448_s0 = sshll.u32 %s12910_s11, 4  ;;  %s421_s20 = int_to_ptr.vmem [resolvable:$true] %s420_s20  ;;  %s449_s0 = int_to_ptr.hbm [resolvable:$true] %s448_s0 }
  0x37   : > { %11462 = dma.hbm_to_vmem [thread:$0]  (!%p12097_p12), %s419_s16, 4096, %s421_s20, [#allocation16], %s11960_s28, %s11960_s28, %s11961_s23  }
  0x38   : > { %s11963_s5 = smov [#allocation20]   ;;  %471 = sbr.rel (%p12083_p10) target bundleno = 1672 (0x688), region = 68 }
  0x39   : > { %s450_s29 = sshll.u32 %s11963_s5, 4  ;;  %s451_s29 = int_to_ptr.vmem [resolvable:$true] %s450_s29 }
  0x3a   : > { %11468 = dma.hbm_to_vmem [thread:$0]  (!%p12097_p12), %s449_s0, 16, %s451_s29, [#allocation19]  }
  0x3d   : > { %11905 = dma.done.wait (%p11473_p9), [#allocation7], 16  }
  0x3e   : > { %11907 = vsyncadd (%p11473_p9), [#allocation7], 4294967280 }
  0x3f   : > { %11909 = dma.done.wait (%p11473_p9), [#allocation5], 16128  }
  0x40   : > { %11911 = vsyncadd (%p11473_p9), [#allocation5], 4294951168 }
  0x41   : > { %11913 = dma.done.wait (%p11473_p9), [#allocation10], 61632  }
  0x42   : > { %11915 = vsyncadd (%p11473_p9), [#allocation10], 4294905664 }
  0x43   : > { %11917 = dma.done.wait (%p11473_p9), [#allocation13], 16448  }
  0x44   : > { %11919 = vsyncadd (%p11473_p9), [#allocation13], 4294950848 }
  0x45   : > { %11921 = dma.done.wait (%p11473_p9), [#allocation16], 4128  }
  0x46   : > { %11923 = vsyncadd (%p11473_p9), [#allocation16], 4294963168 }
  0x47   : > { %11925 = dma.done.wait (%p11473_p9), [#allocation19], 48  }
  0x48   : > { %11927 = vsyncadd (%p11473_p9), [#allocation19], 4294967248 }
  0x49   : > { %523 = sfence }
  0x4a   : > { %p559_p13 = scmp.lt.s32.totalorder %s12055_s25, 1  ;;  %v10704_v0 = vld [vmem:[#allocation8 + $0x2a4] sm:$0xf]  ;;  %v7838_v1 = vld [vmem:[#allocation8 + $0x2d0] sm:$0xf0]  ;;  %v12173_v5 = vld [vmem:[#allocation8 + $0x3c8] sm:$0xff]  ;;  %s7302_s19 = scalar_lea.hbm %s12911_s12, %s12055_s25 }
  0x4b   : > { %v7841_v2 = vor.u32 %v10704_v0, %v7838_v1  ;;  %v10692_v3 = vld [vmem:[#allocation8 + $0x244] sm:$0xf]  ;;  %v7790_v4 = vld [vmem:[#allocation8 + $0x270] sm:$0xf0]  ;;  %v1167_v7 = vunpack.c.l.b16 %v12173_v5  ;;  %vm1433_vm0 = vcmask 1043456   ;;  %s11964_s3 = smov 112  }
  0x4c   : > { %s560_s2 = scalar_select %p559_p13, %s12055_s25, 1  ;;  %v7793_v6 = vor.u32 %v10692_v3, %v7790_v4  ;;  %v12176_v8 = vld [vmem:[#allocation8 + $0x3c0] sm:$0xff]  ;;  %v7742_v10 = vld [vmem:[#allocation8 + $0x210] sm:$0xf0]  ;;  %v7940_v13 = vld [vmem:[#allocation8 + $0x368] sm:$0xf] }
  0x4d   : > { %1498 = vmatpush.bf16.msra.mxu2 %v7841_v2  ;;  %v10680_v9 = vld [vmem:[#allocation8 + $0x1e4] sm:$0xf]  ;;  %v1165_v11 = vunpack.c.l.b16 %v12176_v8  ;;  %v1299_v12 = vpack.c.b16 %v1167_v7, %v1167_v7  ;;  %v10735_v14 = vld [vmem:[#allocation8 + $0x394] sm:$0xf0]  ;;  %v7694_v18 = vld [vmem:[#allocation8 + $0x1b0] sm:$0xf0] }
  0x4e   : > { %s10619_s4 = sshll.u32 %s560_s2, 5  ;;  %v10668_v17 = vld [vmem:[#allocation8 + $0x184] sm:$0xf]  ;;  %v7745_v23 = vor.u32 %v10680_v9, %v7742_v10  ;;  %v7941_v28 = vor.u32 %v10735_v14, %v7940_v13  ;;  %s11965_s26 = smov 28   ;;  %v7646_v35 = vld [vmem:[#allocation8 + $0x150] sm:$0xf0] }
  0x4f   : > { %s12182_s27 = scalar_lea.vmem %s12900_s1, %s10619_s4  ;;  %v1297_v19 = vpack.c.b16 %v1165_v11, %v1165_v11  ;;  %v1441_v24 = vsel %vm1433_vm0, %v1299_v12, 0  ;;  %v10656_v34 = vld [vmem:[#allocation8 + $0x124] sm:$0xf]  ;;  %v7697_v37 = vor.u32 %v10668_v17, %v7694_v18  ;;  %v7892_v38 = vld [vmem:[#allocation8 + $0x308] sm:$0xf]  ;;  %s11966_s14 = smov 84  }
  0x50   : > { %v7494_v15 = vld [vmem:[%s12182_s27 + $0x4] ss:$2 sm:$0xff]  ;;  %v7495_v16 = vld [vmem:[%s12182_s27 + $0x14] ss:$2 sm:$0xf]  ;;  %1545 = vmatpush.bf16.msra.mxu3 %v1441_v24  ;;  %v7649_v53 = vor.u32 %v10656_v34, %v7646_v35  ;;  %s11967_s28 = smov 12  }
  0x51   : > { %v11557_v20 = vpack.i.bf16 %v7495_v16, %v7494_v15  ;;  %v7488_v21 = vld [vmem:[%s12182_s27 + $0x1] ss:$2 sm:$0xff]  ;;  %v7489_v22 = vld [vmem:[%s12182_s27 + $0x11] ss:$2 sm:$0xf]  ;;  %1499 = vmatpush.bf16.msra.mxu2 %v7793_v6  ;;  %v1435_v29 = vsel %vm1433_vm0, %v1297_v19, 0 }
  0x52   : > { %v11547_v25 = vpack.i.bf16 %v7489_v22, %v7488_v21  ;;  %v7496_v26 = vld [vmem:[%s12182_s27 + $0x5] ss:$2 sm:$0xff]  ;;  %v7497_v27 = vld [vmem:[%s12182_s27 + $0x15] ss:$2 sm:$0xf]  ;;  %1489 = vmatpush.bf16.msra.mxu1 %v1435_v29  ;;  %s11968_s23 = smov 56  }
  0x53   : > { %11558 = vrot.lane.b32.xlu1 %v11557_v20, %s11964_s3  ;;  %v7490_v30 = vld [vmem:[%s12182_s27 + $0x2] ss:$2 sm:$0xff]  ;;  %v7491_v31 = vld [vmem:[%s12182_s27 + $0x12] ss:$2 sm:$0xf]  ;;  %v11562_v45 = vpack.i.bf16 %v7497_v27, %v7496_v26  ;;  %vm628_vm1 = vcmask 228352  }
  0x54   : > { %11548 = vrot.lane.b32.xlu0 %v11547_v25, %s11965_s26  ;;  %v7492_v32 = vld [vmem:[%s12182_s27 + $0x3] ss:$2 sm:$0xff]  ;;  %v7493_v33 = vld [vmem:[%s12182_s27 + $0x13] ss:$2 sm:$0xf]  ;;  %1546 = vmatpush.bf16.msra.mxu3 %v7941_v28  ;;  %v11552_v49 = vpack.i.bf16 %v7491_v31, %v7490_v30  ;;  %vm640_vm2 = vcmask 97280  }
  0x55   : > { %v11567_v36 = vpack.i.bf16 %v7493_v33, %v7492_v32  ;;  %1500 = vmatpush.bf16.msra.mxu2 %v7745_v23  ;;  %v10723_v39 = vld [vmem:[#allocation8 + $0x334] sm:$0xf0]  ;;  %v7836_v40 = vld [vmem:[#allocation8 + $0x2a0] sm:$0xf]  ;;  %v10710_v42 = vld [vmem:[#allocation8 + $0x2cc] sm:$0xf0] }
  0x56   : > { %v7893_v41 = vor.u32 %v10723_v39, %v7892_v38  ;;  %v10705_v43 = vld [vmem:[#allocation8 + $0x2ac] sm:$0xf]  ;;  %v7846_v44 = vld [vmem:[#allocation8 + $0x2d8] sm:$0xf0]  ;;  %v7837_v46 = vor.u32 %v10710_v42, %v7836_v40  ;;  %v7788_v48 = vld [vmem:[#allocation8 + $0x240] sm:$0xf] }
  0x57   : > { %11568 = vrot.lane.b32.xlu2 %v11567_v36, %s11966_s14  ;;  %v7849_v47 = vor.u32 %v10705_v43, %v7846_v44  ;;  %v10698_v50 = vld [vmem:[#allocation8 + $0x26c] sm:$0xf0]  ;;  %v10693_v51 = vld [vmem:[#allocation8 + $0x24c] sm:$0xf]  ;;  %v7798_v52 = vld [vmem:[#allocation8 + $0x278] sm:$0xf0] }
  0x58   : > { %1470 = vmatpush.bf16.msra.mxu0 %v7837_v46  ;;  %v10644_v54 = vld [vmem:[#allocation8 + $0xc4] sm:$0xf]  ;;  %v7789_v55 = vor.u32 %v10698_v50, %v7788_v48  ;;  %1547 = vmatpush.bf16.msra.mxu3 %v7893_v41  ;;  %v7598_v56 = vld [vmem:[#allocation8 + $0xf0] sm:$0xf0]  ;;  %v7740_v57 = vld [vmem:[#allocation8 + $0x1e0] sm:$0xf]  ;;  %v7801_v59 = vor.u32 %v10693_v51, %v7798_v52 }
  0x59   : > { %1501 = vmatpush.bf16.msra.mxu2 %v7697_v37  ;;  %v10686_v58 = vld [vmem:[#allocation8 + $0x20c] sm:$0xf0]  ;;  %v7932_v60 = vld [vmem:[#allocation8 + $0x360] sm:$0xf]  ;;  %v10681_v62 = vld [vmem:[#allocation8 + $0x1ec] sm:$0xf]  ;;  %v7601_v1 = vor.u32 %v10644_v54, %v7598_v56 }
  0x5a   : > { %v10734_v61 = vld [vmem:[#allocation8 + $0x38c] sm:$0xf0]  ;;  %v7750_v63 = vld [vmem:[#allocation8 + $0x218] sm:$0xf0]  ;;  %v10632_v2 = vld [vmem:[#allocation8 + $0x64] sm:$0xf]  ;;  %v7741_v4 = vor.u32 %v10686_v58, %v7740_v57 }
  0x5b   : > { %11563 = vrot.lane.b32.xlu1 %v11562_v45, %s11967_s28  ;;  %v7933_v0 = vor.u32 %v10734_v61, %v7932_v60  ;;  %v7550_v3 = vld [vmem:[#allocation8 + $0x90] sm:$0xf0]  ;;  %v7692_v6 = vld [vmem:[#allocation8 + $0x180] sm:$0xf]  ;;  %v10674_v7 = vld [vmem:[#allocation8 + $0x1ac] sm:$0xf0]  ;;  %v7753_v11 = vor.u32 %v10681_v62, %v7750_v63 }
  0x5c   : > { %1554 = vmatpush.bf16.msrb.mxu3 %v7849_v47  ;;  %11553 = vrot.lane.b32.xlu0 %v11552_v49, %s11968_s23  ;;  %v7884_v9 = vld [vmem:[#allocation8 + $0x300] sm:$0xf]  ;;  %v10722_v10 = vld [vmem:[#allocation8 + $0x32c] sm:$0xf0]  ;;  %v7844_v13 = vld [vmem:[#allocation8 + $0x2a8] sm:$0xf]  ;;  %v7553_v18 = vor.u32 %v10632_v2, %v7550_v3  ;;  %v7693_v19 = vor.u32 %v10674_v7, %v7692_v6 }
  0x5d   : > { %1502 = vmatpush.bf16.msra.mxu2 %v7649_v53  ;;  %1471 = vmatpush.bf16.msra.mxu0 %v7789_v55  ;;  %v7885_v12 = vor.u32 %v10722_v10, %v7884_v9  ;;  %v10711_v14 = vld [vmem:[#allocation8 + $0x2d4] sm:$0xf0]  ;;  %v10669_v15 = vld [vmem:[#allocation8 + $0x18c] sm:$0xf]  ;;  %v7702_v16 = vld [vmem:[#allocation8 + $0x1b8] sm:$0xf0] }
  0x5e   : > { %1490 = vmatpush.bf16.msra.mxu1 %v7933_v0  ;;  %v7845_v17 = vor.u32 %v10711_v14, %v7844_v13  ;;  %v10620_v20 = vld [vmem:[#allocation8 + $0x4] sm:$0xf]  ;;  %v7502_v21 = vld [vmem:[#allocation8 + $0x30] sm:$0xf0]  ;;  %v7852_v22 = vld [vmem:[#allocation8 + $0x2b0] sm:$0xf]  ;;  %v7705_v24 = vor.u32 %v10669_v15, %v7702_v16 }
  0x5f   : > { %v10712_v23 = vld [vmem:[#allocation8 + $0x2dc] sm:$0xf0]  ;;  %v7505_v25 = vor.u32 %v10620_v20, %v7502_v21  ;;  %v7804_v27 = vld [vmem:[#allocation8 + $0x250] sm:$0xf]  ;;  %v10657_v32 = vld [vmem:[#allocation8 + $0x12c] sm:$0xf] }
  0x60   : > { %1555 = vmatpush.bf16.msrb.mxu3 %v7801_v59  ;;  %v7853_v26 = vor.u32 %v10712_v23, %v7852_v22  ;;  %v10700_v28 = vld [vmem:[#allocation8 + $0x27c] sm:$0xf0]  ;;  %v10662_v31 = vld [vmem:[#allocation8 + $0x14c] sm:$0xf0]  ;;  %v7654_v34 = vld [vmem:[#allocation8 + $0x158] sm:$0xf0] }
  0x61   : > { %1503 = vmatpush.bf16.msra.mxu2 %v7601_v1  ;;  %1472 = vmatpush.bf16.msra.mxu0 %v7741_v4  ;;  %v7805_v29 = vor.u32 %v10700_v28, %v7804_v27  ;;  %v7644_v30 = vld [vmem:[#allocation8 + $0x120] sm:$0xf]  ;;  %v7657_v35 = vor.u32 %v10657_v32, %v7654_v34  ;;  %v7796_v36 = vld [vmem:[#allocation8 + $0x248] sm:$0xf]  ;;  %v10699_v37 = vld [vmem:[#allocation8 + $0x274] sm:$0xf0]  ;;  %v1166_v1 = vunpack.c.h.b16 %v12176_v8 }
  0x62   : > { %1491 = vmatpush.bf16.msra.mxu1 %v7885_v12  ;;  %v7645_v33 = vor.u32 %v10662_v31, %v7644_v30  ;;  %v7797_v38 = vor.u32 %v10699_v37, %v7796_v36  ;;  %v7756_v39 = vld [vmem:[#allocation8 + $0x1f0] sm:$0xf]  ;;  %v10688_v40 = vld [vmem:[#allocation8 + $0x21c] sm:$0xf0]  ;;  %v10645_v44 = vld [vmem:[#allocation8 + $0xcc] sm:$0xf] }
  0x63   : > { %v7596_v41 = vld [vmem:[#allocation8 + $0xc0] sm:$0xf]  ;;  %v7757_v42 = vor.u32 %v10688_v40, %v7756_v39  ;;  %v10650_v43 = vld [vmem:[#allocation8 + $0xec] sm:$0xf0]  ;;  %v7606_v45 = vld [vmem:[#allocation8 + $0xf8] sm:$0xf0]  ;;  %v1298_v10 = vpack.c.b16 %v1166_v1, %v1166_v1  ;;  %v1168_v40 = vunpack.c.h.b16 %v12173_v5 }
  0x64   : > { %1556 = vmatpush.bf16.msrb.mxu3 %v7753_v11  ;;  %v7597_v46 = vor.u32 %v10650_v43, %v7596_v41  ;;  %v7609_v47 = vor.u32 %v10645_v44, %v7606_v45  ;;  %v7748_v48 = vld [vmem:[#allocation8 + $0x1e8] sm:$0xf]  ;;  %v10687_v49 = vld [vmem:[#allocation8 + $0x214] sm:$0xf0]  ;;  %v7708_v50 = vld [vmem:[#allocation8 + $0x190] sm:$0xf] }
  0x65   : > { %1504 = vmatpush.bf16.msra.mxu2 %v7553_v18  ;;  %1473 = vmatpush.bf16.msra.mxu0 %v7693_v19  ;;  %v7749_v51 = vor.u32 %v10687_v49, %v7748_v48  ;;  %v10676_v52 = vld [vmem:[#allocation8 + $0x1bc] sm:$0xf0]  ;;  %v10638_v55 = vld [vmem:[#allocation8 + $0x8c] sm:$0xf0]  ;;  %v10633_v56 = vld [vmem:[#allocation8 + $0x6c] sm:$0xf]  ;;  %v1300_v45 = vpack.c.b16 %v1168_v40, %v1168_v40 }
  0x66   : > { %1526 = vmatpush.bf16.msrb.mxu1 %v7845_v17  ;;  %v7709_v53 = vor.u32 %v10676_v52, %v7708_v50  ;;  %v7548_v54 = vld [vmem:[#allocation8 + $0x60] sm:$0xf]  ;;  %v7558_v58 = vld [vmem:[#allocation8 + $0x98] sm:$0xf0]  ;;  %v7700_v60 = vld [vmem:[#allocation8 + $0x188] sm:$0xf] }
  0x67   : > { %v7549_v57 = vor.u32 %v10638_v55, %v7548_v54  ;;  %v7561_v59 = vor.u32 %v10633_v56, %v7558_v58  ;;  %v10675_v61 = vld [vmem:[#allocation8 + $0x1b4] sm:$0xf0]  ;;  %v7660_v62 = vld [vmem:[#allocation8 + $0x130] sm:$0xf]  ;;  %v10664_v0 = vld [vmem:[#allocation8 + $0x15c] sm:$0xf0] }
  0x68   : > { %1557 = vmatpush.bf16.msrb.mxu3 %v7705_v24  ;;  %v7701_v63 = vor.u32 %v10675_v61, %v7700_v60  ;;  %v7661_v2 = vor.u32 %v10664_v0, %v7660_v62  ;;  %v7500_v3 = vld [vmem:[#allocation8] sm:$0xf]  ;;  %v10626_v4 = vld [vmem:[#allocation8 + $0x2c] sm:$0xf0]  ;;  %v10621_v7 = vld [vmem:[#allocation8 + $0xc] sm:$0xf] }
  0x69   : > { %1505 = vmatpush.bf16.msra.mxu2 %v7505_v25  ;;  %1474 = vmatpush.bf16.msra.mxu0 %v7645_v33  ;;  %v7501_v6 = vor.u32 %v10626_v4, %v7500_v3  ;;  %v7510_v9 = vld [vmem:[#allocation8 + $0x38] sm:$0xf0]  ;;  %v7652_v12 = vld [vmem:[#allocation8 + $0x128] sm:$0xf]  ;;  %v1438_v13 = vsel %vm1433_vm0, %v1298_v10, 0  ;;  %vm631_vm3 = vcmask 457728  }
  0x6a   : > { %1527 = vmatpush.bf16.msrb.mxu1 %v7797_v38  ;;  %v7513_v11 = vor.u32 %v10621_v7, %v7510_v9  ;;  %v10663_v14 = vld [vmem:[#allocation8 + $0x154] sm:$0xf0]  ;;  %v7612_v15 = vld [vmem:[#allocation8 + $0xd0] sm:$0xf]  ;;  %v10652_v16 = vld [vmem:[#allocation8 + $0xfc] sm:$0xf0] }
  0x6b   : > { %v7653_v8 = vor.u32 %v10663_v14, %v7652_v12  ;;  %v7613_v17 = vor.u32 %v10652_v16, %v7612_v15  ;;  %v10728_v18 = vld [vmem:[#allocation8 + $0x364] sm:$0xf]  ;;  %v7934_v19 = vld [vmem:[#allocation8 + $0x390] sm:$0xf0]  ;;  %v7604_v21 = vld [vmem:[#allocation8 + $0xc8] sm:$0xf] }
  0x6c   : > { %1558 = vmatpush.bf16.msrb.mxu3 %v7657_v35  ;;  %v7937_v20 = vor.u32 %v10728_v18, %v7934_v19  ;;  %v10651_v22 = vld [vmem:[#allocation8 + $0xf4] sm:$0xf0]  ;;  %v7564_v24 = vld [vmem:[#allocation8 + $0x70] sm:$0xf]  ;;  %v10640_v25 = vld [vmem:[#allocation8 + $0x9c] sm:$0xf0] }
  0x6d   : > { %1582 = vmatpush.bf16.msrb.mxu2 %v7853_v26  ;;  %1475 = vmatpush.bf16.msra.mxu0 %v7597_v46  ;;  %v7605_v23 = vor.u32 %v10651_v22, %v7604_v21  ;;  %v7565_v26 = vor.u32 %v10640_v25, %v7564_v24  ;;  %v10716_v27 = vld [vmem:[#allocation8 + $0x304] sm:$0xf]  ;;  %v7886_v28 = vld [vmem:[#allocation8 + $0x330] sm:$0xf0]  ;;  %v7556_v30 = vld [vmem:[#allocation8 + $0x68] sm:$0xf] }
  0x6e   : > { %1528 = vmatpush.bf16.msrb.mxu1 %v7749_v51  ;;  %v10639_v31 = vld [vmem:[#allocation8 + $0x94] sm:$0xf0]  ;;  %v7516_v32 = vld [vmem:[#allocation8 + $0x10] sm:$0xf]  ;;  %v10628_v34 = vld [vmem:[#allocation8 + $0x3c] sm:$0xf0] }
  0x6f   : > { %v7557_v33 = vor.u32 %v10639_v31, %v7556_v30  ;;  %v7517_v35 = vor.u32 %v10628_v34, %v7516_v32  ;;  %v7508_v36 = vld [vmem:[#allocation8 + $0x8] sm:$0xf]  ;;  %v10627_v37 = vld [vmem:[#allocation8 + $0x34] sm:$0xf0]  ;;  %vm634_vm4 = vcmask 687104   ;;  %vm637_vm5 = vcmask 916480  }
  0x70   : > { %1559 = vmatpush.bf16.msrb.mxu3 %v7609_v47  ;;  %v7509_v38 = vor.u32 %v10627_v37, %v7508_v36  ;;  %v12201_v43 = vld [vmem:[#allocation8 + $0x3d8] sm:$0xff]  ;;  %v10713_v50 = vld [vmem:[#allocation8 + $0x2e4] sm:$0xf0]  ;;  %vm1429_vm6 = vcmask 326656   ;;  %v7948_v14 = vld [vmem:[#allocation8 + $0x370] sm:$0xf] }
  0x71   : > { %1583 = vmatpush.bf16.msrb.mxu2 %v7805_v29  ;;  %1476 = vmatpush.bf16.msra.mxu0 %v7549_v57  ;;  %v7889_v29 = vor.u32 %v10716_v27, %v7886_v28  ;;  %v1171_v47 = vunpack.c.l.b16 %v12201_v43  ;;  %v7860_v5 = vld [vmem:[#allocation8 + $0x2b8] sm:$0xf]  ;;  %v7487_v52 = vld [vmem:[%s12182_s27 + $0x10] ss:$2 sm:$0xf]  ;;  %s12340_s17 = sld [smem:[#allocation4]] }
  0x72   : > { %1529 = vmatpush.bf16.msrb.mxu1 %v7701_v63  ;;  %v565_v51 = vld [vmem:[%s12182_s27] ss:$2 sm:$0xff]  ;;  %v7861_v0 = vor.u32 %v10713_v50, %v7860_v5  ;;  %v10701_v9 = vld [vmem:[#allocation8 + $0x284] sm:$0xf0]  ;;  %v10729_v22 = vld [vmem:[#allocation8 + $0x36c] sm:$0xf] }
  0x73   : > { %v1303_v1 = vpack.c.b16 %v1171_v47, %v1171_v47  ;;  %v7812_v7 = vld [vmem:[#allocation8 + $0x258] sm:$0xf]  ;;  %v10736_v15 = vld [vmem:[#allocation8 + $0x39c] sm:$0xf0]  ;;  %v7942_v25 = vld [vmem:[#allocation8 + $0x398] sm:$0xf0] }
  0x74   : > { %1560 = vmatpush.bf16.msrb.mxu3 %v7561_v59  ;;  %v7764_v19 = vld [vmem:[#allocation8 + $0x1f8] sm:$0xf]  ;;  %v7813_v24 = vor.u32 %v10701_v9, %v7812_v7  ;;  %v10737_v27 = vld [vmem:[#allocation8 + $0x3a4] sm:$0xf0]  ;;  %v7949_v28 = vor.u32 %v10736_v15, %v7948_v14  ;;  %v7900_v30 = vld [vmem:[#allocation8 + $0x310] sm:$0xf]  ;;  %v7945_v32 = vor.u32 %v10729_v22, %v7942_v25 }
  0x75   : > { %1584 = vmatpush.bf16.msrb.mxu2 %v7757_v42  ;;  %1477 = vmatpush.bf16.msra.mxu0 %v7501_v6  ;;  %v12199_v42 = vld [vmem:[#allocation8 + $0x3d0] sm:$0xff]  ;;  %v1453_v21 = vsel %vm1433_vm0, %v1303_v1, 0  ;;  %v10724_v31 = vld [vmem:[#allocation8 + $0x33c] sm:$0xf0]  ;;  %v10717_v34 = vld [vmem:[#allocation8 + $0x30c] sm:$0xf] }
  0x76   : > { %1530 = vmatpush.bf16.msrb.mxu1 %v7653_v8  ;;  %v1169_v44 = vunpack.c.l.b16 %v12199_v42  ;;  %v7894_v36 = vld [vmem:[#allocation8 + $0x338] sm:$0xf0]  ;;  %v7908_v37 = vld [vmem:[#allocation8 + $0x318] sm:$0xf]  ;;  %v10706_v50 = vld [vmem:[#allocation8 + $0x2b4] sm:$0xf] }
  0x77   : > { %v7716_v40 = vld [vmem:[#allocation8 + $0x198] sm:$0xf]  ;;  %v7820_v1 = vld [vmem:[#allocation8 + $0x260] sm:$0xf]  ;;  %v10718_v9 = vld [vmem:[#allocation8 + $0x314] sm:$0xf] }
  0x78   : > { %1561 = vmatpush.bf16.msrb.mxu3 %v7513_v11  ;;  %v1301_v56 = vpack.c.b16 %v1169_v44, %v1169_v44  ;;  %v1170_v44 = vunpack.c.h.b16 %v12199_v42  ;;  %v10653_v42 = vld [vmem:[#allocation8 + $0x104] sm:$0xf0]  ;;  %v10682_v14 = vld [vmem:[#allocation8 + $0x1f4] sm:$0xf]  ;;  %s12679_s18 = sld [smem:[#allocation4 + $0x1]]  ;;  %s7306_s5 = sshll.u32 %s7302_s19, 4  ;;  %s7307_s5 = int_to_ptr.hbm [resolvable:$true] %s7306_s5 }
  0x79   : > { %1585 = vmatpush.bf16.msrb.mxu2 %v7709_v53  ;;  %1517 = vmatpush.bf16.msrb.mxu0 %v1438_v13  ;;  %v10670_v25 = vld [vmem:[#allocation8 + $0x194] sm:$0xf]  ;;  %s12809_s16 = sld [smem:[#allocation4 + $0x2]]  ;;  %s11874_s2 = sshra.s32 %s7307_s5, 4  ;;  %s11875_s2 = int_to_ptr.hbm [resolvable:$true] %s11874_s2 }
  0x7a   : > { %1531 = vmatpush.bf16.msrb.mxu1 %v7605_v23  ;;  %v1447_v13 = vsel %vm1433_vm0, %v1301_v56, 0  ;;  %v1302_v5 = vpack.c.b16 %v1170_v44, %v1170_v44  ;;  %s10552_s23 = sld [smem:[#allocation4 + $0x3]]  ;;  %s11876_s4 = scalar_lea.hbm %s11875_s2, 1 }
  0x7b   : > { %p11877_p0 = scmp.ne.s32.totalorder %s11875_s2, %s11876_s4  ;;  %s11880_s15 = scalar_lea.hbm %s12911_s12, 2 }
  0x7c   : > { %v1450_v56 = vsel %vm1433_vm0, %v1302_v5, 0  ;;  %p11881_p3 = scmp.lt.s32.totalorder %s11875_s2, %s12911_s12  ;;  %p11882_p4 = scmp.lt.s32.totalorder %s11880_s15, %s11876_s4 }
  0x7d   : > { %1586 = vmatpush.bf16.msrb.mxu2 %v7661_v2  ;;  %1518 = vmatpush.bf16.msrb.mxu0 %v7937_v20  ;;  %v1444_v20 = vsel %vm1433_vm0, %v1300_v45, 0  ;;  %v7897_v45 = vor.u32 %v10717_v34, %v7894_v36  ;;  %v10738_v34 = vld [vmem:[#allocation8 + $0x3ac] sm:$0xf0]  ;;  %p11878_p1 = pnand %p11877_p0, %p12072_p5 }
  0x7e   : > { %1532 = vmatpush.bf16.msrb.mxu1 %v7557_v33  ;;  %p11883_p7 = por %p11882_p4, %p11881_p3 }
  0x7f   : > { %p11879_p2 = pneg %p11878_p1 }
  0x81   : > { %1587 = vmatpush.bf16.msrb.mxu2 %v7613_v17  ;;  %1519 = vmatpush.bf16.msrb.mxu0 %v7889_v29  ;;  %v10689_v29 = vld [vmem:[#allocation8 + $0x224] sm:$0xf0]  ;;  %p11884_p8 = pnand %p11883_p7, %p11879_p2 }
  0x82   : > { %1533 = vmatpush.bf16.msrb.mxu1 %v7509_v38  ;;  %v10725_v38 = vld [vmem:[#allocation8 + $0x344] sm:$0xf0] }
  0x85   : > { %1588 = vmatpush.bf16.msrb.mxu2 %v7565_v26  ;;  %v7956_v26 = vld [vmem:[#allocation8 + $0x378] sm:$0xf] }
  0x86   : > { %v7957_v33 = vor.u32 %v10737_v27, %v7956_v26  ;;  %v7710_v27 = vld [vmem:[#allocation8 + $0x1c0] sm:$0xf0] }
  0x89   : > { %1589 = vmatpush.bf16.msrb.mxu2 %v7517_v35  ;;  %v7765_v35 = vor.u32 %v10689_v29, %v7764_v19  ;;  %v7524_v19 = vld [vmem:[#allocation8 + $0x18] sm:$0xf]  ;;  %v10678_v29 = vld [vmem:[#allocation8 + $0x1cc] sm:$0xf0] }
  0xb1   : > { %v11569_v46 = vpop.permute.xlu2 %11568 }
  0xb2   : > { %v11571_v54 = vunpack.i.h.bf16 %v11569_v46  ;;  %v11570_v55 = vunpack.i.l.bf16 %v11569_v46  ;;  %v7909_v46 = vor.u32 %v10725_v38, %v7908_v37  ;;  %v10658_v37 = vld [vmem:[#allocation8 + $0x134] sm:$0xf]  ;;  %v7662_v38 = vld [vmem:[#allocation8 + $0x160] sm:$0xf0] }
  0xc5   : > { %v11559_v39 = vpop.permute.xlu1 %11558 }
  0xc6   : > { %v11549_v41 = vpop.permute.xlu0 %11548  ;;  %v11561_v57 = vunpack.i.h.bf16 %v11559_v39  ;;  %v11560_v58 = vunpack.i.l.bf16 %v11559_v39  ;;  %v7901_v39 = vor.u32 %v10724_v31, %v7900_v30  ;;  %v10707_v31 = vld [vmem:[#allocation8 + $0x2bc] sm:$0xf] }
  0xc7   : > { %v11551_v48 = vunpack.i.h.bf16 %v11549_v41  ;;  %v11550_v49 = vunpack.i.l.bf16 %v11549_v41  ;;  %v10677_v41 = vld [vmem:[#allocation8 + $0x1c4] sm:$0xf0] }
  0xc8   : > { %v7717_v47 = vor.u32 %v10677_v41, %v7716_v40  ;;  %v10666_v40 = vld [vmem:[#allocation8 + $0x16c] sm:$0xf0] }
  0xc9   : > { %v629_v2 = vsel %vm628_vm1, %v565_v51, %v11550_v49  ;;  %v630_v3 = vsel %vm628_vm1, %v7487_v52, %v11551_v48  ;;  %v7668_v48 = vld [vmem:[#allocation8 + $0x138] sm:$0xf]  ;;  %v10665_v49 = vld [vmem:[#allocation8 + $0x164] sm:$0xf0]  ;;  %v7854_v51 = vld [vmem:[#allocation8 + $0x2e0] sm:$0xf0] }
  0xca   : > { %v7868_v52 = vld [vmem:[#allocation8 + $0x2c0] sm:$0xf] }
  0xcd   : > { %v11564_v53 = vpop.permute.xlu1 %11563 }
  0xce   : > { %v11566_v59 = vunpack.i.h.bf16 %v11564_v53  ;;  %v11565_v60 = vunpack.i.l.bf16 %v11564_v53  ;;  %v11554_v61 = vpop.permute.xlu0 %11553  ;;  %v7669_v53 = vor.u32 %v10665_v49, %v7668_v48  ;;  %v10726_v48 = vld [vmem:[#allocation8 + $0x34c] sm:$0xf0]  ;;  %v7665_v49 = vor.u32 %v10658_v37, %v7662_v38  ;;  %v7622_v37 = vld [vmem:[#allocation8 + $0x108] sm:$0xf0] }
  0xcf   : > { %v11556_v62 = vunpack.i.h.bf16 %v11554_v61  ;;  %v11555_v63 = vunpack.i.l.bf16 %v11554_v61 }
  0xd0   : > { %v641_v4 = vsel %vm640_vm2, %v11560_v58, %v11565_v60  ;;  %v642_v6 = vsel %vm640_vm2, %v11561_v57, %v11566_v59  ;;  %v12232_v59 = vld [vmem:[#allocation8 + $0x3e0] sm:$0xff]  ;;  %v7857_v60 = vor.u32 %v10706_v50, %v7854_v51  ;;  %v10646_v50 = vld [vmem:[#allocation8 + $0xd4] sm:$0xf]  ;;  %v7876_v51 = vld [vmem:[#allocation8 + $0x2c8] sm:$0xf] }
  0xd1   : > { %v12211_v10 = vpack.c.bf16 %v642_v6, %v641_v4  ;;  %v632_v11 = vsel %vm631_vm3, %v629_v2, %v11555_v63  ;;  %v633_v12 = vsel %vm631_vm3, %v630_v3, %v11556_v62  ;;  %v10694_v62 = vld [vmem:[#allocation8 + $0x254] sm:$0xf]  ;;  %v7806_v63 = vld [vmem:[#allocation8 + $0x280] sm:$0xf0]  ;;  %v10702_v2 = vld [vmem:[#allocation8 + $0x28c] sm:$0xf0]  ;;  %v1173_v7 = vunpack.c.l.b16 %v12232_v59 }
  0xd2   : > { %v635_v8 = vsel %vm634_vm4, %v632_v11, %v11570_v55  ;;  %v636_v16 = vsel %vm634_vm4, %v633_v12, %v11571_v54  ;;  %v10714_v54 = vld [vmem:[#allocation8 + $0x2ec] sm:$0xf0]  ;;  %v7620_v55 = vld [vmem:[#allocation8 + $0xd8] sm:$0xf]  ;;  %v10641_v6 = vld [vmem:[#allocation8 + $0xa4] sm:$0xf0]  ;;  %v7809_v12 = vor.u32 %v10694_v62, %v7806_v63 }
  0xd3   : > { %v638_v17 = vsel %vm637_vm5, %v635_v8, %v11560_v58  ;;  %v639_v18 = vsel %vm637_vm5, %v636_v16, %v11561_v57  ;;  %7978 = vmatmul.msk.bf16.vlgmr.msra.gmra.mxu1 %vm1429_vm6, %v12211_v10  ;;  %7980 = vmatmul.msk.bf16.vlgmr.msra.gmra.mxu3 %vm1429_vm6, %v12211_v10  ;;  %v10730_v57 = vld [vmem:[#allocation8 + $0x374] sm:$0xf]  ;;  %v7950_v58 = vld [vmem:[#allocation8 + $0x3a0] sm:$0xf0]  ;;  %v7869_v61 = vor.u32 %v10714_v54, %v7868_v52  ;;  %v7572_v3 = vld [vmem:[#allocation8 + $0x78] sm:$0xf] }
  0xd4   : > { %v12226_v23 = vpack.c.bf16 %v639_v18, %v638_v17  ;;  %1638 = vmatpush.bf16.msra.mxu3 %v7861_v0  ;;  %1601 = vmatpush.bf16.msra.mxu1 %v1447_v13  ;;  %v7621_v0 = vor.u32 %v10653_v42, %v7620_v55  ;;  %v7953_v4 = vor.u32 %v10730_v57, %v7950_v58  ;;  %v7902_v11 = vld [vmem:[#allocation8 + $0x340] sm:$0xf0]  ;;  %v7772_v16 = vld [vmem:[#allocation8 + $0x200] sm:$0xf]  ;;  %v10690_v17 = vld [vmem:[#allocation8 + $0x22c] sm:$0xf0] }
  0xd5   : > { %v7821_v13 = vor.u32 %v10702_v2, %v7820_v1  ;;  %v7573_v15 = vor.u32 %v10641_v6, %v7572_v3  ;;  %v7758_v8 = vld [vmem:[#allocation8 + $0x220] sm:$0xf0]  ;;  %v7905_v18 = vor.u32 %v10718_v9, %v7902_v11  ;;  %v10715_v52 = vld [vmem:[#allocation8 + $0x2f4] sm:$0xf0]  ;;  %v7628_v54 = vld [vmem:[#allocation8 + $0xe0] sm:$0xf] }
  0xd6   : > { %1478 = vmatmul.bf16.vlgmr.msra.gmra.mxu0 %v12226_v23  ;;  %1506 = vmatmul.bf16.vlgmr.msra.gmra.mxu2 %v12226_v23  ;;  %v7761_v22 = vor.u32 %v10682_v14, %v7758_v8  ;;  %v10654_v55 = vld [vmem:[#allocation8 + $0x10c] sm:$0xf0]  ;;  %v7877_v57 = vor.u32 %v10715_v52, %v7876_v51  ;;  %v10683_v58 = vld [vmem:[#allocation8 + $0x1fc] sm:$0xf]  ;;  %v10634_v63 = vld [vmem:[#allocation8 + $0x74] sm:$0xf] }
  0xd7   : > { %1573 = vmatpush.bf16.msra.mxu0 %v1444_v20  ;;  %1657 = vmatpush.bf16.msra.mxu2 %v1453_v21  ;;  %v10629_v20 = vld [vmem:[#allocation8 + $0x44] sm:$0xf0]  ;;  %v1305_v21 = vpack.c.b16 %v1173_v7, %v1173_v7  ;;  %v7629_v62 = vor.u32 %v10654_v55, %v7628_v54  ;;  %v10703_v1 = vld [vmem:[#allocation8 + $0x294] sm:$0xf0]  ;;  %v7566_v2 = vld [vmem:[#allocation8 + $0xa0] sm:$0xf0]  ;;  %v1172_v7 = vunpack.c.h.b16 %v12201_v43 }
  0xd8   : > { %1639 = vmatpush.bf16.msra.mxu3 %v7813_v24  ;;  %1602 = vmatpush.bf16.msra.mxu1 %v7949_v28  ;;  %v7773_v24 = vor.u32 %v10690_v17, %v7772_v16  ;;  %v7525_v26 = vor.u32 %v10629_v20, %v7524_v19  ;;  %v7724_v28 = vld [vmem:[#allocation8 + $0x1a0] sm:$0xf]  ;;  %v12249_v9 = vld [vmem:[#allocation8 + $0x3e8] sm:$0xff]  ;;  %v7569_v14 = vor.u32 %v10634_v63, %v7566_v2  ;;  %v10622_v8 = vld [vmem:[#allocation8 + $0x14] sm:$0xf] }
  0xd9   : > { %v1459_v30 = vsel %vm1433_vm0, %v1305_v21, 0  ;;  %v7725_v36 = vor.u32 %v10678_v29, %v7724_v28  ;;  %v7580_v3 = vld [vmem:[#allocation8 + $0x80] sm:$0xf]  ;;  %v7780_v16 = vld [vmem:[#allocation8 + $0x208] sm:$0xf]  ;;  %v1175_v21 = vunpack.c.l.b16 %v12249_v9 }
  0xda   : > { %v10691_v17 = vld [vmem:[#allocation8 + $0x234] sm:$0xf0]  ;;  %v7532_v19 = vld [vmem:[#allocation8 + $0x20] sm:$0xf]  ;;  %v10630_v20 = vld [vmem:[#allocation8 + $0x4c] sm:$0xf0] }
  0xdb   : > { %1574 = vmatpush.bf16.msra.mxu0 %v7945_v32  ;;  %1658 = vmatpush.bf16.msra.mxu2 %v7957_v33  ;;  %v7862_v32 = vld [vmem:[#allocation8 + $0x2e8] sm:$0xf0]  ;;  %v7964_v33 = vld [vmem:[#allocation8 + $0x380] sm:$0xf]  ;;  %v7533_v28 = vor.u32 %v10630_v20, %v7532_v19  ;;  %v7732_v29 = vld [vmem:[#allocation8 + $0x1a8] sm:$0xf] }
  0xdc   : > { %1640 = vmatpush.bf16.msra.mxu3 %v7765_v35  ;;  %1603 = vmatpush.bf16.msra.mxu1 %v7901_v39  ;;  %v7713_v35 = vor.u32 %v10670_v25, %v7710_v27  ;;  %v7676_v39 = vld [vmem:[#allocation8 + $0x140] sm:$0xf]  ;;  %v7865_v41 = vor.u32 %v10707_v31, %v7862_v32  ;;  %v7965_v44 = vor.u32 %v10738_v34, %v7964_v33  ;;  %v10659_v25 = vld [vmem:[#allocation8 + $0x13c] sm:$0xf]  ;;  %v10708_v51 = vld [vmem:[#allocation8 + $0x2c4] sm:$0xf] }
  0xdd   : > { %v7677_v5 = vor.u32 %v10666_v40, %v7676_v39  ;;  %v1307_v31 = vpack.c.b16 %v1175_v21, %v1175_v21  ;;  %v10731_v34 = vld [vmem:[#allocation8 + $0x37c] sm:$0xf]  ;;  %v7684_v39 = vld [vmem:[#allocation8 + $0x148] sm:$0xf]  ;;  %v10667_v40 = vld [vmem:[#allocation8 + $0x174] sm:$0xf0] }
  0xde   : > { %v7870_v52 = vld [vmem:[#allocation8 + $0x2f0] sm:$0xf0]  ;;  %v7636_v54 = vld [vmem:[#allocation8 + $0xe8] sm:$0xf]  ;;  %v10623_v63 = vld [vmem:[#allocation8 + $0x1c] sm:$0xf] }
  0xdf   : > { %1575 = vmatpush.bf16.msra.mxu0 %v7897_v45  ;;  %1659 = vmatpush.bf16.msra.mxu2 %v7909_v46  ;;  %v10695_v45 = vld [vmem:[#allocation8 + $0x25c] sm:$0xf]  ;;  %v7814_v46 = vld [vmem:[#allocation8 + $0x288] sm:$0xf0]  ;;  %v7822_v2 = vld [vmem:[#allocation8 + $0x290] sm:$0xf0] }
  0xe0   : > { %1641 = vmatpush.bf16.msra.mxu3 %v7717_v47  ;;  %v7916_v47 = vld [vmem:[#allocation8 + $0x320] sm:$0xf]  ;;  %v7817_v42 = vor.u32 %v10695_v45, %v7814_v46  ;;  %v7972_v45 = vld [vmem:[#allocation8 + $0x388] sm:$0xf]  ;;  %v10739_v46 = vld [vmem:[#allocation8 + $0x3b4] sm:$0xf0] }
  0xe1   : > { %v7973_v55 = vor.u32 %v10739_v46, %v7972_v45  ;;  %v10631_v19 = vld [vmem:[#allocation8 + $0x54] sm:$0xf0]  ;;  %v10636_v45 = vld [vmem:[#allocation8 + $0x84] sm:$0xf]  ;;  %v7582_v46 = vld [vmem:[#allocation8 + $0xb0] sm:$0xf0] }
  0xe3   : > { %1534 = vmatmul.bf16.vlgmr.msrb.gmra.mxu1 %v12226_v23  ;;  %1562 = vmatmul.bf16.vlgmr.msrb.gmra.mxu3 %v12226_v23 }
  0xe4   : > { %1642 = vmatpush.bf16.msra.mxu3 %v7669_v53  ;;  %1629 = vmatpush.bf16.msrb.mxu1 %v1450_v56  ;;  %v7614_v53 = vld [vmem:[#allocation8 + $0x100] sm:$0xf0]  ;;  %v7917_v56 = vor.u32 %v10726_v48, %v7916_v47  ;;  %v10719_v48 = vld [vmem:[#allocation8 + $0x31c] sm:$0xf] }
  0xe6   : > { %7979 = vmatmul.msk.bf16.vlgmr.msrb.gmra.mxu0 %vm1429_vm6, %v12211_v10  ;;  %1590 = vmatmul.bf16.vlgmr.msrb.gmra.mxu2 %v12226_v23 }
  0xe7   : > { %1610 = vmatpush.bf16.msrb.mxu0 %v7857_v60  ;;  %1694 = vmatpush.bf16.msrb.mxu2 %v7869_v61  ;;  %v7766_v60 = vld [vmem:[#allocation8 + $0x228] sm:$0xf0]  ;;  %v7617_v61 = vor.u32 %v10646_v50, %v7614_v53  ;;  %v7685_v53 = vor.u32 %v10667_v40, %v7684_v39 }
  0xe8   : > { %1643 = vmatpush.bf16.msra.mxu3 %v7621_v0  ;;  %1630 = vmatpush.bf16.msrb.mxu1 %v7953_v4  ;;  %v7828_v0 = vld [vmem:[#allocation8 + $0x268] sm:$0xf]  ;;  %v10642_v4 = vld [vmem:[#allocation8 + $0xac] sm:$0xf0]  ;;  %v7769_v6 = vor.u32 %v10683_v58, %v7766_v60  ;;  %v7574_v50 = vld [vmem:[#allocation8 + $0xa8] sm:$0xf0] }
  0xe9   : > { %v7829_v11 = vor.u32 %v10703_v1, %v7828_v0  ;;  %v7924_v58 = vld [vmem:[#allocation8 + $0x328] sm:$0xf]  ;;  %v10727_v60 = vld [vmem:[#allocation8 + $0x354] sm:$0xf0]  ;;  %v7526_v0 = vld [vmem:[#allocation8 + $0x48] sm:$0xf0] }
  0xea   : > { %v10696_v1 = vld [vmem:[#allocation8 + $0x264] sm:$0xf]  ;;  %v10685_v40 = vld [vmem:[#allocation8 + $0x20c] sm:$0xf] }
  0xeb   : > { %1611 = vmatpush.bf16.msrb.mxu0 %v7809_v12  ;;  %1695 = vmatpush.bf16.msrb.mxu2 %v7821_v13  ;;  %v10671_v12 = vld [vmem:[#allocation8 + $0x19c] sm:$0xf]  ;;  %v7718_v13 = vld [vmem:[#allocation8 + $0x1c8] sm:$0xf0] }
  0xec   : > { %1644 = vmatpush.bf16.msra.mxu3 %v7573_v15  ;;  %1631 = vmatpush.bf16.msrb.mxu1 %v7905_v18  ;;  %v7581_v15 = vor.u32 %v10642_v4, %v7580_v3  ;;  %v7518_v18 = vld [vmem:[#allocation8 + $0x40] sm:$0xf0]  ;;  %v7721_v43 = vor.u32 %v10671_v12, %v7718_v13  ;;  %v7825_v12 = vor.u32 %v10696_v1, %v7822_v2  ;;  %v10721_v1 = vld [vmem:[#allocation8 + $0x32c] sm:$0xf]  ;;  %v7926_v2 = vld [vmem:[#allocation8 + $0x358] sm:$0xf0] }
  0xed   : > { %v7521_v27 = vor.u32 %v10622_v8, %v7518_v18  ;;  %v10684_v13 = vld [vmem:[#allocation8 + $0x204] sm:$0xf]  ;;  %v7540_v18 = vld [vmem:[#allocation8 + $0x28] sm:$0xf] }
  0xef   : > { %1612 = vmatpush.bf16.msrb.mxu0 %v7761_v22  ;;  %1696 = vmatpush.bf16.msrb.mxu2 %v7773_v24  ;;  %v1304_v22 = vpack.c.b16 %v1172_v7, %v1172_v7  ;;  %v7781_v24 = vor.u32 %v10691_v17, %v7780_v16  ;;  %v7588_v7 = vld [vmem:[#allocation8 + $0x88] sm:$0xf]  ;;  %v10732_v16 = vld [vmem:[#allocation8 + $0x384] sm:$0xf]  ;;  %v7966_v17 = vld [vmem:[#allocation8 + $0x3b0] sm:$0xf0] }
  0xf0   : > { %1645 = vmatpush.bf16.msra.mxu3 %v7525_v26  ;;  %v7670_v26 = vld [vmem:[#allocation8 + $0x168] sm:$0xf0]  ;;  %v7969_v21 = vor.u32 %v10732_v16, %v7966_v17 }
  0xf1   : > { %v1456_v32 = vsel %vm1433_vm0, %v1304_v22, 0  ;;  %v7673_v33 = vor.u32 %v10659_v25, %v7670_v26  ;;  %v7726_v22 = vld [vmem:[#allocation8 + $0x1d0] sm:$0xf0]  ;;  %v10720_v25 = vld [vmem:[#allocation8 + $0x324] sm:$0xf] }
  0xf2   : > { %v7918_v26 = vld [vmem:[#allocation8 + $0x350] sm:$0xf0] }
  0xf3   : > { %1613 = vmatpush.bf16.msrb.mxu0 %v7713_v35  ;;  %1697 = vmatpush.bf16.msrb.mxu2 %v7725_v36  ;;  %v7958_v35 = vld [vmem:[#allocation8 + $0x3a8] sm:$0xf0]  ;;  %v10647_v36 = vld [vmem:[#allocation8 + $0xdc] sm:$0xf] }
  0xf4   : > { %1713 = vmatpush.bf16.msrb.mxu3 %v1459_v30  ;;  %7982 = vmatmul.msk.bf16.vlgmr.msra.gmra.mxu1 %vm1429_vm6, %v12211_v10  ;;  %v10679_v30 = vld [vmem:[#allocation8 + $0x1d4] sm:$0xf0]  ;;  %v7625_v47 = vor.u32 %v10647_v36, %v7622_v37  ;;  %v10648_v37 = vld [vmem:[#allocation8 + $0xe4] sm:$0xf] }
  0xf5   : > { %1646 = vmatmul.bf16.vlgmr.msra.gmra.mxu3 %v12226_v23  ;;  %1666 = vmatpush.bf16.msra.mxu1 %v7865_v41  ;;  %v7733_v38 = vor.u32 %v10679_v30, %v7732_v29  ;;  %v7961_v41 = vor.u32 %v10731_v34, %v7958_v35  ;;  %v7921_v30 = vor.u32 %v10720_v25, %v7918_v26  ;;  %v10697_v34 = vld [vmem:[#allocation8 + $0x26c] sm:$0xf]  ;;  %v7830_v35 = vld [vmem:[#allocation8 + $0x298] sm:$0xf0] }
  0xf6   : > { %7981 = vmatmul.msk.bf16.vlgmr.msra.gmra.mxu0 %vm1429_vm6, %v12211_v10  ;;  %7984 = vmatmul.msk.bf16.vlgmr.msra.gmra.mxu2 %vm1429_vm6, %v12211_v10  ;;  %v7833_v39 = vor.u32 %v10697_v34, %v7830_v35  ;;  %v10802_v34 = vld [vmem:[#allocation11 + $0x1ec] sm:$0xf0] }
  0xf7   : > { %1614 = vmatpush.bf16.msrb.mxu0 %v7665_v49  ;;  %1698 = vmatpush.bf16.msrb.mxu2 %v7677_v5  ;;  %v7910_v49 = vld [vmem:[#allocation8 + $0x348] sm:$0xf0]  ;;  %v10635_v5 = vld [vmem:[#allocation8 + $0x7c] sm:$0xf] }
  0xf8   : > { %1714 = vmatpush.bf16.msrb.mxu3 %v7965_v44  ;;  %v1465_v44 = vsel %vm1433_vm0, %v1307_v31, 0  ;;  %v10660_v31 = vld [vmem:[#allocation8 + $0x144] sm:$0xf] }
  0xf9   : > { %1667 = vmatpush.bf16.msra.mxu1 %v7817_v42  ;;  %v1174_v42 = vunpack.c.h.b16 %v12232_v59  ;;  %v10643_v59 = vld [vmem:[#allocation8 + $0xb4] sm:$0xf0] }
  0xfa   : > { %v7589_v8 = vor.u32 %v10643_v59, %v7588_v7  ;;  %v10625_v59 = vld [vmem:[#allocation8 + $0x2c] sm:$0xf] }
  0xfb   : > { %1615 = vmatpush.bf16.msrb.mxu0 %v7617_v61  ;;  %1699 = vmatpush.bf16.msrb.mxu2 %v7629_v62  ;;  %v7577_v61 = vor.u32 %v10635_v5, %v7574_v50  ;;  %v7873_v62 = vor.u32 %v10708_v51, %v7870_v52  ;;  %v1306_v4 = vpack.c.b16 %v1174_v42, %v1174_v42  ;;  %v7734_v5 = vld [vmem:[#allocation8 + $0x1d8] sm:$0xf0]  ;;  %v10624_v51 = vld [vmem:[#allocation8 + $0x24] sm:$0xf]  ;;  %v7534_v52 = vld [vmem:[#allocation8 + $0x50] sm:$0xf0] }
  0xfc   : > { %1715 = vmatpush.bf16.msrb.mxu3 %v7917_v56  ;;  %v7913_v56 = vor.u32 %v10719_v48, %v7910_v49  ;;  %v1176_v48 = vunpack.c.h.b16 %v12249_v9  ;;  %v10673_v49 = vld [vmem:[#allocation8 + $0x1ac] sm:$0xf]  ;;  %v7585_v50 = vor.u32 %v10636_v45, %v7582_v46  ;;  %v7686_v42 = vld [vmem:[#allocation8 + $0x178] sm:$0xf0] }
  0xfd   : > { %1668 = vmatpush.bf16.msra.mxu1 %v7769_v6  ;;  %v7925_v6 = vor.u32 %v10727_v60, %v7924_v58  ;;  %v10733_v58 = vld [vmem:[#allocation8 + $0x38c] sm:$0xf]  ;;  %v7974_v60 = vld [vmem:[#allocation8 + $0x3b8] sm:$0xf0] }
  0xfe   : > { %v10798_v45 = vld [vmem:[#allocation11 + $0x1cc] sm:$0xf0] }
  0xff   : > { %1616 = vmatpush.bf16.msrb.mxu0 %v7569_v14  ;;  %1700 = vmatpush.bf16.msrb.mxu2 %v7581_v15  ;;  %v7774_v14 = vld [vmem:[#allocation8 + $0x230] sm:$0xf0]  ;;  %v1462_v15 = vsel %vm1433_vm0, %v1306_v4, 0  ;;  %v7590_v4 = vld [vmem:[#allocation8 + $0xb8] sm:$0xf0] }
 0x100   : > { %1750 = vmatpush.bf16.msra.mxu3 %v7877_v57  ;;  %v10655_v57 = vld [vmem:[#allocation8 + $0x114] sm:$0xf0]  ;;  %v7777_v20 = vor.u32 %v10684_v13, %v7774_v14  ;;  %v12276_v13 = vld [vmem:[#allocation9] sm:$0xff] }
 0x101   : > { %1669 = vmatpush.bf16.msra.mxu1 %v7721_v43  ;;  %v7637_v3 = vor.u32 %v10655_v57, %v7636_v54  ;;  %v10672_v43 = vld [vmem:[#allocation8 + $0x1a4] sm:$0xf]  ;;  %v1308_v54 = vpack.c.b16 %v1176_v48, %v1176_v48  ;;  %v10758_v48 = vld [vmem:[#allocation11 + $0x8c] sm:$0xf0] }
 0x102   : > { %v7729_v29 = vor.u32 %v10672_v43, %v7726_v22  ;;  %v8104_v43 = vld [vmem:[#allocation11 + $0xe0] sm:$0xf]  ;;  %v10770_v22 = vld [vmem:[#allocation11 + $0xec] sm:$0xf0] }
 0x103   : > { %1617 = vmatpush.bf16.msrb.mxu0 %v7521_v27  ;;  %1701 = vmatpush.bf16.msrb.mxu2 %v7533_v28  ;;  %v10709_v27 = vld [vmem:[#allocation8 + $0x2cc] sm:$0xf]  ;;  %v7878_v28 = vld [vmem:[#allocation8 + $0x2f8] sm:$0xf0]  ;;  %v1468_v9 = vsel %vm1433_vm0, %v1308_v54, 0 }
 0x104   : > { %1751 = vmatpush.bf16.msra.mxu3 %v7829_v11  ;;  %7983 = vmatmul.msk.bf16.vlgmr.msrb.gmra.mxu1 %vm1429_vm6, %v12211_v10  ;;  %v7529_v11 = vor.u32 %v10623_v63, %v7526_v0  ;;  %v7977_v63 = vor.u32 %v10733_v58, %v7974_v60  ;;  %v8040_v54 = vld [vmem:[#allocation11 + $0x60] sm:$0xf]  ;;  %v10790_v58 = vld [vmem:[#allocation11 + $0x18c] sm:$0xf0] }
 0x105   : > { %1670 = vmatpush.bf16.msra.mxu1 %v7673_v33  ;;  %7986 = vmatmul.msk.bf16.vlgmr.msrb.gmra.mxu3 %vm1429_vm6, %v12211_v10  ;;  %v7881_v33 = vor.u32 %v10709_v27, %v7878_v28  ;;  %v8088_v28 = vld [vmem:[#allocation11 + $0xc0] sm:$0xf] }
 0x106   : > { %1618 = vmatmul.bf16.vlgmr.msrb.gmra.mxu0 %v12226_v23  ;;  %1702 = vmatmul.bf16.vlgmr.msrb.gmra.mxu2 %v12226_v23 }
 0x107   : > { %1685 = vmatpush.bf16.msra.mxu0 %v1456_v32  ;;  %1769 = vmatpush.bf16.msra.mxu2 %v1465_v44  ;;  %v7678_v32 = vld [vmem:[#allocation8 + $0x170] sm:$0xf0] }
 0x108   : > { %1752 = vmatpush.bf16.msra.mxu3 %v7781_v24  ;;  %v7541_v24 = vor.u32 %v10631_v19, %v7540_v18  ;;  %v7681_v36 = vor.u32 %v10660_v31, %v7678_v32 }
 0x109   : > { %1671 = vmatpush.bf16.msra.mxu1 %v7625_v47 }
 0x10b   : > { %1686 = vmatpush.bf16.msra.mxu0 %v7961_v41  ;;  %1770 = vmatpush.bf16.msra.mxu2 %v7973_v55  ;;  %v7782_v41 = vld [vmem:[#allocation8 + $0x238] sm:$0xf0]  ;;  %v10661_v55 = vld [vmem:[#allocation8 + $0x14c] sm:$0xf] }
 0x10c   : > { %1753 = vmatpush.bf16.msra.mxu3 %v7733_v38  ;;  %v7630_v38 = vld [vmem:[#allocation8 + $0x110] sm:$0xf0]  ;;  %v7785_v47 = vor.u32 %v10685_v40, %v7782_v41  ;;  %v7689_v57 = vor.u32 %v10661_v55, %v7686_v42  ;;  %v10754_v55 = vld [vmem:[#allocation11 + $0x6c] sm:$0xf0] }
 0x10d   : > { %1672 = vmatpush.bf16.msra.mxu1 %v7577_v61  ;;  %v7633_v44 = vor.u32 %v10648_v37, %v7630_v38  ;;  %v10649_v61 = vld [vmem:[#allocation8 + $0xec] sm:$0xf]  ;;  %v8072_v37 = vld [vmem:[#allocation11 + $0xa0] sm:$0xf]  ;;  %v8041_v42 = vor.u32 %v10754_v55, %v8040_v54 }
 0x10e   : > { %v10762_v38 = vld [vmem:[#allocation11 + $0xac] sm:$0xf0]  ;;  %v8136_v55 = vld [vmem:[#allocation11 + $0x120] sm:$0xf] }
 0x10f   : > { %1687 = vmatpush.bf16.msra.mxu0 %v7913_v56  ;;  %1771 = vmatpush.bf16.msra.mxu2 %v7925_v6  ;;  %v7537_v56 = vor.u32 %v10624_v51, %v7534_v52  ;;  %v7929_v6 = vor.u32 %v10721_v1, %v7926_v2  ;;  %v10794_v51 = vld [vmem:[#allocation11 + $0x1ac] sm:$0xf0]  ;;  %v8360_v1 = vld [vmem:[#allocation11 + $0x2e0] sm:$0xf] }
 0x110   : > { %1754 = vmatpush.bf16.msra.mxu3 %v7685_v53  ;;  %v7737_v53 = vor.u32 %v10673_v49, %v7734_v5  ;;  %v10834_v2 = vld [vmem:[#allocation11 + $0x2ec] sm:$0xf0] }
 0x111   : > { %1673 = vmatpush.bf16.msra.mxu1 %v7529_v11  ;;  %v7542_v11 = vld [vmem:[#allocation8 + $0x58] sm:$0xf0] }
 0x113   : > { %1722 = vmatpush.bf16.msrb.mxu0 %v7873_v62  ;;  %v7638_v62 = vld [vmem:[#allocation8 + $0x118] sm:$0xf0] }
 0x114   : > { %1755 = vmatpush.bf16.msra.mxu3 %v7637_v3  ;;  %1674 = vmatmul.bf16.vlgmr.msra.gmra.mxu1 %v12226_v23  ;;  %v7641_v0 = vor.u32 %v10649_v61, %v7638_v62  ;;  %v10637_v3 = vld [vmem:[#allocation8 + $0x8c] sm:$0xf]  ;;  %v8024_v61 = vld [vmem:[#allocation11 + $0x40] sm:$0xf] }
 0x115   : > { %1741 = vmatpush.bf16.msrb.mxu1 %v1462_v15  ;;  %v7593_v7 = vor.u32 %v10637_v3, %v7590_v4  ;;  %v775_v15 = vperm.slane %v12276_v13, 0  ;;  %v10750_v62 = vld [vmem:[#allocation11 + $0x4c] sm:$0xf0]  ;;  %v8361_v3 = vor.u32 %v10834_v2, %v8360_v1  ;;  %v8488_v4 = vld [vmem:[#allocation11 + $0x3e0] sm:$0xf] }
 0x116   : > { %7985 = vmatmul.msk.bf16.vlgmr.msra.gmra.mxu0 %vm1429_vm6, %v12211_v10  ;;  %7988 = vmatmul.msk.bf16.vlgmr.msra.gmra.mxu2 %vm1429_vm6, %v12211_v10 }
 0x117   : > { %1723 = vmatpush.bf16.msrb.mxu0 %v7825_v12  ;;  %v7545_v12 = vor.u32 %v10625_v59, %v7542_v11  ;;  %v10786_v11 = vld [vmem:[#allocation11 + $0x16c] sm:$0xf0] }
 0x118   : > { %1756 = vmatpush.bf16.msra.mxu3 %v7589_v8 }
 0x119   : > { %1742 = vmatpush.bf16.msrb.mxu1 %v7969_v21 }
 0x11b   : > { %1724 = vmatpush.bf16.msrb.mxu0 %v7777_v20 }
 0x11c   : > { %1757 = vmatpush.bf16.msra.mxu3 %v7541_v24  ;;  %v8105_v24 = vor.u32 %v10770_v22, %v8104_v43  ;;  %v10830_v43 = vld [vmem:[#allocation11 + $0x2cc] sm:$0xf0]  ;;  %v8472_v22 = vld [vmem:[#allocation11 + $0x3c0] sm:$0xf] }
 0x11d   : > { %1743 = vmatpush.bf16.msrb.mxu1 %v7921_v30 }
 0x11e   : > { %4912 = vmatpush.bf16.msrb.mxu2 %v8105_v24 }
 0x11f   : > { %1725 = vmatpush.bf16.msrb.mxu0 %v7729_v29  ;;  %1758 = vmatmul.bf16.vlgmr.msra.gmra.mxu3 %v12226_v23  ;;  %v10766_v29 = vld [vmem:[#allocation11 + $0xcc] sm:$0xf0] }
 0x120   : > { %v8089_v32 = vor.u32 %v10766_v29, %v8088_v28  ;;  %v10862_v29 = vld [vmem:[#allocation11 + $0x3cc] sm:$0xf0] }
 0x121   : > { %1778 = vmatpush.bf16.msra.mxu1 %v7881_v33  ;;  %v8232_v33 = vld [vmem:[#allocation11 + $0x1e0] sm:$0xf] }
 0x122   : > { %4913 = vmatpush.bf16.msrb.mxu2 %v8089_v32  ;;  %v8152_v32 = vld [vmem:[#allocation11 + $0x140] sm:$0xf] }
 0x123   : > { %1726 = vmatpush.bf16.msrb.mxu0 %v7681_v36  ;;  %v8233_v36 = vor.u32 %v10802_v34, %v8232_v33  ;;  %v10782_v33 = vld [vmem:[#allocation11 + $0x14c] sm:$0xf0]  ;;  %v8473_v34 = vor.u32 %v10862_v29, %v8472_v22  ;;  %v8296_v29 = vld [vmem:[#allocation11 + $0x260] sm:$0xf] }
 0x124   : > { %7987 = vmatmul.msk.bf16.vlgmr.msrb.gmra.mxu1 %vm1429_vm6, %v12211_v10 }
 0x125   : > { %1779 = vmatpush.bf16.msra.mxu1 %v7833_v39  ;;  %v8073_v39 = vor.u32 %v10762_v38, %v8072_v37  ;;  %4925 = vmatpush.bf16.msrb.mxu3 %v8233_v36  ;;  %v8153_v36 = vor.u32 %v10782_v33, %v8152_v32  ;;  %v7992_v37 = vld [vmem:[#allocation11] sm:$0xf]  ;;  %v10742_v38 = vld [vmem:[#allocation11 + $0xc] sm:$0xf0] }
 0x126   : > { %v10818_v32 = vld [vmem:[#allocation11 + $0x26c] sm:$0xf0] }
 0x127   : > { %1727 = vmatpush.bf16.msrb.mxu0 %v7633_v44  ;;  %v8216_v44 = vld [vmem:[#allocation11 + $0x1c0] sm:$0xf]  ;;  %4914 = vmatpush.bf16.msrb.mxu2 %v8073_v39 }
 0x128   : > { %v8217_v46 = vor.u32 %v10798_v45, %v8216_v44  ;;  %v7993_v44 = vor.u32 %v10742_v38, %v7992_v37  ;;  %v8616_v45 = vld [vmem:[#allocation11 + $0x4e0] sm:$0xf]  ;;  %v10850_v37 = vld [vmem:[#allocation11 + $0x36c] sm:$0xf0] }
 0x129   : > { %1780 = vmatpush.bf16.msra.mxu1 %v7785_v47  ;;  %v8056_v47 = vld [vmem:[#allocation11 + $0x80] sm:$0xf] }
 0x12a   : > { %v8057_v5 = vor.u32 %v10758_v48, %v8056_v47  ;;  %4926 = vmatpush.bf16.msrb.mxu3 %v8217_v46  ;;  %v10898_v46 = vld [vmem:[#allocation11 + $0x4ec] sm:$0xf0]  ;;  %v8328_v47 = vld [vmem:[#allocation11 + $0x2a0] sm:$0xf] }
 0x12b   : > { %1728 = vmatpush.bf16.msrb.mxu0 %v7585_v50  ;;  %v8200_v50 = vld [vmem:[#allocation11 + $0x1a0] sm:$0xf]  ;;  %v10826_v48 = vld [vmem:[#allocation11 + $0x2ac] sm:$0xf0] }
 0x12c   : > { %4915 = vmatpush.bf16.msrb.mxu2 %v8057_v5  ;;  %v8329_v5 = vor.u32 %v10826_v48, %v8328_v47  ;;  %v8568_v47 = vld [vmem:[#allocation11 + $0x480] sm:$0xf]  ;;  %v10886_v48 = vld [vmem:[#allocation11 + $0x48c] sm:$0xf0] }
 0x12d   : > { %1781 = vmatpush.bf16.msra.mxu1 %v7737_v53  ;;  %v8201_v53 = vor.u32 %v10794_v51, %v8200_v50  ;;  %v8456_v50 = vld [vmem:[#allocation11 + $0x3a0] sm:$0xf]  ;;  %v10858_v51 = vld [vmem:[#allocation11 + $0x3ac] sm:$0xf0] }
 0x12e   : > { %v8457_v54 = vor.u32 %v10858_v51, %v8456_v50  ;;  %v10814_v50 = vld [vmem:[#allocation11 + $0x24c] sm:$0xf0]  ;;  %v8569_v51 = vor.u32 %v10886_v48, %v8568_v47  ;;  %v8872_v47 = vld [vmem:[#allocation11 + $0x6e0] sm:$0xf] }
 0x12f   : > { %1729 = vmatpush.bf16.msrb.mxu0 %v7537_v56  ;;  %4927 = vmatpush.bf16.msrb.mxu3 %v8201_v53  ;;  %v8617_v53 = vor.u32 %v10898_v46, %v8616_v45  ;;  %v10926_v45 = vld [vmem:[#allocation11 + $0x5cc] sm:$0xf0] }
 0x130   : > { %4916 = vmatpush.bf16.msrb.mxu2 %v8041_v42  ;;  %v10778_v42 = vld [vmem:[#allocation11 + $0x12c] sm:$0xf0] }
 0x131   : > { %1782 = vmatpush.bf16.msra.mxu1 %v7689_v57 }
 0x132   : > { %1730 = vmatmul.bf16.vlgmr.msrb.gmra.mxu0 %v12226_v23 }
 0x133   : > { %1797 = vmatpush.bf16.msra.mxu0 %v1468_v9  ;;  %v8184_v9 = vld [vmem:[#allocation11 + $0x180] sm:$0xf] }
 0x134   : > { %v8185_v60 = vor.u32 %v10790_v58, %v8184_v9  ;;  %v8137_v9 = vor.u32 %v10778_v42, %v8136_v55  ;;  %v8600_v58 = vld [vmem:[#allocation11 + $0x4c0] sm:$0xf]  ;;  %v10846_v42 = vld [vmem:[#allocation11 + $0x34c] sm:$0xf0] }
 0x135   : > { %1783 = vmatpush.bf16.msra.mxu1 %v7641_v0  ;;  %v8025_v0 = vor.u32 %v10750_v62, %v8024_v61  ;;  %v8312_v61 = vld [vmem:[#allocation11 + $0x280] sm:$0xf]  ;;  %v10822_v62 = vld [vmem:[#allocation11 + $0x28c] sm:$0xf0] }
 0x136   : > { %4928 = vmatpush.bf16.msrb.mxu3 %v8185_v60  ;;  %v10894_v60 = vld [vmem:[#allocation11 + $0x4cc] sm:$0xf0]  ;;  %v8408_v55 = vld [vmem:[#allocation11 + $0x340] sm:$0xf] }
 0x137   : > { %1798 = vmatpush.bf16.msra.mxu0 %v7977_v63  ;;  %4917 = vmatpush.bf16.msrb.mxu2 %v8025_v0  ;;  %v8440_v0 = vld [vmem:[#allocation11 + $0x380] sm:$0xf]  ;;  %v8601_v1 = vor.u32 %v10894_v60, %v8600_v58  ;;  %v10922_v60 = vld [vmem:[#allocation11 + $0x5ac] sm:$0xf0] }
 0x138   : > { %v8712_v58 = vld [vmem:[#allocation11 + $0x5a0] sm:$0xf] }
 0x139   : > { %1784 = vmatpush.bf16.msra.mxu1 %v7593_v7  ;;  %v8168_v7 = vld [vmem:[#allocation11 + $0x160] sm:$0xf] }
 0x13b   : > { %1799 = vmatpush.bf16.msra.mxu0 %v7929_v6  ;;  %v10866_v6 = vld [vmem:[#allocation11 + $0x3ec] sm:$0xf0] }
 0x13c   : > { %v8489_v59 = vor.u32 %v10866_v6, %v8488_v4  ;;  %v8313_v4 = vor.u32 %v10822_v62, %v8312_v61  ;;  %v10854_v6 = vld [vmem:[#allocation11 + $0x38c] sm:$0xf0]  ;;  %v8713_v62 = vor.u32 %v10922_v60, %v8712_v58  ;;  %v8520_v58 = vld [vmem:[#allocation11 + $0x420] sm:$0xf]  ;;  %v776_v60 = vperm.slane %v12276_v13, 1 }
 0x13d   : > { %1785 = vmatpush.bf16.msra.mxu1 %v7545_v12  ;;  %v8008_v12 = vld [vmem:[#allocation11 + $0x20] sm:$0xf] }
 0x13f   : > { %4938 = vmatpush.bf16.msrb.mxu0 %v8361_v3 }
 0x140   : > { %1786 = vmatmul.bf16.vlgmr.msra.gmra.mxu1 %v12226_v23 }
 0x141   : > { %4951 = vmatpush.bf16.msrb.mxu1 %v8489_v59  ;;  %v10774_v59 = vld [vmem:[#allocation11 + $0x10c] sm:$0xf0] }
 0x142   : > { %7989 = vmatmul.msk.bf16.vlgmr.msra.gmra.mxu0 %vm1429_vm6, %v12211_v10  ;;  %v777_v10 = vperm.slane %v12276_v13, 2 }
 0x145   : > { %4952 = vmatpush.bf16.msrb.mxu1 %v8473_v34  ;;  %v8297_v34 = vor.u32 %v10818_v32, %v8296_v29  ;;  %v8536_v32 = vld [vmem:[#allocation11 + $0x440] sm:$0xf] }
 0x149   : > { %4953 = vmatpush.bf16.msrb.mxu1 %v8457_v54 }
 0x150   : > { %v1493_v14 = vpop.f32.mrf.mxu1 }
 0x153   : > { %v1479_v8 = vpop.f32.mrf.mxu0 }
 0x154   : > { %v1480_v16 = vadd.f32 %v1479_v8, %v775_v15  ;;  %v8169_v8 = vor.u32 %v10786_v11, %v8168_v7  ;;  %v8120_v7 = vld [vmem:[#allocation11 + $0x100] sm:$0xf]  ;;  %v8441_v11 = vor.u32 %v10854_v6, %v8440_v0  ;;  %v10810_v6 = vld [vmem:[#allocation11 + $0x22c] sm:$0xf0] }
 0x155   : > { %v8552_v0 = vld [vmem:[#allocation11 + $0x460] sm:$0xf] }
 0x156   : > { %v12281_v17 = vadd.f32 %v1493_v14, %v1480_v16  ;;  %v1549_v18 = vpop.f32.mrf.mxu3  ;;  %v10746_v16 = vld [vmem:[#allocation11 + $0x2c] sm:$0xf0]  ;;  %4929 = vmatpush.bf16.msrb.mxu3 %v8169_v8  ;;  %v8744_v8 = vld [vmem:[#allocation11 + $0x5e0] sm:$0xf]  ;;  %4954 = vmatpush.bf16.msrb.mxu1 %v8441_v11 }
 0x157   : > { %v8009_v24 = vor.u32 %v10746_v16, %v8008_v12  ;;  %v8121_v12 = vor.u32 %v10774_v59, %v8120_v7  ;;  %v10930_v16 = vld [vmem:[#allocation11 + $0x5ec] sm:$0xf0]  ;;  %v8392_v7 = vld [vmem:[#allocation11 + $0x320] sm:$0xf] }
 0x158   : > { %v12283_v19 = vpop.f32.mrf.mxu1  ;;  %v8745_v22 = vor.u32 %v10930_v16, %v8744_v8  ;;  %v10842_v16 = vld [vmem:[#allocation11 + $0x32c] sm:$0xf0]  ;;  %vm1806_vm7 = vcmp.ge.f32.partialorder %v12281_v17, 0.0 }
 0x159   : > { %v12285_v20 = vpop.f32.mrf.mxu2  ;;  %4918 = vmatpush.bf16.msrb.mxu2 %v8009_v24  ;;  %v8584_v24 = vld [vmem:[#allocation11 + $0x4a0] sm:$0xf] }
 0x15a   : > { %4930 = vmatpush.bf16.msrb.mxu3 %v8153_v36  ;;  %v8424_v36 = vld [vmem:[#allocation11 + $0x360] sm:$0xf] }
 0x15b   : > { %v12287_v23 = vpop.f32.mrf.mxu0  ;;  %v8425_v38 = vor.u32 %v10850_v37, %v8424_v36  ;;  %v10806_v36 = vld [vmem:[#allocation11 + $0x20c] sm:$0xf0] }
 0x15d   : > { %4919 = vmatpush.bf16.msrb.mxu2 %v7993_v44  ;;  %v8728_v44 = vld [vmem:[#allocation11 + $0x5c0] sm:$0xf]  ;;  %4955 = vmatpush.bf16.msrb.mxu1 %v8425_v38 }
 0x15e   : > { %v12290_v21 = vpop.f32.mrf.mxu3  ;;  %4931 = vmatpush.bf16.msrb.mxu3 %v8137_v9  ;;  %v8729_v46 = vor.u32 %v10926_v45, %v8728_v44  ;;  %v8409_v9 = vor.u32 %v10846_v42, %v8408_v55  ;;  %v8376_v45 = vld [vmem:[#allocation11 + $0x300] sm:$0xf] }
 0x15f   : > { %v8680_v42 = vld [vmem:[#allocation11 + $0x560] sm:$0xf] }
 0x160   : > { %v1535_v25 = vpop.f32.mrf.mxu1 }
 0x161   : > { %v12292_v26 = vpop.f32.mrf.mxu2  ;;  %v1536_v27 = vadd.f32 %v1535_v25, %v777_v10  ;;  %4964 = vmatpush.bf16.msra.mxu2 %v8617_v53  ;;  %4956 = vmatpush.bf16.msrb.mxu1 %v8409_v9  ;;  %v10914_v9 = vld [vmem:[#allocation11 + $0x56c] sm:$0xf0] }
 0x162   : > { %4932 = vmatpush.bf16.msrb.mxu3 %v8121_v12 }
 0x163   : > { %v12296_v30 = vadd.f32 %v1549_v18, %v1536_v27  ;;  %v12298_v31 = vpop.f32.mrf.mxu0  ;;  %v8344_v18 = vld [vmem:[#allocation11 + $0x2c0] sm:$0xf] }
 0x164   : > { %v8345_v28 = vor.u32 %v10830_v43, %v8344_v18 }
 0x165   : > { %4965 = vmatpush.bf16.msra.mxu2 %v8601_v1  ;;  %v10882_v1 = vld [vmem:[#allocation11 + $0x46c] sm:$0xf0]  ;;  %vm1808_vm4 = vcmp.ge.f32.partialorder %v12296_v30, 0.0 }
 0x166   : > { %v12300_v35 = vpop.f32.mrf.mxu3  ;;  %4939 = vmatpush.bf16.msrb.mxu0 %v8345_v28  ;;  %v10890_v28 = vld [vmem:[#allocation11 + $0x4ac] sm:$0xf0]  ;;  %4977 = vmatpush.bf16.msra.mxu3 %v8745_v22  ;;  %v8553_v59 = vor.u32 %v10882_v1, %v8552_v0  ;;  %v8393_v22 = vor.u32 %v10842_v16, %v8392_v7  ;;  %v1482_v1 = vadd.f32 %v12287_v23, %v775_v15  ;;  %v8504_v15 = vld [vmem:[#allocation11 + $0x400] sm:$0xf] }
 0x167   : > { %v8585_v33 = vor.u32 %v10890_v28, %v8584_v24  ;;  %v8696_v24 = vld [vmem:[#allocation11 + $0x580] sm:$0xf]  ;;  %v10918_v28 = vld [vmem:[#allocation11 + $0x58c] sm:$0xf0]  ;;  %v1508_v23 = vadd.f32 %v12285_v20, %v776_v60 }
 0x168   : > { %v12302_v40 = vpop.f32.mrf.mxu1  ;;  %v8697_v29 = vor.u32 %v10918_v28, %v8696_v24  ;;  %4957 = vmatpush.bf16.msrb.mxu1 %v8393_v22  ;;  %v10874_v0 = vld [vmem:[#allocation11 + $0x42c] sm:$0xf0]  ;;  %v8664_v22 = vld [vmem:[#allocation11 + $0x540] sm:$0xf] }
 0x169   : > { %v12304_v41 = vpop.f32.mrf.mxu2  ;;  %4966 = vmatpush.bf16.msra.mxu2 %v8585_v33  ;;  %v10878_v33 = vld [vmem:[#allocation11 + $0x44c] sm:$0xf0] }
 0x16a   : > { %4940 = vmatpush.bf16.msrb.mxu0 %v8329_v5  ;;  %v8280_v5 = vld [vmem:[#allocation11 + $0x240] sm:$0xf]  ;;  %4978 = vmatpush.bf16.msra.mxu3 %v8729_v46  ;;  %v8537_v37 = vor.u32 %v10878_v33, %v8536_v32  ;;  %v10838_v46 = vld [vmem:[#allocation11 + $0x30c] sm:$0xf0] }
 0x16b   : > { %v12306_v49 = vpop.f32.mrf.mxu0  ;;  %v8281_v54 = vor.u32 %v10814_v50, %v8280_v5  ;;  %v8377_v48 = vor.u32 %v10838_v46, %v8376_v45  ;;  %v10962_v5 = vld [vmem:[#allocation11 + $0x6ec] sm:$0xf0]  ;;  %v9000_v50 = vld [vmem:[#allocation11 + $0x7e0] sm:$0xf]  ;;  %v12358_v45 = vstv %s12340_s17  ;;  %v1496_v46 = vadd.f32 %v12283_v19, %v1482_v1  ;;  %s557_s17 = sand.u32 1, %s11938_s22  }
 0x16c   : > { %v10958_v7 = vld [vmem:[#allocation11 + $0x6cc] sm:$0xf0]  ;;  %v1832_v1 = vmul.f32 %v12358_v45, %v12281_v17  ;;  %s558_s20 = scalar_lea.vmem [#allocation21], %s557_s17  ;;  %s7294_s29 = scalar_lea.sflag [#allocation6], %s557_s17 }
 0x16d   : > { %4967 = vmatpush.bf16.msra.mxu2 %v8569_v51  ;;  %v10994_v51 = vld [vmem:[#allocation11 + $0x7ec] sm:$0xf0]  ;;  %4958 = vmatpush.bf16.msrb.mxu1 %v8377_v48  ;;  %vm1818_vm8 = vcmp.ge.f32.partialorder %v1496_v46, 0.0  ;;  %s7304_s0 = sshll.u32 %s558_s20, 4  ;;  %s7305_s0 = int_to_ptr.vmem [resolvable:$true] %s7304_s0 }
 0x16e   : > { %v12308_v52 = vpop.f32.mrf.mxu3  ;;  %4941 = vmatpush.bf16.msrb.mxu0 %v8313_v4  ;;  %v8264_v4 = vld [vmem:[#allocation11 + $0x220] sm:$0xf]  ;;  %4979 = vmatpush.bf16.msra.mxu3 %v8713_v62  ;;  %v9001_v55 = vor.u32 %v10994_v51, %v9000_v50  ;;  %v8681_v62 = vor.u32 %v10914_v9, %v8680_v42  ;;  %v10990_v16 = vld [vmem:[#allocation11 + $0x7cc] sm:$0xf0]  ;;  %v1522_v51 = vadd.f32 %v12298_v31, %v1508_v23  ;;  %v781_v9 = vperm.slane %v12276_v13, 6 }
 0x16f   : > { %v8265_v8 = vor.u32 %v10810_v6, %v8264_v4  ;;  %v8856_v6 = vld [vmem:[#allocation11 + $0x6c0] sm:$0xf]  ;;  %v10910_v33 = vld [vmem:[#allocation11 + $0x54c] sm:$0xf0]  ;;  %v1510_v31 = vadd.f32 %v12292_v26, %v776_v60 }
 0x170   : > { %v10954_v48 = vld [vmem:[#allocation11 + $0x6ac] sm:$0xf0]  ;;  %v8632_v23 = vld [vmem:[#allocation11 + $0x500] sm:$0xf]  ;;  %vm1807_vm9 = vcmp.ge.f32.partialorder %v1522_v51, 0.0 }
 0x171   : > { %v12310_v56 = vpop.f32.mrf.mxu2  ;;  %v12312_v57 = vpop.f32.mrf.mxu1  ;;  %4968 = vmatpush.bf16.msra.mxu2 %v8553_v59  ;;  %5003 = vmatpush.bf16.msra.mxu1 %v9001_v55  ;;  %v8984_v59 = vld [vmem:[#allocation11 + $0x7c0] sm:$0xf]  ;;  %v10906_v42 = vld [vmem:[#allocation11 + $0x52c] sm:$0xf0]  ;;  %v1524_v26 = vadd.f32 %v12306_v49, %v1510_v31 }
 0x172   : > { %4942 = vmatpush.bf16.msrb.mxu0 %v8297_v34  ;;  %v8248_v34 = vld [vmem:[#allocation11 + $0x200] sm:$0xf]  ;;  %4980 = vmatpush.bf16.msra.mxu3 %v8697_v29  ;;  %v8857_v29 = vor.u32 %v10958_v7, %v8856_v6  ;;  %v8985_v32 = vor.u32 %v10990_v16, %v8984_v59  ;;  %v782_v6 = vperm.slane %v12276_v13, 7  ;;  %v1844_v59 = vmul.f32 %v12358_v45, %v1496_v46 }
 0x173   : > { %v12314_v63 = vpop.f32.mrf.mxu0  ;;  %v8249_v44 = vor.u32 %v10806_v36, %v8248_v34  ;;  %v778_v34 = vperm.slane %v12276_v13, 3  ;;  %v779_v36 = vperm.slane %v12276_v13, 4  ;;  %v8648_v55 = vld [vmem:[#allocation11 + $0x520] sm:$0xf]  ;;  %vm1819_vm10 = vcmp.ge.f32.partialorder %v1524_v26, 0.0 }
 0x175   : > { %4969 = vmatpush.bf16.msra.mxu2 %v8537_v37  ;;  %v8665_v37 = vor.u32 %v10910_v33, %v8664_v22  ;;  %5004 = vmatpush.bf16.msra.mxu1 %v8985_v32  ;;  %v8824_v22 = vld [vmem:[#allocation11 + $0x680] sm:$0xf]  ;;  %v1833_v33 = vmul.f32 %v12358_v45, %v1522_v51 }
 0x176   : > { %4943 = vmatpush.bf16.msrb.mxu0 %v8281_v54  ;;  %v8873_v54 = vor.u32 %v10962_v5, %v8872_v47  ;;  %4981 = vmatpush.bf16.msra.mxu3 %v8681_v62  ;;  %v8840_v47 = vld [vmem:[#allocation11 + $0x6a0] sm:$0xf] }
 0x177   : > { %v8968_v5 = vld [vmem:[#allocation11 + $0x7a0] sm:$0xf]  ;;  %v8841_v20 = vor.u32 %v10954_v48, %v8840_v47  ;;  %v10902_v47 = vld [vmem:[#allocation11 + $0x50c] sm:$0xf0]  ;;  %v12384_v48 = vsel %vm1806_vm7, %v12281_v17, %v1832_v1 }
 0x178   : > { %v12316_v14 = vpop.f32.mrf.mxu3  ;;  %v8952_v32 = vld [vmem:[#allocation11 + $0x780] sm:$0xf]  ;;  %v8633_v49 = vor.u32 %v10902_v47, %v8632_v23 }
 0x179   : > { %v12318_v25 = vpop.f32.mrf.mxu1  ;;  %v12320_v27 = vpop.f32.mrf.mxu2  ;;  %v8920_v23 = vld [vmem:[#allocation11 + $0x740] sm:$0xf] }
 0x17a   : > { %4944 = vmatpush.bf16.msrb.mxu0 %v8265_v8  ;;  %v8521_v8 = vor.u32 %v10874_v0, %v8520_v58  ;;  %4982 = vmatpush.bf16.msra.mxu3 %v8665_v37  ;;  %v12364_v58 = vld [vmem:[#allocation9 + $0x8] sm:$0xf]  ;;  %v8649_v0 = vor.u32 %v10906_v42, %v8648_v55  ;;  %v12402_v55 = vmul.f32 %v12358_v45, %v12296_v30  ;;  %v8808_v42 = vld [vmem:[#allocation11 + $0x660] sm:$0xf] }
 0x17b   : > { %v12322_v39 = vpop.f32.mrf.mxu0  ;;  %v785_v7 = vperm.slane %v12364_v58, 2 }
 0x17c   : > { %4970 = vmatpush.bf16.msra.mxu2 %v8521_v8  ;;  %v1592_v8 = vadd.f32 %v12304_v41, %v779_v36  ;;  %v1648_v41 = vadd.f32 %v12316_v14, %v781_v9 }
 0x17e   : > { %4945 = vmatpush.bf16.msrb.mxu0 %v8249_v44  ;;  %v10870_v44 = vld [vmem:[#allocation11 + $0x40c] sm:$0xf0]  ;;  %4983 = vmatpush.bf16.msra.mxu3 %v8649_v0  ;;  %v1606_v37 = vadd.f32 %v12312_v57, %v1592_v8  ;;  %v780_v57 = vperm.slane %v12276_v13, 5  ;;  %v1662_v1 = vadd.f32 %v12320_v27, %v1648_v41  ;;  %v784_v27 = vperm.slane %v12364_v58, 1  ;;  %v9096_v13 = vld [vmem:[#allocation11 + $0x8a0] sm:$0xf] }
 0x17f   : > { %v8505_v50 = vor.u32 %v10870_v44, %v8504_v15  ;;  %v10982_v15 = vld [vmem:[#allocation11 + $0x78c] sm:$0xf0] }
 0x180   : > { %v12324_v2 = vpop.f32.mrf.mxu3  ;;  %v8953_v44 = vor.u32 %v10982_v15, %v8952_v32  ;;  %v10978_v8 = vld [vmem:[#allocation11 + $0x76c] sm:$0xf0]  ;;  %vm1810_vm11 = vcmp.ge.f32.partialorder %v1606_v37, 0.0  ;;  %v783_v32 = vperm.slane %v12364_v58, 0  ;;  %v12421_v15 = vadd.f32 %v12302_v40, %v777_v10 }
 0x181   : > { %v12326_v3 = vpop.f32.mrf.mxu1  ;;  %v12328_v18 = vpop.f32.mrf.mxu2  ;;  %4971 = vmatpush.bf16.msra.mxu2 %v8505_v50  ;;  %v1564_v50 = vadd.f32 %v12300_v35, %v778_v34  ;;  %v12405_v35 = vsel %vm1807_vm9, %v1522_v51, %v1833_v33  ;;  %v1594_v51 = vadd.f32 %v12310_v56, %v779_v36  ;;  %v1838_v10 = vmul.f32 %v12358_v45, %v1662_v1 }
 0x182   : > { %4990 = vmatpush.bf16.msra.mxu0 %v8873_v54  ;;  %v10986_v54 = vld [vmem:[#allocation11 + $0x7ac] sm:$0xf0]  ;;  %4984 = vmatpush.bf16.msra.mxu3 %v8633_v49  ;;  %vm1812_vm13 = vcmp.ge.f32.partialorder %v1662_v1, 0.0 }
 0x183   : > { %v12330_v43 = vpop.f32.mrf.mxu0  ;;  %v8969_v62 = vor.u32 %v10986_v54, %v8968_v5  ;;  %v1578_v0 = vadd.f32 %v12314_v63, %v1564_v50  ;;  %v12430_v36 = vadd.f32 %v12318_v25, %v1594_v51  ;;  %v8776_v50 = vld [vmem:[#allocation11 + $0x620] sm:$0xf] }
 0x185   : > { %5005 = vmatpush.bf16.msra.mxu1 %v8969_v62  ;;  %v10946_v62 = vld [vmem:[#allocation11 + $0x66c] sm:$0xf0]  ;;  %vm1809_vm12 = vcmp.ge.f32.partialorder %v1578_v0, 0.0  ;;  %vm1822_vm15 = vcmp.ge.f32.partialorder %v12430_v36, 0.0 }
 0x186   : > { %4991 = vmatpush.bf16.msra.mxu0 %v8857_v29  ;;  %v10950_v29 = vld [vmem:[#allocation11 + $0x68c] sm:$0xf0]  ;;  %v8809_v31 = vor.u32 %v10946_v62, %v8808_v42 }
 0x187   : > { %v8825_v60 = vor.u32 %v10950_v29, %v8824_v22  ;;  %v1650_v29 = vadd.f32 %v12324_v2, %v781_v9  ;;  %v1566_v2 = vadd.f32 %v12308_v52, %v778_v34  ;;  %v10942_v9 = vld [vmem:[#allocation11 + $0x64c] sm:$0xf0]  ;;  %v1835_v34 = vmul.f32 %v12358_v45, %v1578_v0 }
 0x188   : > { %v12334_v61 = vpop.f32.mrf.mxu3 }
 0x189   : > { %v12332_v53 = vpop.f32.mrf.mxu1  ;;  %v12336_v11 = vpop.f32.mrf.mxu2  ;;  %5006 = vmatpush.bf16.msra.mxu1 %v8953_v44  ;;  %v1664_v47 = vadd.f32 %v12328_v18, %v1650_v29  ;;  %v1862_v18 = vsel %vm1812_vm13, %v1662_v1, %v1838_v10  ;;  %v1859_v51 = vsel %vm1809_vm12, %v1578_v0, %v1835_v34  ;;  %v1848_v1 = vmul.f32 %v12358_v45, %v12430_v36  ;;  %v10934_v29 = vld [vmem:[#allocation11 + $0x60c] sm:$0xf0] }
 0x18a   : > { %4992 = vmatpush.bf16.msra.mxu0 %v8841_v20  ;;  %v12392_v20 = vsel %vm1818_vm8, %v1496_v46, %v1844_v59  ;;  %v1845_v46 = vmul.f32 %v12358_v45, %v1524_v26  ;;  %v8936_v59 = vld [vmem:[#allocation11 + $0x760] sm:$0xf]  ;;  %v1880_v0 = vmax.f32 %v12384_v48, %v1862_v18 }
 0x18b   : > { %v12338_v12 = vpop.f32.mrf.mxu0  ;;  %v8937_v22 = vor.u32 %v10978_v8, %v8936_v59  ;;  %vm1824_vm2 = vcmp.ge.f32.partialorder %v1664_v47, 0.0 }
 0x18c   : > { %v12424_v56 = vsel %vm1819_vm10, %v1524_v26, %v1845_v46  ;;  %v10974_v26 = vld [vmem:[#allocation11 + $0x74c] sm:$0xf0]  ;;  %v1704_v46 = vadd.f32 %v12336_v11, %v783_v32  ;;  %v8760_v11 = vld [vmem:[#allocation11 + $0x600] sm:$0xf] }
 0x18d   : > { %5007 = vmatpush.bf16.msra.mxu1 %v8937_v22  ;;  %v8921_v25 = vor.u32 %v10974_v26, %v8920_v23 }
 0x18e   : > { %4993 = vmatpush.bf16.msra.mxu0 %v8825_v60 }
 0x190   : > { %v12348_v4 = vpop.f32.mrf.mxu3 }
 0x191   : > { %v12342_v38 = vpop.f32.mrf.mxu1  ;;  %v12350_v24 = vpop.f32.mrf.mxu2  ;;  %5008 = vmatpush.bf16.msra.mxu1 %v8921_v25 }
 0x192   : > { %v1676_v14 = vadd.f32 %v12342_v38, %v782_v6  ;;  %v1836_v38 = vmul.f32 %v12358_v45, %v1606_v37  ;;  %4994 = vmatpush.bf16.msra.mxu0 %v8809_v31  ;;  %v10970_v31 = vld [vmem:[#allocation11 + $0x72c] sm:$0xf0] }
 0x193   : > { %v12352_v28 = vpop.f32.mrf.mxu0 }
 0x194   : > { %v1690_v33 = vadd.f32 %v12352_v28, %v1676_v14  ;;  %v8792_v28 = vld [vmem:[#allocation11 + $0x640] sm:$0xf]  ;;  %v12433_v41 = vsel %vm1810_vm11, %v1606_v37, %v1836_v38  ;;  %v10938_v14 = vld [vmem:[#allocation11 + $0x62c] sm:$0xf0] }
 0x195   : > { %v8793_v40 = vor.u32 %v10942_v9, %v8792_v28  ;;  %v8777_v62 = vor.u32 %v10938_v14, %v8776_v50  ;;  %v8904_v38 = vld [vmem:[#allocation11 + $0x720] sm:$0xf]  ;;  %v10966_v28 = vld [vmem:[#allocation11 + $0x70c] sm:$0xf0] }
 0x196   : > { %vm1813_vm0 = vcmp.ge.f32.partialorder %v1690_v33, 0.0  ;;  %v8905_v8 = vor.u32 %v10970_v31, %v8904_v38  ;;  %v9128_v50 = vld [vmem:[#allocation11 + $0x8e0] sm:$0xf] }
 0x197   : > { %4995 = vmatpush.bf16.msra.mxu0 %v8793_v40  ;;  %v1718_v40 = vadd.f32 %v12334_v61, %v1704_v46  ;;  %v11026_v46 = vld [vmem:[#allocation11 + $0x8ec] sm:$0xf0] }
 0x198   : > { %5009 = vmatpush.bf16.msra.mxu1 %v8905_v8 }
 0x199   : > { %v12366_v19 = vpop.f32.mrf.mxu1  ;;  %v1773_v54 = vpop.f32.mrf.mxu2  ;;  %vm1814_vm7 = vcmp.ge.f32.partialorder %v1718_v40, 0.0 }
 0x19a   : > { %v1678_v49 = vadd.f32 %v12366_v19, %v782_v6 }
 0x19b   : > { %v12398_v17 = vpop.f32.mrf.mxu0  ;;  %4996 = vmatpush.bf16.msra.mxu0 %v8777_v62  ;;  %v11058_v62 = vld [vmem:[#allocation11 + $0x9ec] sm:$0xf0] }
 0x1a1   : > { %v1745_v60 = vpop.f32.mrf.mxu1  ;;  %v1775_v42 = vpop.f32.mrf.mxu2 }
 0x1a2   : > { %v1759_v16 = vpop.f32.mrf.mxu3 }
 0x1a3   : > { %v1760_v5 = vadd.f32 %v1759_v16, %v785_v7 }
 0x1a5   : > { %v1774_v16 = vadd.f32 %v1773_v54, %v1760_v5  ;;  %v1839_v5 = vmul.f32 %v12358_v45, %v1690_v33  ;;  %v1580_v54 = vadd.f32 %v12322_v39, %v1566_v2  ;;  %v1850_v39 = vmul.f32 %v12358_v45, %v1664_v47 }
 0x1a6   : > { %v1692_v2 = vadd.f32 %v12398_v17, %v1678_v49 }
 0x1a7   : > { %v1842_v44 = vmul.f32 %v12358_v45, %v1774_v16  ;;  %vm1816_vm14 = vcmp.ge.f32.partialorder %v1774_v16, 0.0  ;;  %v1863_v22 = vsel %vm1813_vm0, %v1690_v33, %v1839_v5  ;;  %v1847_v33 = vmul.f32 %v12358_v45, %v1580_v54 }
 0x1a8   : > { %vm1821_vm5 = vcmp.ge.f32.partialorder %v1580_v54, 0.0  ;;  %v1851_v61 = vmul.f32 %v12358_v45, %v1692_v2  ;;  %vm1825_vm6 = vcmp.ge.f32.partialorder %v1692_v2, 0.0 }
 0x1a9   : > { %v1866_v19 = vsel %vm1816_vm14, %v1774_v16, %v1842_v44  ;;  %v1747_v23 = vpop.f32.mrf.mxu1  ;;  %v1620_v44 = vadd.f32 %v12330_v43, %v780_v57  ;;  %v1872_v43 = vsel %vm1822_vm15, %v12430_v36, %v1848_v1  ;;  %v1840_v36 = vmul.f32 %v12358_v45, %v1718_v40 }
 0x1aa   : > { %v1761_v63 = vpop.f32.mrf.mxu3  ;;  %v1884_v9 = vmax.f32 %v12433_v41, %v1866_v19  ;;  %v1874_v41 = vsel %vm1824_vm2, %v1664_v47, %v1850_v39  ;;  %v1871_v47 = vsel %vm1821_vm5, %v1580_v54, %v1847_v33  ;;  %v1875_v38 = vsel %vm1825_vm6, %v1692_v2, %v1851_v61  ;;  %v9112_v39 = vld [vmem:[#allocation11 + $0x8c0] sm:$0xf] }
 0x1ab   : > { %v1762_v52 = vadd.f32 %v1761_v63, %v785_v7  ;;  %v8888_v63 = vld [vmem:[#allocation11 + $0x700] sm:$0xf]  ;;  %v1886_v14 = vmax.f32 %v12392_v20, %v1874_v41  ;;  %v1634_v18 = vadd.f32 %v12326_v3, %v1620_v44  ;;  %v1706_v19 = vadd.f32 %v12350_v24, %v783_v32  ;;  %v11050_v44 = vld [vmem:[#allocation11 + $0x9ac] sm:$0xf0] }
 0x1ac   : > { %v8889_v10 = vor.u32 %v10966_v28, %v8888_v63  ;;  %v11022_v63 = vld [vmem:[#allocation11 + $0x8cc] sm:$0xf0]  ;;  %v9240_v2 = vld [vmem:[#allocation11 + $0x9c0] sm:$0xf]  ;;  %v1864_v28 = vsel %vm1814_vm7, %v1718_v40, %v1840_v36  ;;  %vm7276_vm7 = vcmask 8192  }
 0x1ad   : > { %v1776_v6 = vadd.f32 %v1775_v42, %v1762_v52  ;;  %v1881_v52 = vmax.f32 %v12405_v35, %v1863_v22  ;;  %v9256_v42 = vld [vmem:[#allocation11 + $0x9e0] sm:$0xf]  ;;  %v1887_v22 = vmax.f32 %v12424_v56, %v1875_v38  ;;  %v1622_v56 = vadd.f32 %v12338_v12, %v780_v57  ;;  %v11018_v57 = vld [vmem:[#allocation11 + $0x8ac] sm:$0xf0] }
 0x1ae   : > { %5010 = vmatpush.bf16.msra.mxu1 %v8889_v10  ;;  %v9257_v1 = vor.u32 %v11058_v62, %v9256_v42  ;;  %vm1811_vm9 = vcmp.ge.f32.partialorder %v1634_v18, 0.0  ;;  %v9113_v40 = vor.u32 %v11022_v63, %v9112_v39  ;;  %v1858_v12 = vsel %vm1808_vm4, %v12296_v30, %v12402_v55  ;;  %v9064_v62 = vld [vmem:[#allocation11 + $0x860] sm:$0xf]  ;;  %v11010_v36 = vld [vmem:[#allocation11 + $0x86c] sm:$0xf0] }
 0x1af   : > { %v1731_v37 = vpop.f32.mrf.mxu0  ;;  %v1854_v26 = vmul.f32 %v12358_v45, %v1776_v6  ;;  %vm1828_vm3 = vcmp.ge.f32.partialorder %v1776_v6, 0.0  ;;  %v1893_v35 = vmax.f32 %v1881_v52, %v1884_v9  ;;  %v1720_v9 = vadd.f32 %v12348_v4, %v1706_v19  ;;  %v9192_v38 = vld [vmem:[#allocation11 + $0x960] sm:$0xf] }
 0x1b0   : > { %v1732_v7 = vadd.f32 %v1731_v37, %v784_v27  ;;  %v1552_v52 = vadd.f32 %v12290_v21, %v12421_v15  ;;  %v1882_v61 = vmax.f32 %v1858_v12, %v1864_v28  ;;  %v9097_v55 = vor.u32 %v11018_v57, %v9096_v13  ;;  %v9080_v21 = vld [vmem:[#allocation11 + $0x880] sm:$0xf] }
 0x1b1   : > { %v1878_v37 = vsel %vm1828_vm3, %v1776_v6, %v1854_v26  ;;  %vm1826_vm11 = vcmp.ge.f32.partialorder %v1720_v9, 0.0  ;;  %v9065_v39 = vor.u32 %v11010_v36, %v9064_v62  ;;  %v9176_v28 = vld [vmem:[#allocation11 + $0x940] sm:$0xf]  ;;  %v11114_v62 = vld [vmem:[#allocation11 + $0xbac] sm:$0xf0] }
 0x1b2   : > { %v1746_v59 = vadd.f32 %v1745_v60, %v1732_v7  ;;  %v8761_v60 = vor.u32 %v10934_v29, %v8760_v11  ;;  %v786_v7 = vperm.slane %v12364_v58, 3  ;;  %v1890_v54 = vmax.f32 %v1872_v43, %v1878_v37  ;;  %v11014_v37 = vld [vmem:[#allocation11 + $0x88c] sm:$0xf0]  ;;  %v9160_v57 = vld [vmem:[#allocation11 + $0x920] sm:$0xf] }
 0x1b3   : > { %vm1820_vm12 = vcmp.ge.f32.partialorder %v1552_v52, 0.0 }
 0x1b4   : > { %vm1815_vm1 = vcmp.ge.f32.partialorder %v1746_v59, 0.0  ;;  %v1841_v16 = vmul.f32 %v12358_v45, %v1746_v59  ;;  %4997 = vmatpush.bf16.msra.mxu0 %v8761_v60  ;;  %v1837_v60 = vmul.f32 %v12358_v45, %v1634_v18 }
 0x1b6   : > { %v1865_v17 = vsel %vm1815_vm1, %v1746_v59, %v1841_v16  ;;  %v11054_v16 = vld [vmem:[#allocation11 + $0x9cc] sm:$0xf0] }
 0x1b7   : > { %v1883_v48 = vmax.f32 %v1859_v51, %v1865_v17  ;;  %v1733_v25 = vpop.f32.mrf.mxu0  ;;  %v9129_v51 = vor.u32 %v11026_v46, %v9128_v50  ;;  %v9241_v26 = vor.u32 %v11054_v16, %v9240_v2  ;;  %v9224_v17 = vld [vmem:[#allocation11 + $0x9a0] sm:$0xf]  ;;  %v11046_v50 = vld [vmem:[#allocation11 + $0x98c] sm:$0xf0]  ;;  %v9081_v46 = vor.u32 %v11014_v37, %v9080_v21 }
 0x1b8   : > { %v1734_v34 = vadd.f32 %v1733_v25, %v784_v27  ;;  %v1861_v25 = vsel %vm1811_vm9, %v1634_v18, %v1837_v60  ;;  %v9384_v2 = vld [vmem:[#allocation11 + $0xae0] sm:$0xf]  ;;  %v11006_v60 = vld [vmem:[#allocation11 + $0x84c] sm:$0xf0] }
 0x1b9   : > { %v1892_v5 = vmax.f32 %v1880_v0, %v1883_v48  ;;  %v1636_v48 = vadd.f32 %v12332_v53, %v1622_v56  ;;  %v11038_v56 = vld [vmem:[#allocation11 + $0x94c] sm:$0xf0]  ;;  %v9016_v37 = vld [vmem:[#allocation11 + $0x800] sm:$0xf] }
 0x1ba   : > { %v1748_v49 = vadd.f32 %v1747_v23, %v1734_v34  ;;  %v1896_v23 = vmax.f32 %v1887_v22, %v1890_v54  ;;  %v1852_v34 = vmul.f32 %v12358_v45, %v1720_v9 }
 0x1bb   : > { %v1898_v27 = vpack.c.bf16 %v1893_v35, %v1892_v5  ;;  %v9225_v5 = vor.u32 %v11050_v44, %v9224_v17  ;;  %vm1823_vm13 = vcmp.ge.f32.partialorder %v1636_v48, 0.0 }
 0x1bc   : > { %vm1827_vm8 = vcmp.ge.f32.partialorder %v1748_v49, 0.0  ;;  %v1853_v31 = vmul.f32 %v12358_v45, %v1748_v49  ;;  %v1876_v58 = vsel %vm1826_vm11, %v1720_v9, %v1852_v34  ;;  %v9512_v9 = vld [vmem:[#allocation11 + $0xbe0] sm:$0xf] }
 0x1bd   : > { %1902 = vst [vmem:[#allocation2] sm:$0xff] %v1898_v27  ;;  %v1787_v20 = vpop.f32.mrf.mxu1  ;;  %v12487_v6 = vunpack.c.l.b16 %v1898_v27  ;;  %v12489_v3 = vunpack.c.h.b16 %v1898_v27  ;;  %v9368_v34 = vld [vmem:[#allocation11 + $0xac0] sm:$0xf] }
 0x1be   : > { %v1877_v59 = vsel %vm1827_vm8, %v1748_v49, %v1853_v31  ;;  %v1788_v8 = vadd.f32 %v1787_v20, %v786_v7  ;;  %v9208_v49 = vld [vmem:[#allocation11 + $0x980] sm:$0xf]  ;;  %v11042_v31 = vld [vmem:[#allocation11 + $0x96c] sm:$0xf0] }
 0x1bf   : > { %v1889_v11 = vmax.f32 %v1871_v47, %v1877_v59  ;;  %v1801_v29 = vpop.f32.mrf.mxu0  ;;  %v12496_v24 = vpack.c.b16 %v12487_v6, %v12487_v6  ;;  %v12500_v32 = vpack.c.b16 %v12489_v3, %v12489_v3  ;;  %v1846_v47 = vmul.f32 %v12358_v45, %v1552_v52 }
 0x1c0   : > { %v1802_v0 = vadd.f32 %v1801_v29, %v1788_v8  ;;  %v9209_v42 = vor.u32 %v11046_v50, %v9208_v49  ;;  %v9193_v22 = vor.u32 %v11042_v31, %v9192_v38  ;;  %v10998_v49 = vld [vmem:[#allocation11 + $0x80c] sm:$0xf0]  ;;  %v9144_v50 = vld [vmem:[#allocation11 + $0x900] sm:$0xf] }
 0x1c1   : > { %v1895_v10 = vmax.f32 %v1886_v14, %v1889_v11  ;;  %4920 = vmatmul.bf16.vlgmr.msrb.gmra.mxu2 %v12496_v24  ;;  %4933 = vmatmul.bf16.vlgmr.msrb.gmra.mxu3 %v12500_v32  ;;  %v1849_v14 = vmul.f32 %v12358_v45, %v1636_v48  ;;  %v1870_v19 = vsel %vm1820_vm12, %v1552_v52, %v1846_v47  ;;  %v9048_v11 = vld [vmem:[#allocation11 + $0x840] sm:$0xf]  ;;  %v11034_v52 = vld [vmem:[#allocation11 + $0x92c] sm:$0xf0] }
 0x1c2   : > { %vm1817_vm10 = vcmp.ge.f32.partialorder %v1802_v0, 0.0  ;;  %v1843_v33 = vmul.f32 %v12358_v45, %v1802_v0  ;;  %5016 = vmatpush.bf16.msrb.mxu2 %v9129_v51  ;;  %5029 = vmatpush.bf16.msrb.mxu3 %v9257_v1  ;;  %v1888_v8 = vmax.f32 %v1870_v19, %v1876_v58  ;;  %v11030_v47 = vld [vmem:[#allocation11 + $0x90c] sm:$0xf0]  ;;  %v9352_v58 = vld [vmem:[#allocation11 + $0xaa0] sm:$0xf]  ;;  %v9017_v38 = vor.u32 %v10998_v49, %v9016_v37 }
 0x1c3   : > { %v1900_v4 = vpack.c.bf16 %v1896_v23, %v1895_v10  ;;  %v1873_v54 = vsel %vm1823_vm13, %v1636_v48, %v1849_v14  ;;  %v11122_v23 = vld [vmem:[#allocation11 + $0xbec] sm:$0xf0]  ;;  %v9145_v31 = vor.u32 %v11030_v47, %v9144_v50  ;;  %v9432_v50 = vld [vmem:[#allocation11 + $0xb40] sm:$0xf] }
 0x1c4   : > { %v1867_v41 = vsel %vm1817_vm10, %v1802_v0, %v1843_v33  ;;  %v11090_v0 = vld [vmem:[#allocation11 + $0xaec] sm:$0xf0] }
 0x1c5   : > { %1904 = vst [vmem:[#allocation2 + $0xc] sm:$0x33] %v1900_v4  ;;  %v1885_v43 = vmax.f32 %v1861_v25, %v1867_v41  ;;  %v1789_v35 = vpop.f32.mrf.mxu1  ;;  %v9177_v4 = vor.u32 %v11038_v56, %v9176_v28  ;;  %v9385_v48 = vor.u32 %v11090_v0, %v9384_v2  ;;  %v9513_v25 = vor.u32 %v11122_v23, %v9512_v9  ;;  %v11110_v2 = vld [vmem:[#allocation11 + $0xb8c] sm:$0xf0]  ;;  %v9768_v0 = vld [vmem:[#allocation11 + $0xde0] sm:$0xf] }
 0x1c6   : > { %v1790_v30 = vadd.f32 %v1789_v35, %v786_v7  ;;  %5017 = vmatpush.bf16.msrb.mxu2 %v9113_v40  ;;  %5030 = vmatpush.bf16.msrb.mxu3 %v9241_v26  ;;  %v9032_v40 = vld [vmem:[#allocation11 + $0x820] sm:$0xf]  ;;  %v11002_v26 = vld [vmem:[#allocation11 + $0x82c] sm:$0xf0] }
 0x1c7   : > { %v1894_v15 = vmax.f32 %v1882_v61, %v1885_v43  ;;  %v1803_v53 = vpop.f32.mrf.mxu0  ;;  %v11186_v9 = vld [vmem:[#allocation11 + $0xdec] sm:$0xf0] }
 0x1c8   : > { %v1804_v18 = vadd.f32 %v1803_v53, %v1790_v30  ;;  %v11086_v30 = vld [vmem:[#allocation11 + $0xacc] sm:$0xf0]  ;;  %v9161_v53 = vor.u32 %v11034_v52, %v9160_v57 }
 0x1c9   : > { %v1899_v7 = vpack.c.bf16 %v1894_v15, %v1894_v15  ;;  %v9033_v15 = vor.u32 %v11002_v26, %v9032_v40  ;;  %v9369_v14 = vor.u32 %v11086_v30, %v9368_v34  ;;  %v11182_v30 = vld [vmem:[#allocation11 + $0xdcc] sm:$0xf0] }
 0x1ca   : > { %vm1829_vm14 = vcmp.ge.f32.partialorder %v1804_v18, 0.0  ;;  %v1855_v27 = vmul.f32 %v12358_v45, %v1804_v18  ;;  %5018 = vmatpush.bf16.msrb.mxu2 %v9097_v55  ;;  %5031 = vmatpush.bf16.msrb.mxu3 %v9225_v5  ;;  %v9496_v55 = vld [vmem:[#allocation11 + $0xbc0] sm:$0xf]  ;;  %v11118_v5 = vld [vmem:[#allocation11 + $0xbcc] sm:$0xf0] }
 0x1cb   : > { %1903 = vst [vmem:[#allocation2 + $0x8] sm:$0xf] %v1899_v7  ;;  %v9640_v7 = vld [vmem:[#allocation11 + $0xce0] sm:$0xf]  ;;  %v11102_v47 = vld [vmem:[#allocation11 + $0xb4c] sm:$0xf0] }
 0x1cc   : > { %v1879_v20 = vsel %vm1829_vm14, %v1804_v18, %v1855_v27  ;;  %v12526_v59 = vld [vmem:[#allocation2 + $0xc] sm:$0x11]  ;;  %v9497_v18 = vor.u32 %v11118_v5, %v9496_v55  ;;  %v11154_v27 = vld [vmem:[#allocation11 + $0xcec] sm:$0xf0]  ;;  %v9304_v5 = vld [vmem:[#allocation11 + $0xa40] sm:$0xf] }
 0x1cd   : > { %v1891_v51 = vmax.f32 %v1873_v54, %v1879_v20  ;;  %v1929_v1 = vunpack.c.l.b16 %v12526_v59  ;;  %v1930_v45 = vunpack.c.h.b16 %v12526_v59  ;;  %v9641_v54 = vor.u32 %v11154_v27, %v9640_v7  ;;  %v12545_v20 = vld [vmem:[#allocation2] sm:$0xee]  ;;  %v12556_v52 = vld [vmem:[#allocation2 + $0xc] sm:$0x33]  ;;  %v11178_v27 = vld [vmem:[#allocation11 + $0xdac] sm:$0xf0] }
 0x1ce   : > { %5019 = vmatpush.bf16.msrb.mxu2 %v9081_v46  ;;  %5032 = vmatpush.bf16.msrb.mxu3 %v9209_v42  ;;  %v11082_v46 = vld [vmem:[#allocation11 + $0xaac] sm:$0xf0]  ;;  %v9480_v42 = vld [vmem:[#allocation11 + $0xba0] sm:$0xf]  ;;  %v1962_v23 = vunpack.c.h.b16 %v12545_v20 }
 0x1cf   : > { %v1897_v29 = vmax.f32 %v1888_v8, %v1891_v51  ;;  %v1932_v63 = vpack.c.b16 %v1929_v1, %v12487_v6  ;;  %v1933_v16 = vpack.c.b16 %v1930_v45, %v12489_v3  ;;  %v9049_v6 = vor.u32 %v11006_v60, %v9048_v11  ;;  %v11150_v11 = vld [vmem:[#allocation11 + $0xccc] sm:$0xf0]  ;;  %v9736_v7 = vld [vmem:[#allocation11 + $0xda0] sm:$0xf] }
 0x1d0   : > { %v9353_v8 = vor.u32 %v11082_v46, %v9352_v58  ;;  %v9481_v51 = vor.u32 %v11114_v62, %v9480_v42  ;;  %v1961_v60 = vunpack.c.l.b16 %v12545_v20  ;;  %v9592_v62 = vld [vmem:[#allocation11 + $0xc80] sm:$0xf]  ;;  %v11066_v20 = vld [vmem:[#allocation11 + $0xa2c] sm:$0xf0] }
 0x1d1   : > { %v1901_v10 = vpack.c.bf16 %v1897_v29, %v1897_v29  ;;  %v1938_v33 = vshll.u32 %v1932_v63, 16  ;;  %v1945_v12 = vshll.u32 %v1933_v16, 16  ;;  %v1936_v3 = vshrl.u32 %v1932_v63, 16  ;;  %v11078_v29 = vld [vmem:[#allocation11 + $0xa8c] sm:$0xf0] }
 0x1d2   : > { %v1907_v13 = vld [vmem:[#allocation2 + $0x8] sm:$0xf]  ;;  %5020 = vmatpush.bf16.msrb.mxu2 %v9065_v39  ;;  %5033 = vmatpush.bf16.msrb.mxu3 %v9193_v22  ;;  %v1943_v41 = vshrl.u32 %v1933_v16, 16  ;;  %v9336_v39 = vld [vmem:[#allocation11 + $0xa80] sm:$0xf]  ;;  %v1964_v26 = vpack.c.b16 %v1929_v1, %v1961_v60 }
 0x1d3   : > { %1905 = vst [vmem:[#allocation2 + $0x14] sm:$0x3] %v1901_v10  ;;  %v1920_v17 = vunpack.c.l.b16 %v1907_v13  ;;  %v1940_v44 = vrot.slane %v1938_v33, 1  ;;  %v1947_v61 = vrot.slane %v1945_v12, 1  ;;  %v9624_v22 = vld [vmem:[#allocation11 + $0xcc0] sm:$0xf]  ;;  %v9337_v33 = vor.u32 %v11078_v29, %v9336_v39 }
 0x1d4   : > { %v9464_v63 = vld [vmem:[#allocation11 + $0xb80] sm:$0xf]  ;;  %v12548_v28 = vld [vmem:[#allocation2 + $0x8] sm:$0xe]  ;;  %v9625_v10 = vor.u32 %v11150_v11, %v9624_v22  ;;  %v11074_v12 = vld [vmem:[#allocation11 + $0xa6c] sm:$0xf0]  ;;  %v9737_v22 = vor.u32 %v11178_v27, %v9736_v7 }
 0x1d5   : > { %v12536_v43 = vpack.c.b16 %v1920_v17, %v1920_v17  ;;  %v12538_v35 = vor.u32 %v1940_v44, %v1936_v3  ;;  %v12540_v21 = vor.u32 %v1947_v61, %v1943_v41  ;;  %v9465_v40 = vor.u32 %v11110_v2, %v9464_v63  ;;  %v9320_v13 = vld [vmem:[#allocation11 + $0xa60] sm:$0xf]  ;;  %v11106_v3 = vld [vmem:[#allocation11 + $0xb6c] sm:$0xf0] }
 0x1d6   : > { %5021 = vmatpush.bf16.msrb.mxu2 %v9049_v6  ;;  %5034 = vmatpush.bf16.msrb.mxu3 %v9177_v4  ;;  %v9448_v6 = vld [vmem:[#allocation11 + $0xb60] sm:$0xf]  ;;  %v1963_v44 = vunpack.c.l.b16 %v12548_v28  ;;  %v11146_v41 = vld [vmem:[#allocation11 + $0xcac] sm:$0xf0]  ;;  %v9321_v59 = vor.u32 %v11074_v12, %v9320_v13  ;;  %v12564_v37 = vrot.slane %v1964_v26, 1 }
 0x1d7   : > { %4946 = vmatmul.bf16.vlgmr.msrb.gmra.mxu0 %v12536_v43  ;;  %4959 = vmatmul.bf16.vlgmr.msrb.gmra.mxu1 %v12538_v35  ;;  %v9752_v1 = vld [vmem:[#allocation11 + $0xdc0] sm:$0xf]  ;;  %v11138_v2 = vld [vmem:[#allocation11 + $0xc6c] sm:$0xf0] }
 0x1d8   : > { %5042 = vmatpush.bf16.msrb.mxu0 %v9385_v48  ;;  %5055 = vmatpush.bf16.msrb.mxu1 %v9513_v25  ;;  %v9769_v48 = vor.u32 %v11186_v9, %v9768_v0  ;;  %v9608_v25 = vld [vmem:[#allocation11 + $0xca0] sm:$0xf]  ;;  %v11174_v28 = vld [vmem:[#allocation11 + $0xd8c] sm:$0xf0] }
 0x1d9   : > { %4972 = vmatmul.bf16.vlgmr.msra.gmra.mxu2 %v12540_v21  ;;  %v9609_v58 = vor.u32 %v11146_v41, %v9608_v25  ;;  %v9720_v29 = vld [vmem:[#allocation11 + $0xd80] sm:$0xf]  ;;  %v11218_v13 = vld [vmem:[#allocation11 + $0xeec] sm:$0xf0] }
 0x1da   : > { %5022 = vmatpush.bf16.msrb.mxu2 %v9033_v15  ;;  %5035 = vmatpush.bf16.msrb.mxu3 %v9161_v53  ;;  %v1909_v36 = vld [vmem:[#allocation2 + $0x14] sm:$0x1]  ;;  %v1975_v53 = vunpack.c.l.b16 %v12556_v52  ;;  %v9576_v63 = vld [vmem:[#allocation11 + $0xc60] sm:$0xf] }
 0x1db   : > { %v1931_v19 = vunpack.c.l.b16 %v1909_v36  ;;  %v12560_v55 = vld [vmem:[#allocation2 + $0x14] sm:$0x3]  ;;  %v9896_v26 = vld [vmem:[#allocation11 + $0xee0] sm:$0xf] }
 0x1dc   : > { %5043 = vmatpush.bf16.msrb.mxu0 %v9369_v14  ;;  %5056 = vmatpush.bf16.msrb.mxu1 %v9497_v18  ;;  %v11070_v15 = vld [vmem:[#allocation11 + $0xa4c] sm:$0xf0]  ;;  %v1976_v14 = vunpack.c.h.b16 %v12556_v52  ;;  %v9753_v18 = vor.u32 %v11182_v30, %v9752_v1  ;;  %v1977_v46 = vunpack.c.l.b16 %v12560_v55  ;;  %v9560_v25 = vld [vmem:[#allocation11 + $0xc40] sm:$0xf] }
 0x1dd   : > { %v1934_v16 = vpack.c.b16 %v1931_v19, %v1920_v17  ;;  %v1965_v17 = vpack.c.b16 %v1930_v45, %v1962_v23  ;;  %v1966_v34 = vpack.c.b16 %v1931_v19, %v1963_v44  ;;  %v9449_v45 = vor.u32 %v11106_v3, %v9448_v6  ;;  %v11142_v36 = vld [vmem:[#allocation11 + $0xc8c] sm:$0xf0]  ;;  %v9288_v19 = vld [vmem:[#allocation11 + $0xa20] sm:$0xf] }
 0x1de   : > { %5023 = vmatpush.bf16.msrb.mxu2 %v9017_v38  ;;  %5036 = vmatpush.bf16.msrb.mxu3 %v9145_v31  ;;  %v9305_v38 = vor.u32 %v11070_v15, %v9304_v5  ;;  %v9433_v31 = vor.u32 %v11102_v47, %v9432_v50  ;;  %v1979_v39 = vpack.c.b16 %v1976_v14, %v1962_v23  ;;  %v11134_v41 = vld [vmem:[#allocation11 + $0xc4c] sm:$0xf0] }
 0x1df   : > { %v1952_v56 = vshll.u32 %v1934_v16, 16  ;;  %v1950_v4 = vshrl.u32 %v1934_v16, 16  ;;  %v12566_v49 = vrot.slane %v1965_v17, 1  ;;  %v12572_v42 = vrot.slane %v1966_v34, 1  ;;  %v8106_v17 = vld [vmem:[#allocation11 + $0xf0] sm:$0xf0] }
 0x1e0   : > { %5044 = vmatpush.bf16.msrb.mxu0 %v9353_v8  ;;  %5057 = vmatpush.bf16.msrb.mxu1 %v9481_v51  ;;  %v9416_v8 = vld [vmem:[#allocation11 + $0xb20] sm:$0xf]  ;;  %v11098_v51 = vld [vmem:[#allocation11 + $0xb2c] sm:$0xf0]  ;;  %v9593_v11 = vor.u32 %v11142_v36, %v9592_v62  ;;  %v1980_v16 = vpack.c.b16 %v1977_v46, %v1963_v44  ;;  %v9289_v0 = vor.u32 %v11066_v20, %v9288_v19  ;;  %v1990_v12 = vshrl.u32 %v1979_v39, 16 }
 0x1e1   : > { %v1954_v57 = vrot.slane %v1952_v56, 1  ;;  %v11062_v56 = vld [vmem:[#allocation11 + $0xa0c] sm:$0xf0]  ;;  %v9417_v9 = vor.u32 %v11098_v51, %v9416_v8  ;;  %v1993_v6 = vshll.u32 %v1979_v39, 16  ;;  %v9577_v3 = vor.u32 %v11138_v2, %v9576_v63  ;;  %v10764_v36 = vld [vmem:[#allocation11 + $0xc4] sm:$0xf] }
 0x1e2   : > { %5068 = vmatpush.bf16.msra.mxu2 %v9641_v54  ;;  %v1978_v54 = vpack.c.b16 %v1975_v53, %v1961_v60  ;;  %v9272_v60 = vld [vmem:[#allocation11 + $0xa00] sm:$0xf]  ;;  %v1998_v44 = vshrl.u32 %v1980_v16, 16  ;;  %v11170_v5 = vld [vmem:[#allocation11 + $0xd6c] sm:$0xf0]  ;;  %v9897_v15 = vor.u32 %v11218_v13, %v9896_v26  ;;  %v1992_v47 = vrot.slane %v1990_v12, 1 }
 0x1e3   : > { %v12558_v61 = vor.u32 %v1954_v57, %v1950_v4  ;;  %v9721_v4 = vor.u32 %v11174_v28, %v9720_v29  ;;  %v10768_v57 = vld [vmem:[#allocation11 + $0xe4] sm:$0xf]  ;;  %v9273_v34 = vor.u32 %v11062_v56, %v9272_v60  ;;  %v11214_v7 = vld [vmem:[#allocation11 + $0xecc] sm:$0xf0]  ;;  %v9688_v51 = vld [vmem:[#allocation11 + $0xd40] sm:$0xf] }
 0x1e4   : > { %5045 = vmatpush.bf16.msrb.mxu0 %v9337_v33  ;;  %5058 = vmatpush.bf16.msrb.mxu1 %v9465_v40  ;;  %v11094_v33 = vld [vmem:[#allocation11 + $0xb0c] sm:$0xf0]  ;;  %v1982_v23 = vshrl.u32 %v1978_v54, 16  ;;  %v1985_v40 = vshll.u32 %v1978_v54, 16  ;;  %v8109_v50 = vor.u32 %v10768_v57, %v8106_v17  ;;  %v2000_v27 = vrot.slane %v1998_v44, 1 }
 0x1e5   : > { %4985 = vmatmul.bf16.vlgmr.msra.gmra.mxu3 %v12558_v61  ;;  %v9544_v54 = vld [vmem:[#allocation11 + $0xc20] sm:$0xf]  ;;  %v11130_v20 = vld [vmem:[#allocation11 + $0xc2c] sm:$0xf0]  ;;  %v10760_v60 = vld [vmem:[#allocation11 + $0xa4] sm:$0xf] }
 0x1e6   : > { %5069 = vmatpush.bf16.msra.mxu2 %v9625_v10  ;;  %5081 = vmatpush.bf16.msra.mxu3 %v9769_v48  ;;  %v9400_v10 = vld [vmem:[#allocation11 + $0xb00] sm:$0xf]  ;;  %v2001_v48 = vshll.u32 %v1980_v16, 16  ;;  %v1984_v30 = vrot.slane %v1982_v23, 1  ;;  %v11166_v39 = vld [vmem:[#allocation11 + $0xd4c] sm:$0xf0] }
 0x1e7   : > { %4998 = vmatmul.bf16.vlgmr.msra.gmra.mxu0 %v12564_v37  ;;  %5011 = vmatmul.bf16.vlgmr.msra.gmra.mxu1 %v12566_v49  ;;  %v9401_v1 = vor.u32 %v11094_v33, %v9400_v10  ;;  %v9864_v63 = vld [vmem:[#allocation11 + $0xea0] sm:$0xf]  ;;  %v11210_v28 = vld [vmem:[#allocation11 + $0xeac] sm:$0xf0]  ;;  %v8074_v56 = vld [vmem:[#allocation11 + $0xb0] sm:$0xf0] }
 0x1e8   : > { %5046 = vmatpush.bf16.msrb.mxu0 %v9321_v59  ;;  %5059 = vmatpush.bf16.msrb.mxu1 %v9449_v45  ;;  %v1987_v59 = vrot.slane %v1985_v40, 2  ;;  %v9704_v45 = vld [vmem:[#allocation11 + $0xd60] sm:$0xf]  ;;  %v2003_v62 = vrot.slane %v2001_v48, 2  ;;  %v11126_v23 = vld [vmem:[#allocation11 + $0xc0c] sm:$0xf0]  ;;  %v9865_v12 = vor.u32 %v11210_v28, %v9864_v63 }
 0x1e9   : > { %5024 = vmatmul.bf16.vlgmr.msrb.gmra.mxu2 %v12572_v42  ;;  %v9705_v19 = vor.u32 %v11170_v5, %v9704_v45  ;;  %v1914_v2 = vld [vmem:[#allocation2] sm:$0xcc]  ;;  %v11162_v40 = vld [vmem:[#allocation11 + $0xd2c] sm:$0xf0]  ;;  %v10800_v26 = vld [vmem:[#allocation11 + $0x1e4] sm:$0xf] }
 0x1ea   : > { %5082 = vmatpush.bf16.msra.mxu3 %v9753_v18  ;;  %5070 = vmatpush.bf16.msra.mxu2 %v9609_v58  ;;  %v1995_v18 = vrot.slane %v1993_v6, 2  ;;  %v9880_v58 = vld [vmem:[#allocation11 + $0xec0] sm:$0xf]  ;;  %v12581_v8 = vor.u32 %v1987_v59, %v1984_v30  ;;  %v12586_v16 = vor.u32 %v2003_v62, %v2000_v27  ;;  %v8234_v13 = vld [vmem:[#allocation11 + $0x1f0] sm:$0xf0]  ;;  %v8077_v6 = vor.u32 %v10760_v60, %v8074_v56 }
 0x1eb   : > { %v9672_v10 = vld [vmem:[#allocation11 + $0xd20] sm:$0xf]  ;;  %v11206_v57 = vld [vmem:[#allocation11 + $0xe8c] sm:$0xf0]  ;;  %v10756_v17 = vld [vmem:[#allocation11 + $0x84] sm:$0xf]  ;;  %v2010_v48 = vunpack.c.l.b16 %v1914_v2  ;;  %v2011_v62 = vunpack.c.h.b16 %v1914_v2 }
 0x1ec   : > { %5047 = vmatpush.bf16.msrb.mxu0 %v9305_v38  ;;  %5060 = vmatpush.bf16.msrb.mxu1 %v9433_v31  ;;  %v8090_v38 = vld [vmem:[#allocation11 + $0xd0] sm:$0xf0]  ;;  %v9561_v31 = vor.u32 %v11134_v41, %v9560_v25  ;;  %v9528_v33 = vld [vmem:[#allocation11 + $0xc00] sm:$0xf]  ;;  %v9673_v25 = vor.u32 %v11162_v40, %v9672_v10  ;;  %v10796_v59 = vld [vmem:[#allocation11 + $0x1c4] sm:$0xf] }
 0x1ed   : > { %v8093_v29 = vor.u32 %v10764_v36, %v8090_v38  ;;  %v9529_v44 = vor.u32 %v11126_v23, %v9528_v33  ;;  %v9656_v41 = vld [vmem:[#allocation11 + $0xd00] sm:$0xf]  ;;  %v2013_v30 = vpack.c.b16 %v1975_v53, %v2010_v48  ;;  %v8218_v45 = vld [vmem:[#allocation11 + $0x1d0] sm:$0xf0]  ;;  %v11198_v2 = vld [vmem:[#allocation11 + $0xe4c] sm:$0xf0] }
 0x1ee   : > { %5083 = vmatpush.bf16.msra.mxu3 %v9737_v22  ;;  %5071 = vmatpush.bf16.msra.mxu2 %v9593_v11  ;;  %v12583_v22 = vor.u32 %v1995_v18, %v1992_v47  ;;  %v9881_v11 = vor.u32 %v11214_v7, %v9880_v58  ;;  %v8362_v47 = vld [vmem:[#allocation11 + $0x2f0] sm:$0xf0]  ;;  %v9832_v18 = vld [vmem:[#allocation11 + $0xe60] sm:$0xf]  ;;  %v11202_v58 = vld [vmem:[#allocation11 + $0xe6c] sm:$0xf0]  ;;  %v8221_v38 = vor.u32 %v10796_v59, %v8218_v45 }
 0x1ef   : > { %v10752_v7 = vld [vmem:[#allocation11 + $0x64] sm:$0xf]  ;;  %v8042_v27 = vld [vmem:[#allocation11 + $0x70] sm:$0xf0]  ;;  %v12592_v53 = vrot.slane %v2013_v30, 2 }
 0x1f0   : > { %5048 = vmatpush.bf16.msrb.mxu0 %v9289_v0  ;;  %5061 = vmatpush.bf16.msrb.mxu1 %v9417_v9  ;;  %v9545_v0 = vor.u32 %v11130_v20, %v9544_v54  ;;  %v9689_v9 = vor.u32 %v11166_v39, %v9688_v51  ;;  %v10792_v54 = vld [vmem:[#allocation11 + $0x1a4] sm:$0xf]  ;;  %v8202_v20 = vld [vmem:[#allocation11 + $0x1b0] sm:$0xf0]  ;;  %v9833_v51 = vor.u32 %v11202_v58, %v9832_v18  ;;  %v9816_v63 = vld [vmem:[#allocation11 + $0xe40] sm:$0xf] }
 0x1f1   : > { %v8045_v39 = vor.u32 %v10752_v7, %v8042_v27  ;;  %v10748_v28 = vld [vmem:[#allocation11 + $0x44] sm:$0xf]  ;;  %v8026_v60 = vld [vmem:[#allocation11 + $0x50] sm:$0xf0]  ;;  %v8205_v56 = vor.u32 %v10792_v54, %v8202_v20  ;;  %v9817_v10 = vor.u32 %v11198_v2, %v9816_v63  ;;  %v11190_v30 = vld [vmem:[#allocation11 + $0xe0c] sm:$0xf0] }
 0x1f2   : > { %5084 = vmatpush.bf16.msra.mxu3 %v9721_v4  ;;  %5072 = vmatpush.bf16.msra.mxu2 %v9577_v3  ;;  %v9848_v4 = vld [vmem:[#allocation11 + $0xe80] sm:$0xf]  ;;  %v8058_v3 = vld [vmem:[#allocation11 + $0x90] sm:$0xf0]  ;;  %v8029_v33 = vor.u32 %v10748_v28, %v8026_v60  ;;  %v10824_v23 = vld [vmem:[#allocation11 + $0x2a4] sm:$0xf] }
 0x1f3   : > { %v9849_v5 = vor.u32 %v11206_v57, %v9848_v4  ;;  %v8330_v40 = vld [vmem:[#allocation11 + $0x2b0] sm:$0xf0]  ;;  %v1915_v57 = vld [vmem:[#allocation2 + $0x8] sm:$0xc] }
 0x1f4   : > { %5049 = vmatpush.bf16.msrb.mxu0 %v9273_v34  ;;  %5062 = vmatpush.bf16.msrb.mxu1 %v9401_v1  ;;  %v8237_v34 = vor.u32 %v10800_v26, %v8234_v13  ;;  %v11158_v1 = vld [vmem:[#allocation11 + $0xd0c] sm:$0xf0]  ;;  %v9800_v26 = vld [vmem:[#allocation11 + $0xe20] sm:$0xf]  ;;  %v8170_v48 = vld [vmem:[#allocation11 + $0x170] sm:$0xf0]  ;;  %v2012_v18 = vunpack.c.l.b16 %v1915_v57 }
 0x1f5   : > { %5037 = vmatmul.bf16.vlgmr.msrb.gmra.mxu3 %v12581_v8  ;;  %v9657_v36 = vor.u32 %v11158_v1, %v9656_v41  ;;  %v11194_v13 = vld [vmem:[#allocation11 + $0xe2c] sm:$0xf0]  ;;  %v9784_v1 = vld [vmem:[#allocation11 + $0xe00] sm:$0xf]  ;;  %v10740_v59 = vld [vmem:[#allocation11 + $0x4] sm:$0xf] }
 0x1f6   : > { %5073 = vmatpush.bf16.msra.mxu2 %v9561_v31  ;;  %5085 = vmatpush.bf16.msra.mxu3 %v9705_v19  ;;  %v2014_v19 = vpack.c.b16 %v1976_v14, %v2011_v62  ;;  %v7994_v45 = vld [vmem:[#allocation11 + $0x10] sm:$0xf0]  ;;  %v10780_v27 = vld [vmem:[#allocation11 + $0x144] sm:$0xf] }
 0x1f7   : > { %5050 = vmatmul.bf16.vlgmr.msrb.gmra.mxu0 %v12583_v22  ;;  %5063 = vmatmul.bf16.vlgmr.msrb.gmra.mxu1 %v12586_v16  ;;  %v8154_v62 = vld [vmem:[#allocation11 + $0x150] sm:$0xf0]  ;;  %v10816_v20 = vld [vmem:[#allocation11 + $0x264] sm:$0xf] }
 0x1f8   : > { %5094 = vmatpush.bf16.msra.mxu0 %v9897_v15  ;;  %5107 = vmatpush.bf16.msra.mxu1 %v8109_v50  ;;  %v8061_v15 = vor.u32 %v10756_v17, %v8058_v3  ;;  %v10832_v50 = vld [vmem:[#allocation11 + $0x2e4] sm:$0xf]  ;;  %v12597_v52 = vrot.slane %v2014_v19, 2  ;;  %v8333_v17 = vor.u32 %v10824_v23, %v8330_v40  ;;  %v8602_v63 = vld [vmem:[#allocation11 + $0x4d0] sm:$0xf0]  ;;  %v8157_v2 = vor.u32 %v10780_v27, %v8154_v62 }
 0x1f9   : > { %v8365_v31 = vor.u32 %v10832_v50, %v8362_v47  ;;  %v10820_v3 = vld [vmem:[#allocation11 + $0x284] sm:$0xf]  ;;  %v8618_v47 = vld [vmem:[#allocation11 + $0x4f0] sm:$0xf0] }
 0x1fa   : > { %5074 = vmatpush.bf16.msra.mxu2 %v9545_v0  ;;  %5086 = vmatpush.bf16.msra.mxu3 %v9689_v9  ;;  %v10788_v0 = vld [vmem:[#allocation11 + $0x184] sm:$0xf]  ;;  %v8186_v9 = vld [vmem:[#allocation11 + $0x190] sm:$0xf0] }
 0x1fb   : > { %v8189_v4 = vor.u32 %v10788_v0, %v8186_v9  ;;  %v10896_v50 = vld [vmem:[#allocation11 + $0x4e4] sm:$0xf]  ;;  %v8138_v60 = vld [vmem:[#allocation11 + $0x130] sm:$0xf0] }
 0x1fc   : > { %5095 = vmatpush.bf16.msra.mxu0 %v9881_v11  ;;  %5108 = vmatpush.bf16.msra.mxu1 %v8093_v29  ;;  %v10828_v11 = vld [vmem:[#allocation11 + $0x2c4] sm:$0xf]  ;;  %v8346_v29 = vld [vmem:[#allocation11 + $0x2d0] sm:$0xf0]  ;;  %v8621_v54 = vor.u32 %v10896_v50, %v8618_v47 }
 0x1fd   : > { %v8349_v14 = vor.u32 %v10828_v11, %v8346_v29  ;;  %v8474_v11 = vld [vmem:[#allocation11 + $0x3d0] sm:$0xf0]  ;;  %v10892_v29 = vld [vmem:[#allocation11 + $0x4c4] sm:$0xf] }
 0x1fe   : > { %5075 = vmatpush.bf16.msra.mxu2 %v9529_v44  ;;  %5087 = vmatpush.bf16.msra.mxu3 %v9673_v25  ;;  %v10784_v44 = vld [vmem:[#allocation11 + $0x164] sm:$0xf]  ;;  %v9801_v25 = vor.u32 %v11194_v13, %v9800_v26  ;;  %v8282_v9 = vld [vmem:[#allocation11 + $0x250] sm:$0xf0] }
 0x1ff   : > { %v8173_v58 = vor.u32 %v10784_v44, %v8170_v48  ;;  %v10776_v28 = vld [vmem:[#allocation11 + $0x124] sm:$0xf]  ;;  %v8586_v40 = vld [vmem:[#allocation11 + $0x4b0] sm:$0xf0] }
 0x200   : > { %5096 = vmatpush.bf16.msra.mxu0 %v9865_v12  ;;  %5109 = vmatpush.bf16.msra.mxu1 %v8077_v6  ;;  %v10744_v12 = vld [vmem:[#allocation11 + $0x24] sm:$0xf]  ;;  %v8010_v6 = vld [vmem:[#allocation11 + $0x30] sm:$0xf0]  ;;  %v8141_v26 = vor.u32 %v10776_v28, %v8138_v60 }
 0x201   : > { %5076 = vmatmul.bf16.vlgmr.msra.gmra.mxu2 %v12592_v53  ;;  %v8013_v41 = vor.u32 %v10744_v12, %v8010_v6  ;;  %v10812_v0 = vld [vmem:[#allocation11 + $0x244] sm:$0xf]  ;;  %v8122_v12 = vld [vmem:[#allocation11 + $0x110] sm:$0xf0] }
 0x202   : > { %5120 = vmatpush.bf16.msrb.mxu2 %v8237_v34  ;;  %5088 = vmatpush.bf16.msra.mxu3 %v9657_v36  ;;  %v8314_v34 = vld [vmem:[#allocation11 + $0x290] sm:$0xf0]  ;;  %v9785_v36 = vor.u32 %v11190_v30, %v9784_v1  ;;  %v10888_v23 = vld [vmem:[#allocation11 + $0x4a4] sm:$0xf]  ;;  %v8285_v6 = vor.u32 %v10812_v0, %v8282_v9 }
 0x203   : > { %v8317_v7 = vor.u32 %v10820_v3, %v8314_v34  ;;  %v10772_v13 = vld [vmem:[#allocation11 + $0x104] sm:$0xf]  ;;  %v8746_v57 = vld [vmem:[#allocation11 + $0x5f0] sm:$0xf0]  ;;  %v8589_v3 = vor.u32 %v10888_v23, %v8586_v40 }
 0x204   : > { %5097 = vmatpush.bf16.msra.mxu0 %v9849_v5  ;;  %5110 = vmatpush.bf16.msra.mxu1 %v8061_v15  ;;  %v10864_v5 = vld [vmem:[#allocation11 + $0x3e4] sm:$0xf]  ;;  %v8490_v15 = vld [vmem:[#allocation11 + $0x3f0] sm:$0xf0]  ;;  %v8125_v30 = vor.u32 %v10772_v13, %v8122_v12 }
 0x205   : > { %5089 = vmatmul.bf16.vlgmr.msra.gmra.mxu3 %v12597_v52  ;;  %v8493_v19 = vor.u32 %v10864_v5, %v8490_v15  ;;  %v10808_v44 = vld [vmem:[#allocation11 + $0x224] sm:$0xf]  ;;  %v8266_v48 = vld [vmem:[#allocation11 + $0x230] sm:$0xf0] }
 0x206   : > { %5121 = vmatpush.bf16.msrb.mxu2 %v8221_v38  ;;  %5133 = vmatpush.bf16.msrb.mxu3 %v8365_v31  ;;  %v7997_v38 = vor.u32 %v10740_v59, %v7994_v45  ;;  %v2015_v31 = vpack.c.b16 %v1977_v46, %v2012_v18  ;;  %v8605_v46 = vor.u32 %v10892_v29, %v8602_v63  ;;  %v10884_v34 = vld [vmem:[#allocation11 + $0x484] sm:$0xf]  ;;  %v8570_v1 = vld [vmem:[#allocation11 + $0x490] sm:$0xf0] }
 0x207   : > { %v8269_v45 = vor.u32 %v10808_v44, %v8266_v48  ;;  %v10924_v5 = vld [vmem:[#allocation11 + $0x5c4] sm:$0xf]  ;;  %v8730_v15 = vld [vmem:[#allocation11 + $0x5d0] sm:$0xf0]  ;;  %v8573_v47 = vor.u32 %v10884_v34, %v8570_v1 }
 0x208   : > { %5098 = vmatpush.bf16.msra.mxu0 %v9833_v51  ;;  %5111 = vmatpush.bf16.msra.mxu1 %v8045_v39  ;;  %v8298_v51 = vld [vmem:[#allocation11 + $0x270] sm:$0xf0]  ;;  %v10860_v39 = vld [vmem:[#allocation11 + $0x3c4] sm:$0xf] }
 0x209   : > { %v8477_v55 = vor.u32 %v10860_v39, %v8474_v11  ;;  %v10804_v18 = vld [vmem:[#allocation11 + $0x204] sm:$0xf]  ;;  %v8874_v27 = vld [vmem:[#allocation11 + $0x6f0] sm:$0xf0] }
 0x20a   : > { %5122 = vmatpush.bf16.msrb.mxu2 %v8205_v56  ;;  %5134 = vmatpush.bf16.msrb.mxu3 %v8349_v14  ;;  %v12602_v56 = vrot.slane %v2015_v31, 2  ;;  %v8301_v14 = vor.u32 %v10816_v20, %v8298_v51  ;;  %v10848_v62 = vld [vmem:[#allocation11 + $0x364] sm:$0xf]  ;;  %v8554_v31 = vld [vmem:[#allocation11 + $0x470] sm:$0xf0] }
 0x20b   : > { %v10920_v20 = vld [vmem:[#allocation11 + $0x5a4] sm:$0xf]  ;;  %v8714_v51 = vld [vmem:[#allocation11 + $0x5b0] sm:$0xf0] }
 0x20c   : > { %5099 = vmatpush.bf16.msra.mxu0 %v9817_v10  ;;  %5112 = vmatpush.bf16.msra.mxu1 %v8029_v33  ;;  %v10856_v10 = vld [vmem:[#allocation11 + $0x3a4] sm:$0xf]  ;;  %v8458_v33 = vld [vmem:[#allocation11 + $0x3b0] sm:$0xf0] }
 0x20d   : > { %v10956_v29 = vld [vmem:[#allocation11 + $0x6c4] sm:$0xf]  ;;  %v8410_v60 = vld [vmem:[#allocation11 + $0x350] sm:$0xf0] }
 0x20e   : > { %5123 = vmatpush.bf16.msrb.mxu2 %v8189_v4  ;;  %5135 = vmatpush.bf16.msrb.mxu3 %v8333_v17  ;;  %v10928_v4 = vld [vmem:[#allocation11 + $0x5e4] sm:$0xf]  ;;  %v8461_v17 = vor.u32 %v10856_v10, %v8458_v33  ;;  %v8698_v9 = vld [vmem:[#allocation11 + $0x590] sm:$0xf0] }
 0x20f   : > { %v8749_v59 = vor.u32 %v10928_v4, %v8746_v57  ;;  %v10844_v28 = vld [vmem:[#allocation11 + $0x344] sm:$0xf]  ;;  %v8394_v12 = vld [vmem:[#allocation11 + $0x330] sm:$0xf0] }
 0x210   : > { %5100 = vmatpush.bf16.msra.mxu0 %v9801_v25  ;;  %5113 = vmatpush.bf16.msra.mxu1 %v8013_v41  ;;  %v10852_v25 = vld [vmem:[#allocation11 + $0x384] sm:$0xf]  ;;  %v8442_v41 = vld [vmem:[#allocation11 + $0x390] sm:$0xf0]  ;;  %v8413_v33 = vor.u32 %v10844_v28, %v8410_v60 }
 0x211   : > { %v8445_v50 = vor.u32 %v10852_v25, %v8442_v41  ;;  %v10916_v0 = vld [vmem:[#allocation11 + $0x584] sm:$0xf]  ;;  %v8522_v4 = vld [vmem:[#allocation11 + $0x430] sm:$0xf0] }
 0x212   : > { %5124 = vmatpush.bf16.msrb.mxu2 %v8173_v58  ;;  %5136 = vmatpush.bf16.msrb.mxu3 %v8317_v7  ;;  %v8250_v58 = vld [vmem:[#allocation11 + $0x210] sm:$0xf0]  ;;  %v10960_v7 = vld [vmem:[#allocation11 + $0x6e4] sm:$0xf]  ;;  %v8701_v57 = vor.u32 %v10916_v0, %v8698_v9 }
 0x213   : > { %v8877_v39 = vor.u32 %v10960_v7, %v8874_v27  ;;  %v10952_v23 = vld [vmem:[#allocation11 + $0x6a4] sm:$0xf]  ;;  %v8826_v41 = vld [vmem:[#allocation11 + $0x690] sm:$0xf0] }
 0x214   : > { %5101 = vmatpush.bf16.msra.mxu0 %v9785_v36  ;;  %5114 = vmatpush.bf16.msra.mxu1 %v7997_v38  ;;  %v8426_v36 = vld [vmem:[#allocation11 + $0x370] sm:$0xf0]  ;;  %v10880_v38 = vld [vmem:[#allocation11 + $0x464] sm:$0xf] }
 0x215   : > { %v8429_v11 = vor.u32 %v10848_v62, %v8426_v36  ;;  %v8557_v63 = vor.u32 %v10880_v38, %v8554_v31  ;;  %v10840_v13 = vld [vmem:[#allocation11 + $0x324] sm:$0xf]  ;;  %v8666_v7 = vld [vmem:[#allocation11 + $0x550] sm:$0xf0] }
 0x216   : > { %5125 = vmatpush.bf16.msrb.mxu2 %v8157_v2  ;;  %5137 = vmatpush.bf16.msrb.mxu3 %v8301_v14  ;;  %v8858_v2 = vld [vmem:[#allocation11 + $0x6d0] sm:$0xf0]  ;;  %v10876_v14 = vld [vmem:[#allocation11 + $0x444] sm:$0xf]  ;;  %v8397_v48 = vor.u32 %v10840_v13, %v8394_v12 }
 0x217   : > { %5102 = vmatmul.bf16.vlgmr.msra.gmra.mxu0 %v12602_v56  ;;  %5115 = vmatmul.bf16.vlgmr.msra.gmra.mxu1 %v12496_v24  ;;  %v8861_v10 = vor.u32 %v10956_v29, %v8858_v2  ;;  %v10948_v25 = vld [vmem:[#allocation11 + $0x684] sm:$0xf]  ;;  %v9114_v29 = vld [vmem:[#allocation11 + $0x8d0] sm:$0xf0] }
 0x218   : > { %5146 = vmatpush.bf16.msrb.mxu0 %v8493_v19  ;;  %5159 = vmatpush.bf16.msrb.mxu1 %v8621_v54  ;;  %v8733_v19 = vor.u32 %v10924_v5, %v8730_v15  ;;  %v8253_v54 = vor.u32 %v10804_v18, %v8250_v58  ;;  %v10836_v34 = vld [vmem:[#allocation11 + $0x304] sm:$0xf]  ;;  %v9002_v15 = vld [vmem:[#allocation11 + $0x7f0] sm:$0xf0]  ;;  %v8829_v27 = vor.u32 %v10948_v25, %v8826_v41 }
 0x219   : > { %v10992_v5 = vld [vmem:[#allocation11 + $0x7e4] sm:$0xf]  ;;  %v9130_v18 = vld [vmem:[#allocation11 + $0x8f0] sm:$0xf0] }
 0x21a   : > { %5126 = vmatpush.bf16.msrb.mxu2 %v8141_v26  ;;  %5138 = vmatpush.bf16.msrb.mxu3 %v8285_v6  ;;  %v8842_v26 = vld [vmem:[#allocation11 + $0x6b0] sm:$0xf0]  ;;  %v10872_v6 = vld [vmem:[#allocation11 + $0x424] sm:$0xf]  ;;  %v9005_v38 = vor.u32 %v10992_v5, %v9002_v15 }
 0x21b   : > { %v8845_v44 = vor.u32 %v10952_v23, %v8842_v26  ;;  %v8525_v1 = vor.u32 %v10872_v6, %v8522_v4  ;;  %v10908_v58 = vld [vmem:[#allocation11 + $0x544] sm:$0xf]  ;;  %v8650_v2 = vld [vmem:[#allocation11 + $0x530] sm:$0xf0] }
 0x21c   : > { %5147 = vmatpush.bf16.msrb.mxu0 %v8477_v55  ;;  %5160 = vmatpush.bf16.msrb.mxu1 %v8605_v46  ;;  %v8538_v55 = vld [vmem:[#allocation11 + $0x450] sm:$0xf0]  ;;  %v8717_v46 = vor.u32 %v10920_v20, %v8714_v51  ;;  %v10944_v31 = vld [vmem:[#allocation11 + $0x664] sm:$0xf] }
 0x21d   : > { %v8541_v40 = vor.u32 %v10876_v14, %v8538_v55  ;;  %v10988_v20 = vld [vmem:[#allocation11 + $0x7c4] sm:$0xf]  ;;  %v8986_v51 = vld [vmem:[#allocation11 + $0x7d0] sm:$0xf0] }
 0x21e   : > { %5127 = vmatpush.bf16.msrb.mxu2 %v8125_v30  ;;  %5139 = vmatpush.bf16.msrb.mxu3 %v8269_v45  ;;  %v8378_v30 = vld [vmem:[#allocation11 + $0x310] sm:$0xf0]  ;;  %v8989_v60 = vor.u32 %v10988_v20, %v8986_v51  ;;  %v10940_v14 = vld [vmem:[#allocation11 + $0x644] sm:$0xf] }
 0x21f   : > { %v8506_v45 = vld [vmem:[#allocation11 + $0x410] sm:$0xf0]  ;;  %v8381_v62 = vor.u32 %v10836_v34, %v8378_v30  ;;  %v10984_v0 = vld [vmem:[#allocation11 + $0x7a4] sm:$0xf] }
 0x220   : > { %5148 = vmatpush.bf16.msrb.mxu0 %v8461_v17  ;;  %5161 = vmatpush.bf16.msrb.mxu1 %v8589_v3  ;;  %v10912_v17 = vld [vmem:[#allocation11 + $0x564] sm:$0xf]  ;;  %v8682_v3 = vld [vmem:[#allocation11 + $0x570] sm:$0xf0] }
 0x221   : > { %5128 = vmatmul.bf16.vlgmr.msrb.gmra.mxu2 %v12500_v32  ;;  %v8794_v55 = vld [vmem:[#allocation11 + $0x650] sm:$0xf0]  ;;  %v11056_v12 = vld [vmem:[#allocation11 + $0x9e4] sm:$0xf] }
 0x222   : > { %5172 = vmatpush.bf16.msra.mxu2 %v8749_v59  ;;  %5140 = vmatpush.bf16.msrb.mxu3 %v8253_v54  ;;  %v10868_v59 = vld [vmem:[#allocation11 + $0x404] sm:$0xf]  ;;  %v8970_v9 = vld [vmem:[#allocation11 + $0x7b0] sm:$0xf0]  ;;  %v8797_v13 = vor.u32 %v10940_v14, %v8794_v55 }
 0x223   : > { %v8509_v36 = vor.u32 %v10868_v59, %v8506_v45  ;;  %v9098_v23 = vld [vmem:[#allocation11 + $0x8b0] sm:$0xf0]  ;;  %v8973_v4 = vor.u32 %v10984_v0, %v8970_v9  ;;  %v11012_v41 = vld [vmem:[#allocation11 + $0x884] sm:$0xf]  ;;  %v12611_v0 = vld [vmem:[#allocation12] sm:$0xf] }
 0x224   : > { %5149 = vmatpush.bf16.msrb.mxu0 %v8445_v50  ;;  %5162 = vmatpush.bf16.msrb.mxu1 %v8573_v47  ;;  %v11024_v50 = vld [vmem:[#allocation11 + $0x8e4] sm:$0xf]  ;;  %v8685_v47 = vor.u32 %v10912_v17, %v8682_v3  ;;  %v8634_v26 = vld [vmem:[#allocation11 + $0x510] sm:$0xf0] }
 0x225   : > { %5141 = vmatmul.bf16.vlgmr.msrb.gmra.mxu3 %v12536_v43  ;;  %v9133_v54 = vor.u32 %v11024_v50, %v9130_v18  ;;  %v9258_v6 = vld [vmem:[#allocation11 + $0x9f0] sm:$0xf0]  ;;  %v11052_v59 = vld [vmem:[#allocation11 + $0x9c4] sm:$0xf] }
 0x226   : > { %5173 = vmatpush.bf16.msra.mxu2 %v8733_v19  ;;  %5185 = vmatpush.bf16.msra.mxu3 %v8877_v39  ;;  %v8810_v19 = vld [vmem:[#allocation11 + $0x670] sm:$0xf0]  ;;  %v11020_v39 = vld [vmem:[#allocation11 + $0x8c4] sm:$0xf] }
 0x227   : > { %v8813_v28 = vor.u32 %v10944_v31, %v8810_v19  ;;  %v8778_v17 = vld [vmem:[#allocation11 + $0x630] sm:$0xf0]  ;;  %v10932_v15 = vld [vmem:[#allocation11 + $0x604] sm:$0xf] }
 0x228   : > { %5150 = vmatpush.bf16.msrb.mxu0 %v8429_v11  ;;  %5163 = vmatpush.bf16.msrb.mxu1 %v8557_v63  ;;  %v8669_v11 = vor.u32 %v10908_v58, %v8666_v7  ;;  %v10904_v63 = vld [vmem:[#allocation11 + $0x524] sm:$0xf]  ;;  %v9082_v34 = vld [vmem:[#allocation11 + $0x890] sm:$0xf0] }
 0x229   : > { %v9242_v45 = vld [vmem:[#allocation11 + $0x9d0] sm:$0xf0]  ;;  %v9085_v18 = vor.u32 %v11012_v41, %v9082_v34  ;;  %v10976_v7 = vld [vmem:[#allocation11 + $0x764] sm:$0xf] }
 0x22a   : > { %5174 = vmatpush.bf16.msra.mxu2 %v8717_v46  ;;  %5186 = vmatpush.bf16.msra.mxu3 %v8861_v10  ;;  %v9117_v46 = vor.u32 %v11020_v39, %v9114_v29  ;;  %v11016_v10 = vld [vmem:[#allocation11 + $0x8a4] sm:$0xf]  ;;  %v8762_v50 = vld [vmem:[#allocation11 + $0x610] sm:$0xf0] }
 0x22b   : > { %v9101_v3 = vor.u32 %v11016_v10, %v9098_v23  ;;  %v9386_v58 = vld [vmem:[#allocation11 + $0xaf0] sm:$0xf0]  ;;  %v8765_v31 = vor.u32 %v10932_v15, %v8762_v50  ;;  %v11048_v19 = vld [vmem:[#allocation11 + $0x9a4] sm:$0xf] }
 0x22c   : > { %5151 = vmatpush.bf16.msrb.mxu0 %v8413_v33  ;;  %5164 = vmatpush.bf16.msrb.mxu1 %v8541_v40  ;;  %v8653_v33 = vor.u32 %v10904_v63, %v8650_v2  ;;  %v10900_v40 = vld [vmem:[#allocation11 + $0x504] sm:$0xf]  ;;  %v9370_v29 = vld [vmem:[#allocation11 + $0xad0] sm:$0xf0] }
 0x22d   : > { %v8637_v25 = vor.u32 %v10900_v40, %v8634_v26  ;;  %v11084_v39 = vld [vmem:[#allocation11 + $0xac4] sm:$0xf]  ;;  %v8922_v2 = vld [vmem:[#allocation11 + $0x750] sm:$0xf0] }
 0x22e   : > { %5175 = vmatpush.bf16.msra.mxu2 %v8701_v57  ;;  %5187 = vmatpush.bf16.msra.mxu3 %v8845_v44  ;;  %v10936_v57 = vld [vmem:[#allocation11 + $0x624] sm:$0xf]  ;;  %v9373_v9 = vor.u32 %v11084_v39, %v9370_v29  ;;  %v9354_v40 = vld [vmem:[#allocation11 + $0xab0] sm:$0xf0] }
 0x22f   : > { %v10980_v44 = vld [vmem:[#allocation11 + $0x784] sm:$0xf]  ;;  %v8781_v30 = vor.u32 %v10936_v57, %v8778_v17  ;;  %v2504_v57 = vperm.slane %v12611_v0, 0  ;;  %v9338_v41 = vld [vmem:[#allocation11 + $0xa90] sm:$0xf0] }
 0x230   : > { %5152 = vmatpush.bf16.msrb.mxu0 %v8397_v48  ;;  %5165 = vmatpush.bf16.msrb.mxu1 %v8525_v1  ;;  %v8954_v48 = vld [vmem:[#allocation11 + $0x790] sm:$0xf0]  ;;  %v9261_v1 = vor.u32 %v11056_v12, %v9258_v6  ;;  %v10972_v63 = vld [vmem:[#allocation11 + $0x744] sm:$0xf] }
 0x231   : > { %v8957_v5 = vor.u32 %v10980_v44, %v8954_v48  ;;  %v11044_v55 = vld [vmem:[#allocation11 + $0x984] sm:$0xf]  ;;  %v8925_v10 = vor.u32 %v10972_v63, %v8922_v2  ;;  %v9034_v6 = vld [vmem:[#allocation11 + $0x830] sm:$0xf0] }
 0x232   : > { %5176 = vmatpush.bf16.msra.mxu2 %v8685_v47  ;;  %5188 = vmatpush.bf16.msra.mxu3 %v8829_v27  ;;  %v11088_v47 = vld [vmem:[#allocation11 + $0xae4] sm:$0xf]  ;;  %v8938_v27 = vld [vmem:[#allocation11 + $0x770] sm:$0xf0] }
 0x233   : > { %v9389_v20 = vor.u32 %v11088_v47, %v9386_v58  ;;  %v8941_v51 = vor.u32 %v10976_v7, %v8938_v27  ;;  %v10968_v26 = vld [vmem:[#allocation11 + $0x724] sm:$0xf]  ;;  %v9514_v47 = vld [vmem:[#allocation11 + $0xbf0] sm:$0xf0] }
 0x234   : > { %5153 = vmatpush.bf16.msrb.mxu0 %v8381_v62  ;;  %5166 = vmatpush.bf16.msrb.mxu1 %v8509_v36  ;;  %v11008_v62 = vld [vmem:[#allocation11 + $0x864] sm:$0xf]  ;;  %v9066_v36 = vld [vmem:[#allocation11 + $0x870] sm:$0xf0] }
 0x235   : > { %v11000_v12 = vld [vmem:[#allocation11 + $0x824] sm:$0xf]  ;;  %v9642_v27 = vld [vmem:[#allocation11 + $0xcf0] sm:$0xf0] }
 0x236   : > { %5177 = vmatpush.bf16.msra.mxu2 %v8669_v11  ;;  %5189 = vmatpush.bf16.msra.mxu3 %v8813_v28  ;;  %v9069_v11 = vor.u32 %v11008_v62, %v9066_v36  ;;  %v11004_v28 = vld [vmem:[#allocation11 + $0x844] sm:$0xf]  ;;  %v9178_v36 = vld [vmem:[#allocation11 + $0x950] sm:$0xf0] }
 0x237   : > { %5154 = vmatmul.bf16.vlgmr.msrb.gmra.mxu0 %v12538_v35  ;;  %5167 = vmatmul.bf16.vlgmr.msrb.gmra.mxu1 %v12540_v21  ;;  %v11040_v17 = vld [vmem:[#allocation11 + $0x964] sm:$0xf]  ;;  %v9322_v39 = vld [vmem:[#allocation11 + $0xa70] sm:$0xf0] }
 0x238   : > { %5198 = vmatpush.bf16.msra.mxu0 %v9005_v38  ;;  %5211 = vmatpush.bf16.msra.mxu1 %v9133_v54  ;;  %v9245_v38 = vor.u32 %v11052_v59, %v9242_v45  ;;  %v9226_v54 = vld [vmem:[#allocation11 + $0x9b0] sm:$0xf0]  ;;  %v10964_v34 = vld [vmem:[#allocation11 + $0x704] sm:$0xf] }
 0x239   : > { %v9229_v14 = vor.u32 %v11048_v19, %v9226_v54  ;;  %v10996_v59 = vld [vmem:[#allocation11 + $0x804] sm:$0xf]  ;;  %v9018_v45 = vld [vmem:[#allocation11 + $0x810] sm:$0xf0] }
 0x23a   : > { %5178 = vmatpush.bf16.msra.mxu2 %v8653_v33  ;;  %5190 = vmatpush.bf16.msra.mxu3 %v8797_v13  ;;  %v11080_v33 = vld [vmem:[#allocation11 + $0xaa4] sm:$0xf]  ;;  %v8906_v13 = vld [vmem:[#allocation11 + $0x730] sm:$0xf0]  ;;  %v9021_v54 = vor.u32 %v10996_v59, %v9018_v45 }
 0x23b   : > { %v9357_v44 = vor.u32 %v11080_v33, %v9354_v40  ;;  %v8909_v48 = vor.u32 %v10968_v26, %v8906_v13  ;;  %v11120_v50 = vld [vmem:[#allocation11 + $0xbe4] sm:$0xf]  ;;  %v9498_v63 = vld [vmem:[#allocation11 + $0xbd0] sm:$0xf0] }
 0x23c   : > { %5199 = vmatpush.bf16.msra.mxu0 %v8989_v60  ;;  %5212 = vmatpush.bf16.msra.mxu1 %v9117_v46  ;;  %v9050_v60 = vld [vmem:[#allocation11 + $0x850] sm:$0xf0]  ;;  %v11036_v62 = vld [vmem:[#allocation11 + $0x944] sm:$0xf] }
 0x23d   : > { %v9210_v46 = vld [vmem:[#allocation11 + $0x990] sm:$0xf0]  ;;  %v9053_v23 = vor.u32 %v11004_v28, %v9050_v60  ;;  %v11116_v29 = vld [vmem:[#allocation11 + $0xbc4] sm:$0xf]  ;;  %v9181_v28 = vor.u32 %v11036_v62, %v9178_v36 }
 0x23e   : > { %5179 = vmatpush.bf16.msra.mxu2 %v8637_v25  ;;  %5191 = vmatpush.bf16.msra.mxu3 %v8781_v30  ;;  %v11076_v25 = vld [vmem:[#allocation11 + $0xa84] sm:$0xf]  ;;  %v8890_v30 = vld [vmem:[#allocation11 + $0x710] sm:$0xf0] }
 0x23f   : > { %v11148_v2 = vld [vmem:[#allocation11 + $0xcc4] sm:$0xf]  ;;  %v9626_v60 = vld [vmem:[#allocation11 + $0xcd0] sm:$0xf0] }
 0x240   : > { %5200 = vmatpush.bf16.msra.mxu0 %v8973_v4  ;;  %5213 = vmatpush.bf16.msra.mxu1 %v9101_v3  ;;  %v9213_v4 = vor.u32 %v11044_v55, %v9210_v46  ;;  %v9194_v3 = vld [vmem:[#allocation11 + $0x970] sm:$0xf0]  ;;  %v9629_v26 = vor.u32 %v11148_v2, %v9626_v60  ;;  %v11112_v13 = vld [vmem:[#allocation11 + $0xba4] sm:$0xf] }
 0x241   : > { %5180 = vmatmul.bf16.vlgmr.msra.gmra.mxu2 %v12558_v61  ;;  %v9197_v7 = vor.u32 %v11040_v17, %v9194_v3  ;;  %v9162_v55 = vld [vmem:[#allocation11 + $0x930] sm:$0xf0]  ;;  %v11028_v17 = vld [vmem:[#allocation11 + $0x904] sm:$0xf] }
 0x242   : > { %5224 = vmatpush.bf16.msrb.mxu2 %v9261_v1  ;;  %5192 = vmatpush.bf16.msra.mxu3 %v8765_v31  ;;  %v9037_v1 = vor.u32 %v11000_v12, %v9034_v6  ;;  %v8893_v31 = vor.u32 %v10964_v34, %v8890_v30  ;;  %v9306_v33 = vld [vmem:[#allocation11 + $0xa50] sm:$0xf0]  ;;  %v11144_v6 = vld [vmem:[#allocation11 + $0xca4] sm:$0xf] }
 0x243   : > { %v9482_v12 = vld [vmem:[#allocation11 + $0xbb0] sm:$0xf0]  ;;  %v11064_v34 = vld [vmem:[#allocation11 + $0xa24] sm:$0xf] }
 0x244   : > { %5201 = vmatpush.bf16.msra.mxu0 %v8957_v5  ;;  %5214 = vmatpush.bf16.msra.mxu1 %v9085_v18  ;;  %v4921_v5 = vpop.f32.mrf.mxu2  ;;  %v4934_v15 = vpop.f32.mrf.mxu3  ;;  %v11152_v18 = vld [vmem:[#allocation11 + $0xce4] sm:$0xf]  ;;  %v9146_v3 = vld [vmem:[#allocation11 + $0x910] sm:$0xf0] }
 0x245   : > { %5193 = vmatmul.bf16.vlgmr.msra.gmra.mxu3 %v12564_v37  ;;  %v4922_v58 = vadd.f32 %v4921_v5, %v2504_v57  ;;  %v9610_v57 = vld [vmem:[#allocation11 + $0xcb0] sm:$0xf0]  ;;  %v11108_v59 = vld [vmem:[#allocation11 + $0xb84] sm:$0xf]  ;;  %v9149_v5 = vor.u32 %v11028_v17, %v9146_v3 }
 0x246   : > { %5225 = vmatpush.bf16.msrb.mxu2 %v9245_v38  ;;  %5237 = vmatpush.bf16.msrb.mxu3 %v9389_v20  ;;  %v9341_v38 = vor.u32 %v11076_v25, %v9338_v41  ;;  %v9517_v20 = vor.u32 %v11120_v50, %v9514_v47  ;;  %v9770_v25 = vld [vmem:[#allocation11 + $0xdf0] sm:$0xf0]  ;;  %v9485_v41 = vor.u32 %v11112_v13, %v9482_v12  ;;  %v11132_v13 = vld [vmem:[#allocation11 + $0xc44] sm:$0xf] }
 0x247   : > { %v12615_v19 = vadd.f32 %v4934_v15, %v4922_v58  ;;  %v9613_v30 = vor.u32 %v11144_v6, %v9610_v57  ;;  %v9466_v45 = vld [vmem:[#allocation11 + $0xb90] sm:$0xf0]  ;;  %v11140_v15 = vld [vmem:[#allocation11 + $0xc84] sm:$0xf] }
 0x248   : > { %5202 = vmatpush.bf16.msra.mxu0 %v8941_v51  ;;  %5215 = vmatpush.bf16.msra.mxu1 %v9069_v11  ;;  %v11072_v51 = vld [vmem:[#allocation11 + $0xa64] sm:$0xf]  ;;  %v9645_v11 = vor.u32 %v11152_v18, %v9642_v27  ;;  %v9594_v50 = vld [vmem:[#allocation11 + $0xc90] sm:$0xf0]  ;;  %v9469_v36 = vor.u32 %v11108_v59, %v9466_v45 }
 0x249   : > { %v9325_v46 = vor.u32 %v11072_v51, %v9322_v39  ;;  %v11180_v58 = vld [vmem:[#allocation11 + $0xdc4] sm:$0xf]  ;;  %v9597_v51 = vor.u32 %v11140_v15, %v9594_v50  ;;  %v9898_v39 = vld [vmem:[#allocation11 + $0xef0] sm:$0xf0] }
 0x24a   : > { %5226 = vmatpush.bf16.msrb.mxu2 %v9229_v14  ;;  %5238 = vmatpush.bf16.msrb.mxu3 %v9373_v9  ;;  %v11032_v14 = vld [vmem:[#allocation11 + $0x924] sm:$0xf]  ;;  %v9501_v9 = vor.u32 %v11116_v29, %v9498_v63  ;;  %v9450_v29 = vld [vmem:[#allocation11 + $0xb70] sm:$0xf0] }
 0x24b   : > { %v11136_v63 = vld [vmem:[#allocation11 + $0xc64] sm:$0xf]  ;;  %v9578_v2 = vld [vmem:[#allocation11 + $0xc70] sm:$0xf0] }
 0x24c   : > { %5203 = vmatpush.bf16.msra.mxu0 %v8925_v10  ;;  %5216 = vmatpush.bf16.msra.mxu1 %v9053_v23  ;;  %v11068_v10 = vld [vmem:[#allocation11 + $0xa44] sm:$0xf]  ;;  %v4923_v23 = vpop.f32.mrf.mxu2  ;;  %v4936_v40 = vpop.f32.mrf.mxu3  ;;  %v9562_v12 = vld [vmem:[#allocation11 + $0xc50] sm:$0xf0] }
 0x24d   : > { %v9882_v23 = vld [vmem:[#allocation11 + $0xed0] sm:$0xf0]  ;;  %v11100_v40 = vld [vmem:[#allocation11 + $0xb44] sm:$0xf] }
 0x24e   : > { %5227 = vmatpush.bf16.msrb.mxu2 %v9213_v4  ;;  %5239 = vmatpush.bf16.msrb.mxu3 %v9357_v44  ;;  %v9165_v4 = vor.u32 %v11032_v14, %v9162_v55  ;;  %v9309_v44 = vor.u32 %v11068_v10, %v9306_v33  ;;  %v11176_v55 = vld [vmem:[#allocation11 + $0xda4] sm:$0xf]  ;;  %v9581_v33 = vor.u32 %v11136_v63, %v9578_v2  ;;  %v9722_v57 = vld [vmem:[#allocation11 + $0xd90] sm:$0xf0]  ;;  %v10803_v63 = vld [vmem:[#allocation11 + $0x1f4] sm:$0xf0] }
 0x24f   : > { %v9418_v59 = vld [vmem:[#allocation11 + $0xb30] sm:$0xf0]  ;;  %v11164_v2 = vld [vmem:[#allocation11 + $0xd44] sm:$0xf] }
 0x250   : > { %5204 = vmatpush.bf16.msra.mxu0 %v8909_v48  ;;  %5217 = vmatpush.bf16.msra.mxu1 %v9037_v1  ;;  %v11184_v48 = vld [vmem:[#allocation11 + $0xde4] sm:$0xf]  ;;  %v9290_v1 = vld [vmem:[#allocation11 + $0xa30] sm:$0xf0] }
 0x251   : > { %v9773_v47 = vor.u32 %v11184_v48, %v9770_v25  ;;  %v9293_v18 = vor.u32 %v11064_v34, %v9290_v1  ;;  %v11208_v25 = vld [vmem:[#allocation11 + $0xea4] sm:$0xf]  ;;  %v9565_v34 = vor.u32 %v11132_v13, %v9562_v12  ;;  %v9866_v1 = vld [vmem:[#allocation11 + $0xeb0] sm:$0xf0]  ;;  %v10767_v13 = vld [vmem:[#allocation11 + $0xd4] sm:$0xf0] }
 0x252   : > { %5228 = vmatpush.bf16.msrb.mxu2 %v9197_v7  ;;  %5240 = vmatpush.bf16.msrb.mxu3 %v9341_v38  ;;  %v9754_v7 = vld [vmem:[#allocation11 + $0xdd0] sm:$0xf0]  ;;  %v11060_v38 = vld [vmem:[#allocation11 + $0xa04] sm:$0xf]  ;;  %v8224_v12 = vld [vmem:[#allocation11 + $0x1c8] sm:$0xf] }
 0x253   : > { %v9546_v15 = vld [vmem:[#allocation11 + $0xc30] sm:$0xf0] }
 0x254   : > { %5205 = vmatpush.bf16.msra.mxu0 %v8893_v31  ;;  %5218 = vmatpush.bf16.msra.mxu1 %v9021_v54  ;;  %v4947_v27 = vpop.f32.mrf.mxu0  ;;  %v4960_v62 = vpop.f32.mrf.mxu1  ;;  %v9274_v31 = vld [vmem:[#allocation11 + $0xa10] sm:$0xf0]  ;;  %v11216_v54 = vld [vmem:[#allocation11 + $0xee4] sm:$0xf] }
 0x255   : > { %v9277_v14 = vor.u32 %v11060_v38, %v9274_v31  ;;  %v9402_v31 = vld [vmem:[#allocation11 + $0xb10] sm:$0xf0] }
 0x256   : > { %5229 = vmatpush.bf16.msrb.mxu2 %v9181_v28  ;;  %5241 = vmatpush.bf16.msrb.mxu3 %v9325_v46  ;;  %v9757_v28 = vor.u32 %v11180_v58, %v9754_v7  ;;  %v9738_v46 = vld [vmem:[#allocation11 + $0xdb0] sm:$0xf0]  ;;  %v9869_v58 = vor.u32 %v11208_v25, %v9866_v1 }
 0x257   : > { %5206 = vmatmul.bf16.vlgmr.msra.gmra.mxu0 %v12566_v49  ;;  %5219 = vmatmul.bf16.vlgmr.msra.gmra.mxu1 %v12572_v42  ;;  %v9741_v6 = vor.u32 %v11176_v55, %v9738_v46 }
 0x258   : > { %5250 = vmatpush.bf16.msrb.mxu0 %v9517_v20  ;;  %5263 = vmatpush.bf16.msrb.mxu1 %v9645_v11  ;;  %v4948_v20 = vadd.f32 %v4947_v27, %v12615_v19  ;;  %v11104_v11 = vld [vmem:[#allocation11 + $0xb64] sm:$0xf] }
 0x259   : > { %v9453_v10 = vor.u32 %v11104_v11, %v9450_v29  ;;  %v11212_v19 = vld [vmem:[#allocation11 + $0xec4] sm:$0xf]  ;;  %v8240_v11 = vld [vmem:[#allocation11 + $0x1e8] sm:$0xf] }
 0x25a   : > { %5230 = vmatpush.bf16.msrb.mxu2 %v9165_v4  ;;  %5242 = vmatpush.bf16.msrb.mxu3 %v9309_v44  ;;  %v4961_v60 = vadd.f32 %v4960_v62, %v4948_v20  ;;  %v11172_v4 = vld [vmem:[#allocation11 + $0xd84] sm:$0xf]  ;;  %v9885_v44 = vor.u32 %v11212_v19, %v9882_v23  ;;  %v9850_v62 = vld [vmem:[#allocation11 + $0xe90] sm:$0xf0] }
 0x25b   : > { %v9725_v50 = vor.u32 %v11172_v4, %v9722_v57  ;;  %v11204_v27 = vld [vmem:[#allocation11 + $0xe84] sm:$0xf]  ;;  %v9530_v20 = vld [vmem:[#allocation11 + $0xc10] sm:$0xf0]  ;;  %v10799_v4 = vld [vmem:[#allocation11 + $0x1d4] sm:$0xf0] }
 0x25c   : > { %5251 = vmatpush.bf16.msrb.mxu0 %v9501_v9  ;;  %5264 = vmatpush.bf16.msrb.mxu1 %v9629_v26  ;;  %v9901_v9 = vor.u32 %v11216_v54, %v9898_v39  ;;  %v9434_v26 = vld [vmem:[#allocation11 + $0xb50] sm:$0xf0]  ;;  %v4949_v17 = vpop.f32.mrf.mxu0  ;;  %v4962_v3 = vpop.f32.mrf.mxu1  ;;  %v11124_v54 = vld [vmem:[#allocation11 + $0xc04] sm:$0xf]  ;;  %v10771_v39 = vld [vmem:[#allocation11 + $0xf4] sm:$0xf0]  ;;  %v9853_v55 = vor.u32 %v11204_v27, %v9850_v62  ;;  %v8225_v1 = vor.u32 %v10799_v4, %v8224_v12 }
 0x25d   : > { %v9437_v48 = vor.u32 %v11100_v40, %v9434_v26  ;;  %v9834_v23 = vld [vmem:[#allocation11 + $0xe70] sm:$0xf0]  ;;  %v8241_v40 = vor.u32 %v10803_v63, %v8240_v11  ;;  %v8096_v26 = vld [vmem:[#allocation11 + $0xc8] sm:$0xf]  ;;  %v11160_v57 = vld [vmem:[#allocation11 + $0xd24] sm:$0xf] }
 0x25e   : > { %5231 = vmatpush.bf16.msrb.mxu2 %v9149_v5  ;;  %5243 = vmatpush.bf16.msrb.mxu3 %v9293_v18  ;;  %v11128_v5 = vld [vmem:[#allocation11 + $0xc24] sm:$0xf]  ;;  %v9706_v18 = vld [vmem:[#allocation11 + $0xd70] sm:$0xf0]  ;;  %v8097_v25 = vor.u32 %v10767_v13, %v8096_v26  ;;  %v8368_v62 = vld [vmem:[#allocation11 + $0x2e8] sm:$0xf] }
 0x25f   : > { %v9549_v38 = vor.u32 %v11128_v5, %v9546_v15  ;;  %v9674_v17 = vld [vmem:[#allocation11 + $0xd30] sm:$0xf0]  ;;  %v8208_v5 = vld [vmem:[#allocation11 + $0x1a8] sm:$0xf]  ;;  %v10867_v13 = vld [vmem:[#allocation11 + $0x3f4] sm:$0xf0] }
 0x260   : > { %5252 = vmatpush.bf16.msrb.mxu0 %v9485_v41  ;;  %5265 = vmatpush.bf16.msrb.mxu1 %v9613_v30  ;;  %v4973_v41 = vpop.f32.mrf.mxu2  ;;  %v11096_v30 = vld [vmem:[#allocation11 + $0xb24] sm:$0xf]  ;;  %v9677_v15 = vor.u32 %v11160_v57, %v9674_v17  ;;  %v8064_v11 = vld [vmem:[#allocation11 + $0x88] sm:$0xf]  ;;  %v10787_v57 = vld [vmem:[#allocation11 + $0x174] sm:$0xf0] }
 0x261   : > { %5232 = vmatmul.bf16.vlgmr.msrb.gmra.mxu2 %v12581_v8  ;;  %v4974_v45 = vadd.f32 %v4973_v41, %v4961_v60  ;;  %v9421_v7 = vor.u32 %v11096_v30, %v9418_v59  ;;  %v11196_v41 = vld [vmem:[#allocation11 + $0xe44] sm:$0xf]  ;;  %v8080_v30 = vld [vmem:[#allocation11 + $0xa8] sm:$0xf]  ;;  %v10763_v59 = vld [vmem:[#allocation11 + $0xb4] sm:$0xf0] }
 0x262   : > { %5276 = vmatpush.bf16.msra.mxu2 %v9773_v47  ;;  %5244 = vmatpush.bf16.msrb.mxu3 %v9277_v14  ;;  %v11168_v47 = vld [vmem:[#allocation11 + $0xd64] sm:$0xf]  ;;  %v8048_v12 = vld [vmem:[#allocation11 + $0x68] sm:$0xf] }
 0x263   : > { %v9709_v29 = vor.u32 %v11168_v47, %v9706_v18  ;;  %v10795_v47 = vld [vmem:[#allocation11 + $0x1b4] sm:$0xf0]  ;;  %v11156_v18 = vld [vmem:[#allocation11 + $0xd04] sm:$0xf]  ;;  %v8176_v4 = vld [vmem:[#allocation11 + $0x168] sm:$0xf] }
 0x264   : > { %5253 = vmatpush.bf16.msrb.mxu0 %v9469_v36  ;;  %5266 = vmatpush.bf16.msrb.mxu1 %v9597_v51  ;;  %v11092_v36 = vld [vmem:[#allocation11 + $0xb04] sm:$0xf]  ;;  %v8112_v51 = vld [vmem:[#allocation11 + $0xe8] sm:$0xf]  ;;  %v4999_v60 = vpop.f32.mrf.mxu0  ;;  %v5012_v14 = vpop.f32.mrf.mxu1 }
 0x265   : > { %5245 = vmatmul.bf16.vlgmr.msrb.gmra.mxu3 %v12583_v22  ;;  %v9405_v46 = vor.u32 %v11092_v36, %v9402_v31  ;;  %v8113_v19 = vor.u32 %v10771_v39, %v8112_v51  ;;  %v10835_v36 = vld [vmem:[#allocation11 + $0x2f4] sm:$0xf0]  ;;  %v9802_v51 = vld [vmem:[#allocation11 + $0xe30] sm:$0xf0]  ;;  %v8209_v39 = vor.u32 %v10795_v47, %v8208_v5  ;;  %v8177_v5 = vor.u32 %v10787_v57, %v8176_v4  ;;  %v8624_v4 = vld [vmem:[#allocation11 + $0x4e8] sm:$0xf] }
 0x266   : > { %5277 = vmatpush.bf16.msra.mxu2 %v9757_v28  ;;  %5289 = vmatpush.bf16.msra.mxu3 %v9901_v9  ;;  %v9690_v28 = vld [vmem:[#allocation11 + $0xd50] sm:$0xf0]  ;;  %v10751_v47 = vld [vmem:[#allocation11 + $0x54] sm:$0xf0] }
 0x267   : > { %v10899_v57 = vld [vmem:[#allocation11 + $0x4f4] sm:$0xf0] }
 0x268   : > { %5254 = vmatpush.bf16.msrb.mxu0 %v9453_v10  ;;  %5267 = vmatpush.bf16.msrb.mxu1 %v9581_v33  ;;  %v4975_v9 = vpop.f32.mrf.mxu2  ;;  %v9533_v10 = vor.u32 %v11124_v54, %v9530_v20  ;;  %v11200_v33 = vld [vmem:[#allocation11 + $0xe64] sm:$0xf]  ;;  %v4986_v3 = vpop.f32.mrf.mxu3  ;;  %v8081_v54 = vor.u32 %v10763_v59, %v8080_v30  ;;  %v8480_v59 = vld [vmem:[#allocation11 + $0x3c8] sm:$0xf] }
 0x269   : > { %v11192_v20 = vld [vmem:[#allocation11 + $0xe24] sm:$0xf] }
 0x26a   : > { %5278 = vmatpush.bf16.msra.mxu2 %v9741_v6  ;;  %5290 = vmatpush.bf16.msra.mxu3 %v9885_v44  ;;  %v9693_v6 = vor.u32 %v11164_v2, %v9690_v28  ;;  %v9837_v44 = vor.u32 %v11200_v33, %v9834_v23  ;;  %v8192_v28 = vld [vmem:[#allocation11 + $0x188] sm:$0xf]  ;;  %v9805_v9 = vor.u32 %v11192_v20, %v9802_v51  ;;  %v11188_v33 = vld [vmem:[#allocation11 + $0xe04] sm:$0xf]  ;;  %v9786_v23 = vld [vmem:[#allocation11 + $0xe10] sm:$0xf0] }
 0x26b   : > { %v10859_v51 = vld [vmem:[#allocation11 + $0x3b4] sm:$0xf0] }
 0x26c   : > { %5255 = vmatpush.bf16.msrb.mxu0 %v9437_v48  ;;  %5268 = vmatpush.bf16.msrb.mxu1 %v9565_v34  ;;  %v4987_v48 = vadd.f32 %v4986_v3, %v4974_v45  ;;  %v9818_v34 = vld [vmem:[#allocation11 + $0xe50] sm:$0xf0]  ;;  %v5001_v45 = vpop.f32.mrf.mxu0 }
 0x26d   : > { %v9821_v27 = vor.u32 %v11196_v41, %v9818_v34 }
 0x26e   : > { %5279 = vmatpush.bf16.msra.mxu2 %v9725_v50  ;;  %5291 = vmatpush.bf16.msra.mxu3 %v9869_v58  ;;  %v5000_v50 = vadd.f32 %v4999_v60, %v4987_v48  ;;  %v9658_v58 = vld [vmem:[#allocation11 + $0xd10] sm:$0xf0]  ;;  %v10791_v60 = vld [vmem:[#allocation11 + $0x194] sm:$0xf0]  ;;  %v8336_v48 = vld [vmem:[#allocation11 + $0x2a8] sm:$0xf] }
 0x26f   : > { %v9661_v63 = vor.u32 %v11156_v18, %v9658_v58  ;;  %v8193_v26 = vor.u32 %v10791_v60, %v8192_v28  ;;  %v8160_v18 = vld [vmem:[#allocation11 + $0x148] sm:$0xf]  ;;  %v10783_v58 = vld [vmem:[#allocation11 + $0x154] sm:$0xf0] }
 0x270   : > { %5256 = vmatpush.bf16.msrb.mxu0 %v9421_v7  ;;  %5269 = vmatpush.bf16.msrb.mxu1 %v9549_v38  ;;  %v5014_v7 = vpop.f32.mrf.mxu1  ;;  %v5013_v38 = vadd.f32 %v5012_v14, %v5000_v50  ;;  %v5025_v31 = vpop.f32.mrf.mxu2  ;;  %v10831_v14 = vld [vmem:[#allocation11 + $0x2d4] sm:$0xf0]  ;;  %v8032_v50 = vld [vmem:[#allocation11 + $0x48] sm:$0xf]  ;;  %v8161_v20 = vor.u32 %v10783_v58, %v8160_v18 }
 0x271   : > { %v8320_v7 = vld [vmem:[#allocation11 + $0x288] sm:$0xf]  ;;  %v10895_v18 = vld [vmem:[#allocation11 + $0x4d4] sm:$0xf0] }
 0x272   : > { %5280 = vmatpush.bf16.msra.mxu2 %v9709_v29  ;;  %5292 = vmatpush.bf16.msra.mxu3 %v9853_v55  ;;  %v10759_v29 = vld [vmem:[#allocation11 + $0x94] sm:$0xf0]  ;;  %v5026_v2 = vadd.f32 %v5025_v31, %v5013_v38  ;;  %v8369_v55 = vor.u32 %v10835_v36, %v8368_v62  ;;  %v8033_v38 = vor.u32 %v10751_v47, %v8032_v50  ;;  %v8464_v31 = vld [vmem:[#allocation11 + $0x3a8] sm:$0xf] }
 0x273   : > { %v10851_v50 = vld [vmem:[#allocation11 + $0x374] sm:$0xf0]  ;;  %v8736_v58 = vld [vmem:[#allocation11 + $0x5c8] sm:$0xf] }
 0x274   : > { %5257 = vmatpush.bf16.msrb.mxu0 %v9405_v46  ;;  %5270 = vmatpush.bf16.msrb.mxu1 %v9533_v10  ;;  %v4988_v46 = vpop.f32.mrf.mxu3  ;;  %v8352_v10 = vld [vmem:[#allocation11 + $0x2c8] sm:$0xf]  ;;  %v5051_v3 = vpop.f32.mrf.mxu0 }
 0x275   : > { %v8353_v17 = vor.u32 %v10831_v14, %v8352_v10  ;;  %v8304_v46 = vld [vmem:[#allocation11 + $0x268] sm:$0xf]  ;;  %v8465_v14 = vor.u32 %v10859_v51, %v8464_v31  ;;  %v10847_v51 = vld [vmem:[#allocation11 + $0x354] sm:$0xf0] }
 0x276   : > { %5281 = vmatpush.bf16.msra.mxu2 %v9693_v6  ;;  %5293 = vmatpush.bf16.msra.mxu3 %v9837_v44  ;;  %v10755_v6 = vld [vmem:[#allocation11 + $0x74] sm:$0xf0]  ;;  %v9789_v44 = vor.u32 %v11188_v33, %v9786_v23  ;;  %v8000_v23 = vld [vmem:[#allocation11 + $0x8] sm:$0xf] }
 0x277   : > { %5258 = vmatmul.bf16.vlgmr.msrb.gmra.mxu0 %v12586_v16  ;;  %5271 = vmatmul.bf16.vlgmr.msrb.gmra.mxu1 %v12592_v53  ;;  %v8049_v30 = vor.u32 %v10755_v6, %v8048_v12  ;;  %v10855_v33 = vld [vmem:[#allocation11 + $0x394] sm:$0xf0] }
 0x278   : > { %5302 = vmatpush.bf16.msra.mxu0 %v8113_v19  ;;  %5315 = vmatpush.bf16.msra.mxu1 %v8241_v40  ;;  %v8065_v19 = vor.u32 %v10759_v29, %v8064_v11  ;;  %v8496_v40 = vld [vmem:[#allocation11 + $0x3e8] sm:$0xf]  ;;  %v5027_v41 = vpop.f32.mrf.mxu2  ;;  %v5064_v34 = vpop.f32.mrf.mxu1  ;;  %v10747_v11 = vld [vmem:[#allocation11 + $0x34] sm:$0xf0] }
 0x279   : > { %v8144_v29 = vld [vmem:[#allocation11 + $0x128] sm:$0xf]  ;;  %v10775_v12 = vld [vmem:[#allocation11 + $0x114] sm:$0xf0] }
 0x27a   : > { %5282 = vmatpush.bf16.msra.mxu2 %v9677_v15  ;;  %5294 = vmatpush.bf16.msra.mxu3 %v9821_v27  ;;  %v10863_v15 = vld [vmem:[#allocation11 + $0x3d4] sm:$0xf0] }
 0x27b   : > { %v10823_v27 = vld [vmem:[#allocation11 + $0x294] sm:$0xf0]  ;;  %v8481_v36 = vor.u32 %v10863_v15, %v8480_v59  ;;  %v8432_v15 = vld [vmem:[#allocation11 + $0x368] sm:$0xf] }
 0x27c   : > { %5303 = vmatpush.bf16.msra.mxu0 %v8097_v25  ;;  %5316 = vmatpush.bf16.msra.mxu1 %v8225_v1  ;;  %v10827_v25 = vld [vmem:[#allocation11 + $0x2b4] sm:$0xf0]  ;;  %v8497_v1 = vor.u32 %v10867_v13, %v8496_v40  ;;  %v5038_v62 = vpop.f32.mrf.mxu3  ;;  %v8321_v28 = vor.u32 %v10823_v27, %v8320_v7  ;;  %v8128_v13 = vld [vmem:[#allocation11 + $0x108] sm:$0xf] }
 0x27d   : > { %v8337_v45 = vor.u32 %v10827_v25, %v8336_v48  ;;  %v8288_v48 = vld [vmem:[#allocation11 + $0x248] sm:$0xf]  ;;  %v10815_v25 = vld [vmem:[#allocation11 + $0x254] sm:$0xf0]  ;;  %v8129_v59 = vor.u32 %v10775_v12, %v8128_v13 }
 0x27e   : > { %5283 = vmatpush.bf16.msra.mxu2 %v9661_v63  ;;  %5295 = vmatpush.bf16.msra.mxu3 %v9805_v9  ;;  %v10779_v63 = vld [vmem:[#allocation11 + $0x134] sm:$0xf0]  ;;  %v8272_v27 = vld [vmem:[#allocation11 + $0x228] sm:$0xf] }
 0x27f   : > { %v10819_v9 = vld [vmem:[#allocation11 + $0x274] sm:$0xf0]  ;;  %v8145_v40 = vor.u32 %v10779_v63, %v8144_v29  ;;  %v8720_v63 = vld [vmem:[#allocation11 + $0x5a8] sm:$0xf] }
 0x280   : > { %5304 = vmatpush.bf16.msra.mxu0 %v8081_v54  ;;  %5317 = vmatpush.bf16.msra.mxu1 %v8209_v39  ;;  %v5039_v54 = vadd.f32 %v5038_v62, %v5026_v2  ;;  %v8016_v39 = vld [vmem:[#allocation11 + $0x28] sm:$0xf]  ;;  %v5066_v10 = vpop.f32.mrf.mxu1  ;;  %v10927_v7 = vld [vmem:[#allocation11 + $0x5d4] sm:$0xf0] }
 0x281   : > { %5284 = vmatmul.bf16.vlgmr.msra.gmra.mxu2 %v12597_v52  ;;  %v8017_v2 = vor.u32 %v10747_v11, %v8016_v39  ;;  %v10811_v62 = vld [vmem:[#allocation11 + $0x234] sm:$0xf0]  ;;  %v8737_v39 = vor.u32 %v10927_v7, %v8736_v58  ;;  %v8592_v11 = vld [vmem:[#allocation11 + $0x4a8] sm:$0xf] }
 0x282   : > { %5328 = vmatpush.bf16.msrb.mxu2 %v8369_v55  ;;  %5296 = vmatpush.bf16.msra.mxu3 %v9789_v44  ;;  %v5052_v60 = vadd.f32 %v5051_v3, %v5039_v54  ;;  %v5053_v55 = vpop.f32.mrf.mxu0  ;;  %v8305_v3 = vor.u32 %v10819_v9, %v8304_v46  ;;  %v10931_v44 = vld [vmem:[#allocation11 + $0x5f4] sm:$0xf0]  ;;  %v8576_v13 = vld [vmem:[#allocation11 + $0x488] sm:$0xf] }
 0x283   : > { %v10891_v29 = vld [vmem:[#allocation11 + $0x4b4] sm:$0xf0]  ;;  %v8256_v55 = vld [vmem:[#allocation11 + $0x208] sm:$0xf] }
 0x284   : > { %5305 = vmatpush.bf16.msra.mxu0 %v8065_v19  ;;  %5318 = vmatpush.bf16.msra.mxu1 %v8193_v26  ;;  %v8448_v19 = vld [vmem:[#allocation11 + $0x388] sm:$0xf]  ;;  %v10743_v26 = vld [vmem:[#allocation11 + $0x14] sm:$0xf0]  ;;  %v5065_v6 = vadd.f32 %v5064_v34, %v5052_v60  ;;  %v5040_v41 = vpop.f32.mrf.mxu3 }
 0x285   : > { %5297 = vmatmul.bf16.vlgmr.msra.gmra.mxu3 %v12602_v56  ;;  %v8608_v34 = vld [vmem:[#allocation11 + $0x4c8] sm:$0xf]  ;;  %v10923_v60 = vld [vmem:[#allocation11 + $0x5b4] sm:$0xf0] }
 0x286   : > { %5329 = vmatpush.bf16.msrb.mxu2 %v8353_v17  ;;  %5341 = vmatpush.bf16.msrb.mxu3 %v8497_v1  ;;  %v8752_v17 = vld [vmem:[#allocation11 + $0x5e8] sm:$0xf]  ;;  %v8449_v1 = vor.u32 %v10855_v33, %v8448_v19  ;;  %v8609_v54 = vor.u32 %v10895_v18, %v8608_v34  ;;  %v10807_v46 = vld [vmem:[#allocation11 + $0x214] sm:$0xf0]  ;;  %v8593_v33 = vor.u32 %v10891_v29, %v8592_v11 }
 0x287   : > { %v8753_v47 = vor.u32 %v10931_v44, %v8752_v17  ;;  %v10887_v12 = vld [vmem:[#allocation11 + $0x494] sm:$0xf0]  ;;  %v8688_v34 = vld [vmem:[#allocation11 + $0x568] sm:$0xf] }
 0x288   : > { %5306 = vmatpush.bf16.msra.mxu0 %v8049_v30  ;;  %5319 = vmatpush.bf16.msra.mxu1 %v8177_v5  ;;  %v8001_v30 = vor.u32 %v10743_v26, %v8000_v23  ;;  %v8625_v5 = vor.u32 %v10899_v57, %v8624_v4  ;;  %v8400_v23 = vld [vmem:[#allocation11 + $0x328] sm:$0xf]  ;;  %v8721_v26 = vor.u32 %v10923_v60, %v8720_v63  ;;  %v10919_v57 = vld [vmem:[#allocation11 + $0x594] sm:$0xf0] }
 0x289   : > { %v8704_v4 = vld [vmem:[#allocation11 + $0x588] sm:$0xf]  ;;  %v8577_v41 = vor.u32 %v10887_v12, %v8576_v13  ;;  %v10915_v18 = vld [vmem:[#allocation11 + $0x574] sm:$0xf0] }
 0x28a   : > { %5330 = vmatpush.bf16.msrb.mxu2 %v8337_v45  ;;  %5342 = vmatpush.bf16.msrb.mxu3 %v8481_v36  ;;  %v8289_v45 = vor.u32 %v10815_v25, %v8288_v48  ;;  %v8433_v36 = vor.u32 %v10851_v50, %v8432_v15  ;;  %v8864_v48 = vld [vmem:[#allocation11 + $0x6c8] sm:$0xf]  ;;  %v10959_v25 = vld [vmem:[#allocation11 + $0x6d4] sm:$0xf0] }
 0x28b   : > { %v10995_v15 = vld [vmem:[#allocation11 + $0x7f4] sm:$0xf0]  ;;  %v8560_v50 = vld [vmem:[#allocation11 + $0x468] sm:$0xf]  ;;  %v8865_v58 = vor.u32 %v10959_v25, %v8864_v48 }
 0x28c   : > { %5307 = vmatpush.bf16.msra.mxu0 %v8033_v38  ;;  %5320 = vmatpush.bf16.msra.mxu1 %v8161_v20  ;;  %v5077_v38 = vpop.f32.mrf.mxu2  ;;  %v8416_v20 = vld [vmem:[#allocation11 + $0x348] sm:$0xf]  ;;  %v5090_v9 = vpop.f32.mrf.mxu3  ;;  %v10991_v11 = vld [vmem:[#allocation11 + $0x7d4] sm:$0xf0] }
 0x28d   : > { %v5078_v31 = vadd.f32 %v5077_v38, %v5065_v6  ;;  %v8417_v10 = vor.u32 %v10847_v51, %v8416_v20  ;;  %v8257_v6 = vor.u32 %v10807_v46, %v8256_v55  ;;  %v8992_v51 = vld [vmem:[#allocation11 + $0x7c8] sm:$0xf]  ;;  %v10879_v63 = vld [vmem:[#allocation11 + $0x454] sm:$0xf0] }
 0x28e   : > { %5331 = vmatpush.bf16.msrb.mxu2 %v8321_v28  ;;  %5343 = vmatpush.bf16.msrb.mxu3 %v8465_v14  ;;  %v8273_v28 = vor.u32 %v10811_v62, %v8272_v27  ;;  %v8880_v14 = vld [vmem:[#allocation11 + $0x6e8] sm:$0xf]  ;;  %v10911_v60 = vld [vmem:[#allocation11 + $0x554] sm:$0xf0] }
 0x28f   : > { %v5091_v19 = vadd.f32 %v5090_v9, %v5078_v31  ;;  %v8848_v62 = vld [vmem:[#allocation11 + $0x6a8] sm:$0xf]  ;;  %v10951_v9 = vld [vmem:[#allocation11 + $0x694] sm:$0xf0] }
 0x290   : > { %5308 = vmatpush.bf16.msra.mxu0 %v8017_v2  ;;  %5321 = vmatpush.bf16.msra.mxu1 %v8145_v40  ;;  %v10963_v2 = vld [vmem:[#allocation11 + $0x6f4] sm:$0xf0]  ;;  %v8544_v29 = vld [vmem:[#allocation11 + $0x448] sm:$0xf] }
 0x291   : > { %v10843_v40 = vld [vmem:[#allocation11 + $0x334] sm:$0xf0]  ;;  %v8881_v17 = vor.u32 %v10963_v2, %v8880_v14  ;;  %v8832_v46 = vld [vmem:[#allocation11 + $0x688] sm:$0xf]  ;;  %v8545_v14 = vor.u32 %v10879_v63, %v8544_v29 }
 0x292   : > { %5332 = vmatpush.bf16.msrb.mxu2 %v8305_v3  ;;  %5344 = vmatpush.bf16.msrb.mxu3 %v8449_v1  ;;  %v8401_v3 = vor.u32 %v10843_v40, %v8400_v23  ;;  %v8384_v1 = vld [vmem:[#allocation11 + $0x308] sm:$0xf]  ;;  %v10875_v40 = vld [vmem:[#allocation11 + $0x434] sm:$0xf0]  ;;  %v8833_v12 = vor.u32 %v10951_v9, %v8832_v46 }
 0x293   : > { %v8976_v2 = vld [vmem:[#allocation11 + $0x7a8] sm:$0xf]  ;;  %v10907_v13 = vld [vmem:[#allocation11 + $0x534] sm:$0xf0] }
 0x294   : > { %5309 = vmatpush.bf16.msra.mxu0 %v8001_v30  ;;  %5322 = vmatpush.bf16.msra.mxu1 %v8129_v59  ;;  %v5079_v44 = vpop.f32.mrf.mxu2  ;;  %v10839_v30 = vld [vmem:[#allocation11 + $0x314] sm:$0xf0]  ;;  %v9008_v59 = vld [vmem:[#allocation11 + $0x7e8] sm:$0xf]  ;;  %v5103_v7 = vpop.f32.mrf.mxu0 }
 0x295   : > { %v8385_v27 = vor.u32 %v10839_v30, %v8384_v1  ;;  %v12628_v38 = vadd.f32 %v5103_v7, %v5091_v19  ;;  %v12630_v31 = vpop.f32.mrf.mxu1  ;;  %v8528_v23 = vld [vmem:[#allocation11 + $0x428] sm:$0xf]  ;;  %v10939_v46 = vld [vmem:[#allocation11 + $0x634] sm:$0xf0] }
 0x296   : > { %5333 = vmatpush.bf16.msrb.mxu2 %v8289_v45  ;;  %5345 = vmatpush.bf16.msrb.mxu3 %v8433_v36  ;;  %v5092_v45 = vpop.f32.mrf.mxu3  ;;  %v10955_v36 = vld [vmem:[#allocation11 + $0x6b4] sm:$0xf0]  ;;  %v8529_v48 = vor.u32 %v10875_v40, %v8528_v23  ;;  %v8960_v25 = vld [vmem:[#allocation11 + $0x788] sm:$0xf] }
 0x297   : > { %5310 = vmatmul.bf16.vlgmr.msra.gmra.mxu0 %v12496_v24  ;;  %5323 = vmatmul.bf16.vlgmr.msra.gmra.mxu1 %v12500_v32  ;;  %v8849_v55 = vor.u32 %v10955_v36, %v8848_v62  ;;  %v8512_v1 = vld [vmem:[#allocation11 + $0x408] sm:$0xf]  ;;  %v10943_v45 = vld [vmem:[#allocation11 + $0x654] sm:$0xf0]  ;;  %vm5692_vm15 = vcmp.ge.f32.partialorder %v12628_v38, 0.0 }
 0x298   : > { %5354 = vmatpush.bf16.msrb.mxu0 %v8625_v5  ;;  %5367 = vmatpush.bf16.msrb.mxu1 %v8753_v47  ;;  %v8705_v5 = vor.u32 %v10919_v57, %v8704_v4  ;;  %v10883_v47 = vld [vmem:[#allocation11 + $0x474] sm:$0xf0]  ;;  %v8816_v57 = vld [vmem:[#allocation11 + $0x668] sm:$0xf] }
 0x299   : > { %v8561_v20 = vor.u32 %v10883_v47, %v8560_v50  ;;  %v9136_v50 = vld [vmem:[#allocation11 + $0x8e8] sm:$0xf]  ;;  %v11027_v47 = vld [vmem:[#allocation11 + $0x8f4] sm:$0xf0] }
 0x29a   : > { %5334 = vmatpush.bf16.msrb.mxu2 %v8273_v28  ;;  %5346 = vmatpush.bf16.msrb.mxu3 %v8417_v10  ;;  %v8672_v28 = vld [vmem:[#allocation11 + $0x548] sm:$0xf]  ;;  %v8993_v10 = vor.u32 %v10991_v11, %v8992_v51  ;;  %v9137_v36 = vor.u32 %v11027_v47, %v9136_v50  ;;  %v11023_v11 = vld [vmem:[#allocation11 + $0x8d4] sm:$0xf0] }
 0x29b   : > { %v8673_v19 = vor.u32 %v10911_v60, %v8672_v28  ;;  %v9248_v29 = vld [vmem:[#allocation11 + $0x9c8] sm:$0xf]  ;;  %v11055_v60 = vld [vmem:[#allocation11 + $0x9d4] sm:$0xf0] }
 0x29c   : > { %5355 = vmatpush.bf16.msrb.mxu0 %v8609_v54  ;;  %5368 = vmatpush.bf16.msrb.mxu1 %v8737_v39  ;;  %v9009_v54 = vor.u32 %v10995_v15, %v9008_v59  ;;  %v8689_v39 = vor.u32 %v10915_v18, %v8688_v34  ;;  %v5105_v4 = vpop.f32.mrf.mxu0  ;;  %v10871_v59 = vld [vmem:[#allocation11 + $0x414] sm:$0xf0]  ;;  %v9249_v23 = vor.u32 %v11055_v60, %v9248_v29  ;;  %v9104_v40 = vld [vmem:[#allocation11 + $0x8a8] sm:$0xf] }
 0x29d   : > { %v10903_v15 = vld [vmem:[#allocation11 + $0x514] sm:$0xf0]  ;;  %v9360_v60 = vld [vmem:[#allocation11 + $0xaa8] sm:$0xf] }
 0x29e   : > { %5335 = vmatpush.bf16.msrb.mxu2 %v8257_v6  ;;  %5347 = vmatpush.bf16.msrb.mxu3 %v8401_v3  ;;  %v2505_v6 = vperm.slane %v12611_v0, 1  ;;  %v5118_v3 = vpop.f32.mrf.mxu1  ;;  %v9264_v0 = vld [vmem:[#allocation11 + $0x9e8] sm:$0xf]  ;;  %v11059_v18 = vld [vmem:[#allocation11 + $0x9f4] sm:$0xf0] }
 0x29f   : > { %v9265_v51 = vor.u32 %v11059_v18, %v9264_v0  ;;  %v10935_v4 = vld [vmem:[#allocation11 + $0x614] sm:$0xf0]  ;;  %v9376_v18 = vld [vmem:[#allocation11 + $0xac8] sm:$0xf] }
 0x2a0   : > { %5356 = vmatpush.bf16.msrb.mxu0 %v8593_v33  ;;  %5369 = vmatpush.bf16.msrb.mxu1 %v8721_v26  ;;  %v10987_v33 = vld [vmem:[#allocation11 + $0x7b4] sm:$0xf0]  ;;  %v8656_v26 = vld [vmem:[#allocation11 + $0x528] sm:$0xf]  ;;  %v5117_v28 = vadd.f32 %v12630_v31, %v2505_v6 }
 0x2a1   : > { %5336 = vmatmul.bf16.vlgmr.msrb.gmra.mxu2 %v12536_v43  ;;  %v8977_v44 = vor.u32 %v10987_v33, %v8976_v2  ;;  %v8657_v30 = vor.u32 %v10907_v13, %v8656_v26  ;;  %v10975_v33 = vld [vmem:[#allocation11 + $0x754] sm:$0xf0]  ;;  %v9232_v31 = vld [vmem:[#allocation11 + $0x9a8] sm:$0xf] }
 0x2a2   : > { %5380 = vmatpush.bf16.msra.mxu2 %v8881_v17  ;;  %5348 = vmatpush.bf16.msrb.mxu3 %v8385_v27  ;;  %v10947_v17 = vld [vmem:[#allocation11 + $0x674] sm:$0xf0]  ;;  %v8513_v27 = vor.u32 %v10871_v59, %v8512_v1  ;;  %v8768_v6 = vld [vmem:[#allocation11 + $0x608] sm:$0xf] }
 0x2a3   : > { %v8817_v34 = vor.u32 %v10947_v17, %v8816_v57  ;;  %v11019_v26 = vld [vmem:[#allocation11 + $0x8b4] sm:$0xf0]  ;;  %v9392_v17 = vld [vmem:[#allocation11 + $0xae8] sm:$0xf] }
 0x2a4   : > { %5357 = vmatpush.bf16.msrb.mxu0 %v8577_v41  ;;  %5370 = vmatpush.bf16.msrb.mxu1 %v8705_v5  ;;  %v10983_v41 = vld [vmem:[#allocation11 + $0x794] sm:$0xf0]  ;;  %v8640_v5 = vld [vmem:[#allocation11 + $0x508] sm:$0xf] }
 0x2a5   : > { %5349 = vmatmul.bf16.vlgmr.msrb.gmra.mxu3 %v12538_v35  ;;  %v8961_v7 = vor.u32 %v10983_v41, %v8960_v25  ;;  %v8641_v62 = vor.u32 %v10903_v15, %v8640_v5  ;;  %v11091_v3 = vld [vmem:[#allocation11 + $0xaf4] sm:$0xf0]  ;;  %v8912_v25 = vld [vmem:[#allocation11 + $0x728] sm:$0xf]  ;;  %v8769_v5 = vor.u32 %v10935_v4, %v8768_v6 }
 0x2a6   : > { %5381 = vmatpush.bf16.msra.mxu2 %v8865_v58  ;;  %5393 = vmatpush.bf16.msra.mxu3 %v9009_v54  ;;  %v8800_v58 = vld [vmem:[#allocation11 + $0x648] sm:$0xf]  ;;  %v10971_v41 = vld [vmem:[#allocation11 + $0x734] sm:$0xf0]  ;;  %v9393_v47 = vor.u32 %v11091_v3, %v9392_v17 }
 0x2a7   : > { %v8944_v54 = vld [vmem:[#allocation11 + $0x768] sm:$0xf]  ;;  %v8801_v63 = vor.u32 %v10943_v45, %v8800_v58  ;;  %v11015_v59 = vld [vmem:[#allocation11 + $0x894] sm:$0xf0]  ;;  %v8913_v0 = vor.u32 %v10971_v41, %v8912_v25 }
 0x2a8   : > { %5358 = vmatpush.bf16.msrb.mxu0 %v8561_v20  ;;  %5371 = vmatpush.bf16.msrb.mxu1 %v8689_v39  ;;  %v10979_v20 = vld [vmem:[#allocation11 + $0x774] sm:$0xf0]  ;;  %v9120_v39 = vld [vmem:[#allocation11 + $0x8c8] sm:$0xf] }
 0x2a9   : > { %v8945_v9 = vor.u32 %v10979_v20, %v8944_v54  ;;  %v9121_v2 = vor.u32 %v11023_v11, %v9120_v39  ;;  %v9216_v15 = vld [vmem:[#allocation11 + $0x988] sm:$0xf]  ;;  %v11047_v50 = vld [vmem:[#allocation11 + $0x994] sm:$0xf0] }
 0x2aa   : > { %5382 = vmatpush.bf16.msra.mxu2 %v8849_v55  ;;  %5394 = vmatpush.bf16.msra.mxu3 %v8993_v10  ;;  %v8784_v55 = vld [vmem:[#allocation11 + $0x628] sm:$0xf]  ;;  %v5129_v10 = vpop.f32.mrf.mxu2  ;;  %v11087_v58 = vld [vmem:[#allocation11 + $0xad4] sm:$0xf0] }
 0x2ab   : > { %v8785_v13 = vor.u32 %v10939_v46, %v8784_v55  ;;  %v11123_v54 = vld [vmem:[#allocation11 + $0xbf4] sm:$0xf0]  ;;  %v9072_v20 = vld [vmem:[#allocation11 + $0x868] sm:$0xf]  ;;  %v9377_v29 = vor.u32 %v11087_v58, %v9376_v18 }
 0x2ac   : > { %5359 = vmatpush.bf16.msrb.mxu0 %v8545_v14  ;;  %5372 = vmatpush.bf16.msrb.mxu1 %v8673_v19  ;;  %v12636_v14 = vadd.f32 %v5129_v10, %v5117_v28  ;;  %v8928_v19 = vld [vmem:[#allocation11 + $0x748] sm:$0xf]  ;;  %v11043_v11 = vld [vmem:[#allocation11 + $0x974] sm:$0xf0] }
 0x2ad   : > { %v8929_v57 = vor.u32 %v10975_v33, %v8928_v19  ;;  %v9200_v39 = vld [vmem:[#allocation11 + $0x968] sm:$0xf]  ;;  %v11083_v55 = vld [vmem:[#allocation11 + $0xab4] sm:$0xf0] }
 0x2ae   : > { %5383 = vmatpush.bf16.msra.mxu2 %v8833_v12  ;;  %5395 = vmatpush.bf16.msra.mxu3 %v8977_v44  ;;  %v11051_v12 = vld [vmem:[#allocation11 + $0x9b4] sm:$0xf0]  ;;  %v12640_v44 = vpop.f32.mrf.mxu3  ;;  %v9504_v19 = vld [vmem:[#allocation11 + $0xbc8] sm:$0xf]  ;;  %v9201_v33 = vor.u32 %v11043_v11, %v9200_v39 }
 0x2af   : > { %v9233_v1 = vor.u32 %v11051_v12, %v9232_v31  ;;  %v9184_v31 = vld [vmem:[#allocation11 + $0x948] sm:$0xf]  ;;  %v9361_v12 = vor.u32 %v11083_v55, %v9360_v60  ;;  %v11079_v4 = vld [vmem:[#allocation11 + $0xa94] sm:$0xf0] }
 0x2b0   : > { %5360 = vmatpush.bf16.msrb.mxu0 %v8529_v48  ;;  %5373 = vmatpush.bf16.msrb.mxu1 %v8657_v30  ;;  %v9105_v48 = vor.u32 %v11019_v26, %v9104_v40  ;;  %v9088_v30 = vld [vmem:[#allocation11 + $0x888] sm:$0xf]  ;;  %v11007_v26 = vld [vmem:[#allocation11 + $0x854] sm:$0xf0] }
 0x2b1   : > { %v9089_v45 = vor.u32 %v11015_v59, %v9088_v30  ;;  %v9056_v40 = vld [vmem:[#allocation11 + $0x848] sm:$0xf]  ;;  %v11115_v25 = vld [vmem:[#allocation11 + $0xbb4] sm:$0xf0] }
 0x2b2   : > { %5384 = vmatpush.bf16.msra.mxu2 %v8817_v34  ;;  %5396 = vmatpush.bf16.msra.mxu3 %v8961_v7  ;;  %v5131_v34 = vpop.f32.mrf.mxu2  ;;  %v8896_v7 = vld [vmem:[#allocation11 + $0x708] sm:$0xf]  ;;  %v9057_v17 = vor.u32 %v11007_v26, %v9056_v40  ;;  %v11035_v59 = vld [vmem:[#allocation11 + $0x934] sm:$0xf0] }
 0x2b3   : > { %v9344_v6 = vld [vmem:[#allocation11 + $0xa88] sm:$0xf]  ;;  %v11071_v60 = vld [vmem:[#allocation11 + $0xa54] sm:$0xf0] }
 0x2b4   : > { %5361 = vmatpush.bf16.msrb.mxu0 %v8513_v27  ;;  %5374 = vmatpush.bf16.msrb.mxu1 %v8641_v62  ;;  %v10967_v27 = vld [vmem:[#allocation11 + $0x714] sm:$0xf0]  ;;  %v9520_v62 = vld [vmem:[#allocation11 + $0xbe8] sm:$0xf] }
 0x2b5   : > { %v8897_v28 = vor.u32 %v10967_v27, %v8896_v7  ;;  %v9521_v10 = vor.u32 %v11123_v54, %v9520_v62  ;;  %v9488_v3 = vld [vmem:[#allocation11 + $0xba8] sm:$0xf]  ;;  %v10999_v62 = vld [vmem:[#allocation11 + $0x814] sm:$0xf0] }
 0x2b6   : > { %5385 = vmatpush.bf16.msra.mxu2 %v8801_v63  ;;  %5397 = vmatpush.bf16.msra.mxu3 %v8945_v9  ;;  %v12642_v63 = vpop.f32.mrf.mxu0  ;;  %v5144_v46 = vpop.f32.mrf.mxu3  ;;  %v9040_v41 = vld [vmem:[#allocation11 + $0x828] sm:$0xf]  ;;  %v9489_v34 = vor.u32 %v11115_v25, %v9488_v3  ;;  %v11031_v54 = vld [vmem:[#allocation11 + $0x914] sm:$0xf0] }
 0x2b7   : > { %5362 = vmatmul.bf16.vlgmr.msrb.gmra.mxu0 %v12540_v21  ;;  %5375 = vmatmul.bf16.vlgmr.msrb.gmra.mxu1 %v12558_v61  ;;  %v12644_v9 = vpop.f32.mrf.mxu1  ;;  %v9168_v30 = vld [vmem:[#allocation11 + $0x928] sm:$0xf]  ;;  %v11151_v26 = vld [vmem:[#allocation11 + $0xcd4] sm:$0xf0] }
 0x2b8   : > { %5406 = vmatpush.bf16.msra.mxu0 %v9137_v36  ;;  %5419 = vmatpush.bf16.msra.mxu1 %v9265_v51  ;;  %v9217_v36 = vor.u32 %v11047_v50, %v9216_v15  ;;  %v11011_v51 = vld [vmem:[#allocation11 + $0x874] sm:$0xf0]  ;;  %v9328_v50 = vld [vmem:[#allocation11 + $0xa68] sm:$0xf]  ;;  %v9169_v27 = vor.u32 %v11035_v59, %v9168_v30 }
 0x2b9   : > { %v9472_v58 = vld [vmem:[#allocation11 + $0xb88] sm:$0xf]  ;;  %v11103_v25 = vld [vmem:[#allocation11 + $0xb54] sm:$0xf0] }
 0x2ba   : > { %5386 = vmatpush.bf16.msra.mxu2 %v8785_v13  ;;  %5398 = vmatpush.bf16.msra.mxu3 %v8929_v57  ;;  %v11039_v13 = vld [vmem:[#allocation11 + $0x954] sm:$0xf0]  ;;  %v9024_v7 = vld [vmem:[#allocation11 + $0x808] sm:$0xf] }
 0x2bb   : > { %v9776_v39 = vld [vmem:[#allocation11 + $0xde8] sm:$0xf]  ;;  %v9025_v46 = vor.u32 %v10999_v62, %v9024_v7  ;;  %v11147_v30 = vld [vmem:[#allocation11 + $0xcb4] sm:$0xf0] }
 0x2bc   : > { %5407 = vmatpush.bf16.msra.mxu0 %v9121_v2  ;;  %5420 = vmatpush.bf16.msra.mxu1 %v9249_v23  ;;  %v9073_v2 = vor.u32 %v11011_v51, %v9072_v20  ;;  %v11119_v23 = vld [vmem:[#allocation11 + $0xbd4] sm:$0xf0]  ;;  %v9648_v20 = vld [vmem:[#allocation11 + $0xce8] sm:$0xf] }
 0x2bd   : > { %v9505_v57 = vor.u32 %v11119_v23, %v9504_v19  ;;  %v11155_v51 = vld [vmem:[#allocation11 + $0xcf4] sm:$0xf0]  ;;  %v9456_v19 = vld [vmem:[#allocation11 + $0xb68] sm:$0xf] }
 0x2be   : > { %5387 = vmatpush.bf16.msra.mxu2 %v8769_v5  ;;  %5399 = vmatpush.bf16.msra.mxu3 %v8913_v0  ;;  %v9345_v5 = vor.u32 %v11079_v4, %v9344_v6  ;;  %v5157_v15 = vpop.f32.mrf.mxu0  ;;  %v9632_v40 = vld [vmem:[#allocation11 + $0xcc8] sm:$0xf]  ;;  %v11183_v6 = vld [vmem:[#allocation11 + $0xdd4] sm:$0xf0] }
 0x2bf   : > { %v5170_v0 = vpop.f32.mrf.mxu1  ;;  %v9296_v4 = vld [vmem:[#allocation11 + $0xa28] sm:$0xf]  ;;  %v9633_v3 = vor.u32 %v11151_v26, %v9632_v40  ;;  %v11179_v15 = vld [vmem:[#allocation11 + $0xdb4] sm:$0xf0] }
 0x2c0   : > { %5408 = vmatpush.bf16.msra.mxu0 %v9105_v48  ;;  %5421 = vmatpush.bf16.msra.mxu1 %v9233_v1  ;;  %v9185_v48 = vor.u32 %v11039_v13, %v9184_v31  ;;  %v11003_v1 = vld [vmem:[#allocation11 + $0x834] sm:$0xf0]  ;;  %v9760_v31 = vld [vmem:[#allocation11 + $0xdc8] sm:$0xf] }
 0x2c1   : > { %5388 = vmatmul.bf16.vlgmr.msra.gmra.mxu2 %v12564_v37  ;;  %v9041_v18 = vor.u32 %v11003_v1, %v9040_v41  ;;  %v9761_v41 = vor.u32 %v11183_v6, %v9760_v31  ;;  %v9616_v1 = vld [vmem:[#allocation11 + $0xca8] sm:$0xf]  ;;  %v11139_v26 = vld [vmem:[#allocation11 + $0xc74] sm:$0xf0] }
 0x2c2   : > { %5432 = vmatpush.bf16.msrb.mxu2 %v9393_v47  ;;  %5400 = vmatpush.bf16.msra.mxu3 %v8897_v28  ;;  %v11075_v47 = vld [vmem:[#allocation11 + $0xa74] sm:$0xf0]  ;;  %v9312_v28 = vld [vmem:[#allocation11 + $0xa48] sm:$0xf] }
 0x2c3   : > { %v9329_v11 = vor.u32 %v11075_v47, %v9328_v50  ;;  %v9313_v13 = vor.u32 %v11071_v60, %v9312_v28  ;;  %v9744_v59 = vld [vmem:[#allocation11 + $0xda8] sm:$0xf]  ;;  %v11063_v47 = vld [vmem:[#allocation11 + $0xa14] sm:$0xf0] }
 0x2c4   : > { %5409 = vmatpush.bf16.msra.mxu0 %v9089_v45  ;;  %5422 = vmatpush.bf16.msra.mxu1 %v9217_v36  ;;  %v11111_v45 = vld [vmem:[#allocation11 + $0xb94] sm:$0xf0]  ;;  %v9152_v36 = vld [vmem:[#allocation11 + $0x908] sm:$0xf]  ;;  %v9745_v62 = vor.u32 %v11179_v15, %v9744_v59 }
 0x2c5   : > { %5401 = vmatmul.bf16.vlgmr.msra.gmra.mxu3 %v12566_v49  ;;  %v9473_v55 = vor.u32 %v11111_v45, %v9472_v58  ;;  %v9280_v50 = vld [vmem:[#allocation11 + $0xa08] sm:$0xf]  ;;  %v9617_v45 = vor.u32 %v11147_v30, %v9616_v1  ;;  %v10765_v30 = vld [vmem:[#allocation11 + $0xcc] sm:$0xf] }
 0x2c6   : > { %5433 = vmatpush.bf16.msrb.mxu2 %v9377_v29  ;;  %5445 = vmatpush.bf16.msrb.mxu3 %v9521_v10  ;;  %v11187_v29 = vld [vmem:[#allocation11 + $0xdf4] sm:$0xf0]  ;;  %v9153_v10 = vor.u32 %v11031_v54, %v9152_v36  ;;  %v9424_v7 = vld [vmem:[#allocation11 + $0xb28] sm:$0xf] }
 0x2c7   : > { %v9777_v23 = vor.u32 %v11187_v29, %v9776_v39  ;;  %v9600_v36 = vld [vmem:[#allocation11 + $0xc88] sm:$0xf]  ;;  %v11143_v54 = vld [vmem:[#allocation11 + $0xc94] sm:$0xf0] }
 0x2c8   : > { %5410 = vmatpush.bf16.msra.mxu0 %v9073_v2  ;;  %5423 = vmatpush.bf16.msra.mxu1 %v9201_v33  ;;  %v9649_v2 = vor.u32 %v11155_v51, %v9648_v20  ;;  %v11107_v33 = vld [vmem:[#allocation11 + $0xb74] sm:$0xf0]  ;;  %v12652_v58 = vpop.f32.mrf.mxu3  ;;  %v9281_v20 = vor.u32 %v11063_v47, %v9280_v50  ;;  %v9728_v39 = vld [vmem:[#allocation11 + $0xd88] sm:$0xf] }
 0x2c9   : > { %v9888_v60 = vld [vmem:[#allocation11 + $0xec8] sm:$0xf]  ;;  %v11135_v50 = vld [vmem:[#allocation11 + $0xc54] sm:$0xf0] }
 0x2ca   : > { %5434 = vmatpush.bf16.msrb.mxu2 %v9361_v12  ;;  %5446 = vmatpush.bf16.msrb.mxu3 %v9505_v57  ;;  %v12648_v12 = vpop.f32.mrf.mxu2  ;;  %v11067_v57 = vld [vmem:[#allocation11 + $0xa34] sm:$0xf0]  ;;  %v9584_v40 = vld [vmem:[#allocation11 + $0xc68] sm:$0xf] }
 0x2cb   : > { %v9712_v31 = vld [vmem:[#allocation11 + $0xd68] sm:$0xf]  ;;  %v9585_v1 = vor.u32 %v11139_v26, %v9584_v40  ;;  %v11127_v26 = vld [vmem:[#allocation11 + $0xc14] sm:$0xf0] }
 0x2cc   : > { %5411 = vmatpush.bf16.msra.mxu0 %v9057_v17  ;;  %5424 = vmatpush.bf16.msra.mxu1 %v9185_v48  ;;  %v9457_v17 = vor.u32 %v11107_v33, %v9456_v19  ;;  %v9440_v48 = vld [vmem:[#allocation11 + $0xb48] sm:$0xf]  ;;  %v10769_v19 = vld [vmem:[#allocation11 + $0xec] sm:$0xf] }
 0x2cd   : > { %v9441_v0 = vor.u32 %v11103_v25, %v9440_v48  ;;  %v9568_v15 = vld [vmem:[#allocation11 + $0xc48] sm:$0xf] }
 0x2ce   : > { %5435 = vmatpush.bf16.msrb.mxu2 %v9345_v5  ;;  %5447 = vmatpush.bf16.msrb.mxu3 %v9489_v34  ;;  %v9297_v5 = vor.u32 %v11067_v57, %v9296_v4  ;;  %v9904_v34 = vld [vmem:[#allocation11 + $0xee8] sm:$0xf] }
 0x2cf   : > { %v9696_v47 = vld [vmem:[#allocation11 + $0xd48] sm:$0xf] }
 0x2d0   : > { %5412 = vmatpush.bf16.msra.mxu0 %v9041_v18  ;;  %5425 = vmatpush.bf16.msra.mxu1 %v9169_v27  ;;  %v11219_v18 = vld [vmem:[#allocation11 + $0xef4] sm:$0xf0]  ;;  %v5196_v48 = vpop.f32.mrf.mxu3 }
 0x2d1   : > { %v11099_v27 = vld [vmem:[#allocation11 + $0xb34] sm:$0xf0]  ;;  %v9905_v29 = vor.u32 %v11219_v18, %v9904_v34  ;;  %v9856_v18 = vld [vmem:[#allocation11 + $0xe88] sm:$0xf]  ;;  %v8370_v48 = vld [vmem:[#allocation11 + $0x2f8] sm:$0xf0] }
 0x2d2   : > { %5436 = vmatpush.bf16.msrb.mxu2 %v9329_v11  ;;  %5448 = vmatpush.bf16.msrb.mxu3 %v9473_v55  ;;  %v5183_v51 = vpop.f32.mrf.mxu2  ;;  %v11175_v11 = vld [vmem:[#allocation11 + $0xd94] sm:$0xf0]  ;;  %v9425_v28 = vor.u32 %v11099_v27, %v9424_v7  ;;  %v9569_v27 = vor.u32 %v11135_v50, %v9568_v15  ;;  %v10753_v50 = vld [vmem:[#allocation11 + $0x6c] sm:$0xf] }
 0x2d3   : > { %v11215_v55 = vld [vmem:[#allocation11 + $0xed4] sm:$0xf0]  ;;  %v9729_v33 = vor.u32 %v11175_v11, %v9728_v39  ;;  %v9680_v39 = vld [vmem:[#allocation11 + $0xd28] sm:$0xf] }
 0x2d4   : > { %5413 = vmatpush.bf16.msra.mxu0 %v9025_v46  ;;  %5426 = vmatpush.bf16.msra.mxu1 %v9153_v10  ;;  %v9601_v46 = vor.u32 %v11143_v54, %v9600_v36  ;;  %v9408_v10 = vld [vmem:[#allocation11 + $0xb08] sm:$0xf]  ;;  %v9889_v6 = vor.u32 %v11215_v55, %v9888_v60  ;;  %v12654_v4 = vpop.f32.mrf.mxu0  ;;  %v12656_v25 = vpop.f32.mrf.mxu1  ;;  %v8082_v54 = vld [vmem:[#allocation11 + $0xb8] sm:$0xf0]  ;;  %v11131_v51 = vld [vmem:[#allocation11 + $0xc34] sm:$0xf0] }
 0x2d5   : > { %v11163_v11 = vld [vmem:[#allocation11 + $0xd34] sm:$0xf0]  ;;  %v9840_v60 = vld [vmem:[#allocation11 + $0xe68] sm:$0xf] }
 0x2d6   : > { %5437 = vmatpush.bf16.msrb.mxu2 %v9313_v13  ;;  %5449 = vmatpush.bf16.msrb.mxu3 %v9457_v17  ;;  %v11171_v13 = vld [vmem:[#allocation11 + $0xd74] sm:$0xf0]  ;;  %v9872_v17 = vld [vmem:[#allocation11 + $0xea8] sm:$0xf]  ;;  %v9681_v40 = vor.u32 %v11163_v11, %v9680_v39  ;;  %v10749_v39 = vld [vmem:[#allocation11 + $0x4c] sm:$0xf] }
 0x2d7   : > { %5414 = vmatmul.bf16.vlgmr.msra.gmra.mxu0 %v12572_v42  ;;  %5427 = vmatmul.bf16.vlgmr.msra.gmra.mxu1 %v12581_v8  ;;  %v9713_v59 = vor.u32 %v11171_v13, %v9712_v31  ;;  %v11203_v55 = vld [vmem:[#allocation11 + $0xe74] sm:$0xf0]  ;;  %v9664_v31 = vld [vmem:[#allocation11 + $0xd08] sm:$0xf]  ;;  %v8034_v11 = vld [vmem:[#allocation11 + $0x58] sm:$0xf0] }
 0x2d8   : > { %5458 = vmatpush.bf16.msrb.mxu0 %v9649_v2  ;;  %5471 = vmatpush.bf16.msrb.mxu1 %v9777_v23  ;;  %v11095_v2 = vld [vmem:[#allocation11 + $0xb14] sm:$0xf0]  ;;  %v8114_v23 = vld [vmem:[#allocation11 + $0xf8] sm:$0xf0] }
 0x2d9   : > { %v9409_v57 = vor.u32 %v11095_v2, %v9408_v10  ;;  %v11159_v13 = vld [vmem:[#allocation11 + $0xd14] sm:$0xf0] }
 0x2da   : > { %5438 = vmatpush.bf16.msrb.mxu2 %v9297_v5  ;;  %5450 = vmatpush.bf16.msrb.mxu3 %v9441_v0  ;;  %v8098_v5 = vld [vmem:[#allocation11 + $0xd8] sm:$0xf0]  ;;  %v11167_v0 = vld [vmem:[#allocation11 + $0xd54] sm:$0xf0] }
 0x2db   : > { %v8101_v7 = vor.u32 %v10765_v30, %v8098_v5  ;;  %v9697_v36 = vor.u32 %v11167_v0, %v9696_v47  ;;  %v9665_v5 = vor.u32 %v11159_v13, %v9664_v31  ;;  %v8050_v47 = vld [vmem:[#allocation11 + $0x78] sm:$0xf0] }
 0x2dc   : > { %5459 = vmatpush.bf16.msrb.mxu0 %v9633_v3  ;;  %5472 = vmatpush.bf16.msrb.mxu1 %v9761_v41  ;;  %v11211_v3 = vld [vmem:[#allocation11 + $0xeb4] sm:$0xf0]  ;;  %v8117_v41 = vor.u32 %v10769_v19, %v8114_v23  ;;  %v10757_v19 = vld [vmem:[#allocation11 + $0x8c] sm:$0xf]  ;;  %v9536_v23 = vld [vmem:[#allocation11 + $0xc08] sm:$0xf] }
 0x2dd   : > { %v9873_v34 = vor.u32 %v11211_v3, %v9872_v17  ;;  %v10833_v17 = vld [vmem:[#allocation11 + $0x2ec] sm:$0xf]  ;;  %v9841_v3 = vor.u32 %v11203_v55, %v9840_v60  ;;  %v8210_v60 = vld [vmem:[#allocation11 + $0x1b8] sm:$0xf0] }
 0x2de   : > { %5439 = vmatpush.bf16.msrb.mxu2 %v9281_v20  ;;  %5451 = vmatpush.bf16.msrb.mxu3 %v9425_v28  ;;  %v9552_v20 = vld [vmem:[#allocation11 + $0xc28] sm:$0xf]  ;;  %v5209_v28 = vpop.f32.mrf.mxu0  ;;  %v8373_v0 = vor.u32 %v10833_v17, %v8370_v48  ;;  %v10825_v55 = vld [vmem:[#allocation11 + $0x2ac] sm:$0xf]  ;;  %v8194_v48 = vld [vmem:[#allocation11 + $0x198] sm:$0xf0] }
 0x2df   : > { %v9553_v2 = vor.u32 %v11131_v51, %v9552_v20  ;;  %v8053_v20 = vor.u32 %v10753_v50, %v8050_v47  ;;  %v10793_v28 = vld [vmem:[#allocation11 + $0x1ac] sm:$0xf]  ;;  %v8482_v50 = vld [vmem:[#allocation11 + $0x3d8] sm:$0xf0] }
 0x2e0   : > { %5460 = vmatpush.bf16.msrb.mxu0 %v9617_v45  ;;  %5473 = vmatpush.bf16.msrb.mxu1 %v9745_v62  ;;  %v11207_v45 = vld [vmem:[#allocation11 + $0xe94] sm:$0xf0]  ;;  %v10761_v62 = vld [vmem:[#allocation11 + $0xac] sm:$0xf]  ;;  %v8213_v13 = vor.u32 %v10793_v28, %v8210_v60  ;;  %v8466_v28 = vld [vmem:[#allocation11 + $0x3b8] sm:$0xf0] }
 0x2e1   : > { %5440 = vmatmul.bf16.vlgmr.msrb.gmra.mxu2 %v12583_v22  ;;  %v8085_v10 = vor.u32 %v10761_v62, %v8082_v54  ;;  %v8354_v62 = vld [vmem:[#allocation11 + $0x2d8] sm:$0xf0]  ;;  %v11195_v54 = vld [vmem:[#allocation11 + $0xe34] sm:$0xf0] }
 0x2e2   : > { %5484 = vmatpush.bf16.msra.mxu2 %v9905_v29  ;;  %5452 = vmatpush.bf16.msrb.mxu3 %v9409_v57  ;;  %v9857_v29 = vor.u32 %v11207_v45, %v9856_v18  ;;  %v8242_v57 = vld [vmem:[#allocation11 + $0x1f8] sm:$0xf0]  ;;  %v10829_v45 = vld [vmem:[#allocation11 + $0x2cc] sm:$0xf] }
 0x2e3   : > { %v8226_v18 = vld [vmem:[#allocation11 + $0x1d8] sm:$0xf0] }
 0x2e4   : > { %5461 = vmatpush.bf16.msrb.mxu0 %v9601_v46  ;;  %5474 = vmatpush.bf16.msrb.mxu1 %v9729_v33  ;;  %v5222_v46 = vpop.f32.mrf.mxu1  ;;  %v8066_v33 = vld [vmem:[#allocation11 + $0x98] sm:$0xf0] }
 0x2e5   : > { %5453 = vmatmul.bf16.vlgmr.msrb.gmra.mxu3 %v12586_v16  ;;  %v8069_v30 = vor.u32 %v10757_v19, %v8066_v33  ;;  %v11191_v19 = vld [vmem:[#allocation11 + $0xe14] sm:$0xf0]  ;;  %v8037_v33 = vor.u32 %v10749_v39, %v8034_v11 }
 0x2e6   : > { %5485 = vmatpush.bf16.msra.mxu2 %v9889_v6  ;;  %5497 = vmatpush.bf16.msra.mxu3 %v8117_v41  ;;  %v10801_v6 = vld [vmem:[#allocation11 + $0x1ec] sm:$0xf]  ;;  %v9824_v41 = vld [vmem:[#allocation11 + $0xe48] sm:$0xf] }
 0x2e7   : > { %v8245_v15 = vor.u32 %v10801_v6, %v8242_v57  ;;  %v10745_v6 = vld [vmem:[#allocation11 + $0x2c] sm:$0xf]  ;;  %v8018_v57 = vld [vmem:[#allocation11 + $0x38] sm:$0xf0] }
 0x2e8   : > { %5462 = vmatpush.bf16.msrb.mxu0 %v9585_v1  ;;  %5475 = vmatpush.bf16.msrb.mxu1 %v9713_v59  ;;  %v11199_v1 = vld [vmem:[#allocation11 + $0xe54] sm:$0xf0]  ;;  %v9537_v59 = vor.u32 %v11127_v26, %v9536_v23  ;;  %v10865_v23 = vld [vmem:[#allocation11 + $0x3ec] sm:$0xf]  ;;  %v5143_v26 = vadd.f32 %v12640_v44, %v12636_v14  ;;  %v12666_v31 = vpop.f32.mrf.mxu3  ;;  %v8021_v14 = vor.u32 %v10745_v6, %v8018_v57  ;;  %v8290_v6 = vld [vmem:[#allocation11 + $0x258] sm:$0xf0] }
 0x2e9   : > { %v10861_v44 = vld [vmem:[#allocation11 + $0x3cc] sm:$0xf] }
 0x2ea   : > { %5486 = vmatpush.bf16.msra.mxu2 %v9873_v34  ;;  %5498 = vmatpush.bf16.msra.mxu3 %v8101_v7  ;;  %v10797_v34 = vld [vmem:[#allocation11 + $0x1cc] sm:$0xf]  ;;  %v9825_v7 = vor.u32 %v11199_v1, %v9824_v41  ;;  %v5156_v1 = vadd.f32 %v12642_v63, %v5143_v26 }
 0x2eb   : > { %v8229_v51 = vor.u32 %v10797_v34, %v8226_v18  ;;  %v8002_v34 = vld [vmem:[#allocation11 + $0x18] sm:$0xf0]  ;;  %v10897_v18 = vld [vmem:[#allocation11 + $0x4ec] sm:$0xf] }
 0x2ec   : > { %5463 = vmatpush.bf16.msrb.mxu0 %v9569_v27  ;;  %5476 = vmatpush.bf16.msrb.mxu1 %v9697_v36  ;;  %v12660_v27 = vpop.f32.mrf.mxu2  ;;  %v9808_v36 = vld [vmem:[#allocation11 + $0xe28] sm:$0xf]  ;;  %v5169_v63 = vadd.f32 %v12644_v9, %v5156_v1  ;;  %v10893_v9 = vld [vmem:[#allocation11 + $0x4cc] sm:$0xf] }
 0x2ed   : > { %v9809_v46 = vor.u32 %v11195_v54, %v9808_v36  ;;  %v8178_v36 = vld [vmem:[#allocation11 + $0x178] sm:$0xf0]  ;;  %v10817_v54 = vld [vmem:[#allocation11 + $0x26c] sm:$0xf] }
 0x2ee   : > { %5487 = vmatpush.bf16.msra.mxu2 %v9857_v29  ;;  %5499 = vmatpush.bf16.msra.mxu3 %v8085_v10  ;;  %v8357_v29 = vor.u32 %v10829_v45, %v8354_v62  ;;  %v8338_v10 = vld [vmem:[#allocation11 + $0x2b8] sm:$0xf0]  ;;  %v10785_v62 = vld [vmem:[#allocation11 + $0x16c] sm:$0xf]  ;;  %v5182_v60 = vadd.f32 %v12648_v12, %v5169_v63 }
 0x2ef   : > { %v8341_v17 = vor.u32 %v10825_v55, %v8338_v10  ;;  %v10853_v57 = vld [vmem:[#allocation11 + $0x38c] sm:$0xf]  ;;  %v8130_v63 = vld [vmem:[#allocation11 + $0x118] sm:$0xf0] }
 0x2f0   : > { %5464 = vmatpush.bf16.msrb.mxu0 %v9553_v2  ;;  %5477 = vmatpush.bf16.msrb.mxu1 %v9681_v40  ;;  %v9792_v2 = vld [vmem:[#allocation11 + $0xe08] sm:$0xf]  ;;  %v8498_v40 = vld [vmem:[#allocation11 + $0x3f8] sm:$0xf0]  ;;  %v5248_v55 = vpop.f32.mrf.mxu3  ;;  %v5195_v26 = vadd.f32 %v12652_v58, %v5182_v60  ;;  %v10889_v1 = vld [vmem:[#allocation11 + $0x4ac] sm:$0xf] }
 0x2f1   : > { %v9793_v41 = vor.u32 %v11191_v19, %v9792_v2  ;;  %v8181_v2 = vor.u32 %v10785_v62, %v8178_v36  ;;  %v10809_v58 = vld [vmem:[#allocation11 + $0x22c] sm:$0xf]  ;;  %v8578_v62 = vld [vmem:[#allocation11 + $0x498] sm:$0xf0] }
 0x2f2   : > { %5488 = vmatpush.bf16.msra.mxu2 %v9841_v3  ;;  %5500 = vmatpush.bf16.msra.mxu3 %v8069_v30  ;;  %v10789_v3 = vld [vmem:[#allocation11 + $0x18c] sm:$0xf]  ;;  %v8882_v60 = vld [vmem:[#allocation11 + $0x6f8] sm:$0xf0] }
 0x2f3   : > { %v8197_v47 = vor.u32 %v10789_v3, %v8194_v48  ;;  %v5208_v3 = vadd.f32 %v12654_v4, %v5195_v26  ;;  %v10849_v4 = vld [vmem:[#allocation11 + $0x36c] sm:$0xf]  ;;  %v8562_v26 = vld [vmem:[#allocation11 + $0x478] sm:$0xf0] }
 0x2f4   : > { %5465 = vmatpush.bf16.msrb.mxu0 %v9537_v59  ;;  %5478 = vmatpush.bf16.msrb.mxu1 %v9665_v5  ;;  %v5235_v30 = vpop.f32.mrf.mxu2  ;;  %v10821_v59 = vld [vmem:[#allocation11 + $0x28c] sm:$0xf]  ;;  %v8322_v5 = vld [vmem:[#allocation11 + $0x298] sm:$0xf0]  ;;  %v12670_v39 = vpop.f32.mrf.mxu0 }
 0x2f5   : > { %v8325_v45 = vor.u32 %v10821_v59, %v8322_v5  ;;  %v8594_v59 = vld [vmem:[#allocation11 + $0x4b8] sm:$0xf0]  ;;  %v10777_v5 = vld [vmem:[#allocation11 + $0x12c] sm:$0xf] }
 0x2f6   : > { %5489 = vmatpush.bf16.msra.mxu2 %v9825_v7  ;;  %5501 = vmatpush.bf16.msra.mxu3 %v8053_v20  ;;  %v8626_v7 = vld [vmem:[#allocation11 + $0x4f8] sm:$0xf0]  ;;  %v10773_v36 = vld [vmem:[#allocation11 + $0x10c] sm:$0xf] }
 0x2f7   : > { %5466 = vmatmul.bf16.vlgmr.msrb.gmra.mxu0 %v12592_v53  ;;  %5479 = vmatmul.bf16.vlgmr.msrb.gmra.mxu1 %v12597_v52  ;;  %v8306_v20 = vld [vmem:[#allocation11 + $0x278] sm:$0xf0]  ;;  %v8629_v10 = vor.u32 %v10897_v18, %v8626_v7  ;;  %v8597_v18 = vor.u32 %v10889_v1, %v8594_v59  ;;  %v10885_v7 = vld [vmem:[#allocation11 + $0x48c] sm:$0xf] }
 0x2f8   : > { %5510 = vmatpush.bf16.msra.mxu0 %v8245_v15  ;;  %5523 = vmatpush.bf16.msra.mxu1 %v8373_v0  ;;  %v8501_v15 = vor.u32 %v10865_v23, %v8498_v40  ;;  %v10741_v0 = vld [vmem:[#allocation11 + $0xc] sm:$0xf]  ;;  %v8309_v19 = vor.u32 %v10817_v54, %v8306_v20  ;;  %v8162_v40 = vld [vmem:[#allocation11 + $0x158] sm:$0xf0] }
 0x2f9   : > { %v8005_v11 = vor.u32 %v10741_v0, %v8002_v34  ;;  %v10781_v23 = vld [vmem:[#allocation11 + $0x14c] sm:$0xf]  ;;  %v5221_v0 = vadd.f32 %v12656_v25, %v5208_v3  ;;  %v8258_v20 = vld [vmem:[#allocation11 + $0x218] sm:$0xf0] }
 0x2fa   : > { %5490 = vmatpush.bf16.msra.mxu2 %v9809_v46  ;;  %5502 = vmatpush.bf16.msra.mxu3 %v8037_v33  ;;  %v12673_v46 = vpop.f32.mrf.mxu1  ;;  %v8610_v33 = vld [vmem:[#allocation11 + $0x4d8] sm:$0xf0]  ;;  %v10805_v54 = vld [vmem:[#allocation11 + $0x20c] sm:$0xf] }
 0x2fb   : > { %v8613_v48 = vor.u32 %v10893_v9, %v8610_v33  ;;  %v10845_v55 = vld [vmem:[#allocation11 + $0x34c] sm:$0xf]  ;;  %v8581_v9 = vor.u32 %v10885_v7, %v8578_v62  ;;  %v8261_v33 = vor.u32 %v10805_v54, %v8258_v20  ;;  %v9010_v62 = vld [vmem:[#allocation11 + $0x7f8] sm:$0xf0] }
 0x2fc   : > { %5511 = vmatpush.bf16.msra.mxu0 %v8229_v51  ;;  %5524 = vmatpush.bf16.msra.mxu1 %v8357_v29  ;;  %v8485_v51 = vor.u32 %v10861_v44, %v8482_v50  ;;  %v10857_v29 = vld [vmem:[#allocation11 + $0x3ac] sm:$0xf]  ;;  %v5261_v50 = vpop.f32.mrf.mxu0  ;;  %v8530_v54 = vld [vmem:[#allocation11 + $0x438] sm:$0xf0] }
 0x2fd   : > { %v8469_v12 = vor.u32 %v10857_v29, %v8466_v28  ;;  %v8754_v29 = vld [vmem:[#allocation11 + $0x5f8] sm:$0xf0]  ;;  %v10961_v28 = vld [vmem:[#allocation11 + $0x6ec] sm:$0xf] }
 0x2fe   : > { %5491 = vmatpush.bf16.msra.mxu2 %v9793_v41  ;;  %5503 = vmatpush.bf16.msra.mxu3 %v8021_v14  ;;  %v8165_v41 = vor.u32 %v10781_v23, %v8162_v40  ;;  %v8274_v14 = vld [vmem:[#allocation11 + $0x238] sm:$0xf0]  ;;  %v10881_v40 = vld [vmem:[#allocation11 + $0x46c] sm:$0xf] }
 0x2ff   : > { %v8565_v1 = vor.u32 %v10881_v40, %v8562_v26  ;;  %v10877_v59 = vld [vmem:[#allocation11 + $0x44c] sm:$0xf]  ;;  %v8514_v26 = vld [vmem:[#allocation11 + $0x418] sm:$0xf0] }
 0x300   : > { %5512 = vmatpush.bf16.msra.mxu0 %v8213_v13  ;;  %5525 = vmatpush.bf16.msra.mxu1 %v8341_v17  ;;  %v10813_v13 = vld [vmem:[#allocation11 + $0x24c] sm:$0xf]  ;;  %v8450_v17 = vld [vmem:[#allocation11 + $0x398] sm:$0xf0] }
 0x301   : > { %5492 = vmatmul.bf16.vlgmr.msra.gmra.mxu2 %v12602_v56  ;;  %v8293_v30 = vor.u32 %v10813_v13, %v8290_v6  ;;  %v8453_v44 = vor.u32 %v10853_v57, %v8450_v17  ;;  %v8885_v13 = vor.u32 %v10961_v28, %v8882_v60  ;;  %v10925_v6 = vld [vmem:[#allocation11 + $0x5cc] sm:$0xf] }
 0x302   : > { %5536 = vmatpush.bf16.msrb.mxu2 %v8501_v15  ;;  %5504 = vmatpush.bf16.msra.mxu3 %v8005_v11  ;;  %v8146_v15 = vld [vmem:[#allocation11 + $0x138] sm:$0xf0]  ;;  %v5274_v34 = vpop.f32.mrf.mxu1  ;;  %v10929_v11 = vld [vmem:[#allocation11 + $0x5ec] sm:$0xf] }
 0x303   : > { %v8757_v23 = vor.u32 %v10929_v11, %v8754_v29  ;;  %v10957_v57 = vld [vmem:[#allocation11 + $0x6cc] sm:$0xf]  ;;  %v8386_v34 = vld [vmem:[#allocation11 + $0x318] sm:$0xf0] }
 0x304   : > { %5513 = vmatpush.bf16.msra.mxu0 %v8197_v47  ;;  %5526 = vmatpush.bf16.msra.mxu1 %v8325_v45  ;;  %v8434_v47 = vld [vmem:[#allocation11 + $0x378] sm:$0xf0]  ;;  %v8149_v45 = vor.u32 %v10777_v5, %v8146_v15  ;;  %v5285_v3 = vpop.f32.mrf.mxu2  ;;  %v10953_v50 = vld [vmem:[#allocation11 + $0x6ac] sm:$0xf] }
 0x305   : > { %5505 = vmatmul.bf16.vlgmr.msra.gmra.mxu3 %v12496_v24  ;;  %v8277_v24 = vor.u32 %v10809_v58, %v8274_v14  ;;  %v8437_v25 = vor.u32 %v10849_v4, %v8434_v47  ;;  %v8546_v5 = vld [vmem:[#allocation11 + $0x458] sm:$0xf0]  ;;  %v10921_v14 = vld [vmem:[#allocation11 + $0x5ac] sm:$0xf] }
 0x306   : > { %5537 = vmatpush.bf16.msrb.mxu2 %v8485_v51  ;;  %5549 = vmatpush.bf16.msrb.mxu3 %v8629_v10  ;;  %v5234_v51 = vadd.f32 %v12660_v27, %v5221_v0  ;;  %v8418_v10 = vld [vmem:[#allocation11 + $0x358] sm:$0xf0]  ;;  %v10837_v0 = vld [vmem:[#allocation11 + $0x30c] sm:$0xf] }
 0x307   : > { %v8421_v17 = vor.u32 %v10845_v55, %v8418_v10  ;;  %v8850_v47 = vld [vmem:[#allocation11 + $0x6b8] sm:$0xf0]  ;;  %v10993_v7 = vld [vmem:[#allocation11 + $0x7ec] sm:$0xf] }
 0x308   : > { %5514 = vmatpush.bf16.msra.mxu0 %v8181_v2  ;;  %5527 = vmatpush.bf16.msra.mxu1 %v8309_v19  ;;  %v5247_v2 = vadd.f32 %v12666_v31, %v5234_v51  ;;  %v8133_v19 = vor.u32 %v10773_v36, %v8130_v63  ;;  %v8866_v31 = vld [vmem:[#allocation11 + $0x6d8] sm:$0xf0]  ;;  %v5298_v36 = vpop.f32.mrf.mxu3  ;;  %v10873_v63 = vld [vmem:[#allocation11 + $0x42c] sm:$0xf]  ;;  %v9013_v60 = vor.u32 %v10993_v7, %v9010_v62 }
 0x309   : > { %v8869_v58 = vor.u32 %v10957_v57, %v8866_v31  ;;  %v10917_v51 = vld [vmem:[#allocation11 + $0x58c] sm:$0xf]  ;;  %v8706_v11 = vld [vmem:[#allocation11 + $0x598] sm:$0xf0]  ;;  %v8533_v10 = vor.u32 %v10873_v63, %v8530_v54 }
 0x30a   : > { %5538 = vmatpush.bf16.msrb.mxu2 %v8469_v12  ;;  %5550 = vmatpush.bf16.msrb.mxu3 %v8613_v48  ;;  %v5260_v27 = vadd.f32 %v12670_v39, %v5247_v2  ;;  %v8738_v12 = vld [vmem:[#allocation11 + $0x5d8] sm:$0xf0]  ;;  %v10841_v48 = vld [vmem:[#allocation11 + $0x32c] sm:$0xf]  ;;  %v12686_v39 = vstv %s12679_s18  ;;  %v12695_v2 = vld [vmem:[#allocation12] sm:$0xf] }
 0x30b   : > { %v10949_v28 = vld [vmem:[#allocation11 + $0x68c] sm:$0xf]  ;;  %v9138_v57 = vld [vmem:[#allocation11 + $0x8f8] sm:$0xf0] }
 0x30c   : > { %5515 = vmatpush.bf16.msra.mxu0 %v8165_v41  ;;  %5528 = vmatpush.bf16.msra.mxu1 %v8293_v30  ;;  %v8402_v41 = vld [vmem:[#allocation11 + $0x338] sm:$0xf0]  ;;  %v8741_v30 = vor.u32 %v10925_v6, %v8738_v12  ;;  %v5273_v15 = vadd.f32 %v12673_v46, %v5260_v27  ;;  %v5698_v46 = vmul.f32 %v12686_v39, %v12628_v38  ;;  %v5287_v29 = vpop.f32.mrf.mxu2  ;;  %v10869_v40 = vld [vmem:[#allocation11 + $0x40c] sm:$0xf] }
 0x30d   : > { %v8405_v4 = vor.u32 %v10841_v48, %v8402_v41  ;;  %v11025_v27 = vld [vmem:[#allocation11 + $0x8ec] sm:$0xf]  ;;  %v8818_v41 = vld [vmem:[#allocation11 + $0x678] sm:$0xf0] }
 0x30e   : > { %5539 = vmatpush.bf16.msrb.mxu2 %v8453_v44  ;;  %5551 = vmatpush.bf16.msrb.mxu3 %v8597_v18  ;;  %v8722_v44 = vld [vmem:[#allocation11 + $0x5b8] sm:$0xf0]  ;;  %v5286_v18 = vadd.f32 %v5285_v3, %v5273_v15  ;;  %v10945_v48 = vld [vmem:[#allocation11 + $0x66c] sm:$0xf] }
 0x30f   : > { %v8690_v3 = vld [vmem:[#allocation11 + $0x578] sm:$0xf0]  ;;  %v10941_v7 = vld [vmem:[#allocation11 + $0x64c] sm:$0xf] }
 0x310   : > { %5516 = vmatpush.bf16.msra.mxu0 %v8149_v45  ;;  %5529 = vmatpush.bf16.msra.mxu1 %v8277_v24  ;;  %v8549_v45 = vor.u32 %v10877_v59, %v8546_v5  ;;  %v8725_v24 = vor.u32 %v10921_v14, %v8722_v44  ;;  %v5299_v20 = vadd.f32 %v5298_v36, %v5286_v18  ;;  %v10985_v5 = vld [vmem:[#allocation11 + $0x7ac] sm:$0xf]  ;;  %v8978_v15 = vld [vmem:[#allocation11 + $0x7b8] sm:$0xf0] }
 0x311   : > { %v8517_v59 = vor.u32 %v10869_v40, %v8514_v26  ;;  %v9141_v44 = vor.u32 %v11025_v27, %v9138_v57  ;;  %v8674_v18 = vld [vmem:[#allocation11 + $0x558] sm:$0xf0]  ;;  %v10981_v36 = vld [vmem:[#allocation11 + $0x78c] sm:$0xf] }
 0x312   : > { %5540 = vmatpush.bf16.msrb.mxu2 %v8437_v25  ;;  %5552 = vmatpush.bf16.msrb.mxu3 %v8581_v9  ;;  %v8834_v25 = vld [vmem:[#allocation11 + $0x698] sm:$0xf0]  ;;  %vm5693_vm0 = vcmp.ge.f32.partialorder %v5299_v20, 0.0  ;;  %v5699_v55 = vmul.f32 %v12686_v39, %v5299_v20  ;;  %v2506_v9 = vperm.slane %v12695_v2, 2  ;;  %v10901_v40 = vld [vmem:[#allocation11 + $0x50c] sm:$0xf] }
 0x313   : > { %v8837_v12 = vor.u32 %v10949_v28, %v8834_v25  ;;  %v8802_v62 = vld [vmem:[#allocation11 + $0x658] sm:$0xf0]  ;;  %v11089_v57 = vld [vmem:[#allocation11 + $0xaec] sm:$0xf] }
 0x314   : > { %5517 = vmatpush.bf16.msra.mxu0 %v8133_v19  ;;  %5530 = vmatpush.bf16.msra.mxu1 %v8261_v33  ;;  %v10989_v19 = vld [vmem:[#allocation11 + $0x7cc] sm:$0xf]  ;;  %v8994_v33 = vld [vmem:[#allocation11 + $0x7d8] sm:$0xf0]  ;;  %v5703_v6 = vsel %vm5693_vm0, %v5299_v20, %v5699_v55  ;;  %v5324_v14 = vpop.f32.mrf.mxu1  ;;  %v8805_v20 = vor.u32 %v10941_v7, %v8802_v62 }
 0x315   : > { %v8786_v29 = vld [vmem:[#allocation11 + $0x638] sm:$0xf0] }
 0x316   : > { %5541 = vmatpush.bf16.msrb.mxu2 %v8421_v17  ;;  %5553 = vmatpush.bf16.msrb.mxu3 %v8565_v1  ;;  %v10913_v17 = vld [vmem:[#allocation11 + $0x56c] sm:$0xf]  ;;  %v8997_v1 = vor.u32 %v10989_v19, %v8994_v33  ;;  %v8946_v55 = vld [vmem:[#allocation11 + $0x778] sm:$0xf0] }
 0x317   : > { %5518 = vmatmul.bf16.vlgmr.msra.gmra.mxu0 %v12500_v32  ;;  %5531 = vmatmul.bf16.vlgmr.msra.gmra.mxu1 %v12536_v43  ;;  %v8853_v32 = vor.u32 %v10953_v50, %v8850_v47  ;;  %v8389_v43 = vor.u32 %v10837_v0, %v8386_v34  ;;  %v8693_v50 = vor.u32 %v10913_v17, %v8690_v3  ;;  %v9122_v0 = vld [vmem:[#allocation11 + $0x8d8] sm:$0xf0]  ;;  %v10909_v34 = vld [vmem:[#allocation11 + $0x54c] sm:$0xf] }
 0x318   : > { %5562 = vmatpush.bf16.msrb.mxu0 %v8757_v23  ;;  %5575 = vmatpush.bf16.msrb.mxu1 %v8885_v13  ;;  %v8709_v23 = vor.u32 %v10917_v51, %v8706_v11  ;;  %v5702_v13 = vsel %vm5692_vm15, %v12628_v38, %v5698_v46  ;;  %v8821_v47 = vor.u32 %v10945_v48, %v8818_v41  ;;  %v10905_v51 = vld [vmem:[#allocation11 + $0x52c] sm:$0xf]  ;;  %v8658_v11 = vld [vmem:[#allocation11 + $0x538] sm:$0xf0] }
 0x319   : > { %v5706_v31 = vpack.c.bf16 %v5703_v6, %v5702_v13  ;;  %v8981_v46 = vor.u32 %v10985_v5, %v8978_v15  ;;  %v8677_v54 = vor.u32 %v10909_v34, %v8674_v18  ;;  %v8661_v19 = vor.u32 %v10905_v51, %v8658_v11  ;;  %v11013_v33 = vld [vmem:[#allocation11 + $0x88c] sm:$0xf]  ;;  %v8642_v27 = vld [vmem:[#allocation11 + $0x518] sm:$0xf0] }
 0x31a   : > { %5542 = vmatpush.bf16.msrb.mxu2 %v8405_v4  ;;  %5554 = vmatpush.bf16.msrb.mxu3 %v8549_v45  ;;  %v11021_v4 = vld [vmem:[#allocation11 + $0x8cc] sm:$0xf]  ;;  %v9394_v3 = vld [vmem:[#allocation11 + $0xaf8] sm:$0xf0] }
 0x31b   : > { %5708 = vst [vmem:[#allocation3] sm:$0xff] %v5706_v31  ;;  %v9125_v63 = vor.u32 %v11021_v4, %v9122_v0  ;;  %v10933_v13 = vld [vmem:[#allocation11 + $0x60c] sm:$0xf]  ;;  %v8930_v48 = vld [vmem:[#allocation11 + $0x758] sm:$0xf0] }
 0x31c   : > { %5563 = vmatpush.bf16.msrb.mxu0 %v8741_v30  ;;  %5576 = vmatpush.bf16.msrb.mxu1 %v8869_v58  ;;  %v5311_v30 = vpop.f32.mrf.mxu0  ;;  %v5300_v58 = vpop.f32.mrf.mxu3  ;;  %v11057_v6 = vld [vmem:[#allocation11 + $0x9ec] sm:$0xf]  ;;  %v9074_v15 = vld [vmem:[#allocation11 + $0x878] sm:$0xf0] }
 0x31d   : > { %v5312_v38 = vadd.f32 %v5311_v30, %v2506_v9  ;;  %v10973_v31 = vld [vmem:[#allocation11 + $0x74c] sm:$0xf]  ;;  %v9397_v58 = vor.u32 %v11089_v57, %v9394_v3  ;;  %v8914_v34 = vld [vmem:[#allocation11 + $0x738] sm:$0xf0] }
 0x31e   : > { %5543 = vmatpush.bf16.msrb.mxu2 %v8389_v43  ;;  %5555 = vmatpush.bf16.msrb.mxu3 %v8533_v10  ;;  %v10937_v43 = vld [vmem:[#allocation11 + $0x62c] sm:$0xf]  ;;  %v5326_v10 = vpop.f32.mrf.mxu1  ;;  %v8898_v11 = vld [vmem:[#allocation11 + $0x718] sm:$0xf0] }
 0x31f   : > { %v12702_v45 = vadd.f32 %v5324_v14, %v5312_v38  ;;  %v8789_v26 = vor.u32 %v10937_v43, %v8786_v29  ;;  %v11009_v5 = vld [vmem:[#allocation11 + $0x86c] sm:$0xf]  ;;  %v9250_v14 = vld [vmem:[#allocation11 + $0x9d8] sm:$0xf0] }
 0x320   : > { %5564 = vmatpush.bf16.msrb.mxu0 %v8725_v24  ;;  %5577 = vmatpush.bf16.msrb.mxu1 %v8853_v32  ;;  %v8962_v24 = vld [vmem:[#allocation11 + $0x798] sm:$0xf0]  ;;  %v11053_v38 = vld [vmem:[#allocation11 + $0x9cc] sm:$0xf]  ;;  %v9077_v18 = vor.u32 %v11009_v5, %v9074_v15 }
 0x321   : > { %5544 = vmatmul.bf16.vlgmr.msrb.gmra.mxu2 %v12538_v35  ;;  %v11017_v35 = vld [vmem:[#allocation11 + $0x8ac] sm:$0xf]  ;;  %v9106_v32 = vld [vmem:[#allocation11 + $0x8b8] sm:$0xf0]  ;;  %v8965_v28 = vor.u32 %v10981_v36, %v8962_v24  ;;  %v9253_v62 = vor.u32 %v11053_v38, %v9250_v14 }
 0x322   : > { %5588 = vmatpush.bf16.msra.mxu2 %v9013_v60  ;;  %5556 = vmatpush.bf16.msrb.mxu3 %v8517_v59  ;;  %v10977_v60 = vld [vmem:[#allocation11 + $0x76c] sm:$0xf]  ;;  %v9109_v9 = vor.u32 %v11017_v35, %v9106_v32  ;;  %v9058_v36 = vld [vmem:[#allocation11 + $0x858] sm:$0xf0] }
 0x323   : > { %v8949_v17 = vor.u32 %v10977_v60, %v8946_v55  ;;  %v10969_v0 = vld [vmem:[#allocation11 + $0x72c] sm:$0xf]  ;;  %v9362_v32 = vld [vmem:[#allocation11 + $0xab8] sm:$0xf0] }
 0x324   : > { %5565 = vmatpush.bf16.msrb.mxu0 %v8709_v23  ;;  %5578 = vmatpush.bf16.msrb.mxu1 %v8837_v12  ;;  %v5313_v25 = vpop.f32.mrf.mxu0  ;;  %v9090_v23 = vld [vmem:[#allocation11 + $0x898] sm:$0xf0]  ;;  %v5337_v4 = vpop.f32.mrf.mxu2  ;;  %v11081_v35 = vld [vmem:[#allocation11 + $0xaac] sm:$0xf] }
 0x325   : > { %5557 = vmatmul.bf16.vlgmr.msrb.gmra.mxu3 %v12540_v21  ;;  %v8770_v21 = vld [vmem:[#allocation11 + $0x618] sm:$0xf0]  ;;  %v9093_v41 = vor.u32 %v11013_v33, %v9090_v23  ;;  %v5338_v7 = vadd.f32 %v5337_v4, %v12702_v45  ;;  %v10965_v51 = vld [vmem:[#allocation11 + $0x70c] sm:$0xf] }
 0x326   : > { %5589 = vmatpush.bf16.msra.mxu2 %v8997_v1  ;;  %5601 = vmatpush.bf16.msra.mxu3 %v9141_v44  ;;  %v9266_v12 = vld [vmem:[#allocation11 + $0x9f8] sm:$0xf0]  ;;  %v8645_v1 = vor.u32 %v10901_v40, %v8642_v27  ;;  %v8773_v30 = vor.u32 %v10933_v13, %v8770_v21  ;;  %v11085_v44 = vld [vmem:[#allocation11 + $0xacc] sm:$0xf]  ;;  %v8901_v33 = vor.u32 %v10965_v51, %v8898_v11 }
 0x327   : > { %v9269_v59 = vor.u32 %v11057_v6, %v9266_v12  ;;  %v11121_v43 = vld [vmem:[#allocation11 + $0xbec] sm:$0xf]  ;;  %v9522_v29 = vld [vmem:[#allocation11 + $0xbf8] sm:$0xf0] }
 0x328   : > { %5566 = vmatpush.bf16.msrb.mxu0 %v8693_v50  ;;  %5579 = vmatpush.bf16.msrb.mxu1 %v8821_v47  ;;  %v8933_v50 = vor.u32 %v10973_v31, %v8930_v48  ;;  %v9378_v47 = vld [vmem:[#allocation11 + $0xad8] sm:$0xf0]  ;;  %v11001_v60 = vld [vmem:[#allocation11 + $0x82c] sm:$0xf] }
 0x329   : > { %v9381_v24 = vor.u32 %v11085_v44, %v9378_v47  ;;  %v9042_v55 = vld [vmem:[#allocation11 + $0x838] sm:$0xf0]  ;;  %v11077_v40 = vld [vmem:[#allocation11 + $0xa8c] sm:$0xf] }
 0x32a   : > { %5590 = vmatpush.bf16.msra.mxu2 %v8981_v46  ;;  %5602 = vmatpush.bf16.msra.mxu3 %v9125_v63  ;;  %v11005_v46 = vld [vmem:[#allocation11 + $0x84c] sm:$0xf]  ;;  %v9045_v27 = vor.u32 %v11001_v60, %v9042_v55  ;;  %v9506_v21 = vld [vmem:[#allocation11 + $0xbd8] sm:$0xf0] }
 0x32b   : > { %v11049_v63 = vld [vmem:[#allocation11 + $0x9ac] sm:$0xf]  ;;  %v9061_v45 = vor.u32 %v11005_v46, %v9058_v36  ;;  %v9026_v57 = vld [vmem:[#allocation11 + $0x818] sm:$0xf0] }
 0x32c   : > { %5567 = vmatpush.bf16.msrb.mxu0 %v8677_v54  ;;  %5580 = vmatpush.bf16.msrb.mxu1 %v8805_v20  ;;  %v9234_v54 = vld [vmem:[#allocation11 + $0x9b8] sm:$0xf0]  ;;  %v8917_v20 = vor.u32 %v10969_v0, %v8914_v34  ;;  %v5339_v23 = vpop.f32.mrf.mxu2  ;;  %v11117_v13 = vld [vmem:[#allocation11 + $0xbcc] sm:$0xf] }
 0x32d   : > { %v9237_v25 = vor.u32 %v11049_v63, %v9234_v54  ;;  %v10997_v12 = vld [vmem:[#allocation11 + $0x80c] sm:$0xf]  ;;  %v9650_v31 = vld [vmem:[#allocation11 + $0xcf8] sm:$0xf0] }
 0x32e   : > { %5591 = vmatpush.bf16.msra.mxu2 %v8965_v28  ;;  %5603 = vmatpush.bf16.msra.mxu3 %v9109_v9  ;;  %v5350_v28 = vpop.f32.mrf.mxu3  ;;  %v9365_v9 = vor.u32 %v11081_v35, %v9362_v32  ;;  %v11041_v48 = vld [vmem:[#allocation11 + $0x96c] sm:$0xf]  ;;  %v9029_v15 = vor.u32 %v10997_v12, %v9026_v57  ;;  %v9490_v38 = vld [vmem:[#allocation11 + $0xbb8] sm:$0xf0] }
 0x32f   : > { %v5351_v10 = vadd.f32 %v5350_v28, %v5338_v7  ;;  %v11149_v0 = vld [vmem:[#allocation11 + $0xccc] sm:$0xf]  ;;  %v9474_v35 = vld [vmem:[#allocation11 + $0xb98] sm:$0xf0] }
 0x330   : > { %5568 = vmatpush.bf16.msrb.mxu0 %v8661_v19  ;;  %5581 = vmatpush.bf16.msrb.mxu1 %v8789_v26  ;;  %v11045_v19 = vld [vmem:[#allocation11 + $0x98c] sm:$0xf]  ;;  %v9346_v26 = vld [vmem:[#allocation11 + $0xa98] sm:$0xf0] }
 0x331   : > { %v9349_v3 = vor.u32 %v11077_v40, %v9346_v26  ;;  %v11037_v7 = vld [vmem:[#allocation11 + $0x94c] sm:$0xf]  ;;  %v9618_v11 = vld [vmem:[#allocation11 + $0xcb8] sm:$0xf0] }
 0x332   : > { %5592 = vmatpush.bf16.msra.mxu2 %v8949_v17  ;;  %5604 = vmatpush.bf16.msra.mxu3 %v9093_v41  ;;  %v11153_v17 = vld [vmem:[#allocation11 + $0xcec] sm:$0xf]  ;;  %v9202_v41 = vld [vmem:[#allocation11 + $0x978] sm:$0xf0] }
 0x333   : > { %v9653_v4 = vor.u32 %v11153_v17, %v9650_v31  ;;  %v9205_v47 = vor.u32 %v11041_v48, %v9202_v41  ;;  %v11069_v36 = vld [vmem:[#allocation11 + $0xa4c] sm:$0xf]  ;;  %v9298_v28 = vld [vmem:[#allocation11 + $0xa38] sm:$0xf0] }
 0x334   : > { %5569 = vmatpush.bf16.msrb.mxu0 %v8645_v1  ;;  %5582 = vmatpush.bf16.msrb.mxu1 %v8773_v30  ;;  %v11073_v1 = vld [vmem:[#allocation11 + $0xa6c] sm:$0xf]  ;;  %v9330_v30 = vld [vmem:[#allocation11 + $0xa78] sm:$0xf0]  ;;  %v5363_v5 = vpop.f32.mrf.mxu0 }
 0x335   : > { %v5364_v44 = vadd.f32 %v5363_v5, %v5351_v10  ;;  %v9333_v34 = vor.u32 %v11073_v1, %v9330_v30  ;;  %v11109_v54 = vld [vmem:[#allocation11 + $0xb8c] sm:$0xf]  ;;  %v9458_v10 = vld [vmem:[#allocation11 + $0xb78] sm:$0xf0] }
 0x336   : > { %5593 = vmatpush.bf16.msra.mxu2 %v8933_v50  ;;  %5605 = vmatpush.bf16.msra.mxu3 %v9077_v18  ;;  %v5352_v14 = vpop.f32.mrf.mxu3  ;;  %v5376_v50 = vpop.f32.mrf.mxu1  ;;  %v9634_v18 = vld [vmem:[#allocation11 + $0xcd8] sm:$0xf0]  ;;  %v11105_v55 = vld [vmem:[#allocation11 + $0xb6c] sm:$0xf] }
 0x337   : > { %5570 = vmatmul.bf16.vlgmr.msrb.gmra.mxu0 %v12558_v61  ;;  %5583 = vmatmul.bf16.vlgmr.msrb.gmra.mxu1 %v12564_v37  ;;  %v9218_v61 = vld [vmem:[#allocation11 + $0x998] sm:$0xf0]  ;;  %v9525_v37 = vor.u32 %v11121_v43, %v9522_v29  ;;  %v12709_v46 = vadd.f32 %v5376_v50, %v5364_v44  ;;  %v11065_v29 = vld [vmem:[#allocation11 + $0xa2c] sm:$0xf]  ;;  %v9461_v12 = vor.u32 %v11105_v55, %v9458_v10 }
 0x338   : > { %5614 = vmatpush.bf16.msra.mxu0 %v9269_v59  ;;  %5627 = vmatpush.bf16.msra.mxu1 %v9397_v58  ;;  %v9221_v6 = vor.u32 %v11045_v19, %v9218_v61  ;;  %v9509_v59 = vor.u32 %v11117_v13, %v9506_v21  ;;  %v11113_v58 = vld [vmem:[#allocation11 + $0xbac] sm:$0xf]  ;;  %v9170_v43 = vld [vmem:[#allocation11 + $0x938] sm:$0xf0]  ;;  %v9301_v26 = vor.u32 %v11065_v29, %v9298_v28 }
 0x339   : > { %v9493_v63 = vor.u32 %v11113_v58, %v9490_v38  ;;  %v9602_v23 = vld [vmem:[#allocation11 + $0xc98] sm:$0xf0]  ;;  %v11029_v40 = vld [vmem:[#allocation11 + $0x90c] sm:$0xf] }
 0x33a   : > { %5594 = vmatpush.bf16.msra.mxu2 %v8917_v20  ;;  %5606 = vmatpush.bf16.msra.mxu3 %v9061_v45  ;;  %v9637_v20 = vor.u32 %v11149_v0, %v9634_v18  ;;  %v11033_v45 = vld [vmem:[#allocation11 + $0x92c] sm:$0xf]  ;;  %v9778_v21 = vld [vmem:[#allocation11 + $0xdf8] sm:$0xf0] }
 0x33b   : > { %v9173_v61 = vor.u32 %v11033_v45, %v9170_v43  ;;  %v11185_v13 = vld [vmem:[#allocation11 + $0xdec] sm:$0xf]  ;;  %v9906_v57 = vld [vmem:[#allocation11 + $0xef8] sm:$0xf0] }
 0x33c   : > { %5615 = vmatpush.bf16.msra.mxu0 %v9253_v62  ;;  %5628 = vmatpush.bf16.msra.mxu1 %v9381_v24  ;;  %v9186_v62 = vld [vmem:[#allocation11 + $0x958] sm:$0xf0]  ;;  %v5365_v60 = vpop.f32.mrf.mxu0  ;;  %v11101_v17 = vld [vmem:[#allocation11 + $0xb4c] sm:$0xf]  ;;  %v9781_v1 = vor.u32 %v11185_v13, %v9778_v21 }
 0x33d   : > { %v9314_v24 = vld [vmem:[#allocation11 + $0xa58] sm:$0xf0]  ;;  %v9189_v32 = vor.u32 %v11037_v7, %v9186_v62  ;;  %v11137_v30 = vld [vmem:[#allocation11 + $0xc6c] sm:$0xf] }
 0x33e   : > { %5595 = vmatpush.bf16.msra.mxu2 %v8901_v33  ;;  %5607 = vmatpush.bf16.msra.mxu3 %v9045_v27  ;;  %v9317_v51 = vor.u32 %v11069_v36, %v9314_v24  ;;  %v11141_v33 = vld [vmem:[#allocation11 + $0xc8c] sm:$0xf]  ;;  %v9762_v58 = vld [vmem:[#allocation11 + $0xdd8] sm:$0xf0] }
 0x33f   : > { %v11061_v27 = vld [vmem:[#allocation11 + $0xa0c] sm:$0xf]  ;;  %v9605_v31 = vor.u32 %v11141_v33, %v9602_v23  ;;  %v9890_v50 = vld [vmem:[#allocation11 + $0xed8] sm:$0xf0] }
 0x340   : > { %5616 = vmatpush.bf16.msra.mxu0 %v9237_v25  ;;  %5629 = vmatpush.bf16.msra.mxu1 %v9365_v9  ;;  %v9477_v25 = vor.u32 %v11109_v54, %v9474_v35  ;;  %v5378_v9 = vpop.f32.mrf.mxu1  ;;  %v11213_v38 = vld [vmem:[#allocation11 + $0xecc] sm:$0xf]  ;;  %v9570_v62 = vld [vmem:[#allocation11 + $0xc58] sm:$0xf0] }
 0x341   : > { %5596 = vmatmul.bf16.vlgmr.msra.gmra.mxu2 %v12566_v49  ;;  %v11145_v49 = vld [vmem:[#allocation11 + $0xcac] sm:$0xf]  ;;  %v9893_v36 = vor.u32 %v11213_v38, %v9890_v50  ;;  %v9554_v43 = vld [vmem:[#allocation11 + $0xc38] sm:$0xf0] }
 0x342   : > { %5640 = vmatpush.bf16.msrb.mxu2 %v9525_v37  ;;  %5608 = vmatpush.bf16.msra.mxu3 %v9029_v15  ;;  %v9621_v19 = vor.u32 %v11145_v49, %v9618_v11  ;;  %v9154_v37 = vld [vmem:[#allocation11 + $0x918] sm:$0xf0]  ;;  %v11181_v15 = vld [vmem:[#allocation11 + $0xdcc] sm:$0xf] }
 0x343   : > { %v9157_v48 = vor.u32 %v11029_v40, %v9154_v37  ;;  %v9765_v18 = vor.u32 %v11181_v15, %v9762_v58  ;;  %v11133_v7 = vld [vmem:[#allocation11 + $0xc4c] sm:$0xf]  ;;  %v9410_v49 = vld [vmem:[#allocation11 + $0xb18] sm:$0xf0] }
 0x344   : > { %5617 = vmatpush.bf16.msra.mxu0 %v9221_v6  ;;  %5630 = vmatpush.bf16.msra.mxu1 %v9349_v3  ;;  %v11217_v6 = vld [vmem:[#allocation11 + $0xeec] sm:$0xf]  ;;  %v9442_v3 = vld [vmem:[#allocation11 + $0xb58] sm:$0xf0]  ;;  %v5389_v44 = vpop.f32.mrf.mxu2 }
 0x345   : > { %5609 = vmatmul.bf16.vlgmr.msra.gmra.mxu3 %v12572_v42  ;;  %v9282_v42 = vld [vmem:[#allocation11 + $0xa18] sm:$0xf0]  ;;  %v9909_v5 = vor.u32 %v11217_v6, %v9906_v57  ;;  %v9445_v14 = vor.u32 %v11101_v17, %v9442_v3  ;;  %v11177_v24 = vld [vmem:[#allocation11 + $0xdac] sm:$0xf] }
 0x346   : > { %5641 = vmatpush.bf16.msrb.mxu2 %v9509_v59  ;;  %5653 = vmatpush.bf16.msrb.mxu3 %v9653_v4  ;;  %v9285_v41 = vor.u32 %v11061_v27, %v9282_v42  ;;  %v9586_v59 = vld [vmem:[#allocation11 + $0xc78] sm:$0xf0]  ;;  %v11097_v4 = vld [vmem:[#allocation11 + $0xb2c] sm:$0xf] }
 0x347   : > { %v9589_v0 = vor.u32 %v11137_v30, %v9586_v59  ;;  %v11209_v54 = vld [vmem:[#allocation11 + $0xeac] sm:$0xf]  ;;  %v9730_v60 = vld [vmem:[#allocation11 + $0xd98] sm:$0xf0] }
 0x348   : > { %5618 = vmatpush.bf16.msra.mxu0 %v9205_v47  ;;  %5631 = vmatpush.bf16.msra.mxu1 %v9333_v34  ;;  %v9426_v47 = vld [vmem:[#allocation11 + $0xb38] sm:$0xf0]  ;;  %v5390_v34 = vadd.f32 %v5389_v44, %v12709_v46  ;;  %v9573_v46 = vor.u32 %v11133_v7, %v9570_v62  ;;  %v11129_v45 = vld [vmem:[#allocation11 + $0xc2c] sm:$0xf] }
 0x349   : > { %v9429_v35 = vor.u32 %v11097_v4, %v9426_v47  ;;  %v11205_v10 = vld [vmem:[#allocation11 + $0xe8c] sm:$0xf]  ;;  %v9858_v9 = vld [vmem:[#allocation11 + $0xe98] sm:$0xf0] }
 0x34a   : > { %5642 = vmatpush.bf16.msrb.mxu2 %v9493_v63  ;;  %5654 = vmatpush.bf16.msrb.mxu3 %v9637_v20  ;;  %v9746_v63 = vld [vmem:[#allocation11 + $0xdb8] sm:$0xf0]  ;;  %v9861_v23 = vor.u32 %v11205_v10, %v9858_v9  ;;  %v11169_v40 = vld [vmem:[#allocation11 + $0xd6c] sm:$0xf] }
 0x34b   : > { %v9874_v20 = vld [vmem:[#allocation11 + $0xeb8] sm:$0xf0]  ;;  %v9749_v11 = vor.u32 %v11177_v24, %v9746_v63  ;;  %v11201_v37 = vld [vmem:[#allocation11 + $0xe6c] sm:$0xf] }
 0x34c   : > { %5619 = vmatpush.bf16.msra.mxu0 %v9189_v32  ;;  %5632 = vmatpush.bf16.msra.mxu1 %v9317_v51  ;;  %v11093_v32 = vld [vmem:[#allocation11 + $0xb0c] sm:$0xf]  ;;  %v5402_v51 = vpop.f32.mrf.mxu3  ;;  %v9877_v28 = vor.u32 %v11209_v54, %v9874_v20  ;;  %v9538_v33 = vld [vmem:[#allocation11 + $0xc18] sm:$0xf0] }
 0x34d   : > { %v5403_v29 = vadd.f32 %v5402_v51, %v5390_v34  ;;  %v9413_v55 = vor.u32 %v11093_v32, %v9410_v49  ;;  %v9842_v27 = vld [vmem:[#allocation11 + $0xe78] sm:$0xf0]  ;;  %v11165_v3 = vld [vmem:[#allocation11 + $0xd4c] sm:$0xf] }
 0x34e   : > { %5643 = vmatpush.bf16.msrb.mxu2 %v9477_v25  ;;  %5655 = vmatpush.bf16.msrb.mxu3 %v9621_v19  ;;  %v11173_v25 = vld [vmem:[#allocation11 + $0xd8c] sm:$0xf]  ;;  %v9557_v19 = vor.u32 %v11129_v45, %v9554_v43  ;;  %v9845_v17 = vor.u32 %v11201_v37, %v9842_v27  ;;  %v9682_v15 = vld [vmem:[#allocation11 + $0xd38] sm:$0xf0] }
 0x34f   : > { %v11193_v58 = vld [vmem:[#allocation11 + $0xe2c] sm:$0xf]  ;;  %v9810_v38 = vld [vmem:[#allocation11 + $0xe38] sm:$0xf0] }
 0x350   : > { %5620 = vmatpush.bf16.msra.mxu0 %v9173_v61  ;;  %5633 = vmatpush.bf16.msra.mxu1 %v9301_v26  ;;  %v11125_v61 = vld [vmem:[#allocation11 + $0xc0c] sm:$0xf]  ;;  %v9714_v26 = vld [vmem:[#allocation11 + $0xd78] sm:$0xf0]  ;;  %v9813_v50 = vor.u32 %v11193_v58, %v9810_v38  ;;  %v10153_v58 = vld [vmem:[#allocation14 + $0x1e0] sm:$0xf] }
 0x351   : > { %v9541_v13 = vor.u32 %v11125_v61, %v9538_v33  ;;  %v9717_v57 = vor.u32 %v11169_v40, %v9714_v26  ;;  %v11157_v4 = vld [vmem:[#allocation11 + $0xd0c] sm:$0xf]  ;;  %v9666_v47 = vld [vmem:[#allocation11 + $0xd18] sm:$0xf0] }
 0x352   : > { %5644 = vmatpush.bf16.msrb.mxu2 %v9461_v12  ;;  %5656 = vmatpush.bf16.msrb.mxu3 %v9605_v31  ;;  %v9698_v31 = vld [vmem:[#allocation11 + $0xd58] sm:$0xf0] }
 0x353   : > { %v9701_v30 = vor.u32 %v11165_v3, %v9698_v31  ;;  %v9794_v34 = vld [vmem:[#allocation11 + $0xe18] sm:$0xf0]  ;;  %v9961_v3 = vld [vmem:[#allocation14 + $0x60] sm:$0xf] }
 0x354   : > { %5621 = vmatpush.bf16.msra.mxu0 %v9157_v48  ;;  %5634 = vmatpush.bf16.msra.mxu1 %v9285_v41  ;;  %v5415_v42 = vpop.f32.mrf.mxu0  ;;  %v5404_v21 = vpop.f32.mrf.mxu3  ;;  %v11197_v41 = vld [vmem:[#allocation11 + $0xe4c] sm:$0xf]  ;;  %v11235_v40 = vld [vmem:[#allocation14 + $0x74] sm:$0xf0] }
 0x355   : > { %v5416_v6 = vadd.f32 %v5415_v42, %v5403_v29  ;;  %v5428_v12 = vpop.f32.mrf.mxu1  ;;  %v2507_v29 = vperm.slane %v12695_v2, 3  ;;  %v10033_v2 = vld [vmem:[#allocation14 + $0xf0] sm:$0xf]  ;;  %v11251_v42 = vld [vmem:[#allocation14 + $0xf4] sm:$0xf0] }
 0x356   : > { %5645 = vmatpush.bf16.msrb.mxu2 %v9445_v14  ;;  %5657 = vmatpush.bf16.msrb.mxu3 %v9589_v0  ;;  %v11189_v0 = vld [vmem:[#allocation11 + $0xe0c] sm:$0xf]  ;;  %v11267_v21 = vld [vmem:[#allocation14 + $0x174] sm:$0xf0] }
 0x357   : > { %5622 = vmatmul.bf16.vlgmr.msra.gmra.mxu0 %v12581_v8  ;;  %5635 = vmatmul.bf16.vlgmr.msra.gmra.mxu1 %v12583_v22  ;;  %v5391_v8 = vpop.f32.mrf.mxu2  ;;  %v9733_v22 = vor.u32 %v11173_v25, %v9730_v60  ;;  %v5429_v48 = vadd.f32 %v5428_v12, %v5416_v6  ;;  %v9797_v7 = vor.u32 %v11189_v0, %v9794_v34  ;;  %v10017_v0 = vld [vmem:[#allocation14 + $0xd0] sm:$0xf]  ;;  %v11247_v34 = vld [vmem:[#allocation14 + $0xd4] sm:$0xf0] }
 0x358   : > { %5666 = vmatpush.bf16.msrb.mxu0 %v9781_v1  ;;  %5679 = vmatpush.bf16.msrb.mxu1 %v9909_v5  ;;  %v9826_v1 = vld [vmem:[#allocation11 + $0xe58] sm:$0xf0]  ;;  %v11161_v5 = vld [vmem:[#allocation11 + $0xd2c] sm:$0xf]  ;;  %v10034_v6 = vor.u32 %v11251_v42, %v10033_v2 }
 0x359   : > { %v9829_v59 = vor.u32 %v11197_v41, %v9826_v1  ;;  %v9685_v44 = vor.u32 %v11161_v5, %v9682_v15  ;;  %v10025_v41 = vld [vmem:[#allocation14 + $0xe0] sm:$0xf]  ;;  %v11249_v1 = vld [vmem:[#allocation14 + $0xe4] sm:$0xf0]  ;;  %v11259_v2 = vld [vmem:[#allocation14 + $0x134] sm:$0xf0] }
 0x35a   : > { %5646 = vmatpush.bf16.msrb.mxu2 %v9429_v35  ;;  %5658 = vmatpush.bf16.msrb.mxu3 %v9573_v46  ;;  %v10089_v5 = vld [vmem:[#allocation14 + $0x160] sm:$0xf]  ;;  %v11265_v15 = vld [vmem:[#allocation14 + $0x164] sm:$0xf0]  ;;  %v11275_v42 = vld [vmem:[#allocation14 + $0x1b4] sm:$0xf0] }
 0x35b   : > { %v10090_v38 = vor.u32 %v11265_v15, %v10089_v5 }
 0x35c   : > { %5667 = vmatpush.bf16.msrb.mxu0 %v9765_v18  ;;  %5680 = vmatpush.bf16.msrb.mxu1 %v9893_v36  ;;  %v5417_v14 = vpop.f32.mrf.mxu0  ;;  %v9669_v18 = vor.u32 %v11157_v4, %v9666_v47 }
 0x35d   : > { %v11281_v14 = vld [vmem:[#allocation14 + $0x1e4] sm:$0xf0] }
 0x35e   : > { %5647 = vmatpush.bf16.msrb.mxu2 %v9413_v55  ;;  %5659 = vmatpush.bf16.msrb.mxu3 %v9557_v19  ;;  %v10154_v4 = vor.u32 %v11281_v14, %v10153_v58  ;;  %v9921_v58 = vld [vmem:[#allocation14 + $0x10] sm:$0xf] }
 0x35f   : > { %v9985_v14 = vld [vmem:[#allocation14 + $0x90] sm:$0xf] }
 0x360   : > { %5668 = vmatpush.bf16.msrb.mxu0 %v9749_v11  ;;  %5681 = vmatpush.bf16.msrb.mxu1 %v9877_v28 }
 0x361   : > { %5648 = vmatmul.bf16.vlgmr.msrb.gmra.mxu2 %v12586_v16  ;;  %v5430_v16 = vpop.f32.mrf.mxu1 }
 0x362   : > { %5660 = vmatpush.bf16.msrb.mxu3 %v9541_v13  ;;  %v10097_v13 = vld [vmem:[#allocation14 + $0x170] sm:$0xf] }
 0x363   : > { %v10098_v12 = vor.u32 %v11267_v21, %v10097_v13  ;;  %v9953_v16 = vld [vmem:[#allocation14 + $0x50] sm:$0xf]  ;;  %v9929_v13 = vld [vmem:[#allocation14 + $0x20] sm:$0xf]  ;;  %v11225_v21 = vld [vmem:[#allocation14 + $0x24] sm:$0xf0] }
 0x364   : > { %5669 = vmatpush.bf16.msrb.mxu0 %v9733_v22  ;;  %5682 = vmatpush.bf16.msrb.mxu1 %v9861_v23  ;;  %v5441_v62 = vpop.f32.mrf.mxu2  ;;  %v9969_v23 = vld [vmem:[#allocation14 + $0x70] sm:$0xf] }
 0x365   : > { %5661 = vmatmul.bf16.vlgmr.msrb.gmra.mxu3 %v12592_v53  ;;  %v5442_v36 = vadd.f32 %v5441_v62, %v5429_v48  ;;  %v9970_v27 = vor.u32 %v11235_v40, %v9969_v23  ;;  %v11233_v48 = vld [vmem:[#allocation14 + $0x64] sm:$0xf0]  ;;  %v10018_v62 = vor.u32 %v11247_v34, %v10017_v0  ;;  %v10065_v40 = vld [vmem:[#allocation14 + $0x130] sm:$0xf] }
 0x366   : > { %6655 = vmatpush.bf16.msra.mxu3 %v10034_v6 }
 0x367   : > { %6642 = vmatpush.bf16.msra.mxu2 %v9970_v27  ;;  %v10066_v27 = vor.u32 %v11259_v2, %v10065_v40  ;;  %v10417_v2 = vld [vmem:[#allocation14 + $0x3f0] sm:$0xf] }
 0x368   : > { %5670 = vmatpush.bf16.msrb.mxu0 %v9717_v57  ;;  %5683 = vmatpush.bf16.msrb.mxu1 %v9845_v17  ;;  %v5454_v53 = vpop.f32.mrf.mxu3  ;;  %v10161_v57 = vld [vmem:[#allocation14 + $0x1f0] sm:$0xf]  ;;  %v11283_v17 = vld [vmem:[#allocation14 + $0x1f4] sm:$0xf0] }
 0x369   : > { %v5455_v24 = vadd.f32 %v5454_v53, %v5442_v36  ;;  %v10162_v31 = vor.u32 %v11283_v17, %v10161_v57  ;;  %v11263_v36 = vld [vmem:[#allocation14 + $0x154] sm:$0xf0]  ;;  %v10145_v53 = vld [vmem:[#allocation14 + $0x1d0] sm:$0xf]  ;;  %v9930_v57 = vor.u32 %v11225_v21, %v9929_v13  ;;  %v9993_v17 = vld [vmem:[#allocation14 + $0xa0] sm:$0xf] }
 0x36a   : > { %v11297_v21 = vld [vmem:[#allocation14 + $0x264] sm:$0xf0] }
 0x36c   : > { %5671 = vmatpush.bf16.msrb.mxu0 %v9701_v30  ;;  %5684 = vmatpush.bf16.msrb.mxu1 %v9829_v59  ;;  %v5443_v63 = vpop.f32.mrf.mxu2  ;;  %v9962_v30 = vor.u32 %v11233_v48, %v9961_v3  ;;  %v10026_v59 = vor.u32 %v11249_v1, %v10025_v41  ;;  %v11241_v3 = vld [vmem:[#allocation14 + $0xa4] sm:$0xf0]  ;;  %v10121_v1 = vld [vmem:[#allocation14 + $0x1a0] sm:$0xf] }
 0x36d   : > { %v9994_v48 = vor.u32 %v11241_v3, %v9993_v17  ;;  %v11257_v41 = vld [vmem:[#allocation14 + $0x124] sm:$0xf0] }
 0x36e   : > { %6643 = vmatpush.bf16.msra.mxu2 %v9962_v30  ;;  %6656 = vmatpush.bf16.msra.mxu3 %v10026_v59  ;;  %v11273_v30 = vld [vmem:[#allocation14 + $0x1a4] sm:$0xf0] }
 0x36f   : > { %v10122_v15 = vor.u32 %v11273_v30, %v10121_v1 }
 0x370   : > { %5672 = vmatpush.bf16.msrb.mxu0 %v9685_v44  ;;  %5685 = vmatpush.bf16.msrb.mxu1 %v9813_v50  ;;  %v5456_v35 = vpop.f32.mrf.mxu3  ;;  %v11231_v44 = vld [vmem:[#allocation14 + $0x54] sm:$0xf0] }
 0x371   : > { %v9954_v47 = vor.u32 %v11231_v44, %v9953_v16  ;;  %v9945_v35 = vld [vmem:[#allocation14 + $0x40] sm:$0xf]  ;;  %v11239_v44 = vld [vmem:[#allocation14 + $0x94] sm:$0xf0] }
 0x372   : > { %6657 = vmatpush.bf16.msra.mxu3 %v10018_v62  ;;  %v10113_v62 = vld [vmem:[#allocation14 + $0x190] sm:$0xf] }
 0x373   : > { %6644 = vmatpush.bf16.msra.mxu2 %v9954_v47 }
 0x374   : > { %5673 = vmatpush.bf16.msrb.mxu0 %v9669_v18  ;;  %5686 = vmatpush.bf16.msrb.mxu1 %v9797_v7  ;;  %v5467_v54 = vpop.f32.mrf.mxu0  ;;  %v5480_v32 = vpop.f32.mrf.mxu1  ;;  %v10081_v18 = vld [vmem:[#allocation14 + $0x150] sm:$0xf] }
 0x375   : > { %v5468_v20 = vadd.f32 %v5467_v54, %v5455_v24  ;;  %v11279_v24 = vld [vmem:[#allocation14 + $0x1d4] sm:$0xf0]  ;;  %v10082_v63 = vor.u32 %v11263_v36, %v10081_v18  ;;  %v10049_v18 = vld [vmem:[#allocation14 + $0x110] sm:$0xf] }
 0x376   : > { %v10146_v54 = vor.u32 %v11279_v24, %v10145_v53 }
 0x377   : > { %5674 = vmatmul.bf16.vlgmr.msrb.gmra.mxu0 %v12597_v52  ;;  %5687 = vmatmul.bf16.vlgmr.msrb.gmra.mxu1 %v12602_v56  ;;  %v5481_v49 = vadd.f32 %v5480_v32, %v5468_v20  ;;  %v11229_v20 = vld [vmem:[#allocation14 + $0x44] sm:$0xf0]  ;;  %v10009_v32 = vld [vmem:[#allocation14 + $0xc0] sm:$0xf] }
 0x378   : > { %6668 = vmatpush.bf16.msra.mxu0 %v10098_v12  ;;  %6681 = vmatpush.bf16.msra.mxu1 %v10162_v31  ;;  %v10057_v31 = vld [vmem:[#allocation14 + $0x120] sm:$0xf] }
 0x379   : > { %v10058_v5 = vor.u32 %v11257_v41, %v10057_v31  ;;  %v10345_v31 = vld [vmem:[#allocation14 + $0x360] sm:$0xf] }
 0x37a   : > { %v10409_v41 = vld [vmem:[#allocation14 + $0x3e0] sm:$0xf] }
 0x37c   : > { %v5469_v46 = vpop.f32.mrf.mxu0  ;;  %v5482_v51 = vpop.f32.mrf.mxu1  ;;  %6669 = vmatpush.bf16.msra.mxu0 %v10090_v38  ;;  %6682 = vmatpush.bf16.msra.mxu1 %v10154_v4  ;;  %v11223_v38 = vld [vmem:[#allocation14 + $0x14] sm:$0xf0] }
 0x37d   : > { %v11245_v46 = vld [vmem:[#allocation14 + $0xc4] sm:$0xf0]  ;;  %v10073_v51 = vld [vmem:[#allocation14 + $0x140] sm:$0xf]  ;;  %v9922_v16 = vor.u32 %v11223_v38, %v9921_v58 }
 0x380   : > { %6670 = vmatpush.bf16.msra.mxu0 %v10082_v63  ;;  %6683 = vmatpush.bf16.msra.mxu1 %v10146_v54  ;;  %v11271_v63 = vld [vmem:[#allocation14 + $0x194] sm:$0xf0]  ;;  %v9913_v54 = vld [vmem:[#allocation14] sm:$0xf] }
 0x384   : > { %v5493_v11 = vpop.f32.mrf.mxu2 }
 0x385   : > { %v12719_v45 = vadd.f32 %v5493_v11, %v5481_v49  ;;  %v9946_v49 = vor.u32 %v11229_v20, %v9945_v35  ;;  %v11261_v11 = vld [vmem:[#allocation14 + $0x144] sm:$0xf0] }
 0x386   : > { %v11221_v35 = vld [vmem:[#allocation14 + $0x4] sm:$0xf0] }
 0x387   : > { %6645 = vmatpush.bf16.msra.mxu2 %v9946_v49  ;;  %v9914_v49 = vor.u32 %v11221_v35, %v9913_v54  ;;  %v11309_v54 = vld [vmem:[#allocation14 + $0x2c4] sm:$0xf0]  ;;  %v10329_v35 = vld [vmem:[#allocation14 + $0x340] sm:$0xf]  ;;  %vm5694_vm1 = vcmp.ge.f32.partialorder %v12719_v45, 0.0 }
 0x388   : > { %v5506_v43 = vpop.f32.mrf.mxu3 }
 0x389   : > { %v5507_v52 = vadd.f32 %v5506_v43, %v2507_v29  ;;  %v10010_v43 = vor.u32 %v11245_v46, %v10009_v32  ;;  %v10137_v29 = vld [vmem:[#allocation14 + $0x1c0] sm:$0xf]  ;;  %v10114_v32 = vor.u32 %v11271_v63, %v10113_v62 }
 0x38a   : > { %v9977_v46 = vld [vmem:[#allocation14 + $0x80] sm:$0xf] }
 0x38b   : > { %6658 = vmatpush.bf16.msra.mxu3 %v10010_v43  ;;  %v10201_v62 = vld [vmem:[#allocation14 + $0x240] sm:$0xf] }
 0x38c   : > { %v5495_v28 = vpop.f32.mrf.mxu2 }
 0x38d   : > { %v11277_v28 = vld [vmem:[#allocation14 + $0x1c4] sm:$0xf0] }
 0x390   : > { %v5508_v56 = vpop.f32.mrf.mxu3 }
 0x391   : > { %v11227_v56 = vld [vmem:[#allocation14 + $0x34] sm:$0xf0] }
 0x394   : > { %v5519_v25 = vpop.f32.mrf.mxu0  ;;  %v5532_v55 = vpop.f32.mrf.mxu1 }
 0x395   : > { %v5520_v60 = vadd.f32 %v5519_v25, %v5507_v52  ;;  %v9937_v52 = vld [vmem:[#allocation14 + $0x30] sm:$0xf]  ;;  %v10074_v25 = vor.u32 %v11261_v11, %v10073_v51  ;;  %v11237_v51 = vld [vmem:[#allocation14 + $0x84] sm:$0xf0] }
 0x396   : > { %v10225_v11 = vld [vmem:[#allocation14 + $0x270] sm:$0xf] }
 0x397   : > { %v12722_v8 = vadd.f32 %v5532_v55, %v5520_v60  ;;  %v10001_v60 = vld [vmem:[#allocation14 + $0xb0] sm:$0xf]  ;;  %v11243_v55 = vld [vmem:[#allocation14 + $0xb4] sm:$0xf0]  ;;  %6671 = vmatpush.bf16.msra.mxu0 %v10074_v25  ;;  %v10041_v25 = vld [vmem:[#allocation14 + $0x100] sm:$0xf] }
 0x398   : > { %v10002_v23 = vor.u32 %v11243_v55, %v10001_v60  ;;  %v10105_v60 = vld [vmem:[#allocation14 + $0x180] sm:$0xf] }
 0x39a   : > { %6659 = vmatpush.bf16.msra.mxu3 %v10002_v23  ;;  %v11331_v23 = vld [vmem:[#allocation14 + $0x374] sm:$0xf0] }
 0x39b   : > { %6672 = vmatpush.bf16.msra.mxu0 %v10066_v27  ;;  %v10217_v27 = vld [vmem:[#allocation14 + $0x260] sm:$0xf] }
 0x39c   : > { %v5521_v10 = vpop.f32.mrf.mxu0  ;;  %v5534_v9 = vpop.f32.mrf.mxu1  ;;  %v10218_v17 = vor.u32 %v11297_v21, %v10217_v27 }
 0x39d   : > { %v10138_v10 = vor.u32 %v11277_v28, %v10137_v29  ;;  %v9938_v9 = vor.u32 %v11227_v56, %v9937_v52  ;;  %v10289_v29 = vld [vmem:[#allocation14 + $0x2f0] sm:$0xf]  ;;  %v11315_v28 = vld [vmem:[#allocation14 + $0x2f4] sm:$0xf0]  ;;  %v11253_v56 = vld [vmem:[#allocation14 + $0x104] sm:$0xf0] }
 0x39e   : > { %6660 = vmatpush.bf16.msra.mxu3 %v9994_v48  ;;  %v10290_v52 = vor.u32 %v11315_v28, %v10289_v29  ;;  %v10042_v55 = vor.u32 %v11253_v56, %v10041_v25  ;;  %v11329_v48 = vld [vmem:[#allocation14 + $0x364] sm:$0xf0]  ;;  %v11323_v25 = vld [vmem:[#allocation14 + $0x334] sm:$0xf0] }
 0x39f   : > { %6684 = vmatpush.bf16.msra.mxu1 %v10138_v10  ;;  %6646 = vmatpush.bf16.msra.mxu2 %v9938_v9  ;;  %v11269_v10 = vld [vmem:[#allocation14 + $0x184] sm:$0xf0]  ;;  %v10353_v9 = vld [vmem:[#allocation14 + $0x370] sm:$0xf] }
 0x3a0   : > { %6673 = vmatpush.bf16.msra.mxu0 %v10058_v5  ;;  %v10354_v40 = vor.u32 %v11331_v23, %v10353_v9  ;;  %v11345_v5 = vld [vmem:[#allocation14 + $0x3e4] sm:$0xf0]  ;;  %v10185_v9 = vld [vmem:[#allocation14 + $0x220] sm:$0xf] }
 0x3a1   : > { %v10410_v58 = vor.u32 %v11345_v5, %v10409_v41  ;;  %v11303_v5 = vld [vmem:[#allocation14 + $0x294] sm:$0xf0] }
 0x3a3   : > { %6647 = vmatpush.bf16.msra.mxu2 %v9930_v57  ;;  %v11313_v57 = vld [vmem:[#allocation14 + $0x2e4] sm:$0xf0] }
 0x3a4   : > { %v12724_v19 = vpop.f32.mrf.mxu2 }
 0x3a5   : > { %v5546_v34 = vadd.f32 %v12724_v19, %v12722_v8  ;;  %v9978_v8 = vor.u32 %v11237_v51, %v9977_v46  ;;  %v11299_v19 = vld [vmem:[#allocation14 + $0x274] sm:$0xf0]  ;;  %v11341_v46 = vld [vmem:[#allocation14 + $0x3c4] sm:$0xf0]  ;;  %v10193_v51 = vld [vmem:[#allocation14 + $0x230] sm:$0xf] }
 0x3a7   : > { %6648 = vmatpush.bf16.msra.mxu2 %v9922_v16  ;;  %v11311_v16 = vld [vmem:[#allocation14 + $0x2d4] sm:$0xf0] }
 0x3a8   : > { %v12726_v22 = vpop.f32.mrf.mxu3 }
 0x3a9   : > { %v5559_v36 = vadd.f32 %v12726_v22, %v5546_v34  ;;  %v10226_v22 = vor.u32 %v11299_v19, %v10225_v11  ;;  %v11327_v34 = vld [vmem:[#allocation14 + $0x354] sm:$0xf0] }
 0x3aa   : > { %v11307_v19 = vld [vmem:[#allocation14 + $0x2b4] sm:$0xf0] }
 0x3ab   : > { %6649 = vmatpush.bf16.msra.mxu2 %v9914_v49  ;;  %v10393_v49 = vld [vmem:[#allocation14 + $0x3c0] sm:$0xf] }
 0x3ac   : > { %v5547_v61 = vpop.f32.mrf.mxu2 }
 0x3af   : > { %6694 = vmatpush.bf16.msrb.mxu2 %v10226_v22  ;;  %v10394_v22 = vor.u32 %v11341_v46, %v10393_v49 }
 0x3b0   : > { %v5560_v26 = vpop.f32.mrf.mxu3 }
 0x3b1   : > { %v10129_v26 = vld [vmem:[#allocation14 + $0x1b0] sm:$0xf] }
 0x3b2   : > { %v10130_v12 = vor.u32 %v11275_v42, %v10129_v26  ;;  %v11347_v26 = vld [vmem:[#allocation14 + $0x3f4] sm:$0xf0] }
 0x3b3   : > { %v10418_v13 = vor.u32 %v11347_v26, %v10417_v2  ;;  %6695 = vmatpush.bf16.msrb.mxu2 %v10218_v17  ;;  %v11305_v2 = vld [vmem:[#allocation14 + $0x2a4] sm:$0xf0]  ;;  %v10377_v17 = vld [vmem:[#allocation14 + $0x3a0] sm:$0xf] }
 0x3b4   : > { %v12728_v33 = vpop.f32.mrf.mxu0  ;;  %v12730_v37 = vpop.f32.mrf.mxu1  ;;  %6685 = vmatpush.bf16.msra.mxu1 %v10130_v12  ;;  %v10281_v12 = vld [vmem:[#allocation14 + $0x2e0] sm:$0xf] }
 0x3b5   : > { %v5572_v43 = vadd.f32 %v12728_v33, %v5559_v36  ;;  %v10106_v33 = vor.u32 %v11269_v10, %v10105_v60  ;;  %v10282_v3 = vor.u32 %v11313_v57, %v10281_v12  ;;  %v11293_v36 = vld [vmem:[#allocation14 + $0x244] sm:$0xf0]  ;;  %v11339_v10 = vld [vmem:[#allocation14 + $0x3b4] sm:$0xf0] }
 0x3b7   : > { %v5585_v42 = vadd.f32 %v12730_v37, %v5572_v43  ;;  %v11295_v37 = vld [vmem:[#allocation14 + $0x254] sm:$0xf0] }
 0x3b8   : > { %6686 = vmatpush.bf16.msra.mxu1 %v10122_v15  ;;  %v10209_v15 = vld [vmem:[#allocation14 + $0x250] sm:$0xf]  ;;  %v11291_v43 = vld [vmem:[#allocation14 + $0x234] sm:$0xf0] }
 0x3b9   : > { %v10210_v38 = vor.u32 %v11295_v37, %v10209_v15  ;;  %v10194_v56 = vor.u32 %v11291_v43, %v10193_v51  ;;  %v5700_v37 = vmul.f32 %v12686_v39, %v12719_v45  ;;  %v11333_v43 = vld [vmem:[#allocation14 + $0x384] sm:$0xf0] }
 0x3bb   : > { %6696 = vmatpush.bf16.msrb.mxu2 %v10210_v38 }
 0x3bc   : > { %v5573_v50 = vpop.f32.mrf.mxu0  ;;  %v5586_v7 = vpop.f32.mrf.mxu1  ;;  %6687 = vmatpush.bf16.msra.mxu1 %v10114_v32  ;;  %v10202_v32 = vor.u32 %v11293_v36, %v10201_v62  ;;  %v10233_v62 = vld [vmem:[#allocation14 + $0x280] sm:$0xf]  ;;  %v11301_v36 = vld [vmem:[#allocation14 + $0x284] sm:$0xf0] }
 0x3bd   : > { %v9986_v50 = vor.u32 %v11239_v44, %v9985_v14  ;;  %v11255_v7 = vld [vmem:[#allocation14 + $0x114] sm:$0xf0]  ;;  %v10273_v14 = vld [vmem:[#allocation14 + $0x2d0] sm:$0xf]  ;;  %v10234_v51 = vor.u32 %v11301_v36, %v10233_v62 }
 0x3be   : > { %v10050_v24 = vor.u32 %v11255_v7, %v10049_v18  ;;  %v10337_v44 = vld [vmem:[#allocation14 + $0x350] sm:$0xf]  ;;  %v11343_v7 = vld [vmem:[#allocation14 + $0x3d4] sm:$0xf0] }
 0x3bf   : > { %6661 = vmatpush.bf16.msra.mxu3 %v9986_v50  ;;  %v10401_v18 = vld [vmem:[#allocation14 + $0x3d0] sm:$0xf]  ;;  %6697 = vmatpush.bf16.msrb.mxu2 %v10202_v32  ;;  %v10297_v32 = vld [vmem:[#allocation14 + $0x300] sm:$0xf] }
 0x3c0   : > { %6674 = vmatpush.bf16.msra.mxu0 %v10050_v24  ;;  %6688 = vmatpush.bf16.msra.mxu1 %v10106_v33  ;;  %v10402_v63 = vor.u32 %v11343_v7, %v10401_v18  ;;  %v11289_v33 = vld [vmem:[#allocation14 + $0x224] sm:$0xf0]  ;;  %v10169_v18 = vld [vmem:[#allocation14 + $0x200] sm:$0xf] }
 0x3c1   : > { %v10186_v12 = vor.u32 %v11289_v33, %v10185_v9  ;;  %v11285_v7 = vld [vmem:[#allocation14 + $0x204] sm:$0xf0] }
 0x3c3   : > { %6662 = vmatpush.bf16.msra.mxu3 %v9978_v8  ;;  %v10257_v8 = vld [vmem:[#allocation14 + $0x2b0] sm:$0xf]  ;;  %6698 = vmatpush.bf16.msrb.mxu2 %v10194_v56 }
 0x3c4   : > { %v12732_v61 = vpop.f32.mrf.mxu2  ;;  %6675 = vmatpush.bf16.msra.mxu0 %v10042_v55  ;;  %6733 = vmatpush.bf16.msrb.mxu1 %v10418_v13  ;;  %v10258_v60 = vor.u32 %v11307_v19, %v10257_v8  ;;  %v10385_v55 = vld [vmem:[#allocation14 + $0x3b0] sm:$0xf]  ;;  %v11321_v13 = vld [vmem:[#allocation14 + $0x324] sm:$0xf0] }
 0x3c5   : > { %v5598_v1 = vadd.f32 %v12732_v61, %v5585_v42  ;;  %v10338_v61 = vor.u32 %v11327_v34, %v10337_v44  ;;  %v10313_v42 = vld [vmem:[#allocation14 + $0x320] sm:$0xf]  ;;  %v10369_v44 = vld [vmem:[#allocation14 + $0x390] sm:$0xf]  ;;  %v11335_v34 = vld [vmem:[#allocation14 + $0x394] sm:$0xf0] }
 0x3c6   : > { %v10314_v15 = vor.u32 %v11321_v13, %v10313_v42 }
 0x3c7   : > { %6707 = vmatpush.bf16.msrb.mxu3 %v10290_v52  ;;  %v10321_v52 = vld [vmem:[#allocation14 + $0x330] sm:$0xf]  ;;  %6699 = vmatpush.bf16.msrb.mxu2 %v10186_v12 }
 0x3c8   : > { %v12734_v6 = vpop.f32.mrf.mxu3  ;;  %6720 = vmatpush.bf16.msrb.mxu0 %v10354_v40  ;;  %6734 = vmatpush.bf16.msrb.mxu1 %v10410_v58  ;;  %v10249_v40 = vld [vmem:[#allocation14 + $0x2a0] sm:$0xf]  ;;  %v10322_v26 = vor.u32 %v11323_v25, %v10321_v52  ;;  %v5772_v52 = vld [vmem:[#allocation3] sm:$0x44] }
 0x3c9   : > { %v5611_v50 = vadd.f32 %v12734_v6, %v5598_v1  ;;  %v10250_v57 = vor.u32 %v11305_v2, %v10249_v40  ;;  %v5774_v9 = vunpack.c.l.bf16 %v5772_v52 }
 0x3cb   : > { %6708 = vmatpush.bf16.msrb.mxu3 %v10282_v3  ;;  %v11337_v3 = vld [vmem:[#allocation14 + $0x3a4] sm:$0xf0] }
 0x3cc   : > { %v5599_v59 = vpop.f32.mrf.mxu2  ;;  %6735 = vmatpush.bf16.msrb.mxu1 %v10402_v63  ;;  %v10378_v38 = vor.u32 %v11337_v3, %v10377_v17  ;;  %v5741_v63 = vld [vmem:[#allocation3] sm:$0x22] }
 0x3cd   : > { %v10346_v59 = vor.u32 %v11329_v48, %v10345_v31  ;;  %v10177_v31 = vld [vmem:[#allocation14 + $0x210] sm:$0xf] }
 0x3cf   : > { %6721 = vmatpush.bf16.msrb.mxu0 %v10346_v59  ;;  %v10241_v59 = vld [vmem:[#allocation14 + $0x290] sm:$0xf] }
 0x3d0   : > { %v5612_v47 = vpop.f32.mrf.mxu3  ;;  %6736 = vmatpush.bf16.msrb.mxu1 %v10394_v22 }
 0x3d1   : > { %v10274_v47 = vor.u32 %v11311_v16, %v10273_v14  ;;  %v10305_v14 = vld [vmem:[#allocation14 + $0x310] sm:$0xf]  ;;  %v11319_v16 = vld [vmem:[#allocation14 + $0x314] sm:$0xf0] }
 0x3d3   : > { %6709 = vmatpush.bf16.msrb.mxu3 %v10274_v47  ;;  %6722 = vmatpush.bf16.msrb.mxu0 %v10338_v61  ;;  %v10242_v47 = vor.u32 %v11303_v5, %v10241_v59 }
 0x3d4   : > { %v12736_v4 = vpop.f32.mrf.mxu0  ;;  %v12738_v0 = vpop.f32.mrf.mxu1 }
 0x3d5   : > { %v5624_v24 = vadd.f32 %v12736_v4, %v5611_v50 }
 0x3d7   : > { %v5637_v4 = vadd.f32 %v12738_v0, %v5624_v24  ;;  %v10386_v0 = vor.u32 %v11339_v10, %v10385_v55  ;;  %v5710_v24 = vld [vmem:[#allocation3] sm:$0x11]  ;;  %v5803_v10 = vld [vmem:[#allocation3] sm:$0x88] }
 0x3d8   : > { %v5712_v19 = vunpack.c.l.bf16 %v5710_v24  ;;  %v5805_v33 = vunpack.c.l.bf16 %v5803_v10  ;;  %v5806_v40 = vunpack.c.h.bf16 %v5803_v10 }
 0x3d9   : > { %6737 = vmatpush.bf16.msrb.mxu1 %v10386_v0 }
 0x3da   : > { %v5720_v25 = vrot.slane %v5712_v19, 1 }
 0x3dc   : > { %v5625_v53 = vpop.f32.mrf.mxu0  ;;  %v5638_v20 = vpop.f32.mrf.mxu1 }
 0x3dd   : > { %v10265_v53 = vld [vmem:[#allocation14 + $0x2c0] sm:$0xf]  ;;  %v11325_v20 = vld [vmem:[#allocation14 + $0x344] sm:$0xf0]  ;;  %6738 = vmatpush.bf16.msrb.mxu1 %v10378_v38 }
 0x3de   : > { %v10266_v6 = vor.u32 %v11309_v54, %v10265_v53  ;;  %v10330_v29 = vor.u32 %v11325_v20, %v10329_v35  ;;  %v10306_v53 = vor.u32 %v11319_v16, %v10305_v14  ;;  %v5704_v54 = vsel %vm5694_vm1, %v12719_v45, %v5700_v37 }
 0x3df   : > { %v10370_v20 = vor.u32 %v11335_v34, %v10369_v44 }
 0x3e0   : > { %6710 = vmatpush.bf16.msrb.mxu3 %v10266_v6  ;;  %6723 = vmatpush.bf16.msrb.mxu0 %v10330_v29  ;;  %v11317_v6 = vld [vmem:[#allocation14 + $0x304] sm:$0xf0]  ;;  %v5713_v29 = vunpack.c.h.bf16 %v5710_v24 }
 0x3e1   : > { %v10298_v45 = vor.u32 %v11317_v6, %v10297_v32  ;;  %6739 = vmatpush.bf16.msrb.mxu1 %v10370_v20  ;;  %v9971_v6 = vld [vmem:[#allocation14 + $0x78] sm:$0xf0] }
 0x3e2   : > { %v5721_v56 = vrot.slane %v5713_v29, 1 }
 0x3e4   : > { %v5649_v30 = vpop.f32.mrf.mxu2  ;;  %6711 = vmatpush.bf16.msrb.mxu3 %v10258_v60  ;;  %6724 = vmatpush.bf16.msrb.mxu0 %v10322_v26  ;;  %v5728_v26 = vmax.f32 %v5712_v19, %v5720_v25  ;;  %v10099_v25 = vld [vmem:[#allocation14 + $0x178] sm:$0xf0] }
 0x3e5   : > { %v5650_v23 = vadd.f32 %v5649_v30, %v5637_v4  ;;  %v11287_v30 = vld [vmem:[#allocation14 + $0x214] sm:$0xf0]  ;;  %v5743_v4 = vunpack.c.l.bf16 %v5741_v63 }
 0x3e6   : > { %v10178_v50 = vor.u32 %v11287_v30, %v10177_v31 }
 0x3e7   : > { %v5751_v60 = vrot.slane %v5743_v4, 1 }
 0x3e8   : > { %v5662_v11 = vpop.f32.mrf.mxu3  ;;  %6712 = vmatpush.bf16.msrb.mxu3 %v10250_v57  ;;  %6725 = vmatpush.bf16.msrb.mxu0 %v10314_v15 }
 0x3e9   : > { %v5663_v27 = vadd.f32 %v5662_v11, %v5650_v23  ;;  %6700 = vmatpush.bf16.msrb.mxu2 %v10178_v50  ;;  %v10361_v11 = vld [vmem:[#allocation14 + $0x380] sm:$0xf]  ;;  %v5775_v23 = vunpack.c.h.bf16 %v5772_v52  ;;  %v5759_v42 = vmax.f32 %v5743_v4, %v5751_v60  ;;  %v10163_v60 = vld [vmem:[#allocation14 + $0x1f8] sm:$0xf0] }
 0x3ea   : > { %v10362_v22 = vor.u32 %v11333_v43, %v10361_v11  ;;  %v11266_v43 = vld [vmem:[#allocation14 + $0x174] sm:$0xf] }
 0x3ec   : > { %v5651_v28 = vpop.f32.mrf.mxu2  ;;  %6713 = vmatpush.bf16.msrb.mxu3 %v10242_v47  ;;  %6726 = vmatpush.bf16.msrb.mxu0 %v10306_v53 }
 0x3ed   : > { %v5744_v28 = vunpack.c.h.bf16 %v5741_v63  ;;  %6740 = vmatpush.bf16.msrb.mxu1 %v10362_v22 }
 0x3ef   : > { %v5752_v55 = vrot.slane %v5744_v28, 1 }
 0x3f0   : > { %v5664_v48 = vpop.f32.mrf.mxu3  ;;  %6714 = vmatpush.bf16.msrb.mxu3 %v10234_v51  ;;  %6727 = vmatpush.bf16.msrb.mxu0 %v10298_v45 }
 0x3f1   : > { %v5760_v13 = vmax.f32 %v5744_v28, %v5752_v55 }
 0x3f4   : > { %v5675_v21 = vpop.f32.mrf.mxu0  ;;  %v5688_v1 = vpop.f32.mrf.mxu1 }
 0x3f5   : > { %v5676_v41 = vadd.f32 %v5675_v21, %v5663_v27  ;;  %v5729_v27 = vmax.f32 %v5713_v29, %v5721_v56  ;;  %v11282_v56 = vld [vmem:[#allocation14 + $0x1f4] sm:$0xf] }
 0x3f7   : > { %v5689_v58 = vadd.f32 %v5688_v1, %v5676_v41  ;;  %v5782_v1 = vrot.slane %v5774_v9, 1 }
 0x3f9   : > { %vm5695_vm2 = vcmp.ge.f32.partialorder %v5689_v58, 0.0  ;;  %v5701_v61 = vmul.f32 %v12686_v39, %v5689_v58  ;;  %v10170_v39 = vor.u32 %v11285_v7, %v10169_v18  ;;  %v5813_v18 = vrot.slane %v5805_v33, 1 }
 0x3fa   : > { %v5814_v7 = vrot.slane %v5806_v40, 1  ;;  %v5790_v51 = vmax.f32 %v5774_v9, %v5782_v1 }
 0x3fb   : > { %v5705_v35 = vsel %vm5695_vm2, %v5689_v58, %v5701_v61  ;;  %6701 = vmatpush.bf16.msrb.mxu2 %v10170_v39  ;;  %v5783_v58 = vrot.slane %v5775_v23, 1 }
 0x3fc   : > { %v5707_v49 = vpack.c.bf16 %v5705_v35, %v5704_v54  ;;  %v5677_v46 = vpop.f32.mrf.mxu0  ;;  %v5690_v8 = vpop.f32.mrf.mxu1  ;;  %v11234_v54 = vld [vmem:[#allocation14 + $0x74] sm:$0xf]  ;;  %v5822_v19 = vmax.f32 %v5806_v40, %v5814_v7  ;;  %v9963_v40 = vld [vmem:[#allocation14 + $0x68] sm:$0xf0] }
 0x3fd   : > { %v10035_v46 = vld [vmem:[#allocation14 + $0xf8] sm:$0xf0]  ;;  %v5791_v11 = vmax.f32 %v5775_v23, %v5783_v58  ;;  %v5821_v8 = vmax.f32 %v5805_v33, %v5813_v18  ;;  %v9974_v55 = vor.u32 %v11234_v54, %v9971_v6  ;;  %v11246_v58 = vld [vmem:[#allocation14 + $0xd4] sm:$0xf]  ;;  %v11260_v6 = vld [vmem:[#allocation14 + $0x144] sm:$0xf] }
 0x3fe   : > { %5709 = vst [vmem:[#allocation3 + $0x8] sm:$0xff] %v5707_v49  ;;  %v11250_v49 = vld [vmem:[#allocation14 + $0xf4] sm:$0xf]  ;;  %v10147_v18 = vld [vmem:[#allocation14 + $0x1d8] sm:$0xf0] }
 0x3ff   : > { %v10038_v10 = vor.u32 %v11250_v49, %v10035_v46  ;;  %v10075_v49 = vld [vmem:[#allocation14 + $0x148] sm:$0xf0]  ;;  %v11276_v46 = vld [vmem:[#allocation14 + $0x1c4] sm:$0xf] }
 0x405   : > { %v5711_v2 = vld [vmem:[#allocation3 + $0x8] sm:$0x11]  ;;  %v5742_v0 = vld [vmem:[#allocation3 + $0x8] sm:$0x22]  ;;  %v5773_v21 = vld [vmem:[#allocation3 + $0x8] sm:$0x44] }
 0x406   : > { %v5714_v12 = vunpack.c.l.bf16 %v5711_v2  ;;  %v5715_v57 = vunpack.c.h.bf16 %v5711_v2  ;;  %v5745_v17 = vunpack.c.l.bf16 %v5742_v0  ;;  %v5746_v3 = vunpack.c.h.bf16 %v5742_v0  ;;  %v5804_v31 = vld [vmem:[#allocation3 + $0x8] sm:$0x88]  ;;  %v11232_v2 = vld [vmem:[#allocation14 + $0x64] sm:$0xf] }
 0x407   : > { %v5776_v48 = vunpack.c.l.bf16 %v5773_v21  ;;  %v5777_v41 = vunpack.c.h.bf16 %v5773_v21  ;;  %v5807_v30 = vunpack.c.l.bf16 %v5804_v31  ;;  %v5808_v16 = vunpack.c.h.bf16 %v5804_v31 }
 0x408   : > { %v5722_v59 = vrot.slane %v5714_v12, 1  ;;  %v5723_v5 = vrot.slane %v5715_v57, 1  ;;  %v5753_v15 = vrot.slane %v5745_v17, 1  ;;  %v5754_v37 = vrot.slane %v5746_v3, 1 }
 0x409   : > { %v5784_v38 = vrot.slane %v5776_v48, 1  ;;  %v5785_v14 = vrot.slane %v5777_v41, 1  ;;  %v5815_v61 = vrot.slane %v5807_v30, 1  ;;  %v5816_v62 = vrot.slane %v5808_v16, 1 }
 0x40a   : > { %v5730_v44 = vmax.f32 %v5714_v12, %v5722_v59  ;;  %v5731_v50 = vmax.f32 %v5715_v57, %v5723_v5  ;;  %v5761_v47 = vmax.f32 %v5745_v17, %v5753_v15  ;;  %v5762_v34 = vmax.f32 %v5746_v3, %v5754_v37  ;;  %v11264_v57 = vld [vmem:[#allocation14 + $0x164] sm:$0xf]  ;;  %v10091_v17 = vld [vmem:[#allocation14 + $0x168] sm:$0xf0]  ;;  %v11230_v15 = vld [vmem:[#allocation14 + $0x54] sm:$0xf] }
 0x40b   : > { %v5792_v35 = vmax.f32 %v5776_v48, %v5784_v38  ;;  %v5793_v20 = vmax.f32 %v5777_v41, %v5785_v14  ;;  %v5823_v29 = vmax.f32 %v5807_v30, %v5815_v61  ;;  %v5824_v4 = vmax.f32 %v5808_v16, %v5816_v62  ;;  %v11280_v48 = vld [vmem:[#allocation14 + $0x1e4] sm:$0xf]  ;;  %v10155_v41 = vld [vmem:[#allocation14 + $0x1e8] sm:$0xf0]  ;;  %v9955_v37 = vld [vmem:[#allocation14 + $0x58] sm:$0xf0] }
 0x40c   : > { %v5738_v36 = vmax.f32 %v5728_v26, %v5730_v44  ;;  %v5739_v53 = vmax.f32 %v5729_v27, %v5731_v50  ;;  %v5769_v24 = vmax.f32 %v5759_v42, %v5761_v47  ;;  %v5770_v63 = vmax.f32 %v5760_v13, %v5762_v34  ;;  %v11248_v42 = vld [vmem:[#allocation14 + $0xe4] sm:$0xf]  ;;  %v10027_v13 = vld [vmem:[#allocation14 + $0xe8] sm:$0xf0]  ;;  %v10019_v38 = vld [vmem:[#allocation14 + $0xd8] sm:$0xf0] }
 0x40d   : > { %v5800_v26 = vmax.f32 %v5790_v51, %v5792_v35  ;;  %v5801_v27 = vmax.f32 %v5791_v11, %v5793_v20  ;;  %v10102_v21 = vor.u32 %v11266_v43, %v10099_v25  ;;  %v10166_v12 = vor.u32 %v11282_v56, %v10163_v60  ;;  %v11262_v50 = vld [vmem:[#allocation14 + $0x154] sm:$0xf]  ;;  %v10083_v47 = vld [vmem:[#allocation14 + $0x158] sm:$0xf0] }
 0x40e   : > { %v5740_v32 = vpack.c.bf16 %v5739_v53, %v5738_v36  ;;  %v5771_v39 = vpack.c.bf16 %v5770_v63, %v5769_v24  ;;  %v5831_v1 = vmax.f32 %v5821_v8, %v5823_v29  ;;  %v5832_v30 = vmax.f32 %v5822_v19, %v5824_v4  ;;  %v11278_v34 = vld [vmem:[#allocation14 + $0x1d4] sm:$0xf]  ;;  %v11228_v36 = vld [vmem:[#allocation14 + $0x44] sm:$0xf]  ;;  %v9947_v53 = vld [vmem:[#allocation14 + $0x48] sm:$0xf0] }
 0x40f   : > { %v9966_v59 = vor.u32 %v11232_v2, %v9963_v40  ;;  %v10030_v5 = vor.u32 %v11248_v42, %v10027_v13  ;;  %v5802_v14 = vpack.c.bf16 %v5801_v27, %v5800_v26  ;;  %v10094_v16 = vor.u32 %v11264_v57, %v10091_v17  ;;  %v11244_v24 = vld [vmem:[#allocation14 + $0xc4] sm:$0xf]  ;;  %v10011_v63 = vld [vmem:[#allocation14 + $0xc8] sm:$0xf0]  ;;  %v11226_v19 = vld [vmem:[#allocation14 + $0x34] sm:$0xf] }
 0x410   : > { %v5835_v28 = vunpack.c.l.b16 %v5740_v32  ;;  %v5836_v45 = vunpack.c.h.b16 %v5740_v32  ;;  %v5842_v22 = vunpack.c.l.b16 %v5771_v39  ;;  %v5843_v52 = vunpack.c.h.b16 %v5771_v39  ;;  %v10139_v39 = vld [vmem:[#allocation14 + $0x1c8] sm:$0xf0]  ;;  %v11258_v56 = vld [vmem:[#allocation14 + $0x134] sm:$0xf]  ;;  %v10131_v26 = vld [vmem:[#allocation14 + $0x1b8] sm:$0xf0] }
 0x411   : > { %v10158_v44 = vor.u32 %v11280_v48, %v10155_v41  ;;  %v5833_v7 = vpack.c.bf16 %v5832_v30, %v5831_v1  ;;  %v9958_v61 = vor.u32 %v11230_v15, %v9955_v37  ;;  %v10022_v62 = vor.u32 %v11246_v58, %v10019_v38  ;;  %v11274_v2 = vld [vmem:[#allocation14 + $0x1b4] sm:$0xf]  ;;  %v11224_v42 = vld [vmem:[#allocation14 + $0x24] sm:$0xf]  ;;  %v9931_v13 = vld [vmem:[#allocation14 + $0x28] sm:$0xf0] }
 0x412   : > { %v12756_v0 = vpack.c.b16 %v5835_v28, %v5835_v28  ;;  %v12758_v9 = vpack.c.b16 %v5836_v45, %v5836_v45  ;;  %v12760_v23 = vpack.c.b16 %v5842_v22, %v5842_v22  ;;  %v12762_v33 = vpack.c.b16 %v5843_v52, %v5843_v52  ;;  %v9939_v28 = vld [vmem:[#allocation14 + $0x38] sm:$0xf0]  ;;  %v11242_v45 = vld [vmem:[#allocation14 + $0xb4] sm:$0xf]  ;;  %v11240_v57 = vld [vmem:[#allocation14 + $0xa4] sm:$0xf] }
 0x413   : > { %v5851_v54 = vunpack.c.l.b16 %v5802_v14  ;;  %v5852_v35 = vunpack.c.h.b16 %v5802_v14  ;;  %v10086_v20 = vor.u32 %v11262_v50, %v10083_v47  ;;  %v10150_v32 = vor.u32 %v11278_v34, %v10147_v18  ;;  %v10003_v22 = vld [vmem:[#allocation14 + $0xb8] sm:$0xf0]  ;;  %v9995_v17 = vld [vmem:[#allocation14 + $0xa8] sm:$0xf0]  ;;  %v11256_v1 = vld [vmem:[#allocation14 + $0x124] sm:$0xf] }
 0x414   : > { %6650 = vmatmul.bf16.vlgmr.msra.gmra.mxu2 %v12756_v0  ;;  %6663 = vmatmul.bf16.vlgmr.msra.gmra.mxu3 %v12758_v9  ;;  %v5846_v3 = vrot.slane %v12760_v23, 1  ;;  %v5847_v31 = vrot.slane %v12762_v33, 1  ;;  %v5860_v51 = vunpack.c.l.b16 %v5833_v7  ;;  %v5861_v11 = vunpack.c.h.b16 %v5833_v7  ;;  %v10059_v30 = vld [vmem:[#allocation14 + $0x128] sm:$0xf0]  ;;  %v11272_v15 = vld [vmem:[#allocation14 + $0x1a4] sm:$0xf] }
 0x415   : > { %6746 = vmatpush.bf16.msra.mxu2 %v9974_v55  ;;  %6759 = vmatpush.bf16.msra.mxu3 %v10038_v10  ;;  %v9950_v43 = vor.u32 %v11228_v36, %v9947_v53  ;;  %v10014_v8 = vor.u32 %v11244_v24, %v10011_v63  ;;  %v12772_v29 = vpack.c.b16 %v5851_v54, %v5851_v54  ;;  %v10067_v10 = vld [vmem:[#allocation14 + $0x138] sm:$0xf0]  ;;  %v10123_v37 = vld [vmem:[#allocation14 + $0x1a8] sm:$0xf0]  ;;  %v11222_v14 = vld [vmem:[#allocation14 + $0x14] sm:$0xf] }
 0x416   : > { %6676 = vmatmul.bf16.vlgmr.msra.gmra.mxu0 %v5846_v3  ;;  %6689 = vmatmul.bf16.vlgmr.msra.gmra.mxu1 %v5847_v31  ;;  %v12774_v4 = vpack.c.b16 %v5852_v35, %v5852_v35  ;;  %v10078_v52 = vor.u32 %v11260_v6, %v10075_v49  ;;  %v10142_v25 = vor.u32 %v11276_v46, %v10139_v39  ;;  %v9987_v50 = vld [vmem:[#allocation14 + $0x98] sm:$0xf0]  ;;  %v11254_v18 = vld [vmem:[#allocation14 + $0x114] sm:$0xf]  ;;  %v11220_v36 = vld [vmem:[#allocation14 + $0x4] sm:$0xf] }
 0x417   : > { %6772 = vmatpush.bf16.msra.mxu0 %v10102_v21  ;;  %6785 = vmatpush.bf16.msra.mxu1 %v10166_v12  ;;  %v12776_v60 = vpack.c.b16 %v5860_v51, %v5860_v51  ;;  %v12778_v55 = vpack.c.b16 %v5861_v11, %v5861_v11  ;;  %v9942_v27 = vor.u32 %v11226_v19, %v9939_v28  ;;  %v5855_v21 = vrot.slane %v12772_v29, 2  ;;  %v10051_v7 = vld [vmem:[#allocation14 + $0x118] sm:$0xf0]  ;;  %v9915_v63 = vld [vmem:[#allocation14 + $0x8] sm:$0xf0] }
 0x418   : > { %v10006_v40 = vor.u32 %v11242_v45, %v10003_v22  ;;  %v5856_v12 = vrot.slane %v12774_v4, 2  ;;  %v10070_v48 = vor.u32 %v11258_v56, %v10067_v10  ;;  %v10134_v41 = vor.u32 %v11274_v2, %v10131_v26  ;;  %v11236_v54 = vld [vmem:[#allocation14 + $0x84] sm:$0xf]  ;;  %v9979_v35 = vld [vmem:[#allocation14 + $0x88] sm:$0xf0] }
 0x419   : > { %6747 = vmatpush.bf16.msra.mxu2 %v9966_v59  ;;  %6760 = vmatpush.bf16.msra.mxu3 %v10030_v5  ;;  %v5864_v59 = vrot.slane %v12776_v60, 3  ;;  %v5865_v5 = vrot.slane %v12778_v55, 3  ;;  %v9934_v58 = vor.u32 %v11224_v42, %v9931_v13  ;;  %v9998_v38 = vor.u32 %v11240_v57, %v9995_v17  ;;  %v11314_v6 = vld [vmem:[#allocation14 + $0x2f4] sm:$0xf]  ;;  %v10291_v39 = vld [vmem:[#allocation14 + $0x2f8] sm:$0xf0] }
 0x41a   : > { %v10062_v47 = vor.u32 %v11256_v1, %v10059_v30  ;;  %v10126_v34 = vor.u32 %v11272_v15, %v10123_v37  ;;  %v10054_v49 = vor.u32 %v11254_v18, %v10051_v7  ;;  %v11252_v51 = vld [vmem:[#allocation14 + $0x104] sm:$0xf]  ;;  %v10043_v11 = vld [vmem:[#allocation14 + $0x108] sm:$0xf0]  ;;  %v11330_v19 = vld [vmem:[#allocation14 + $0x374] sm:$0xf]  ;;  %v9918_v28 = vor.u32 %v11220_v36, %v9915_v63 }
 0x41b   : > { %6773 = vmatpush.bf16.msra.mxu0 %v10094_v16  ;;  %6786 = vmatpush.bf16.msra.mxu1 %v10158_v44  ;;  %v9923_v16 = vld [vmem:[#allocation14 + $0x18] sm:$0xf0]  ;;  %v11238_v44 = vld [vmem:[#allocation14 + $0x94] sm:$0xf]  ;;  %v9982_v45 = vor.u32 %v11236_v54, %v9979_v35  ;;  %v10294_v10 = vor.u32 %v11314_v6, %v10291_v39  ;;  %v11296_v2 = vld [vmem:[#allocation14 + $0x264] sm:$0xf]  ;;  %v10046_v26 = vor.u32 %v11252_v51, %v10043_v11 }
 0x41c   : > { %v9926_v53 = vor.u32 %v11222_v14, %v9923_v16  ;;  %v9990_v24 = vor.u32 %v11238_v44, %v9987_v50  ;;  %v10355_v22 = vld [vmem:[#allocation14 + $0x378] sm:$0xf0]  ;;  %v11312_v42 = vld [vmem:[#allocation14 + $0x2e4] sm:$0xf]  ;;  %v10283_v13 = vld [vmem:[#allocation14 + $0x2e8] sm:$0xf0] }
 0x41d   : > { %6748 = vmatpush.bf16.msra.mxu2 %v9958_v61  ;;  %6761 = vmatpush.bf16.msra.mxu3 %v10022_v62  ;;  %v11270_v61 = vld [vmem:[#allocation14 + $0x194] sm:$0xf]  ;;  %v10115_v62 = vld [vmem:[#allocation14 + $0x198] sm:$0xf0]  ;;  %v10358_v57 = vor.u32 %v11330_v19, %v10355_v22  ;;  %v11344_v1 = vld [vmem:[#allocation14 + $0x3e4] sm:$0xf]  ;;  %v10286_v37 = vor.u32 %v11312_v42, %v10283_v13 }
 0x41e   : > { %v10118_v46 = vor.u32 %v11270_v61, %v10115_v62  ;;  %v10411_v30 = vld [vmem:[#allocation14 + $0x3e8] sm:$0xf0]  ;;  %v11310_v14 = vld [vmem:[#allocation14 + $0x2d4] sm:$0xf]  ;;  %v10275_v16 = vld [vmem:[#allocation14 + $0x2d8] sm:$0xf0] }
 0x41f   : > { %6774 = vmatpush.bf16.msra.mxu0 %v10086_v20  ;;  %6787 = vmatpush.bf16.msra.mxu1 %v10150_v32  ;;  %v11298_v20 = vld [vmem:[#allocation14 + $0x274] sm:$0xf]  ;;  %v10227_v32 = vld [vmem:[#allocation14 + $0x278] sm:$0xf0]  ;;  %v10414_v50 = vor.u32 %v11344_v1, %v10411_v30  ;;  %v10278_v62 = vor.u32 %v11310_v14, %v10275_v16  ;;  %v11292_v36 = vld [vmem:[#allocation14 + $0x244] sm:$0xf] }
 0x420   : > { %v10230_v56 = vor.u32 %v11298_v20, %v10227_v32  ;;  %v11342_v18 = vld [vmem:[#allocation14 + $0x3d4] sm:$0xf]  ;;  %v10403_v7 = vld [vmem:[#allocation14 + $0x3d8] sm:$0xf0]  ;;  %v10267_v63 = vld [vmem:[#allocation14 + $0x2c8] sm:$0xf0] }
 0x421   : > { %6749 = vmatpush.bf16.msra.mxu2 %v9950_v43  ;;  %6762 = vmatpush.bf16.msra.mxu3 %v10014_v8  ;;  %v11268_v43 = vld [vmem:[#allocation14 + $0x184] sm:$0xf]  ;;  %v10107_v8 = vld [vmem:[#allocation14 + $0x188] sm:$0xf0]  ;;  %v11290_v23 = vld [vmem:[#allocation14 + $0x234] sm:$0xf] }
 0x422   : > { %v11324_v54 = vld [vmem:[#allocation14 + $0x344] sm:$0xf]  ;;  %v10331_v35 = vld [vmem:[#allocation14 + $0x348] sm:$0xf0]  ;;  %v10259_v33 = vld [vmem:[#allocation14 + $0x2b8] sm:$0xf0] }
 0x423   : > { %6775 = vmatpush.bf16.msra.mxu0 %v10078_v52  ;;  %6788 = vmatpush.bf16.msra.mxu1 %v10142_v25  ;;  %v11346_v52 = vld [vmem:[#allocation14 + $0x3f4] sm:$0xf]  ;;  %v10419_v25 = vld [vmem:[#allocation14 + $0x3f8] sm:$0xf0]  ;;  %v11340_v20 = vld [vmem:[#allocation14 + $0x3c4] sm:$0xf] }
 0x424   : > { %6702 = vmatmul.bf16.vlgmr.msrb.gmra.mxu2 %v5855_v21  ;;  %6715 = vmatmul.bf16.vlgmr.msrb.gmra.mxu3 %v5856_v12  ;;  %v10422_v17 = vor.u32 %v11346_v52, %v10419_v25  ;;  %v10395_v32 = vld [vmem:[#allocation14 + $0x3c8] sm:$0xf0]  ;;  %v11322_v51 = vld [vmem:[#allocation14 + $0x334] sm:$0xf]  ;;  %v10323_v11 = vld [vmem:[#allocation14 + $0x338] sm:$0xf0] }
 0x425   : > { %6750 = vmatpush.bf16.msra.mxu2 %v9942_v27  ;;  %6763 = vmatpush.bf16.msra.mxu3 %v10006_v40  ;;  %v10110_v27 = vor.u32 %v11268_v43, %v10107_v8  ;;  %v10219_v40 = vld [vmem:[#allocation14 + $0x268] sm:$0xf0]  ;;  %v10398_v39 = vor.u32 %v11340_v20, %v10395_v32  ;;  %v11338_v43 = vld [vmem:[#allocation14 + $0x3b4] sm:$0xf]  ;;  %v10387_v8 = vld [vmem:[#allocation14 + $0x3b8] sm:$0xf0] }
 0x426   : > { %6728 = vmatmul.bf16.vlgmr.msrb.gmra.mxu0 %v5864_v59  ;;  %6741 = vmatmul.bf16.vlgmr.msrb.gmra.mxu1 %v5865_v5  ;;  %v10222_v15 = vor.u32 %v11296_v2, %v10219_v40  ;;  %v10187_v22 = vld [vmem:[#allocation14 + $0x228] sm:$0xf0]  ;;  %v11304_v52 = vld [vmem:[#allocation14 + $0x2a4] sm:$0xf]  ;;  %v11362_v20 = vld [vmem:[#allocation17 + $0x74] sm:$0xf] }
 0x427   : > { %6776 = vmatpush.bf16.msra.mxu0 %v10070_v48  ;;  %6789 = vmatpush.bf16.msra.mxu1 %v10134_v41  ;;  %v11328_v48 = vld [vmem:[#allocation14 + $0x364] sm:$0xf]  ;;  %v10347_v41 = vld [vmem:[#allocation14 + $0x368] sm:$0xf0] }
 0x428   : > { %v10350_v44 = vor.u32 %v11328_v48, %v10347_v41  ;;  %v10251_v25 = vld [vmem:[#allocation14 + $0x2a8] sm:$0xf0]  ;;  %v11320_v2 = vld [vmem:[#allocation14 + $0x324] sm:$0xf]  ;;  %v11302_v48 = vld [vmem:[#allocation14 + $0x294] sm:$0xf] }
 0x429   : > { %6751 = vmatpush.bf16.msra.mxu2 %v9934_v58  ;;  %6764 = vmatpush.bf16.msra.mxu3 %v9998_v38  ;;  %v11294_v58 = vld [vmem:[#allocation14 + $0x254] sm:$0xf]  ;;  %v10211_v38 = vld [vmem:[#allocation14 + $0x258] sm:$0xf0]  ;;  %v10379_v40 = vld [vmem:[#allocation14 + $0x3a8] sm:$0xf0]  ;;  %v10254_v13 = vor.u32 %v11304_v52, %v10251_v25 }
 0x42a   : > { %v10214_v61 = vor.u32 %v11294_v58, %v10211_v38  ;;  %v10243_v41 = vld [vmem:[#allocation14 + $0x298] sm:$0xf0]  ;;  %v11334_v58 = vld [vmem:[#allocation14 + $0x394] sm:$0xf]  ;;  %v11361_v29 = vld [vmem:[#allocation17 + $0x64] sm:$0xf0] }
 0x42b   : > { %6777 = vmatpush.bf16.msra.mxu0 %v10062_v47  ;;  %6790 = vmatpush.bf16.msra.mxu1 %v10126_v34  ;;  %v11326_v47 = vld [vmem:[#allocation14 + $0x354] sm:$0xf]  ;;  %v10339_v34 = vld [vmem:[#allocation14 + $0x358] sm:$0xf0]  ;;  %v10246_v16 = vor.u32 %v11302_v48, %v10243_v41  ;;  %v10476_v4 = vld [vmem:[#allocation17 + $0x68] sm:$0xf0] }
 0x42c   : > { %v10371_v38 = vld [vmem:[#allocation14 + $0x398] sm:$0xf0]  ;;  %v11350_v41 = vld [vmem:[#allocation17 + $0x14] sm:$0xf] }
 0x42d   : > { %6752 = vmatpush.bf16.msra.mxu2 %v9926_v53  ;;  %6765 = vmatpush.bf16.msra.mxu3 %v9990_v24  ;;  %v10203_v53 = vld [vmem:[#allocation14 + $0x248] sm:$0xf0]  ;;  %v11308_v24 = vld [vmem:[#allocation14 + $0x2c4] sm:$0xf] }
 0x42e   : > { %v10206_v6 = vor.u32 %v11292_v36, %v10203_v53  ;;  %v11332_v36 = vld [vmem:[#allocation14 + $0x384] sm:$0xf]  ;;  %v10363_v53 = vld [vmem:[#allocation14 + $0x388] sm:$0xf0] }
 0x42f   : > { %6778 = vmatpush.bf16.msra.mxu0 %v10054_v49  ;;  %6791 = vmatpush.bf16.msra.mxu1 %v10118_v46  ;;  %v10270_v49 = vor.u32 %v11308_v24, %v10267_v63  ;;  %v11306_v46 = vld [vmem:[#allocation14 + $0x2b4] sm:$0xf] }
 0x431   : > { %6753 = vmatpush.bf16.msra.mxu2 %v9918_v28  ;;  %6766 = vmatpush.bf16.msra.mxu3 %v9982_v45  ;;  %v10262_v28 = vor.u32 %v11306_v46, %v10259_v33  ;;  %v11288_v45 = vld [vmem:[#allocation14 + $0x224] sm:$0xf]  ;;  %v11359_v46 = vld [vmem:[#allocation17 + $0x54] sm:$0xf0]  ;;  %v10468_v33 = vld [vmem:[#allocation17 + $0x58] sm:$0xf0] }
 0x432   : > { %v10190_v42 = vor.u32 %v11288_v45, %v10187_v22  ;;  %v11354_v45 = vld [vmem:[#allocation17 + $0x34] sm:$0xf]  ;;  %v10452_v22 = vld [vmem:[#allocation17 + $0x38] sm:$0xf0] }
 0x433   : > { %6779 = vmatpush.bf16.msra.mxu0 %v10046_v26  ;;  %6792 = vmatpush.bf16.msra.mxu1 %v10110_v27  ;;  %v10315_v26 = vld [vmem:[#allocation14 + $0x328] sm:$0xf0]  ;;  %v11336_v27 = vld [vmem:[#allocation14 + $0x3a4] sm:$0xf]  ;;  %v10455_v25 = vor.u32 %v11354_v45, %v10452_v22 }
 0x434   : > { %6754 = vmatmul.bf16.vlgmr.msra.gmra.mxu2 %v12756_v0  ;;  %6767 = vmatmul.bf16.vlgmr.msra.gmra.mxu3 %v12758_v9  ;;  %v10342_v0 = vor.u32 %v11326_v47, %v10339_v34  ;;  %v10406_v9 = vor.u32 %v11342_v18, %v10403_v7  ;;  %v10318_v1 = vor.u32 %v11320_v2, %v10315_v26  ;;  %v11300_v47 = vld [vmem:[#allocation14 + $0x284] sm:$0xf]  ;;  %v10235_v34 = vld [vmem:[#allocation14 + $0x288] sm:$0xf0] }
 0x435   : > { %6798 = vmatpush.bf16.msrb.mxu2 %v10230_v56  ;;  %6811 = vmatpush.bf16.msrb.mxu3 %v10294_v10  ;;  %v10326_v56 = vor.u32 %v11322_v51, %v10323_v11  ;;  %v10390_v10 = vor.u32 %v11338_v43, %v10387_v8  ;;  %v10382_v30 = vor.u32 %v11336_v27, %v10379_v40  ;;  %v11356_v51 = vld [vmem:[#allocation17 + $0x44] sm:$0xf]  ;;  %v10460_v11 = vld [vmem:[#allocation17 + $0x48] sm:$0xf0]  ;;  %v10442_v26 = vld [vmem:[#allocation17 + $0x20] sm:$0xf] }
 0x436   : > { %6780 = vmatmul.bf16.vlgmr.msra.gmra.mxu0 %v5846_v3  ;;  %6793 = vmatmul.bf16.vlgmr.msra.gmra.mxu1 %v5847_v31  ;;  %v10195_v3 = vld [vmem:[#allocation14 + $0x238] sm:$0xf0]  ;;  %v10334_v31 = vor.u32 %v11324_v54, %v10331_v35  ;;  %v10374_v7 = vor.u32 %v11334_v58, %v10371_v38  ;;  %v10238_v63 = vor.u32 %v11300_v47, %v10235_v34  ;;  %v10482_v54 = vld [vmem:[#allocation17 + $0x70] sm:$0xf]  ;;  %v11353_v27 = vld [vmem:[#allocation17 + $0x24] sm:$0xf0] }
 0x437   : > { %6824 = vmatpush.bf16.msrb.mxu0 %v10358_v57  ;;  %6837 = vmatpush.bf16.msrb.mxu1 %v10422_v17  ;;  %v10198_v19 = vor.u32 %v11290_v23, %v10195_v3  ;;  %v11286_v57 = vld [vmem:[#allocation14 + $0x214] sm:$0xf]  ;;  %v10179_v17 = vld [vmem:[#allocation14 + $0x218] sm:$0xf0]  ;;  %v10474_v23 = vld [vmem:[#allocation17 + $0x60] sm:$0xf]  ;;  %v10463_v8 = vor.u32 %v11356_v51, %v10460_v11 }
 0x438   : > { %v10182_v14 = vor.u32 %v11286_v57, %v10179_v17  ;;  %v11363_v35 = vld [vmem:[#allocation17 + $0x74] sm:$0xf0]  ;;  %v10475_v3 = vor.u32 %v11361_v29, %v10474_v23  ;;  %v11352_v40 = vld [vmem:[#allocation17 + $0x24] sm:$0xf]  ;;  %v10434_v57 = vld [vmem:[#allocation17 + $0x10] sm:$0xf] }
 0x439   : > { %6799 = vmatpush.bf16.msrb.mxu2 %v10222_v15  ;;  %6812 = vmatpush.bf16.msrb.mxu3 %v10286_v37  ;;  %v11318_v15 = vld [vmem:[#allocation14 + $0x314] sm:$0xf]  ;;  %v10307_v37 = vld [vmem:[#allocation14 + $0x318] sm:$0xf0]  ;;  %v10483_v32 = vor.u32 %v11363_v35, %v10482_v54  ;;  %v10538_v35 = vld [vmem:[#allocation17 + $0xe0] sm:$0xf] }
 0x43a   : > { %v10310_v18 = vor.u32 %v11318_v15, %v10307_v37  ;;  %v11351_v17 = vld [vmem:[#allocation17 + $0x14] sm:$0xf0]  ;;  %v10548_v54 = vld [vmem:[#allocation17 + $0xf8] sm:$0xf0]  ;;  %v10540_v23 = vld [vmem:[#allocation17 + $0xe8] sm:$0xf0] }
 0x43b   : > { %6825 = vmatpush.bf16.msrb.mxu0 %v10350_v44  ;;  %6838 = vmatpush.bf16.msrb.mxu1 %v10414_v50  ;;  %v11284_v44 = vld [vmem:[#allocation14 + $0x204] sm:$0xf]  ;;  %v10171_v50 = vld [vmem:[#allocation14 + $0x208] sm:$0xf0]  ;;  %v10435_v15 = vor.u32 %v11351_v17, %v10434_v57  ;;  %v11371_v57 = vld [vmem:[#allocation17 + $0xb4] sm:$0xf0] }
 0x43c   : > { %v10174_v24 = vor.u32 %v11284_v44, %v10171_v50  ;;  %v11348_v44 = vld [vmem:[#allocation17 + $0x4] sm:$0xf]  ;;  %v10428_v50 = vld [vmem:[#allocation17 + $0x8] sm:$0xf0]  ;;  %v10522_v11 = vld [vmem:[#allocation17 + $0xc0] sm:$0xf] }
 0x43d   : > { %6800 = vmatpush.bf16.msrb.mxu2 %v10214_v61  ;;  %6813 = vmatpush.bf16.msrb.mxu3 %v10278_v62  ;;  %v11316_v61 = vld [vmem:[#allocation14 + $0x304] sm:$0xf]  ;;  %v10299_v62 = vld [vmem:[#allocation14 + $0x308] sm:$0xf0] }
 0x43f   : > { %6826 = vmatpush.bf16.msrb.mxu0 %v10342_v0  ;;  %6839 = vmatpush.bf16.msrb.mxu1 %v10406_v9  ;;  %v10302_v0 = vor.u32 %v11316_v61, %v10299_v62  ;;  %v10366_v9 = vor.u32 %v11332_v36, %v10363_v53  ;;  %v10431_v61 = vor.u32 %v11348_v44, %v10428_v50 }
 0x441   : > { %6801 = vmatpush.bf16.msrb.mxu2 %v10206_v6  ;;  %6814 = vmatpush.bf16.msrb.mxu3 %v10270_v49  ;;  %v10484_v6 = vld [vmem:[#allocation17 + $0x78] sm:$0xf0] }
 0x442   : > { %v10487_v49 = vor.u32 %v11362_v20, %v10484_v6  ;;  %v11377_v20 = vld [vmem:[#allocation17 + $0xe4] sm:$0xf0] }
 0x443   : > { %6827 = vmatpush.bf16.msrb.mxu0 %v10334_v31  ;;  %6840 = vmatpush.bf16.msrb.mxu1 %v10398_v39  ;;  %v10458_v31 = vld [vmem:[#allocation17 + $0x40] sm:$0xf]  ;;  %v11357_v39 = vld [vmem:[#allocation17 + $0x44] sm:$0xf0] }
 0x444   : > { %v10459_v43 = vor.u32 %v11357_v39, %v10458_v31 }
 0x445   : > { %6802 = vmatpush.bf16.msrb.mxu2 %v10198_v19  ;;  %6815 = vmatpush.bf16.msrb.mxu3 %v10262_v28  ;;  %v10450_v19 = vld [vmem:[#allocation17 + $0x30] sm:$0xf]  ;;  %v11355_v28 = vld [vmem:[#allocation17 + $0x34] sm:$0xf0] }
 0x446   : > { %v10451_v52 = vor.u32 %v11355_v28, %v10450_v19  ;;  %v10524_v19 = vld [vmem:[#allocation17 + $0xc8] sm:$0xf0] }
 0x447   : > { %6828 = vmatpush.bf16.msrb.mxu0 %v10326_v56  ;;  %6841 = vmatpush.bf16.msrb.mxu1 %v10390_v10  ;;  %v12806_v56 = vld [vmem:[#allocation15] sm:$0x3] }
 0x449   : > { %6803 = vmatpush.bf16.msrb.mxu2 %v10190_v42  ;;  %6816 = vmatpush.bf16.msrb.mxu3 %v10254_v13  ;;  %v10443_v42 = vor.u32 %v11353_v27, %v10442_v26  ;;  %v10444_v13 = vld [vmem:[#allocation17 + $0x28] sm:$0xf0] }
 0x44a   : > { %v10447_v48 = vor.u32 %v11352_v40, %v10444_v13  ;;  %v10514_v13 = vld [vmem:[#allocation17 + $0xb0] sm:$0xf] }
 0x44b   : > { %6829 = vmatpush.bf16.msrb.mxu0 %v10318_v1  ;;  %6842 = vmatpush.bf16.msrb.mxu1 %v10382_v30  ;;  %v10436_v1 = vld [vmem:[#allocation17 + $0x18] sm:$0xf0]  ;;  %v6638_v30 = vperm.slane %v12806_v56, 0  ;;  %v10515_v17 = vor.u32 %v11371_v57, %v10514_v13  ;;  %v11390_v57 = vld [vmem:[%s12909_s10 + $0x50] sm:$0xff] }
 0x44c   : > { %v10439_v38 = vor.u32 %v11350_v41, %v10436_v1  ;;  %v10516_v41 = vld [vmem:[#allocation17 + $0xb8] sm:$0xf0] }
 0x44d   : > { %6804 = vmatpush.bf16.msrb.mxu2 %v10182_v14  ;;  %6817 = vmatpush.bf16.msrb.mxu3 %v10246_v16  ;;  %v10426_v14 = vld [vmem:[#allocation17] sm:$0xf]  ;;  %v11349_v16 = vld [vmem:[#allocation17 + $0x4] sm:$0xf0] }
 0x44e   : > { %v10427_v34 = vor.u32 %v11349_v16, %v10426_v14 }
 0x44f   : > { %6830 = vmatpush.bf16.msrb.mxu0 %v10310_v18  ;;  %6843 = vmatpush.bf16.msrb.mxu1 %v10374_v7 }
 0x451   : > { %6805 = vmatpush.bf16.msrb.mxu2 %v10174_v24  ;;  %6818 = vmatpush.bf16.msrb.mxu3 %v10238_v63  ;;  %v10546_v24 = vld [vmem:[#allocation17 + $0xf0] sm:$0xf]  ;;  %v11379_v63 = vld [vmem:[#allocation17 + $0xf4] sm:$0xf0] }
 0x453   : > { %6831 = vmatpush.bf16.msrb.mxu0 %v10302_v0  ;;  %6844 = vmatpush.bf16.msrb.mxu1 %v10366_v9  ;;  %v11378_v0 = vld [vmem:[#allocation17 + $0xf4] sm:$0xf]  ;;  %v10547_v9 = vor.u32 %v11379_v63, %v10546_v24 }
 0x454   : > { %6806 = vmatmul.bf16.vlgmr.msrb.gmra.mxu2 %v5855_v21  ;;  %6819 = vmatmul.bf16.vlgmr.msrb.gmra.mxu3 %v5856_v12  ;;  %v11360_v21 = vld [vmem:[#allocation17 + $0x64] sm:$0xf]  ;;  %v10466_v12 = vld [vmem:[#allocation17 + $0x50] sm:$0xf]  ;;  %v10551_v6 = vor.u32 %v11378_v0, %v10548_v54  ;;  %v11366_v63 = vld [vmem:[#allocation17 + $0x94] sm:$0xf] }
 0x455   : > { %7058 = vmatpush.bf16.msra.mxu2 %v10483_v32  ;;  %v10479_v60 = vor.u32 %v11360_v21, %v10476_v4  ;;  %v10467_v55 = vor.u32 %v11359_v46, %v10466_v12  ;;  %7071 = vmatpush.bf16.msra.mxu3 %v10547_v9  ;;  %v10530_v12 = vld [vmem:[#allocation17 + $0xd0] sm:$0xf]  ;;  %v11375_v46 = vld [vmem:[#allocation17 + $0xd4] sm:$0xf0]  ;;  %v10500_v0 = vld [vmem:[#allocation17 + $0x98] sm:$0xf0] }
 0x456   : > { %6832 = vmatmul.bf16.vlgmr.msrb.gmra.mxu0 %v5864_v59  ;;  %6845 = vmatmul.bf16.vlgmr.msrb.gmra.mxu1 %v5865_v5  ;;  %v11358_v59 = vld [vmem:[#allocation17 + $0x54] sm:$0xf]  ;;  %v10531_v31 = vor.u32 %v11375_v46, %v10530_v12  ;;  %v6639_v9 = vperm.slane %v12806_v56, 1 }
 0x457   : > { %7084 = vmatpush.bf16.msra.mxu0 %v10487_v49  ;;  %v10471_v5 = vor.u32 %v11358_v59, %v10468_v33  ;;  %v11376_v49 = vld [vmem:[#allocation17 + $0xe4] sm:$0xf]  ;;  %7097 = vmatpush.bf16.msra.mxu1 %v10551_v6  ;;  %v10532_v59 = vld [vmem:[#allocation17 + $0xd8] sm:$0xf0] }
 0x458   : > { %v10543_v4 = vor.u32 %v11376_v49, %v10540_v23  ;;  %v11364_v6 = vld [vmem:[#allocation17 + $0x84] sm:$0xf]  ;;  %v10492_v49 = vld [vmem:[#allocation17 + $0x88] sm:$0xf0] }
 0x459   : > { %7059 = vmatpush.bf16.msra.mxu2 %v10475_v3  ;;  %v10539_v3 = vor.u32 %v11377_v20, %v10538_v35  ;;  %v10503_v35 = vor.u32 %v11366_v63, %v10500_v0  ;;  %v10490_v20 = vld [vmem:[#allocation17 + $0x80] sm:$0xf] }
 0x45b   : > { %7085 = vmatpush.bf16.msra.mxu0 %v10479_v60  ;;  %v11374_v60 = vld [vmem:[#allocation17 + $0xd4] sm:$0xf]  ;;  %7072 = vmatpush.bf16.msra.mxu3 %v10539_v3 }
 0x45c   : > { %7098 = vmatpush.bf16.msra.mxu1 %v10543_v4  ;;  %v10535_v51 = vor.u32 %v11374_v60, %v10532_v59 }
 0x45d   : > { %7060 = vmatpush.bf16.msra.mxu2 %v10467_v55 }
 0x45f   : > { %7086 = vmatpush.bf16.msra.mxu0 %v10471_v5  ;;  %7073 = vmatpush.bf16.msra.mxu3 %v10531_v31 }
 0x460   : > { %7099 = vmatpush.bf16.msra.mxu1 %v10535_v51 }
 0x461   : > { %7061 = vmatpush.bf16.msra.mxu2 %v10459_v43  ;;  %v11373_v43 = vld [vmem:[#allocation17 + $0xc4] sm:$0xf0] }
 0x463   : > { %7087 = vmatpush.bf16.msra.mxu0 %v10463_v8  ;;  %v11372_v8 = vld [vmem:[#allocation17 + $0xc4] sm:$0xf] }
 0x465   : > { %7062 = vmatpush.bf16.msra.mxu2 %v10451_v52  ;;  %v10523_v52 = vor.u32 %v11373_v43, %v10522_v11 }
 0x467   : > { %7088 = vmatpush.bf16.msra.mxu0 %v10455_v25  ;;  %7074 = vmatpush.bf16.msra.mxu3 %v10523_v52  ;;  %v11394_v52 = vld [vmem:[%s12909_s10 + $0x70] sm:$0xff] }
 0x469   : > { %7063 = vmatpush.bf16.msra.mxu2 %v10443_v42 }
 0x46b   : > { %7089 = vmatpush.bf16.msra.mxu0 %v10447_v48  ;;  %v11370_v48 = vld [vmem:[#allocation17 + $0xb4] sm:$0xf]  ;;  %7075 = vmatpush.bf16.msra.mxu3 %v10515_v17 }
 0x46d   : > { %7064 = vmatpush.bf16.msra.mxu2 %v10435_v15 }
 0x46f   : > { %7090 = vmatpush.bf16.msra.mxu0 %v10439_v38 }
 0x471   : > { %7065 = vmatpush.bf16.msra.mxu2 %v10427_v34  ;;  %v10506_v34 = vld [vmem:[#allocation17 + $0xa0] sm:$0xf] }
 0x473   : > { %7091 = vmatpush.bf16.msra.mxu0 %v10431_v61 }
 0x493   : > { %v6677_v10 = vpop.f32.mrf.mxu0  ;;  %v6690_v2 = vpop.f32.mrf.mxu1 }
 0x497   : > { %v6651_v37 = vpop.f32.mrf.mxu2  ;;  %v6664_v58 = vpop.f32.mrf.mxu3 }
 0x498   : > { %v6652_v47 = vadd.f32 %v6651_v37, %v6638_v30  ;;  %v10519_v30 = vor.u32 %v11370_v48, %v10516_v41 }
 0x49a   : > { %v6665_v62 = vadd.f32 %v6664_v58, %v6652_v47 }
 0x49b   : > { %v6679_v18 = vpop.f32.mrf.mxu0  ;;  %v6692_v7 = vpop.f32.mrf.mxu1 }
 0x49c   : > { %v6678_v32 = vadd.f32 %v6677_v10, %v6665_v62  ;;  %v10527_v10 = vor.u32 %v11372_v8, %v10524_v19  ;;  %v11369_v18 = vld [vmem:[#allocation17 + $0xa4] sm:$0xf0]  ;;  %v11368_v7 = vld [vmem:[#allocation17 + $0xa4] sm:$0xf]  ;;  %v10508_v62 = vld [vmem:[#allocation17 + $0xa8] sm:$0xf0] }
 0x49d   : > { %v10507_v61 = vor.u32 %v11369_v18, %v10506_v34  ;;  %v10511_v24 = vor.u32 %v11368_v7, %v10508_v62 }
 0x49e   : > { %v6691_v33 = vadd.f32 %v6690_v2, %v6678_v32  ;;  %v6853_v2 = vstv %s12809_s16  ;;  %7100 = vmatpush.bf16.msra.mxu1 %v10527_v10  ;;  %v11365_v32 = vld [vmem:[#allocation17 + $0x84] sm:$0xf0]  ;;  %v11393_v10 = vld [vmem:[%s12909_s10 + $0x68] sm:$0xff] }
 0x49f   : > { %v6653_v36 = vpop.f32.mrf.mxu2  ;;  %v6666_v53 = vpop.f32.mrf.mxu3  ;;  %7076 = vmatpush.bf16.msra.mxu3 %v10507_v61 }
 0x4a0   : > { %v10498_v36 = vld [vmem:[#allocation17 + $0x90] sm:$0xf]  ;;  %v11367_v53 = vld [vmem:[#allocation17 + $0x94] sm:$0xf0] }
 0x4a1   : > { %v10499_v54 = vor.u32 %v11367_v53, %v10498_v36 }
 0x4a2   : > { %7101 = vmatpush.bf16.msra.mxu1 %v10519_v30  ;;  %v11382_v30 = vld [vmem:[%s12909_s10 + $0x10] sm:$0xff] }
 0x4a3   : > { %v6729_v29 = vpop.f32.mrf.mxu0  ;;  %v6742_v21 = vpop.f32.mrf.mxu1  ;;  %7077 = vmatpush.bf16.msra.mxu3 %v10499_v54 }
 0x4a6   : > { %7102 = vmatpush.bf16.msra.mxu1 %v10511_v24 }
 0x4a7   : > { %v6703_v55 = vpop.f32.mrf.mxu2  ;;  %v6716_v5 = vpop.f32.mrf.mxu3 }
 0x4a8   : > { %v6704_v39 = vadd.f32 %v6703_v55, %v6691_v33 }
 0x4aa   : > { %v6717_v28 = vadd.f32 %v6716_v5, %v6704_v39  ;;  %7103 = vmatpush.bf16.msra.mxu1 %v10503_v35 }
 0x4ab   : > { %v6731_v45 = vpop.f32.mrf.mxu0  ;;  %v6744_v22 = vpop.f32.mrf.mxu1 }
 0x4ac   : > { %v6730_v25 = vadd.f32 %v6729_v29, %v6717_v28  ;;  %v10491_v29 = vor.u32 %v11365_v32, %v10490_v20  ;;  %v11395_v45 = vld [vmem:[%s12909_s10 + $0x78] sm:$0xff]  ;;  %v7152_v20 = vld [vmem:[#allocation20] sm:$0x1] }
 0x4ad   : > { %v11387_v22 = vld [vmem:[%s12909_s10 + $0x38] sm:$0xff] }
 0x4ae   : > { %v6743_v26 = vadd.f32 %v6742_v21, %v6730_v25  ;;  %v10495_v21 = vor.u32 %v11364_v6, %v10492_v49  ;;  %7078 = vmatpush.bf16.msra.mxu3 %v10491_v29  ;;  %7249 = vmatpush.bf16.msrb.mxu2 %v11387_v22  ;;  %v11386_v25 = vld [vmem:[%s12909_s10 + $0x30] sm:$0xff] }
 0x4af   : > { %v6705_v27 = vpop.f32.mrf.mxu2  ;;  %v6718_v40 = vpop.f32.mrf.mxu3 }
 0x4b0   : > { %vm6850_vm3 = vcmp.ge.f32.partialorder %v6743_v26, 0.0  ;;  %v6854_v42 = vmul.f32 %v6853_v2, %v6743_v26  ;;  %7104 = vmatpush.bf16.msra.mxu1 %v10495_v21  ;;  %v11384_v27 = vld [vmem:[%s12909_s10 + $0x20] sm:$0xff]  ;;  %v11391_v40 = vld [vmem:[%s12909_s10 + $0x58] sm:$0xff] }
 0x4b2   : > { %v6856_v1 = vsel %vm6850_vm3, %v6743_v26, %v6854_v42  ;;  %7262 = vmatpush.bf16.msrb.mxu3 %v11395_v45  ;;  %7250 = vmatpush.bf16.msrb.mxu2 %v11386_v25  ;;  %v11392_v26 = vld [vmem:[%s12909_s10 + $0x60] sm:$0xff]  ;;  %v11383_v42 = vld [vmem:[%s12909_s10 + $0x18] sm:$0xff] }
 0x4b3   : > { %v6858_v15 = vpack.c.bf16 %v6856_v1, %v6856_v1  ;;  %v6781_v37 = vpop.f32.mrf.mxu0  ;;  %v6794_v58 = vpop.f32.mrf.mxu1  ;;  %v11389_v1 = vld [vmem:[%s12909_s10 + $0x48] sm:$0xff] }
 0x4b5   : > { %7066 = vmatmul.bf16.vlgmr.msra.gmra.mxu2 %v6858_v15  ;;  %7092 = vmatmul.bf16.vlgmr.msra.gmra.mxu0 %v6858_v15  ;;  %v11388_v15 = vld [vmem:[%s12909_s10 + $0x40] sm:$0xff] }
 0x4b6   : > { %7263 = vmatpush.bf16.msrb.mxu3 %v11394_v52 }
 0x4b7   : > { %v6755_v38 = vpop.f32.mrf.mxu2  ;;  %v6768_v14 = vpop.f32.mrf.mxu3 }
 0x4b8   : > { %v6756_v23 = vadd.f32 %v6755_v38, %v6639_v9  ;;  %v6892_v38 = vld [vmem:[#allocation18] sm:$0x3] }
 0x4ba   : > { %v6769_v3 = vadd.f32 %v6768_v14, %v6756_v23  ;;  %7264 = vmatpush.bf16.msrb.mxu3 %v11393_v10  ;;  %v7055_v14 = vperm.slane %v6892_v38, 1 }
 0x4bb   : > { %v6783_v16 = vpop.f32.mrf.mxu0  ;;  %v6796_v44 = vpop.f32.mrf.mxu1 }
 0x4bc   : > { %v6782_v4 = vadd.f32 %v6781_v37, %v6769_v3  ;;  %v11381_v37 = vld [vmem:[%s12909_s10 + $0x8] sm:$0xff] }
 0x4be   : > { %v6795_v46 = vadd.f32 %v6794_v58, %v6782_v4  ;;  %7265 = vmatpush.bf16.msrb.mxu3 %v11392_v26  ;;  %v11380_v58 = vld [vmem:[%s12909_s10] sm:$0xff] }
 0x4bf   : > { %v6757_v50 = vpop.f32.mrf.mxu2  ;;  %v6770_v47 = vpop.f32.mrf.mxu3 }
 0x4c0   : > { %v7113_v50 = vstv %s10552_s23  ;;  %v7054_v47 = vperm.slane %v6892_v38, 0 }
 0x4c2   : > { %7266 = vmatpush.bf16.msrb.mxu3 %v11391_v40 }
 0x4c6   : > { %7267 = vmatpush.bf16.msrb.mxu3 %v11390_v57 }
 0x4ca   : > { %7268 = vmatpush.bf16.msrb.mxu3 %v11389_v1 }
 0x4ce   : > { %7269 = vmatpush.bf16.msrb.mxu3 %v11388_v15 }
 0x4d3   : > { %v6833_v12 = vpop.f32.mrf.mxu0  ;;  %v6846_v56 = vpop.f32.mrf.mxu1 }
 0x4d7   : > { %v6807_v60 = vpop.f32.mrf.mxu2  ;;  %v6820_v59 = vpop.f32.mrf.mxu3 }
 0x4d8   : > { %v6808_v33 = vadd.f32 %v6807_v60, %v6795_v46 }
 0x4da   : > { %v6821_v55 = vadd.f32 %v6820_v59, %v6808_v33 }
 0x4db   : > { %v6835_v5 = vpop.f32.mrf.mxu0  ;;  %v6848_v31 = vpop.f32.mrf.mxu1 }
 0x4dc   : > { %v6834_v39 = vadd.f32 %v6833_v12, %v6821_v55 }
 0x4de   : > { %v6847_v51 = vadd.f32 %v6846_v56, %v6834_v39 }
 0x4df   : > { %v6809_v11 = vpop.f32.mrf.mxu2  ;;  %v6822_v43 = vpop.f32.mrf.mxu3 }
 0x4e0   : > { %vm6851_vm4 = vcmp.ge.f32.partialorder %v6847_v51, 0.0  ;;  %v6855_v8 = vmul.f32 %v6853_v2, %v6847_v51  ;;  %v11385_v2 = vld [vmem:[%s12909_s10 + $0x28] sm:$0xff] }
 0x4e1   : > { %7251 = vmatpush.bf16.msrb.mxu2 %v11385_v2 }
 0x4e2   : > { %v6857_v19 = vsel %vm6851_vm4, %v6847_v51, %v6855_v8 }
 0x4e3   : > { %v6859_v28 = vpack.c.bf16 %v6857_v19, %v6857_v19 }
 0x4e5   : > { %7079 = vmatmul.bf16.vlgmr.msra.gmra.mxu3 %v6859_v28  ;;  %7105 = vmatmul.bf16.vlgmr.msra.gmra.mxu1 %v6859_v28 }
 0x4e6   : > { %7252 = vmatpush.bf16.msrb.mxu2 %v11384_v27 }
 0x4ea   : > { %7253 = vmatpush.bf16.msrb.mxu2 %v11383_v42 }
 0x4ee   : > { %7254 = vmatpush.bf16.msrb.mxu2 %v11382_v30 }
 0x4f2   : > { %7255 = vmatpush.bf16.msrb.mxu2 %v11381_v37 }
 0x4f6   : > { %7256 = vmatpush.bf16.msrb.mxu2 %v11380_v58 }
 0x532   : > { %v7093_v13 = vpop.f32.mrf.mxu0 }
 0x533   : > { %v7094_v16 = vadd.f32 %v7093_v13, %v7055_v14 }
 0x538   : > { %v7067_v17 = vpop.f32.mrf.mxu2 }
 0x539   : > { %v7068_v7 = vadd.f32 %v7067_v17, %v7054_v47 }
 0x53a   : > { %v7095_v48 = vpop.f32.mrf.mxu0 }
 0x540   : > { %v7069_v41 = vpop.f32.mrf.mxu2 }
 0x562   : > { %v7106_v44 = vpop.f32.mrf.mxu1 }
 0x563   : > { %v7107_v34 = vadd.f32 %v7106_v44, %v7094_v16 }
 0x565   : > { %vm7111_vm5 = vcmp.ge.f32.partialorder %v7107_v34, 0.0  ;;  %v7115_v18 = vmul.f32 %v7113_v50, %v7107_v34 }
 0x567   : > { %v7117_v61 = vsel %vm7111_vm5, %v7107_v34, %v7115_v18 }
 0x568   : > { %v7119_v62 = vpack.c.bf16 %v7117_v61, %v7117_v61  ;;  %v7080_v36 = vpop.f32.mrf.mxu3 }
 0x569   : > { %v7081_v53 = vadd.f32 %v7080_v36, %v7068_v7 }
 0x56a   : > { %v7108_v24 = vpop.f32.mrf.mxu1  ;;  %7270 = vmatmul.bf16.vlgmr.msrb.gmra.mxu3 %v7119_v62 }
 0x56b   : > { %vm7110_vm6 = vcmp.ge.f32.partialorder %v7081_v53, 0.0  ;;  %v7114_v63 = vmul.f32 %v7113_v50, %v7081_v53 }
 0x56d   : > { %v7116_v0 = vsel %vm7110_vm6, %v7081_v53, %v7114_v63 }
 0x56e   : > { %v7118_v9 = vpack.c.bf16 %v7116_v0, %v7116_v0 }
 0x570   : > { %v7082_v54 = vpop.f32.mrf.mxu3  ;;  %7257 = vmatmul.bf16.vlgmr.msrb.gmra.mxu2 %v7118_v9 }
 0x5ed   : > { %v7271_v35 = vpop.f32.mrf.mxu3 }
 0x5f3   : > { %v7258_v32 = vpop.f32.mrf.mxu2 }
 0x5f4   : > { %v7259_v6 = vadd.f32 %v7258_v32, %v7152_v20 }
 0x5f5   : > { %v7273_v49 = vpop.f32.mrf.mxu3 }
 0x5f6   : > { %v7272_v23 = vadd.f32 %v7271_v35, %v7259_v6 }
 0x5f8   : > { %v7275_v29 = vmul.f32 %v7272_v23, %v7272_v23 }
 0x5fa   : > { %v7277_v21 = vsel %vm7276_vm7, %v7275_v29, 0.0 }
 0x5fb   : > { %v7260_v3 = vpop.f32.mrf.mxu2  ;;  %7278 = vadd.xlane.f32.xlu2 %v7277_v21 }
 0x66e   : > { %v7279_v4 = vpop.xlane.xlu2 %7278 }
 0x66f   : > { %v7280_v12 = vadd.f32 1e-12, %v7279_v4 }
 0x671   : > { %11572 = vrsqrt.f32 %v7280_v12  ;;  %vm7287_vm9 = vweird.f32 %v7280_v12 }
 0x677   : > { %v11573_v56 = vpop.eup %11572 }
 0x678   : > { %v7282_v46 = vmul.f32 %v11573_v56, %v7280_v12  ;;  %vm7288_vm8 = vweird.f32 %v11573_v56 }
 0x679   : > { %vm7289_vm10 = vmor %vm7287_vm9, %vm7288_vm8 }
 0x67a   : > { %v7283_v60 = vmul.f32 %v11573_v56, %v7282_v46 }
 0x67c   : > { %v7284_v59 = vmul.f32 0.5, %v7283_v60 }
 0x67e   : > { %v7285_v33 = vsub.f32 1.5, %v7284_v59 }
 0x680   : > { %v7286_v55 = vmul.f32 %v11573_v56, %v7285_v33 }
 0x682   : > { %v7290_v5 = vsel %vm7289_vm10, %v11573_v56, %v7286_v55 }
 0x683   : > { %v7291_v31 = vmul.f32 %v7290_v5, %v7272_v23 }
 0x685   : > { %7292 = vst.msk [vmem:[%s558_s20] sm:$0x1] %vm7276_vm7, %v7291_v31 }
 0x686   : > { %11887 = shalt.err (!%p11884_p8)
}
 0x687   : > { %11436 = dma.vmem_to_hbm [thread:$0]  (%p12072_p5), %s7305_s0, 16, %s7307_s5, %s7294_s29  }
 0x688 PF: > { %p11493_p9 = scmp.ge.s32.totalorder %s11946_s24, 2  ;;  %s7318_s14 = sand.u32 1, %s11934_s21  }
 0x689   : > { %s7319_s28 = scalar_lea.sflag [#allocation6], %s7318_s14 }
 0x68a   : > { %p11470_p10 = pnand %p11493_p9, %p12076_p6 }
 0x68c   : > { %p11471_p11 = pneg %p11470_p10 }
 0x68e   : > { %11929 = dma.done.wait (%p11471_p11), %s7319_s28, 16  }
 0x68f   : > { %11931 = vsyncadd (%p11471_p11), %s7319_s28, 4294967280  ;;  %s12935_s24 = sld [smem:[#allocation30_spill]]  ;;  %s12938_s21 = smov %s11938_s22 }
 0x690   : > { %s12936_s23 = sld [smem:[#allocation29_spill]] }
 0x691   : > { %s12937_s17 = sld [smem:[#allocation31_spill]] }
 0x695   : > { %p28_p12 = scmp.ge.s32.totalorder %s12935_s24, 4  }
 0x696   : > { %s12939_s22 = smov %s12936_s23 }
 0x697   : > { %s12940_s23 = smov %s12937_s17  ;;  %30 = sbr.rel (!%p28_p12) target bundleno = 15 (0xf), region = 156 }
 0x69c   :  { %7324 = vsyncpa [#allocation5], 1 }
 0x69d   :  { %7326 = vsyncpa [#allocation5 + $0x1], 1 }
 0x69e   :  { %7327 = vsyncpa [#allocation10], 1 }
 0x69f   :  { %7328 = vsyncpa [#allocation13], 1 }
 0x6a0   :  { %7329 = vsyncpa [#allocation16], 1 }
 0x6a1   :  { %7330 = vsyncpa [#allocation19], 1 }
 0x6a2   :  { %7331 = vsyncpa [#allocation6], 1 }
 0x6a3   :  { %7333 = vsyncpa [#allocation6 + $0x1], 1 }
 0x6a4   :  { %7334 = vsyncpa [#allocation7], 1 }
 0x6a5   :  { %7336 = vsyncpa [#allocation7 + $0x1], 1 }

</bundles_post_ra>
